<compile_context>
chip_gen: v7x
topology: tpu7x:2x2x1
jax: 0.10.0
libtpu: 0.0.40
codegen_flags: <defaults>
</compile_context>

<pallas_src>
import jax
import jax.numpy as jnp
from jax.experimental import pallas as pl
from jax.experimental.pallas import tpu as pltpu


def _sign(v):
    # matches torch.sign (sign(0) == 0); explicit selects lower cleanly on Mosaic
    return jnp.where(v > 0.0, 1.0, jnp.where(v < 0.0, -1.0, 0.0)).astype(v.dtype)


def _xnor_block_kernel(x_ref, s1_ref, b1_ref, w1_ref, s2_ref, b2_ref, w2_ref,
                       o_ref, pad3_ref, pad1_ref, col_ref):
    H, W, C = x_ref.shape
    Cout = w1_ref.shape[-1]
    f32 = jnp.float32

    # ---- zero only the 1-pixel halo border of the padded scratches ----
    # (interiors are fully overwritten before every use; interior writes never touch
    #  the border, so the zero padding stays valid for both convs and both box means)
    pad3_ref[0:1, :, :] = jnp.zeros((1, W + 2, C), f32)
    pad3_ref[H + 1:H + 2, :, :] = jnp.zeros((1, W + 2, C), f32)
    pad3_ref[:, 0:1, :] = jnp.zeros((H + 2, 1, C), f32)
    pad3_ref[:, W + 1:W + 2, :] = jnp.zeros((H + 2, 1, C), f32)
    pad1_ref[0:1, :, :] = jnp.zeros((1, W + 2, 1), f32)
    pad1_ref[H + 1:H + 2, :, :] = jnp.zeros((1, W + 2, 1), f32)
    pad1_ref[:, 0:1, :] = jnp.zeros((H + 2, 1, 1), f32)
    pad1_ref[:, W + 1:W + 2, :] = jnp.zeros((H + 2, 1, 1), f32)

    def box_mean_3x3(cm):
        """cm: (H, W, 1) channel-mean -> zero-padded 3x3 box mean (separable)."""
        pad1_ref[1:H + 1, 1:W + 1, :] = cm
        row = (pad1_ref[:, 0:W, :] + pad1_ref[:, 1:W + 1, :]
               + pad1_ref[:, 2:W + 2, :])                                # (H+2, W, 1)
        return (row[0:H] + row[1:H + 1] + row[2:H + 2]) * (1.0 / 9.0)    # (H, W, 1)

    def conv3x3(v, w_flat_ref):
        """v: (H, W, C) -> (H, W, Cout); pad=1, stride=1, single im2col matmul."""
        pad3_ref[1:H + 1, 1:W + 1, :] = v
        for j in range(9):                          # 9 tap copies into one buffer
            dy, dx = j // 3, j % 3
            col_ref[:, :, j * C:(j + 1) * C] = pad3_ref[dy:dy + H, dx:dx + W, :]
        patches = col_ref[...].reshape(H * W, 9 * C)   # leading-dim collapse (layout free)
        out = jnp.dot(patches, w_flat_ref[...], preferred_element_type=f32)
        return out.reshape(H, W, Cout)                 # leading-dim split (layout free)

    # --- bn1 (eval-mode, folded to scale/bias) ---
    xb = x_ref[...] * s1_ref[...] + b1_ref[...]
    residual = xb

    # --- k_1 = conv(channel_mean, ones(3,3)/9, pad=1), computed on 1 channel ---
    k1 = box_mean_3x3(jnp.mean(xb, axis=-1, keepdims=True))

    # --- binary activation 1 + binary conv 1 * k_1 + relu ---
    x1 = jnp.maximum(conv3x3(_sign(xb), w1_ref) * k1, 0.0)

    # --- bn2 + residual (stride=1 => no downsample) ---
    y = x1 * s2_ref[...] + b2_ref[...] + residual

    # --- k_2 from residual-added y ---
    k2 = box_mean_3x3(jnp.mean(y, axis=-1, keepdims=True))

    # --- binary activation 2 (applied to x1, as in the reference) + conv2 * k_2 + relu ---
    y2 = jnp.maximum(conv3x3(_sign(x1), w2_ref) * k2, 0.0)

    o_ref[...] = y2.astype(o_ref.dtype)


def xnor_basic_block(x_nhwc, s1, b1, w1_hwio, s2, b2, w2_hwio,
                     *, vmem_limit_bytes=32 * 1024 * 1024):
    N, H, W, C = x_nhwc.shape
    assert w1_hwio.shape == (3, 3, C, C) and w2_hwio.shape == (3, 3, C, C)
    Cout = C

    # HWIO (3,3,C,Cout) -> (9*C, Cout); row order (dy, dx, c) matches the im2col layout.
    w1f = w1_hwio.reshape(9 * C, Cout).astype(jnp.float32)
    w2f = w2_hwio.reshape(9 * Cout, Cout).astype(jnp.float32)
    s1 = s1.reshape(1, 1, C).astype(jnp.float32)
    b1 = b1.reshape(1, 1, C).astype(jnp.float32)
    s2 = s2.reshape(1, 1, C).astype(jnp.float32)
    b2 = b2.reshape(1, 1, C).astype(jnp.float32)

    flops = 2 * 2 * N * H * W * (9 * C) * Cout          # two im2col matmuls
    bytes_accessed = 4 * (x_nhwc.size + N * H * W * Cout + w1f.size + w2f.size
                          + s1.size + b1.size + s2.size + b2.size)

    grid_spec = pltpu.PrefetchScalarGridSpec(
        num_scalar_prefetch=0,
        grid=(N,),                                       # one image per grid step
        in_specs=[
            pl.BlockSpec((None, H, W, C), lambda n: (n, 0, 0, 0)),   # x (batch squeezed)
            pl.BlockSpec((1, 1, C), lambda n: (0, 0, 0)),            # bn1 scale
            pl.BlockSpec((1, 1, C), lambda n: (0, 0, 0)),            # bn1 bias
            pl.BlockSpec((9 * C, Cout), lambda n: (0, 0)),           # w1 (9C, Cout)
            pl.BlockSpec((1, 1, C), lambda n: (0, 0, 0)),            # bn2 scale
            pl.BlockSpec((1, 1, C), lambda n: (0, 0, 0)),            # bn2 bias
            pl.BlockSpec((9 * Cout, Cout), lambda n: (0, 0)),        # w2 (9C, Cout)
        ],
        out_specs=pl.BlockSpec((None, H, W, Cout), lambda n: (n, 0, 0, 0)),
        scratch_shapes=[
            pltpu.VMEM((H + 2, W + 2, C), jnp.float32),    # conv halo scratch
            pltpu.VMEM((H + 2, W + 2, 1), jnp.float32),    # single-channel box-mean pad
            pltpu.VMEM((H, W, 9 * C), jnp.float32),        # im2col buffer
        ],
    )

    return pl.pallas_call(
        _xnor_block_kernel,
        out_shape=jax.ShapeDtypeStruct((N, H, W, Cout), jnp.float32),
        grid_spec=grid_spec,
        compiler_params=pltpu.CompilerParams(
            dimension_semantics=("parallel",),
            vmem_limit_bytes=vmem_limit_bytes,
        ),
        cost_estimate=pl.CostEstimate(
            flops=flops, transcendentals=0, bytes_accessed=bytes_accessed),
    )(x_nhwc, s1, b1, w1f, s2, b2, w2f)


# ---------------- pure-JAX reference (for verification) ----------------
def _ref_block(x_nhwc, s1, b1, w1, s2, b2, w2):
    C = x_nhwc.shape[-1]
    s1 = s1.reshape(1, 1, 1, C); b1 = b1.reshape(1, 1, 1, C)
    s2 = s2.reshape(1, 1, 1, C); b2 = b2.reshape(1, 1, 1, C)

    def conv(v, w):
        return jax.lax.conv_general_dilated(
            v, w, window_strides=(1, 1), padding=((1, 1), (1, 1)),
            dimension_numbers=('NHWC', 'HWIO', 'NHWC'))
    kw = jnp.full((3, 3, 1, 1), 1.0 / 9.0, jnp.float32)
    xb = x_nhwc * s1 + b1
    residual = xb
    k1 = conv(jnp.mean(xb, axis=-1, keepdims=True), kw)
    x1 = jnp.maximum(conv(jnp.sign(xb), w1) * k1, 0.0)
    y = x1 * s2 + b2 + residual
    k2 = conv(jnp.mean(y, axis=-1, keepdims=True), kw)
    return jnp.maximum(conv(jnp.sign(x1), w2) * k2, 0.0)


if __name__ == "__main__":
    N, C, H, W = 2, 4, 16, 16      # inplanes = planes = 4, stride = 1
    eps = 1e-5
    ks = jax.random.split(jax.random.PRNGKey(0), 11)

    # module input (torch NCHW convention)
    x_nchw = jax.random.normal(ks[0], (N, C, H, W), jnp.float32)

    # bn1 / bn2 parameters (deterministic, eval-mode running stats)
    gamma1 = 1.0 + 0.1 * jax.random.normal(ks[1], (C,), jnp.float32)
    beta1 = 0.1 * jax.random.normal(ks[2], (C,), jnp.float32)
    rmean1 = 0.1 * jax.random.normal(ks[3], (C,), jnp.float32)
    rvar1 = jax.nn.softplus(jax.random.normal(ks[4], (C,), jnp.float32)) + 0.5
    gamma2 = 1.0 + 0.1 * jax.random.normal(ks[5], (C,), jnp.float32)
    beta2 = 0.1 * jax.random.normal(ks[6], (C,), jnp.float32)
    rmean2 = 0.1 * jax.random.normal(ks[7], (C,), jnp.float32)
    rvar2 = jax.nn.softplus(jax.random.normal(ks[8], (C,), jnp.float32)) + 0.5

    # conv weights (torch OIHW) -> HWIO
    w1_oihw = 0.2 * jax.random.normal(ks[9], (C, C, 3, 3), jnp.float32)
    w2_oihw = 0.2 * jax.random.normal(ks[10], (C, C, 3, 3), jnp.float32)
    w1 = jnp.transpose(w1_oihw, (2, 3, 1, 0))
    w2 = jnp.transpose(w2_oihw, (2, 3, 1, 0))

    # fold BN (eval mode) into per-channel scale/bias
    s1 = gamma1 / jnp.sqrt(rvar1 + eps)
    b1 = beta1 - rmean1 * s1
    s2 = gamma2 / jnp.sqrt(rvar2 + eps)
    b2 = beta2 - rmean2 * s2

    x_nhwc = jnp.transpose(x_nchw, (0, 2, 3, 1))

    out = xnor_basic_block(x_nhwc, s1, b1, w1, s2, b2, w2)
    jax.block_until_ready(out)

    ref = _ref_block(x_nhwc, s1, b1, w1, s2, b2, w2)
    assert out.shape == (N, H, W, C)
    assert jnp.allclose(out, ref, atol=1e-4, rtol=1e-4), float(jnp.max(jnp.abs(out - ref)))

    print("KERNEL_OK")
</pallas_src>

<mosaic_0001>
module attributes {stable_mosaic.version = 11 : i64} {
  func.func @_xnor_block_kernel(%arg0: i32, %arg1: memref<1x16x16x4xf32, #tpu.memory_space<vmem>>, %arg2: memref<1x1x4xf32, #tpu.memory_space<vmem>>, %arg3: memref<1x1x4xf32, #tpu.memory_space<vmem>>, %arg4: memref<36x4xf32, #tpu.memory_space<vmem>>, %arg5: memref<1x1x4xf32, #tpu.memory_space<vmem>>, %arg6: memref<1x1x4xf32, #tpu.memory_space<vmem>>, %arg7: memref<36x4xf32, #tpu.memory_space<vmem>>, %arg8: memref<1x16x16x4xf32, #tpu.memory_space<vmem>>, %arg9: memref<18x18x4xf32, #tpu.memory_space<vmem>>, %arg10: memref<18x18x1xf32, #tpu.memory_space<vmem>>, %arg11: memref<16x16x36xf32, #tpu.memory_space<vmem>>) attributes {dimension_semantics = [#tpu.dimension_semantics<parallel>], iteration_bounds = array<i64: 2>, scalar_prefetch = 0 : i64, scratch_operands = 3 : i64, tpu.core_type = #tpu.core_type<tc>, window_params = [{transform_indices = @transform_0, window_bounds = array<i64: 1, 16, 16, 4>}, {pipeline_mode = #tpu.pipeline_mode<synchronous>, transform_indices = @transform_1, window_bounds = array<i64: 1, 1, 4>}, {pipeline_mode = #tpu.pipeline_mode<synchronous>, transform_indices = @transform_2, window_bounds = array<i64: 1, 1, 4>}, {pipeline_mode = #tpu.pipeline_mode<synchronous>, transform_indices = @transform_3, window_bounds = array<i64: 36, 4>}, {pipeline_mode = #tpu.pipeline_mode<synchronous>, transform_indices = @transform_4, window_bounds = array<i64: 1, 1, 4>}, {pipeline_mode = #tpu.pipeline_mode<synchronous>, transform_indices = @transform_5, window_bounds = array<i64: 1, 1, 4>}, {pipeline_mode = #tpu.pipeline_mode<synchronous>, transform_indices = @transform_6, window_bounds = array<i64: 36, 4>}, {transform_indices = @transform_7, window_bounds = array<i64: 1, 16, 16, 4>}]} {
    %cst = arith.constant 0.000000e+00 : f32
    %0 = vector.broadcast %cst : f32 to vector<1x18x4xf32>
    %c0 = arith.constant 0 : index
    %c0_0 = arith.constant 0 : index
    %c0_1 = arith.constant 0 : index
    %1 = vector.load %arg9[%c0, %c0_0, %c0_1] : memref<18x18x4xf32, #tpu.memory_space<vmem>>, vector<1x18x4xf32>
    tpu.vector_store %arg9[%c0, %c0_0, %c0_1], %0 {strides = array<i32>} : memref<18x18x4xf32, #tpu.memory_space<vmem>>, vector<1x18x4xf32>,
    %cst_2 = arith.constant 0.000000e+00 : f32
    %2 = vector.broadcast %cst_2 : f32 to vector<1x18x4xf32>
    %c17 = arith.constant 17 : index
    %c0_3 = arith.constant 0 : index
    %c0_4 = arith.constant 0 : index
    %3 = vector.load %arg9[%c17, %c0_3, %c0_4] : memref<18x18x4xf32, #tpu.memory_space<vmem>>, vector<1x18x4xf32>
    tpu.vector_store %arg9[%c17, %c0_3, %c0_4], %2 {strides = array<i32>} : memref<18x18x4xf32, #tpu.memory_space<vmem>>, vector<1x18x4xf32>,
    %cst_5 = arith.constant 0.000000e+00 : f32
    %4 = vector.broadcast %cst_5 : f32 to vector<18x1x4xf32>
    %c0_6 = arith.constant 0 : index
    %c0_7 = arith.constant 0 : index
    %c0_8 = arith.constant 0 : index
    %5 = vector.load %arg9[%c0_6, %c0_7, %c0_8] : memref<18x18x4xf32, #tpu.memory_space<vmem>>, vector<18x1x4xf32>
    tpu.vector_store %arg9[%c0_6, %c0_7, %c0_8], %4 {strides = array<i32>} : memref<18x18x4xf32, #tpu.memory_space<vmem>>, vector<18x1x4xf32>,
    %cst_9 = arith.constant 0.000000e+00 : f32
    %6 = vector.broadcast %cst_9 : f32 to vector<18x1x4xf32>
    %c0_10 = arith.constant 0 : index
    %c17_11 = arith.constant 17 : index
    %c0_12 = arith.constant 0 : index
    %7 = vector.load %arg9[%c0_10, %c17_11, %c0_12] : memref<18x18x4xf32, #tpu.memory_space<vmem>>, vector<18x1x4xf32>
    tpu.vector_store %arg9[%c0_10, %c17_11, %c0_12], %6 {strides = array<i32>} : memref<18x18x4xf32, #tpu.memory_space<vmem>>, vector<18x1x4xf32>,
    %cst_13 = arith.constant 0.000000e+00 : f32
    %8 = vector.broadcast %cst_13 : f32 to vector<1x18x1xf32>
    %c0_14 = arith.constant 0 : index
    %c0_15 = arith.constant 0 : index
    %c0_16 = arith.constant 0 : index
    %9 = vector.load %arg10[%c0_14, %c0_15, %c0_16] : memref<18x18x1xf32, #tpu.memory_space<vmem>>, vector<1x18x1xf32>
    tpu.vector_store %arg10[%c0_14, %c0_15, %c0_16], %8 {strides = array<i32>} : memref<18x18x1xf32, #tpu.memory_space<vmem>>, vector<1x18x1xf32>,
    %cst_17 = arith.constant 0.000000e+00 : f32
    %10 = vector.broadcast %cst_17 : f32 to vector<1x18x1xf32>
    %c17_18 = arith.constant 17 : index
    %c0_19 = arith.constant 0 : index
    %c0_20 = arith.constant 0 : index
    %11 = vector.load %arg10[%c17_18, %c0_19, %c0_20] : memref<18x18x1xf32, #tpu.memory_space<vmem>>, vector<1x18x1xf32>
    tpu.vector_store %arg10[%c17_18, %c0_19, %c0_20], %10 {strides = array<i32>} : memref<18x18x1xf32, #tpu.memory_space<vmem>>, vector<1x18x1xf32>,
    %cst_21 = arith.constant 0.000000e+00 : f32
    %12 = vector.broadcast %cst_21 : f32 to vector<18x1x1xf32>
    %c0_22 = arith.constant 0 : index
    %c0_23 = arith.constant 0 : index
    %c0_24 = arith.constant 0 : index
    %13 = vector.load %arg10[%c0_22, %c0_23, %c0_24] : memref<18x18x1xf32, #tpu.memory_space<vmem>>, vector<18x1x1xf32>
    tpu.vector_store %arg10[%c0_22, %c0_23, %c0_24], %12 {strides = array<i32>} : memref<18x18x1xf32, #tpu.memory_space<vmem>>, vector<18x1x1xf32>,
    %cst_25 = arith.constant 0.000000e+00 : f32
    %14 = vector.broadcast %cst_25 : f32 to vector<18x1x1xf32>
    %c0_26 = arith.constant 0 : index
    %c17_27 = arith.constant 17 : index
    %c0_28 = arith.constant 0 : index
    %15 = vector.load %arg10[%c0_26, %c17_27, %c0_28] : memref<18x18x1xf32, #tpu.memory_space<vmem>>, vector<18x1x1xf32>
    tpu.vector_store %arg10[%c0_26, %c17_27, %c0_28], %14 {strides = array<i32>} : memref<18x18x1xf32, #tpu.memory_space<vmem>>, vector<18x1x1xf32>,
    %c0_29 = arith.constant 0 : index
    %c0_30 = arith.constant 0 : index
    %c0_31 = arith.constant 0 : index
    %c0_32 = arith.constant 0 : index
    %16 = vector.load %arg1[%c0_29, %c0_30, %c0_31, %c0_32] : memref<1x16x16x4xf32, #tpu.memory_space<vmem>>, vector<1x16x16x4xf32>
    %17 = vector.shape_cast %16 : vector<1x16x16x4xf32> to vector<16x16x4xf32>
    %c0_33 = arith.constant 0 : index
    %c0_34 = arith.constant 0 : index
    %c0_35 = arith.constant 0 : index
    %18 = vector.load %arg2[%c0_33, %c0_34, %c0_35] : memref<1x1x4xf32, #tpu.memory_space<vmem>>, vector<1x1x4xf32>
    %19 = vector.broadcast %18 : vector<1x1x4xf32> to vector<16x16x4xf32>
    %20 = arith.mulf %17, %19 : vector<16x16x4xf32>
    %c0_36 = arith.constant 0 : index
    %c0_37 = arith.constant 0 : index
    %c0_38 = arith.constant 0 : index
    %21 = vector.load %arg3[%c0_36, %c0_37, %c0_38] : memref<1x1x4xf32, #tpu.memory_space<vmem>>, vector<1x1x4xf32>
    %22 = vector.broadcast %21 : vector<1x1x4xf32> to vector<16x16x4xf32>
    %23 = arith.addf %20, %22 : vector<16x16x4xf32>
    %cst_39 = arith.constant dense<0.000000e+00> : vector<16x16xf32>
    %24 = vector.multi_reduction <add>, %23, %cst_39 [2] : vector<16x16x4xf32> to vector<16x16xf32>
    %25 = vector.shape_cast %24 : vector<16x16xf32> to vector<16x16x1xf32>
    %cst_40 = arith.constant 4.000000e+00 : f32
    %26 = vector.broadcast %cst_40 : f32 to vector<16x16x1xf32>
    %27 = arith.divf %25, %26 : vector<16x16x1xf32>
    %c1 = arith.constant 1 : index
    %c1_41 = arith.constant 1 : index
    %c0_42 = arith.constant 0 : index
    %28 = vector.load %arg10[%c1, %c1_41, %c0_42] : memref<18x18x1xf32, #tpu.memory_space<vmem>>, vector<16x16x1xf32>
    tpu.vector_store %arg10[%c1, %c1_41, %c0_42], %27 {strides = array<i32>} : memref<18x18x1xf32, #tpu.memory_space<vmem>>, vector<16x16x1xf32>,
    %c0_43 = arith.constant 0 : index
    %c0_44 = arith.constant 0 : index
    %c0_45 = arith.constant 0 : index
    %29 = vector.load %arg10[%c0_43, %c0_44, %c0_45] : memref<18x18x1xf32, #tpu.memory_space<vmem>>, vector<18x16x1xf32>
    %c0_46 = arith.constant 0 : index
    %c1_47 = arith.constant 1 : index
    %c0_48 = arith.constant 0 : index
    %30 = vector.load %arg10[%c0_46, %c1_47, %c0_48] : memref<18x18x1xf32, #tpu.memory_space<vmem>>, vector<18x16x1xf32>
    %31 = arith.addf %29, %30 : vector<18x16x1xf32>
    %c0_49 = arith.constant 0 : index
    %c2 = arith.constant 2 : index
    %c0_50 = arith.constant 0 : index
    %32 = vector.load %arg10[%c0_49, %c2, %c0_50] : memref<18x18x1xf32, #tpu.memory_space<vmem>>, vector<18x16x1xf32>
    %33 = arith.addf %31, %32 : vector<18x16x1xf32>
    %34 = vector.extract_strided_slice %33 {offsets = [0, 0, 0], sizes = [16, 16, 1], strides = [1, 1, 1]} : vector<18x16x1xf32> to vector<16x16x1xf32>
    %35 = vector.extract_strided_slice %33 {offsets = [1, 0, 0], sizes = [16, 16, 1], strides = [1, 1, 1]} : vector<18x16x1xf32> to vector<16x16x1xf32>
    %36 = arith.addf %34, %35 : vector<16x16x1xf32>
    %37 = vector.extract_strided_slice %33 {offsets = [2, 0, 0], sizes = [16, 16, 1], strides = [1, 1, 1]} : vector<18x16x1xf32> to vector<16x16x1xf32>
    %38 = arith.addf %36, %37 : vector<16x16x1xf32>
    %cst_51 = arith.constant 0.111111112 : f32
    %39 = vector.broadcast %cst_51 : f32 to vector<16x16x1xf32>
    %40 = arith.mulf %38, %39 : vector<16x16x1xf32>
    %cst_52 = arith.constant 0.000000e+00 : f32
    %41 = vector.broadcast %cst_52 : f32 to vector<16x16x4xf32>
    %42 = arith.cmpf ogt, %23, %41 : vector<16x16x4xf32>
    %cst_53 = arith.constant 0.000000e+00 : f32
    %43 = vector.broadcast %cst_53 : f32 to vector<16x16x4xf32>
    %44 = arith.cmpf olt, %23, %43 : vector<16x16x4xf32>
    %cst_54 = arith.constant -1.000000e+00 : f32
    %cst_55 = arith.constant 0.000000e+00 : f32
    %45 = vector.broadcast %cst_54 : f32 to vector<16x16x4xf32>
    %46 = vector.broadcast %cst_55 : f32 to vector<16x16x4xf32>
    %47 = arith.select %44, %45, %46 : vector<16x16x4xi1>, vector<16x16x4xf32>
    %cst_56 = arith.constant 1.000000e+00 : f32
    %48 = vector.broadcast %cst_56 : f32 to vector<16x16x4xf32>
    %49 = arith.select %42, %48, %47 : vector<16x16x4xi1>, vector<16x16x4xf32>
    %c1_57 = arith.constant 1 : index
    %c1_58 = arith.constant 1 : index
    %c0_59 = arith.constant 0 : index
    %50 = vector.load %arg9[%c1_57, %c1_58, %c0_59] : memref<18x18x4xf32, #tpu.memory_space<vmem>>, vector<16x16x4xf32>
    tpu.vector_store %arg9[%c1_57, %c1_58, %c0_59], %49 {strides = array<i32>} : memref<18x18x4xf32, #tpu.memory_space<vmem>>, vector<16x16x4xf32>,
    %c0_60 = arith.constant 0 : index
    %c0_61 = arith.constant 0 : index
    %c0_62 = arith.constant 0 : index
    %51 = vector.load %arg9[%c0_60, %c0_61, %c0_62] : memref<18x18x4xf32, #tpu.memory_space<vmem>>, vector<16x16x4xf32>
    %c0_63 = arith.constant 0 : index
    %c0_64 = arith.constant 0 : index
    %c0_65 = arith.constant 0 : index
    %52 = vector.load %arg11[%c0_63, %c0_64, %c0_65] : memref<16x16x36xf32, #tpu.memory_space<vmem>>, vector<16x16x4xf32>
    tpu.vector_store %arg11[%c0_63, %c0_64, %c0_65], %51 {strides = array<i32>} : memref<16x16x36xf32, #tpu.memory_space<vmem>>, vector<16x16x4xf32>,
    %c0_66 = arith.constant 0 : index
    %c1_67 = arith.constant 1 : index
    %c0_68 = arith.constant 0 : index
    %53 = vector.load %arg9[%c0_66, %c1_67, %c0_68] : memref<18x18x4xf32, #tpu.memory_space<vmem>>, vector<16x16x4xf32>
    %c0_69 = arith.constant 0 : index
    %c0_70 = arith.constant 0 : index
    %c4 = arith.constant 4 : index
    %54 = vector.load %arg11[%c0_69, %c0_70, %c4] : memref<16x16x36xf32, #tpu.memory_space<vmem>>, vector<16x16x4xf32>
    tpu.vector_store %arg11[%c0_69, %c0_70, %c4], %53 {strides = array<i32>} : memref<16x16x36xf32, #tpu.memory_space<vmem>>, vector<16x16x4xf32>,
    %c0_71 = arith.constant 0 : index
    %c2_72 = arith.constant 2 : index
    %c0_73 = arith.constant 0 : index
    %55 = vector.load %arg9[%c0_71, %c2_72, %c0_73] : memref<18x18x4xf32, #tpu.memory_space<vmem>>, vector<16x16x4xf32>
    %c0_74 = arith.constant 0 : index
    %c0_75 = arith.constant 0 : index
    %c8 = arith.constant 8 : index
    %56 = vector.load %arg11[%c0_74, %c0_75, %c8] : memref<16x16x36xf32, #tpu.memory_space<vmem>>, vector<16x16x4xf32>
    tpu.vector_store %arg11[%c0_74, %c0_75, %c8], %55 {strides = array<i32>} : memref<16x16x36xf32, #tpu.memory_space<vmem>>, vector<16x16x4xf32>,
    %c1_76 = arith.constant 1 : index
    %c0_77 = arith.constant 0 : index
    %c0_78 = arith.constant 0 : index
    %57 = vector.load %arg9[%c1_76, %c0_77, %c0_78] : memref<18x18x4xf32, #tpu.memory_space<vmem>>, vector<16x16x4xf32>
    %c0_79 = arith.constant 0 : index
    %c0_80 = arith.constant 0 : index
    %c12 = arith.constant 12 : index
    %58 = vector.load %arg11[%c0_79, %c0_80, %c12] : memref<16x16x36xf32, #tpu.memory_space<vmem>>, vector<16x16x4xf32>
    tpu.vector_store %arg11[%c0_79, %c0_80, %c12], %57 {strides = array<i32>} : memref<16x16x36xf32, #tpu.memory_space<vmem>>, vector<16x16x4xf32>,
    %c1_81 = arith.constant 1 : index
    %c1_82 = arith.constant 1 : index
    %c0_83 = arith.constant 0 : index
    %59 = vector.load %arg9[%c1_81, %c1_82, %c0_83] : memref<18x18x4xf32, #tpu.memory_space<vmem>>, vector<16x16x4xf32>
    %c0_84 = arith.constant 0 : index
    %c0_85 = arith.constant 0 : index
    %c16 = arith.constant 16 : index
    %60 = vector.load %arg11[%c0_84, %c0_85, %c16] : memref<16x16x36xf32, #tpu.memory_space<vmem>>, vector<16x16x4xf32>
    tpu.vector_store %arg11[%c0_84, %c0_85, %c16], %59 {strides = array<i32>} : memref<16x16x36xf32, #tpu.memory_space<vmem>>, vector<16x16x4xf32>,
    %c1_86 = arith.constant 1 : index
    %c2_87 = arith.constant 2 : index
    %c0_88 = arith.constant 0 : index
    %61 = vector.load %arg9[%c1_86, %c2_87, %c0_88] : memref<18x18x4xf32, #tpu.memory_space<vmem>>, vector<16x16x4xf32>
    %c0_89 = arith.constant 0 : index
    %c0_90 = arith.constant 0 : index
    %c20 = arith.constant 20 : index
    %62 = vector.load %arg11[%c0_89, %c0_90, %c20] : memref<16x16x36xf32, #tpu.memory_space<vmem>>, vector<16x16x4xf32>
    tpu.vector_store %arg11[%c0_89, %c0_90, %c20], %61 {strides = array<i32>} : memref<16x16x36xf32, #tpu.memory_space<vmem>>, vector<16x16x4xf32>,
    %c2_91 = arith.constant 2 : index
    %c0_92 = arith.constant 0 : index
    %c0_93 = arith.constant 0 : index
    %63 = vector.load %arg9[%c2_91, %c0_92, %c0_93] : memref<18x18x4xf32, #tpu.memory_space<vmem>>, vector<16x16x4xf32>
    %c0_94 = arith.constant 0 : index
    %c0_95 = arith.constant 0 : index
    %c24 = arith.constant 24 : index
    %64 = vector.load %arg11[%c0_94, %c0_95, %c24] : memref<16x16x36xf32, #tpu.memory_space<vmem>>, vector<16x16x4xf32>
    tpu.vector_store %arg11[%c0_94, %c0_95, %c24], %63 {strides = array<i32>} : memref<16x16x36xf32, #tpu.memory_space<vmem>>, vector<16x16x4xf32>,
    %c2_96 = arith.constant 2 : index
    %c1_97 = arith.constant 1 : index
    %c0_98 = arith.constant 0 : index
    %65 = vector.load %arg9[%c2_96, %c1_97, %c0_98] : memref<18x18x4xf32, #tpu.memory_space<vmem>>, vector<16x16x4xf32>
    %c0_99 = arith.constant 0 : index
    %c0_100 = arith.constant 0 : index
    %c28 = arith.constant 28 : index
    %66 = vector.load %arg11[%c0_99, %c0_100, %c28] : memref<16x16x36xf32, #tpu.memory_space<vmem>>, vector<16x16x4xf32>
    tpu.vector_store %arg11[%c0_99, %c0_100, %c28], %65 {strides = array<i32>} : memref<16x16x36xf32, #tpu.memory_space<vmem>>, vector<16x16x4xf32>,
    %c2_101 = arith.constant 2 : index
    %c2_102 = arith.constant 2 : index
    %c0_103 = arith.constant 0 : index
    %67 = vector.load %arg9[%c2_101, %c2_102, %c0_103] : memref<18x18x4xf32, #tpu.memory_space<vmem>>, vector<16x16x4xf32>
    %c0_104 = arith.constant 0 : index
    %c0_105 = arith.constant 0 : index
    %c32 = arith.constant 32 : index
    %68 = vector.load %arg11[%c0_104, %c0_105, %c32] : memref<16x16x36xf32, #tpu.memory_space<vmem>>, vector<16x16x4xf32>
    tpu.vector_store %arg11[%c0_104, %c0_105, %c32], %67 {strides = array<i32>} : memref<16x16x36xf32, #tpu.memory_space<vmem>>, vector<16x16x4xf32>,
    %c0_106 = arith.constant 0 : index
    %c0_107 = arith.constant 0 : index
    %c0_108 = arith.constant 0 : index
    %69 = vector.load %arg11[%c0_106, %c0_107, %c0_108] : memref<16x16x36xf32, #tpu.memory_space<vmem>>, vector<16x16x36xf32>
    %70 = vector.shape_cast %69 : vector<16x16x36xf32> to vector<256x36xf32>
    %c0_109 = arith.constant 0 : index
    %c0_110 = arith.constant 0 : index
    %71 = vector.load %arg4[%c0_109, %c0_110] : memref<36x4xf32, #tpu.memory_space<vmem>>, vector<36x4xf32>
    %cst_111 = arith.constant dense<0.000000e+00> : vector<256x4xf32>
    %72 = tpu.matmul %70, %71, %cst_111 {dimension_numbers = #tpu.dot_dimension_numbers<[1], [0], [0], [1], [0, 0, 1, 1], [], []>} : vector<256x36xf32>, vector<36x4xf32>, vector<256x4xf32> -> vector<256x4xf32>
    %73 = vector.shape_cast %72 : vector<256x4xf32> to vector<16x16x4xf32>
    %74 = vector.broadcast %40 : vector<16x16x1xf32> to vector<16x16x4xf32>
    %75 = arith.mulf %73, %74 : vector<16x16x4xf32>
    %cst_112 = arith.constant 0.000000e+00 : f32
    %76 = vector.broadcast %cst_112 : f32 to vector<16x16x4xf32>
    %77 = arith.maximumf %75, %76 : vector<16x16x4xf32>
    %c0_113 = arith.constant 0 : index
    %c0_114 = arith.constant 0 : index
    %c0_115 = arith.constant 0 : index
    %78 = vector.load %arg5[%c0_113, %c0_114, %c0_115] : memref<1x1x4xf32, #tpu.memory_space<vmem>>, vector<1x1x4xf32>
    %79 = vector.broadcast %78 : vector<1x1x4xf32> to vector<16x16x4xf32>
    %80 = arith.mulf %77, %79 : vector<16x16x4xf32>
    %c0_116 = arith.constant 0 : index
    %c0_117 = arith.constant 0 : index
    %c0_118 = arith.constant 0 : index
    %81 = vector.load %arg6[%c0_116, %c0_117, %c0_118] : memref<1x1x4xf32, #tpu.memory_space<vmem>>, vector<1x1x4xf32>
    %82 = vector.broadcast %81 : vector<1x1x4xf32> to vector<16x16x4xf32>
    %83 = arith.addf %80, %82 : vector<16x16x4xf32>
    %84 = arith.addf %83, %23 : vector<16x16x4xf32>
    %cst_119 = arith.constant dense<0.000000e+00> : vector<16x16xf32>
    %85 = vector.multi_reduction <add>, %84, %cst_119 [2] : vector<16x16x4xf32> to vector<16x16xf32>
    %86 = vector.shape_cast %85 : vector<16x16xf32> to vector<16x16x1xf32>
    %cst_120 = arith.constant 4.000000e+00 : f32
    %87 = vector.broadcast %cst_120 : f32 to vector<16x16x1xf32>
    %88 = arith.divf %86, %87 : vector<16x16x1xf32>
    %c1_121 = arith.constant 1 : index
    %c1_122 = arith.constant 1 : index
    %c0_123 = arith.constant 0 : index
    %89 = vector.load %arg10[%c1_121, %c1_122, %c0_123] : memref<18x18x1xf32, #tpu.memory_space<vmem>>, vector<16x16x1xf32>
    tpu.vector_store %arg10[%c1_121, %c1_122, %c0_123], %88 {strides = array<i32>} : memref<18x18x1xf32, #tpu.memory_space<vmem>>, vector<16x16x1xf32>,
    %c0_124 = arith.constant 0 : index
    %c0_125 = arith.constant 0 : index
    %c0_126 = arith.constant 0 : index
    %90 = vector.load %arg10[%c0_124, %c0_125, %c0_126] : memref<18x18x1xf32, #tpu.memory_space<vmem>>, vector<18x16x1xf32>
    %c0_127 = arith.constant 0 : index
    %c1_128 = arith.constant 1 : index
    %c0_129 = arith.constant 0 : index
    %91 = vector.load %arg10[%c0_127, %c1_128, %c0_129] : memref<18x18x1xf32, #tpu.memory_space<vmem>>, vector<18x16x1xf32>
    %92 = arith.addf %90, %91 : vector<18x16x1xf32>
    %c0_130 = arith.constant 0 : index
    %c2_131 = arith.constant 2 : index
    %c0_132 = arith.constant 0 : index
    %93 = vector.load %arg10[%c0_130, %c2_131, %c0_132] : memref<18x18x1xf32, #tpu.memory_space<vmem>>, vector<18x16x1xf32>
    %94 = arith.addf %92, %93 : vector<18x16x1xf32>
    %95 = vector.extract_strided_slice %94 {offsets = [0, 0, 0], sizes = [16, 16, 1], strides = [1, 1, 1]} : vector<18x16x1xf32> to vector<16x16x1xf32>
    %96 = vector.extract_strided_slice %94 {offsets = [1, 0, 0], sizes = [16, 16, 1], strides = [1, 1, 1]} : vector<18x16x1xf32> to vector<16x16x1xf32>
    %97 = arith.addf %95, %96 : vector<16x16x1xf32>
    %98 = vector.extract_strided_slice %94 {offsets = [2, 0, 0], sizes = [16, 16, 1], strides = [1, 1, 1]} : vector<18x16x1xf32> to vector<16x16x1xf32>
    %99 = arith.addf %97, %98 : vector<16x16x1xf32>
    %cst_133 = arith.constant 0.111111112 : f32
    %100 = vector.broadcast %cst_133 : f32 to vector<16x16x1xf32>
    %101 = arith.mulf %99, %100 : vector<16x16x1xf32>
    %cst_134 = arith.constant 0.000000e+00 : f32
    %102 = vector.broadcast %cst_134 : f32 to vector<16x16x4xf32>
    %103 = arith.cmpf ogt, %77, %102 : vector<16x16x4xf32>
    %cst_135 = arith.constant 0.000000e+00 : f32
    %104 = vector.broadcast %cst_135 : f32 to vector<16x16x4xf32>
    %105 = arith.cmpf olt, %77, %104 : vector<16x16x4xf32>
    %cst_136 = arith.constant -1.000000e+00 : f32
    %cst_137 = arith.constant 0.000000e+00 : f32
    %106 = vector.broadcast %cst_136 : f32 to vector<16x16x4xf32>
    %107 = vector.broadcast %cst_137 : f32 to vector<16x16x4xf32>
    %108 = arith.select %105, %106, %107 : vector<16x16x4xi1>, vector<16x16x4xf32>
    %cst_138 = arith.constant 1.000000e+00 : f32
    %109 = vector.broadcast %cst_138 : f32 to vector<16x16x4xf32>
    %110 = arith.select %103, %109, %108 : vector<16x16x4xi1>, vector<16x16x4xf32>
    %c1_139 = arith.constant 1 : index
    %c1_140 = arith.constant 1 : index
    %c0_141 = arith.constant 0 : index
    %111 = vector.load %arg9[%c1_139, %c1_140, %c0_141] : memref<18x18x4xf32, #tpu.memory_space<vmem>>, vector<16x16x4xf32>
    tpu.vector_store %arg9[%c1_139, %c1_140, %c0_141], %110 {strides = array<i32>} : memref<18x18x4xf32, #tpu.memory_space<vmem>>, vector<16x16x4xf32>,
    %c0_142 = arith.constant 0 : index
    %c0_143 = arith.constant 0 : index
    %c0_144 = arith.constant 0 : index
    %112 = vector.load %arg9[%c0_142, %c0_143, %c0_144] : memref<18x18x4xf32, #tpu.memory_space<vmem>>, vector<16x16x4xf32>
    %c0_145 = arith.constant 0 : index
    %c0_146 = arith.constant 0 : index
    %c0_147 = arith.constant 0 : index
    %113 = vector.load %arg11[%c0_145, %c0_146, %c0_147] : memref<16x16x36xf32, #tpu.memory_space<vmem>>, vector<16x16x4xf32>
    tpu.vector_store %arg11[%c0_145, %c0_146, %c0_147], %112 {strides = array<i32>} : memref<16x16x36xf32, #tpu.memory_space<vmem>>, vector<16x16x4xf32>,
    %c0_148 = arith.constant 0 : index
    %c1_149 = arith.constant 1 : index
    %c0_150 = arith.constant 0 : index
    %114 = vector.load %arg9[%c0_148, %c1_149, %c0_150] : memref<18x18x4xf32, #tpu.memory_space<vmem>>, vector<16x16x4xf32>
    %c0_151 = arith.constant 0 : index
    %c0_152 = arith.constant 0 : index
    %c4_153 = arith.constant 4 : index
    %115 = vector.load %arg11[%c0_151, %c0_152, %c4_153] : memref<16x16x36xf32, #tpu.memory_space<vmem>>, vector<16x16x4xf32>
    tpu.vector_store %arg11[%c0_151, %c0_152, %c4_153], %114 {strides = array<i32>} : memref<16x16x36xf32, #tpu.memory_space<vmem>>, vector<16x16x4xf32>,
    %c0_154 = arith.constant 0 : index
    %c2_155 = arith.constant 2 : index
    %c0_156 = arith.constant 0 : index
    %116 = vector.load %arg9[%c0_154, %c2_155, %c0_156] : memref<18x18x4xf32, #tpu.memory_space<vmem>>, vector<16x16x4xf32>
    %c0_157 = arith.constant 0 : index
    %c0_158 = arith.constant 0 : index
    %c8_159 = arith.constant 8 : index
    %117 = vector.load %arg11[%c0_157, %c0_158, %c8_159] : memref<16x16x36xf32, #tpu.memory_space<vmem>>, vector<16x16x4xf32>
    tpu.vector_store %arg11[%c0_157, %c0_158, %c8_159], %116 {strides = array<i32>} : memref<16x16x36xf32, #tpu.memory_space<vmem>>, vector<16x16x4xf32>,
    %c1_160 = arith.constant 1 : index
    %c0_161 = arith.constant 0 : index
    %c0_162 = arith.constant 0 : index
    %118 = vector.load %arg9[%c1_160, %c0_161, %c0_162] : memref<18x18x4xf32, #tpu.memory_space<vmem>>, vector<16x16x4xf32>
    %c0_163 = arith.constant 0 : index
    %c0_164 = arith.constant 0 : index
    %c12_165 = arith.constant 12 : index
    %119 = vector.load %arg11[%c0_163, %c0_164, %c12_165] : memref<16x16x36xf32, #tpu.memory_space<vmem>>, vector<16x16x4xf32>
    tpu.vector_store %arg11[%c0_163, %c0_164, %c12_165], %118 {strides = array<i32>} : memref<16x16x36xf32, #tpu.memory_space<vmem>>, vector<16x16x4xf32>,
    %c1_166 = arith.constant 1 : index
    %c1_167 = arith.constant 1 : index
    %c0_168 = arith.constant 0 : index
    %120 = vector.load %arg9[%c1_166, %c1_167, %c0_168] : memref<18x18x4xf32, #tpu.memory_space<vmem>>, vector<16x16x4xf32>
    %c0_169 = arith.constant 0 : index
    %c0_170 = arith.constant 0 : index
    %c16_171 = arith.constant 16 : index
    %121 = vector.load %arg11[%c0_169, %c0_170, %c16_171] : memref<16x16x36xf32, #tpu.memory_space<vmem>>, vector<16x16x4xf32>
    tpu.vector_store %arg11[%c0_169, %c0_170, %c16_171], %120 {strides = array<i32>} : memref<16x16x36xf32, #tpu.memory_space<vmem>>, vector<16x16x4xf32>,
    %c1_172 = arith.constant 1 : index
    %c2_173 = arith.constant 2 : index
    %c0_174 = arith.constant 0 : index
    %122 = vector.load %arg9[%c1_172, %c2_173, %c0_174] : memref<18x18x4xf32, #tpu.memory_space<vmem>>, vector<16x16x4xf32>
    %c0_175 = arith.constant 0 : index
    %c0_176 = arith.constant 0 : index
    %c20_177 = arith.constant 20 : index
    %123 = vector.load %arg11[%c0_175, %c0_176, %c20_177] : memref<16x16x36xf32, #tpu.memory_space<vmem>>, vector<16x16x4xf32>
    tpu.vector_store %arg11[%c0_175, %c0_176, %c20_177], %122 {strides = array<i32>} : memref<16x16x36xf32, #tpu.memory_space<vmem>>, vector<16x16x4xf32>,
    %c2_178 = arith.constant 2 : index
    %c0_179 = arith.constant 0 : index
    %c0_180 = arith.constant 0 : index
    %124 = vector.load %arg9[%c2_178, %c0_179, %c0_180] : memref<18x18x4xf32, #tpu.memory_space<vmem>>, vector<16x16x4xf32>
    %c0_181 = arith.constant 0 : index
    %c0_182 = arith.constant 0 : index
    %c24_183 = arith.constant 24 : index
    %125 = vector.load %arg11[%c0_181, %c0_182, %c24_183] : memref<16x16x36xf32, #tpu.memory_space<vmem>>, vector<16x16x4xf32>
    tpu.vector_store %arg11[%c0_181, %c0_182, %c24_183], %124 {strides = array<i32>} : memref<16x16x36xf32, #tpu.memory_space<vmem>>, vector<16x16x4xf32>,
    %c2_184 = arith.constant 2 : index
    %c1_185 = arith.constant 1 : index
    %c0_186 = arith.constant 0 : index
    %126 = vector.load %arg9[%c2_184, %c1_185, %c0_186] : memref<18x18x4xf32, #tpu.memory_space<vmem>>, vector<16x16x4xf32>
    %c0_187 = arith.constant 0 : index
    %c0_188 = arith.constant 0 : index
    %c28_189 = arith.constant 28 : index
    %127 = vector.load %arg11[%c0_187, %c0_188, %c28_189] : memref<16x16x36xf32, #tpu.memory_space<vmem>>, vector<16x16x4xf32>
    tpu.vector_store %arg11[%c0_187, %c0_188, %c28_189], %126 {strides = array<i32>} : memref<16x16x36xf32, #tpu.memory_space<vmem>>, vector<16x16x4xf32>,
    %c2_190 = arith.constant 2 : index
    %c2_191 = arith.constant 2 : index
    %c0_192 = arith.constant 0 : index
    %128 = vector.load %arg9[%c2_190, %c2_191, %c0_192] : memref<18x18x4xf32, #tpu.memory_space<vmem>>, vector<16x16x4xf32>
    %c0_193 = arith.constant 0 : index
    %c0_194 = arith.constant 0 : index
    %c32_195 = arith.constant 32 : index
    %129 = vector.load %arg11[%c0_193, %c0_194, %c32_195] : memref<16x16x36xf32, #tpu.memory_space<vmem>>, vector<16x16x4xf32>
    tpu.vector_store %arg11[%c0_193, %c0_194, %c32_195], %128 {strides = array<i32>} : memref<16x16x36xf32, #tpu.memory_space<vmem>>, vector<16x16x4xf32>,
    %c0_196 = arith.constant 0 : index
    %c0_197 = arith.constant 0 : index
    %c0_198 = arith.constant 0 : index
    %130 = vector.load %arg11[%c0_196, %c0_197, %c0_198] : memref<16x16x36xf32, #tpu.memory_space<vmem>>, vector<16x16x36xf32>
    %131 = vector.shape_cast %130 : vector<16x16x36xf32> to vector<256x36xf32>
    %c0_199 = arith.constant 0 : index
    %c0_200 = arith.constant 0 : index
    %132 = vector.load %arg7[%c0_199, %c0_200] : memref<36x4xf32, #tpu.memory_space<vmem>>, vector<36x4xf32>
    %cst_201 = arith.constant dense<0.000000e+00> : vector<256x4xf32>
    %133 = tpu.matmul %131, %132, %cst_201 {dimension_numbers = #tpu.dot_dimension_numbers<[1], [0], [0], [1], [0, 0, 1, 1], [], []>} : vector<256x36xf32>, vector<36x4xf32>, vector<256x4xf32> -> vector<256x4xf32>
    %134 = vector.shape_cast %133 : vector<256x4xf32> to vector<16x16x4xf32>
    %135 = vector.broadcast %101 : vector<16x16x1xf32> to vector<16x16x4xf32>
    %136 = arith.mulf %134, %135 : vector<16x16x4xf32>
    %cst_202 = arith.constant 0.000000e+00 : f32
    %137 = vector.broadcast %cst_202 : f32 to vector<16x16x4xf32>
    %138 = arith.maximumf %136, %137 : vector<16x16x4xf32>
    %c0_203 = arith.constant 0 : index
    %c0_204 = arith.constant 0 : index
    %c0_205 = arith.constant 0 : index
    %c0_206 = arith.constant 0 : index
    %139 = vector.load %arg8[%c0_203, %c0_204, %c0_205, %c0_206] : memref<1x16x16x4xf32, #tpu.memory_space<vmem>>, vector<1x16x16x4xf32>
    %140 = vector.shape_cast %139 : vector<1x16x16x4xf32> to vector<16x16x4xf32>
    %141 = vector.shape_cast %138 : vector<16x16x4xf32> to vector<1x16x16x4xf32>
    tpu.vector_store %arg8[%c0_203, %c0_204, %c0_205, %c0_206], %141 {strides = array<i32>} : memref<1x16x16x4xf32, #tpu.memory_space<vmem>>, vector<1x16x16x4xf32>,
    return
  }
  func.func @transform_0(%arg0: i32) -> (i32, i32, i32, i32) {
    %c0_i32 = arith.constant 0 : i32
    %c0_i32_0 = arith.constant 0 : i32
    %c0_i32_1 = arith.constant 0 : i32
    %c0_i32_2 = arith.constant 0 : i32
    return %arg0, %c0_i32, %c0_i32_0, %c0_i32_1 : i32, i32, i32, i32
  }
  func.func @transform_1(%arg0: i32) -> (i32, i32, i32) {
    %c0_i32 = arith.constant 0 : i32
    %c0_i32_0 = arith.constant 0 : i32
    %c0_i32_1 = arith.constant 0 : i32
    %c0_i32_2 = arith.constant 0 : i32
    return %c0_i32, %c0_i32_0, %c0_i32_1 : i32, i32, i32
  }
  func.func @transform_2(%arg0: i32) -> (i32, i32, i32) {
    %c0_i32 = arith.constant 0 : i32
    %c0_i32_0 = arith.constant 0 : i32
    %c0_i32_1 = arith.constant 0 : i32
    %c0_i32_2 = arith.constant 0 : i32
    return %c0_i32, %c0_i32_0, %c0_i32_1 : i32, i32, i32
  }
  func.func @transform_3(%arg0: i32) -> (i32, i32) {
    %c0_i32 = arith.constant 0 : i32
    %c0_i32_0 = arith.constant 0 : i32
    %c0_i32_1 = arith.constant 0 : i32
    return %c0_i32, %c0_i32_0 : i32, i32
  }
  func.func @transform_4(%arg0: i32) -> (i32, i32, i32) {
    %c0_i32 = arith.constant 0 : i32
    %c0_i32_0 = arith.constant 0 : i32
    %c0_i32_1 = arith.constant 0 : i32
    %c0_i32_2 = arith.constant 0 : i32
    return %c0_i32, %c0_i32_0, %c0_i32_1 : i32, i32, i32
  }
  func.func @transform_5(%arg0: i32) -> (i32, i32, i32) {
    %c0_i32 = arith.constant 0 : i32
    %c0_i32_0 = arith.constant 0 : i32
    %c0_i32_1 = arith.constant 0 : i32
    %c0_i32_2 = arith.constant 0 : i32
    return %c0_i32, %c0_i32_0, %c0_i32_1 : i32, i32, i32
  }
  func.func @transform_6(%arg0: i32) -> (i32, i32) {
    %c0_i32 = arith.constant 0 : i32
    %c0_i32_0 = arith.constant 0 : i32
    %c0_i32_1 = arith.constant 0 : i32
    return %c0_i32, %c0_i32_0 : i32, i32
  }
  func.func @transform_7(%arg0: i32) -> (i32, i32, i32, i32) {
    %c0_i32 = arith.constant 0 : i32
    %c0_i32_0 = arith.constant 0 : i32
    %c0_i32_1 = arith.constant 0 : i32
    %c0_i32_2 = arith.constant 0 : i32
    return %arg0, %c0_i32, %c0_i32_0, %c0_i32_1 : i32, i32, i32, i32
  }
}

</mosaic_0001>

<bundles_post_ra>
// kernel: tpu_custom_call.1
= control target key start
LH: loop header
LB: loop body
LE: loop exit
PB: predicated region body
PF: predicated region fallthrough
CT: control target
= control target key end

     0   :  { %s6621_s24 = smov 0   ;;  %s9574_s0 = inlined_call_operand.vmem [shape: f32[2,16,16,4], index: 0, kind: input, shape index: {}]   ;;  %s9575_s1 = inlined_call_operand.vmem [shape: f32[1,1,4], index: 1, kind: input, shape index: {}]   ;;  %s9576_s2 = inlined_call_operand.vmem [shape: f32[1,1,4], index: 2, kind: input, shape index: {}]   ;;  %s9577_s3 = inlined_call_operand.vmem [shape: f32[36,4], index: 3, kind: input, shape index: {}]   ;;  %s9578_s4 = inlined_call_operand.vmem [shape: f32[1,1,4], index: 4, kind: input, shape index: {}]   ;;  %s9579_s5 = inlined_call_operand.vmem [shape: f32[1,1,4], index: 5, kind: input, shape index: {}]   ;;  %s9580_s6 = inlined_call_operand.vmem [shape: f32[36,4], index: 6, kind: input, shape index: {}]   ;;  %s9581_s7 = inlined_call_operand.vmem [shape: f32[2,16,16,4], index: 7, kind: output, shape index: {}]  }
   0x1 LB: > { %s6254_s25 = sadd.s32 4294967295, %s6569_s24   ;;  %p6258_p0 = scmp.ge.s32.totalorder %s6569_s24, 1  ;;  %s6569_s24 = sphi %s6621_s24, %s17_s24  }
   0x2   : > { %p237_p1 = scmp.lt.s32.totalorder %s6569_s24, 3 }
   0x4   : > { %p238_p2 = pnand %p6258_p0, %p237_p1 }
   0x6   : > { %241 = sbr.rel (%p238_p2) target bundleno = 1877 (0x755), region = 48 }
   0xd   : > { %p269_p3 = scmp.lt.s32.totalorder %s6254_s25, 1  ;;  %vm279_vm0 = vcmask 31744   ;;  %vm282_vm1 = vcmask 25600   ;;  %v9582_v0 = vmov 0.0   ;;  %v6645_v1 = vld [vmem:[%s9575_s1] ss:$0 sm:$0xff] }
   0xe   : > { %280 = vst.msk [vmem:[#allocation2] sm:$0xff] %vm279_vm0, %v9582_v0  ;;  %281 = vst.msk [vmem:[#allocation2 + $0x8] sm:$0xff] %vm279_vm0, %v9582_v0  ;;  %v6657_v2 = vld [vmem:[%s9576_s2] ss:$0 sm:$0xff]  ;;  %s6572_s11 = smov 4   ;;  %s6573_s12 = smov 8  }
   0xf   : > { %285 = vst.msk [vmem:[#allocation2 + $0x198] sm:$0xff] %vm279_vm0, %v9582_v0  ;;  %286 = vst.msk [vmem:[#allocation2 + $0x1a0] sm:$0xff] %vm279_vm0, %v9582_v0  ;;  %s9912_s25 = smov (!%p269_p3, %s6254_s25), 1  ;;  %s6574_s13 = smov 12  }
  0x10   : > { %283 = vst.msk [vmem:[#allocation2 + $0x10] sm:$0x3] %vm282_vm1, %v9582_v0  ;;  %287 = vst.msk [vmem:[#allocation2 + $0x1a8] sm:$0x3] %vm282_vm1, %v9582_v0  ;;  %s6335_s26 = sshll.u32 %s9912_s25, 8  ;;  %s6575_s14 = smov 16  }
  0x11   : > { %s6652_s8 = scalar_lea.vmem %s9574_s0, %s6335_s26  ;;  %s6576_s15 = smov 20  }
  0x12   : > { %v373_v3 = vld [vmem:[%s6652_s8 + $0x10] sm:$0xff]  ;;  %v371_v4 = vld [vmem:[%s6652_s8] sm:$0xff]  ;;  %v374_v5 = vld [vmem:[%s6652_s8 + $0x18] sm:$0xff]  ;;  %s6577_s16 = smov 24   ;;  %s6579_s17 = smov 28  }
  0x13   : > { %v412_v6 = vmul.f32 %v6645_v1, %v373_v3  ;;  %v410_v7 = vmul.f32 %v6645_v1, %v371_v4  ;;  %v413_v8 = vmul.f32 %v6645_v1, %v374_v5  ;;  %v372_v9 = vld [vmem:[%s6652_s8 + $0x8] sm:$0xff]  ;;  %v375_v11 = vld [vmem:[%s6652_s8 + $0x20] sm:$0xff]  ;;  %v378_v15 = vld [vmem:[%s6652_s8 + $0x38] sm:$0xff]  ;;  %s6580_s18 = smov 32  }
  0x14   : > { %v376_v10 = vld [vmem:[%s6652_s8 + $0x28] sm:$0xff]  ;;  %v411_v12 = vmul.f32 %v6645_v1, %v372_v9  ;;  %v414_v14 = vmul.f32 %v6645_v1, %v375_v11  ;;  %v377_v16 = vld [vmem:[%s6652_s8 + $0x30] sm:$0xff]  ;;  %v417_v20 = vmul.f32 %v6645_v1, %v378_v15  ;;  %v379_v46 = vld [vmem:[%s6652_s8 + $0x40] sm:$0xff] }
  0x15   : > { %v415_v13 = vmul.f32 %v6645_v1, %v376_v10  ;;  %v6674_v17 = vadd.f32 %v6657_v2, %v412_v6  ;;  %v6677_v18 = vadd.f32 %v6657_v2, %v410_v7  ;;  %v6680_v19 = vadd.f32 %v6657_v2, %v413_v8  ;;  %v380_v36 = vld [vmem:[%s6652_s8 + $0x48] sm:$0xff]  ;;  %v382_v47 = vld [vmem:[%s6652_s8 + $0x58] sm:$0xff]  ;;  %v381_v50 = vld [vmem:[%s6652_s8 + $0x50] sm:$0xff] }
  0x16   : > { %v6684_v21 = vadd.f32 %v6657_v2, %v411_v12  ;;  %v6690_v23 = vadd.f32 %v6657_v2, %v414_v14  ;;  %v416_v24 = vmul.f32 %v6645_v1, %v377_v16  ;;  %v6727_v41 = vadd.f32 %v6657_v2, %v417_v20  ;;  %v384_v51 = vld [vmem:[%s6652_s8 + $0x68] sm:$0xff]  ;;  %v383_v10 = vld [vmem:[%s6652_s8 + $0x60] sm:$0xff]  ;;  %v386_v11 = vld [vmem:[%s6652_s8 + $0x78] sm:$0xff] }
  0x17   : > { %9675 = vst [vmem:[#allocation5_spill] sm:$0xff] %v6674_v17  ;;  %9676 = vst [vmem:[#allocation6_spill] sm:$0xff] %v6677_v18  ;;  %v6687_v22 = vadd.f32 %v6657_v2, %v415_v13  ;;  %v487_v25 = vsel %vm279_vm0, %v6674_v17, 0.0  ;;  %vm921_vm2 = vcmp.gt.f32.partialorder %v6674_v17, 0.0  ;;  %vm953_vm3 = vcmp.lt.f32.partialorder %v6674_v17, 0.0  ;;  %v385_v15 = vld [vmem:[%s6652_s8 + $0x70] sm:$0xff] }
  0x18   : > { %9677 = vst [vmem:[#allocation7_spill] sm:$0xff] %v6680_v19  ;;  %9678 = vst [vmem:[#allocation8_spill] sm:$0xff] %v6684_v21  ;;  %v481_v26 = vsel %vm279_vm0, %v6677_v18, 0.0  ;;  %v985_v27 = vsel %vm953_vm3, -1.0, %v9582_v0  ;;  %488 = vadd.xlane.f32.xlu1 %v487_v25  ;;  %vm919_vm4 = vcmp.gt.f32.partialorder %v6677_v18, 0.0  ;;  %vm951_vm5 = vcmp.lt.f32.partialorder %v6677_v18, 0.0 }
  0x19   : > { %9679 = vst [vmem:[#allocation9_spill] sm:$0xff] %v6687_v22  ;;  %9680 = vst [vmem:[#allocation10_spill] sm:$0xff] %v6690_v23  ;;  %482 = vadd.xlane.f32.xlu0 %v481_v26  ;;  %v490_v28 = vsel %vm279_vm0, %v6680_v19, 0.0  ;;  %v1017_v29 = vsel %vm921_vm2, 1.0, %v985_v27  ;;  %v983_v30 = vsel %vm951_vm5, -1.0, %v9582_v0  ;;  %vm922_vm6 = vcmp.gt.f32.partialorder %v6680_v19, 0.0 }
  0x1a   : > { %vm954_vm7 = vcmp.lt.f32.partialorder %v6680_v19, 0.0  ;;  %1050 = vst.msk [vmem:[#allocation2 + $0x31] sm:$0xff] %vm279_vm0, %v1017_v29  ;;  %v1015_v31 = vsel %vm919_vm4, 1.0, %v983_v30  ;;  %v484_v33 = vsel %vm279_vm0, %v6684_v21, 0.0  ;;  %vm920_vm8 = vcmp.gt.f32.partialorder %v6684_v21, 0.0  ;;  %9681 = vst [vmem:[#allocation11_spill] sm:$0xff] %v6727_v41 }
  0x1b   : > { %v986_v32 = vsel %vm954_vm7, -1.0, %v9582_v0  ;;  %1048 = vst.msk [vmem:[#allocation2 + $0x19] sm:$0xff] %vm279_vm0, %v1015_v31  ;;  %vm952_vm9 = vcmp.lt.f32.partialorder %v6684_v21, 0.0  ;;  %v496_v35 = vsel %vm279_vm0, %v6687_v22, 0.0  ;;  %vm924_vm10 = vcmp.gt.f32.partialorder %v6687_v22, 0.0  ;;  %v388_v16 = vld [vmem:[%s6652_s8 + $0x88] sm:$0xff] }
  0x1c   : > { %v1018_v34 = vsel %vm922_vm6, 1.0, %v986_v32  ;;  %491 = vadd.xlane.f32.xlu1 %v490_v28  ;;  %v984_v37 = vsel %vm952_vm9, -1.0, %v9582_v0  ;;  %vm956_vm11 = vcmp.lt.f32.partialorder %v6687_v22, 0.0  ;;  %v493_v38 = vsel %vm279_vm0, %v6690_v23, 0.0  ;;  %v387_v28 = vld [vmem:[%s6652_s8 + $0x80] sm:$0xff] }
  0x1d   : > { %1051 = vst.msk [vmem:[#allocation2 + $0x39] sm:$0xff] %vm279_vm0, %v1018_v34  ;;  %485 = vadd.xlane.f32.xlu0 %v484_v33  ;;  %vm923_vm12 = vcmp.gt.f32.partialorder %v6690_v23, 0.0  ;;  %v1016_v39 = vsel %vm920_vm8, 1.0, %v984_v37  ;;  %v988_v40 = vsel %vm956_vm11, -1.0, %v9582_v0  ;;  %vm955_vm13 = vcmp.lt.f32.partialorder %v6690_v23, 0.0  ;;  %v1337_v23 = vld [vmem:[#allocation2 + $0x2] sm:$0xff] }
  0x1e   : > { %1049 = vst.msk [vmem:[#allocation2 + $0x21] sm:$0xff] %vm279_vm0, %v1016_v39  ;;  %v1020_v42 = vsel %vm924_vm10, 1.0, %v988_v40  ;;  %v987_v43 = vsel %vm955_vm13, -1.0, %v9582_v0  ;;  %v6732_v44 = vadd.f32 %v6657_v2, %v416_v24  ;;  %v419_v45 = vmul.f32 %v6645_v1, %v380_v36  ;;  %v390_v36 = vld [vmem:[%s6652_s8 + $0x98] sm:$0xff] }
  0x1f   : > { %1053 = vst.msk [vmem:[#allocation2 + $0x51] sm:$0xff] %vm279_vm0, %v1020_v42  ;;  %v1019_v48 = vsel %vm923_vm12, 1.0, %v987_v43  ;;  %v502_v49 = vsel %vm279_vm0, %v6727_v41, 0.0  ;;  %vm926_vm14 = vcmp.gt.f32.partialorder %v6727_v41, 0.0  ;;  %vm958_vm15 = vcmp.lt.f32.partialorder %v6727_v41, 0.0 }
  0x20   : > { %9682 = vst [vmem:[#allocation12_spill] sm:$0xff] %v6732_v44  ;;  %497 = vadd.xlane.f32.xlu1 %v496_v35  ;;  %1052 = vst.msk [vmem:[#allocation2 + $0x49] sm:$0xff] %vm279_vm0, %v1019_v48  ;;  %v990_v52 = vsel %vm958_vm15, -1.0, %v9582_v0  ;;  %v499_v53 = vsel %vm279_vm0, %v6732_v44, 0.0  ;;  %vm925_vm1 = vcmp.gt.f32.partialorder %v6732_v44, 0.0  ;;  %vm957_vm2 = vcmp.lt.f32.partialorder %v6732_v44, 0.0 }
  0x21   : > { %494 = vadd.xlane.f32.xlu0 %v493_v38  ;;  %v1022_v54 = vsel %vm926_vm14, 1.0, %v990_v52  ;;  %v989_v55 = vsel %vm957_vm2, -1.0, %v9582_v0  ;;  %v6752_v56 = vadd.f32 %v6657_v2, %v419_v45  ;;  %v418_v57 = vmul.f32 %v6645_v1, %v379_v46  ;;  %v389_v48 = vld [vmem:[%s6652_s8 + $0x90] sm:$0xff] }
  0x22   : > { %1055 = vst.msk [vmem:[#allocation2 + $0x69] sm:$0xff] %vm279_vm0, %v1022_v54  ;;  %v1021_v58 = vsel %vm925_vm1, 1.0, %v989_v55  ;;  %v421_v59 = vmul.f32 %v6645_v1, %v382_v47  ;;  %v420_v60 = vmul.f32 %v6645_v1, %v381_v50  ;;  %v423_v61 = vmul.f32 %v6645_v1, %v384_v51 }
  0x23   : > { %9683 = vst [vmem:[#allocation13_spill] sm:$0xff] %v6752_v56  ;;  %1054 = vst.msk [vmem:[#allocation2 + $0x61] sm:$0xff] %vm279_vm0, %v1021_v58  ;;  %vm928_vm3 = vcmp.gt.f32.partialorder %v6752_v56, 0.0  ;;  %vm960_vm4 = vcmp.lt.f32.partialorder %v6752_v56, 0.0  ;;  %v6763_v62 = vadd.f32 %v6657_v2, %v418_v57  ;;  %v508_v63 = vsel %vm279_vm0, %v6752_v56, 0.0 }
  0x24   : > { %503 = vadd.xlane.f32.xlu1 %v502_v49  ;;  %v992_v3 = vsel %vm960_vm4, -1.0, %v9582_v0  ;;  %v6769_v4 = vadd.f32 %v6657_v2, %v421_v59  ;;  %v6772_v5 = vadd.f32 %v6657_v2, %v420_v60  ;;  %v6783_v9 = vadd.f32 %v6657_v2, %v423_v61  ;;  %v392_v49 = vld [vmem:[%s6652_s8 + $0xa8] sm:$0xff] }
  0x25   : > { %9684 = vst [vmem:[#allocation14_spill] sm:$0xff] %v6763_v62  ;;  %500 = vadd.xlane.f32.xlu0 %v499_v53  ;;  %v1024_v6 = vsel %vm928_vm3, 1.0, %v992_v3  ;;  %v505_v7 = vsel %vm279_vm0, %v6763_v62, 0.0  ;;  %vm927_vm5 = vcmp.gt.f32.partialorder %v6763_v62, 0.0  ;;  %vm959_vm6 = vcmp.lt.f32.partialorder %v6763_v62, 0.0  ;;  %v391_v53 = vld [vmem:[%s6652_s8 + $0xa0] sm:$0xff] }
  0x26   : > { %9685 = vst [vmem:[#allocation15_spill] sm:$0xff] %v6769_v4  ;;  %9686 = vst [vmem:[#allocation16_spill] sm:$0xff] %v6772_v5  ;;  %v991_v8 = vsel %vm959_vm6, -1.0, %v9582_v0  ;;  %vm930_vm7 = vcmp.gt.f32.partialorder %v6769_v4, 0.0  ;;  %vm962_vm8 = vcmp.lt.f32.partialorder %v6769_v4, 0.0  ;;  %v514_v13 = vsel %vm279_vm0, %v6769_v4, 0.0 }
  0x27   : > { %1057 = vst.msk [vmem:[#allocation2 + $0x81] sm:$0xff] %vm279_vm0, %v1024_v6  ;;  %9687 = vst [vmem:[#allocation17_spill] sm:$0xff] %v6783_v9  ;;  %v1023_v12 = vsel %vm927_vm5, 1.0, %v991_v8  ;;  %v994_v14 = vsel %vm962_vm8, -1.0, %v9582_v0  ;;  %vm929_vm9 = vcmp.gt.f32.partialorder %v6772_v5, 0.0  ;;  %v511_v24 = vsel %vm279_vm0, %v6772_v5, 0.0 }
  0x28   : > { %509 = vadd.xlane.f32.xlu1 %v508_v63  ;;  %1056 = vst.msk [vmem:[#allocation2 + $0x79] sm:$0xff] %vm279_vm0, %v1023_v12  ;;  %v1026_v20 = vsel %vm930_vm7, 1.0, %v994_v14  ;;  %vm961_vm10 = vcmp.lt.f32.partialorder %v6772_v5, 0.0  ;;  %vm932_vm11 = vcmp.gt.f32.partialorder %v6783_v9, 0.0  ;;  %vm964_vm12 = vcmp.lt.f32.partialorder %v6783_v9, 0.0  ;;  %v394_v6 = vld [vmem:[%s6652_s8 + $0xb8] sm:$0xff] }
  0x29   : > { %506 = vadd.xlane.f32.xlu0 %v505_v7  ;;  %1059 = vst.msk [vmem:[#allocation2 + $0x99] sm:$0xff] %vm279_vm0, %v1026_v20  ;;  %v993_v25 = vsel %vm961_vm10, -1.0, %v9582_v0  ;;  %v422_v26 = vmul.f32 %v6645_v1, %v383_v10  ;;  %v425_v27 = vmul.f32 %v6645_v1, %v386_v11  ;;  %v996_v30 = vsel %vm964_vm12, -1.0, %v9582_v0  ;;  %v393_v7 = vld [vmem:[%s6652_s8 + $0xb0] sm:$0xff] }
  0x2a   : > { %v1025_v29 = vsel %vm929_vm9, 1.0, %v993_v25  ;;  %v424_v31 = vmul.f32 %v6645_v1, %v385_v15  ;;  %v427_v32 = vmul.f32 %v6645_v1, %v388_v16  ;;  %v520_v33 = vsel %vm279_vm0, %v6783_v9, 0.0 }
  0x2b   : > { %1058 = vst.msk [vmem:[#allocation2 + $0x91] sm:$0xff] %vm279_vm0, %v1025_v29  ;;  %v1028_v34 = vsel %vm932_vm11, 1.0, %v996_v30  ;;  %v6813_v35 = vadd.f32 %v6657_v2, %v422_v26  ;;  %v6818_v37 = vadd.f32 %v6657_v2, %v425_v27  ;;  %v426_v39 = vmul.f32 %v6645_v1, %v387_v28  ;;  %v396_v27 = vld [vmem:[%s6652_s8 + $0xc8] sm:$0xff]  ;;  %v395_v30 = vld [vmem:[%s6652_s8 + $0xc0] sm:$0xff] }
  0x2c   : > { %515 = vadd.xlane.f32.xlu1 %v514_v13  ;;  %1061 = vst.msk [vmem:[#allocation2 + $0xb1] sm:$0xff] %vm279_vm0, %v1028_v34  ;;  %v6821_v38 = vadd.f32 %v6657_v2, %v424_v31  ;;  %vm325_vm13 = vcmask 7168   ;;  %v6829_v42 = vadd.f32 %v6657_v2, %v427_v32  ;;  %v429_v45 = vmul.f32 %v6645_v1, %v390_v36  ;;  %v398_v31 = vld [vmem:[%s6652_s8 + $0xd8] sm:$0xff] }
  0x2d   : > { %9688 = vst [vmem:[#allocation18_spill] sm:$0xff] %v6813_v35  ;;  %512 = vadd.xlane.f32.xlu0 %v511_v24  ;;  %9689 = vst [vmem:[#allocation19_spill] sm:$0xff] %v6818_v37  ;;  %v517_v40 = vsel %vm279_vm0, %v6813_v35, 0.0  ;;  %vm931_vm14 = vcmp.gt.f32.partialorder %v6813_v35, 0.0  ;;  %vm963_vm15 = vcmp.lt.f32.partialorder %v6813_v35, 0.0  ;;  %vm934_vm1 = vcmp.gt.f32.partialorder %v6818_v37, 0.0 }
  0x2e   : > { %9690 = vst [vmem:[#allocation20_spill] sm:$0xff] %v6821_v38  ;;  %9691 = vst [vmem:[#allocation21_spill] sm:$0xff] %v6829_v42  ;;  %v995_v43 = vsel %vm963_vm15, -1.0, %v9582_v0  ;;  %vm966_vm2 = vcmp.lt.f32.partialorder %v6818_v37, 0.0  ;;  %vm933_vm3 = vcmp.gt.f32.partialorder %v6821_v38, 0.0  ;;  %vm965_vm4 = vcmp.lt.f32.partialorder %v6821_v38, 0.0 }
  0x2f   : > { %326 = vst.msk [vmem:[#allocation3] sm:$0xff] %vm325_vm13, %v9582_v0  ;;  %327 = vst.msk [vmem:[#allocation3 + $0x8] sm:$0xff] %vm325_vm13, %v9582_v0  ;;  %v1027_v46 = vsel %vm931_vm14, 1.0, %v995_v43  ;;  %v998_v47 = vsel %vm966_vm2, -1.0, %v9582_v0  ;;  %v526_v50 = vsel %vm279_vm0, %v6818_v37, 0.0  ;;  %v997_v52 = vsel %vm965_vm4, -1.0, %v9582_v0 }
  0x30   : > { %331 = vst.msk [vmem:[#allocation3 + $0x198] sm:$0xff] %vm325_vm13, %v9582_v0  ;;  %332 = vst.msk [vmem:[#allocation3 + $0x1a0] sm:$0xff] %vm325_vm13, %v9582_v0  ;;  %521 = vadd.xlane.f32.xlu1 %v520_v33  ;;  %v1030_v51 = vsel %vm934_vm1, 1.0, %v998_v47  ;;  %vm936_vm5 = vcmp.gt.f32.partialorder %v6829_v42, 0.0  ;;  %v523_v54 = vsel %vm279_vm0, %v6821_v38, 0.0  ;;  %v1029_v55 = vsel %vm933_vm3, 1.0, %v997_v52 }
  0x31   : > { %1060 = vst.msk [vmem:[#allocation2 + $0xa9] sm:$0xff] %vm279_vm0, %v1027_v46  ;;  %518 = vadd.xlane.f32.xlu0 %v517_v40  ;;  %1063 = vst.msk [vmem:[#allocation2 + $0xc9] sm:$0xff] %vm279_vm0, %v1030_v51  ;;  %vm968_vm6 = vcmp.lt.f32.partialorder %v6829_v42, 0.0  ;;  %v6859_v57 = vadd.f32 %v6657_v2, %v426_v39  ;;  %v6864_v59 = vadd.f32 %v6657_v2, %v429_v45  ;;  %v532_v8 = vsel %vm279_vm0, %v6829_v42, 0.0 }
  0x32   : > { %1062 = vst.msk [vmem:[#allocation2 + $0xc1] sm:$0xff] %vm279_vm0, %v1029_v55  ;;  %v1000_v58 = vsel %vm968_vm6, -1.0, %v9582_v0  ;;  %v428_v60 = vmul.f32 %v6645_v1, %v389_v48  ;;  %v431_v61 = vmul.f32 %v6645_v1, %v392_v49  ;;  %v430_v3 = vmul.f32 %v6645_v1, %v391_v53 }
  0x33   : > { %9692 = vst [vmem:[#allocation22_spill] sm:$0xff] %v6859_v57  ;;  %9693 = vst [vmem:[#allocation23_spill] sm:$0xff] %v6864_v59  ;;  %v1032_v63 = vsel %vm936_vm5, 1.0, %v1000_v58  ;;  %vm935_vm7 = vcmp.gt.f32.partialorder %v6859_v57, 0.0  ;;  %vm967_vm8 = vcmp.lt.f32.partialorder %v6859_v57, 0.0  ;;  %vm938_vm9 = vcmp.gt.f32.partialorder %v6864_v59, 0.0 }
  0x34   : > { %527 = vadd.xlane.f32.xlu1 %v526_v50  ;;  %1065 = vst.msk [vmem:[#allocation2 + $0xe1] sm:$0xff] %vm279_vm0, %v1032_v63  ;;  %v999_v10 = vsel %vm967_vm8, -1.0, %v9582_v0  ;;  %vm970_vm10 = vcmp.lt.f32.partialorder %v6864_v59, 0.0  ;;  %v529_v11 = vsel %vm279_vm0, %v6859_v57, 0.0  ;;  %v6883_v14 = vadd.f32 %v6657_v2, %v428_v60  ;;  %v397_v60 = vld [vmem:[%s6652_s8 + $0xd0] sm:$0xff]  ;;  %v399_v63 = vld [vmem:[%s6652_s8 + $0xe0] sm:$0xff] }
  0x35   : > { %524 = vadd.xlane.f32.xlu0 %v523_v54  ;;  %v1031_v12 = vsel %vm935_vm7, 1.0, %v999_v10  ;;  %v1002_v13 = vsel %vm970_vm10, -1.0, %v9582_v0  ;;  %v6887_v16 = vadd.f32 %v6657_v2, %v431_v61  ;;  %v433_v20 = vmul.f32 %v6645_v1, %v394_v6  ;;  %v400_v61 = vld [vmem:[%s6652_s8 + $0xe8] sm:$0xff] }
  0x36   : > { %9694 = vst [vmem:[#allocation24_spill] sm:$0xff] %v6883_v14  ;;  %1064 = vst.msk [vmem:[#allocation2 + $0xd9] sm:$0xff] %vm279_vm0, %v1031_v12  ;;  %v1034_v15 = vsel %vm938_vm9, 1.0, %v1002_v13  ;;  %v432_v24 = vmul.f32 %v6645_v1, %v393_v7  ;;  %v538_v25 = vsel %vm279_vm0, %v6864_v59, 0.0  ;;  %vm937_vm11 = vcmp.gt.f32.partialorder %v6883_v14, 0.0  ;;  %v402_v7 = vld [vmem:[%s6652_s8 + $0xf8] sm:$0xff] }
  0x37   : > { %9695 = vst [vmem:[#allocation25_spill] sm:$0xff] %v6887_v16  ;;  %1067 = vst.msk [vmem:[#allocation2 + $0xf9] sm:$0xff] %vm279_vm0, %v1034_v15  ;;  %vm969_vm12 = vcmp.lt.f32.partialorder %v6883_v14, 0.0  ;;  %v6897_v26 = vadd.f32 %v6657_v2, %v430_v3  ;;  %v535_v28 = vsel %vm279_vm0, %v6883_v14, 0.0  ;;  %vm940_vm14 = vcmp.gt.f32.partialorder %v6887_v16, 0.0 }
  0x38   : > { %533 = vadd.xlane.f32.xlu1 %v532_v8  ;;  %v1001_v29 = vsel %vm969_vm12, -1.0, %v9582_v0  ;;  %vm972_vm15 = vcmp.lt.f32.partialorder %v6887_v16, 0.0  ;;  %v6913_v39 = vadd.f32 %v6657_v2, %v433_v20  ;;  %v6916_v40 = vadd.f32 %v6657_v2, %v432_v24  ;;  %v401_v8 = vld [vmem:[%s6652_s8 + $0xf0] sm:$0xff] }
  0x39   : > { %9696 = vst [vmem:[#allocation26_spill] sm:$0xff] %v6897_v26  ;;  %530 = vadd.xlane.f32.xlu0 %v529_v11  ;;  %v1033_v32 = vsel %vm937_vm11, 1.0, %v1001_v29  ;;  %v1004_v33 = vsel %vm972_vm15, -1.0, %v9582_v0  ;;  %vm939_vm1 = vcmp.gt.f32.partialorder %v6897_v26, 0.0  ;;  %vm971_vm2 = vcmp.lt.f32.partialorder %v6897_v26, 0.0 }
  0x3a   : > { %1066 = vst.msk [vmem:[#allocation2 + $0xf1] sm:$0xff] %vm279_vm0, %v1033_v32  ;;  %v1036_v34 = vsel %vm940_vm14, 1.0, %v1004_v33  ;;  %v1003_v36 = vsel %vm971_vm2, -1.0, %v9582_v0  ;;  %9697 = vst [vmem:[#allocation27_spill] sm:$0xff] %v6913_v39  ;;  %v435_v45 = vmul.f32 %v6645_v1, %v396_v27  ;;  %v434_v46 = vmul.f32 %v6645_v1, %v395_v30 }
  0x3b   : > { %9698 = vst [vmem:[#allocation28_spill] sm:$0xff] %v6916_v40  ;;  %1069 = vst.msk [vmem:[#allocation2 + $0x111] sm:$0xff] %vm279_vm0, %v1036_v34  ;;  %v1035_v43 = vsel %vm939_vm1, 1.0, %v1003_v36  ;;  %v437_v47 = vmul.f32 %v6645_v1, %v398_v31  ;;  %v544_v48 = vsel %vm279_vm0, %v6887_v16, 0.0  ;;  %v541_v49 = vsel %vm279_vm0, %v6897_v26, 0.0 }
  0x3c   : > { %539 = vadd.xlane.f32.xlu1 %v538_v25  ;;  %1068 = vst.msk [vmem:[#allocation2 + $0x109] sm:$0xff] %vm279_vm0, %v1035_v43  ;;  %vm942_vm3 = vcmp.gt.f32.partialorder %v6913_v39, 0.0  ;;  %vm974_vm4 = vcmp.lt.f32.partialorder %v6913_v39, 0.0  ;;  %vm941_vm5 = vcmp.gt.f32.partialorder %v6916_v40, 0.0  ;;  %vm973_vm6 = vcmp.lt.f32.partialorder %v6916_v40, 0.0 }
  0x3d   : > { %536 = vadd.xlane.f32.xlu0 %v535_v28  ;;  %v1006_v50 = vsel %vm974_vm4, -1.0, %v9582_v0  ;;  %v6933_v51 = vadd.f32 %v6657_v2, %v435_v45  ;;  %v1005_v53 = vsel %vm973_vm6, -1.0, %v9582_v0  ;;  %v6937_v54 = vadd.f32 %v6657_v2, %v434_v46 }
  0x3e   : > { %v1038_v52 = vsel %vm942_vm3, 1.0, %v1006_v50  ;;  %v1037_v55 = vsel %vm941_vm5, 1.0, %v1005_v53  ;;  %v6943_v58 = vadd.f32 %v6657_v2, %v437_v47  ;;  %v550_v3 = vsel %vm279_vm0, %v6913_v39, 0.0 }
  0x3f   : > { %9699 = vst [vmem:[#allocation29_spill] sm:$0xff] %v6933_v51  ;;  %9700 = vst [vmem:[#allocation30_spill] sm:$0xff] %v6937_v54  ;;  %vm944_vm7 = vcmp.gt.f32.partialorder %v6933_v51, 0.0  ;;  %vm976_vm8 = vcmp.lt.f32.partialorder %v6933_v51, 0.0  ;;  %vm943_vm9 = vcmp.gt.f32.partialorder %v6937_v54, 0.0  ;;  %vm975_vm10 = vcmp.lt.f32.partialorder %v6937_v54, 0.0 }
  0x40   : > { %1071 = vst.msk [vmem:[#allocation2 + $0x129] sm:$0xff] %vm279_vm0, %v1038_v52  ;;  %9701 = vst [vmem:[#allocation31_spill] sm:$0xff] %v6943_v58  ;;  %545 = vadd.xlane.f32.xlu1 %v544_v48  ;;  %v1008_v6 = vsel %vm976_vm8, -1.0, %v9582_v0  ;;  %v547_v10 = vsel %vm279_vm0, %v6916_v40, 0.0  ;;  %v1007_v12 = vsel %vm975_vm10, -1.0, %v9582_v0  ;;  %vm946_vm11 = vcmp.gt.f32.partialorder %v6943_v58, 0.0 }
  0x41   : > { %542 = vadd.xlane.f32.xlu0 %v541_v49  ;;  %1070 = vst.msk [vmem:[#allocation2 + $0x121] sm:$0xff] %vm279_vm0, %v1037_v55  ;;  %v1040_v11 = vsel %vm944_vm7, 1.0, %v1008_v6  ;;  %v1039_v13 = vsel %vm943_vm9, 1.0, %v1007_v12  ;;  %vm978_vm12 = vcmp.lt.f32.partialorder %v6943_v58, 0.0  ;;  %v436_v15 = vmul.f32 %v6645_v1, %v397_v60  ;;  %v7191_v12 = vld [vmem:[#allocation2 + $0x20] sm:$0xff] }
  0x42   : > { %1073 = vst.msk [vmem:[#allocation2 + $0x141] sm:$0xff] %vm279_vm0, %v1040_v11  ;;  %v439_v20 = vmul.f32 %v6645_v1, %v400_v61  ;;  %1072 = vst.msk [vmem:[#allocation2 + $0x139] sm:$0xff] %vm279_vm0, %v1039_v13  ;;  %v1010_v24 = vsel %vm978_vm12, -1.0, %v9582_v0  ;;  %v438_v25 = vmul.f32 %v6645_v1, %v399_v63  ;;  %v441_v27 = vmul.f32 %v6645_v1, %v402_v7  ;;  %v1145_v7 = vld [vmem:[#allocation2 + $0x9] sm:$0xff]  ;;  %v7189_v11 = vld [vmem:[#allocation2 + $0x19] sm:$0xff] }
  0x43   : > { %v6971_v28 = vmul.f32 %v6645_v1, %v401_v8  ;;  %v6975_v29 = vsel %vm279_vm0, %v6933_v51, 0.0  ;;  %v1042_v30 = vsel %vm946_vm11, 1.0, %v1010_v24  ;;  %v6978_v31 = vadd.f32 %v6657_v2, %v436_v15  ;;  %v1081_v8 = vld [vmem:[#allocation2 + $0x8] sm:$0xff]  ;;  %1115 = vst.msk [vmem:[#allocation4 + $0x18] sm:$0xff] %vm279_vm0, %v7191_v12  ;;  %v7333_v51 = vld [vmem:[#allocation2 + $0xf8] sm:$0xff]  ;;  %v7349_v16 = vld [vmem:[#allocation2 + $0x110] sm:$0xff] }
  0x44   : > { %551 = vadd.xlane.f32.xlu1 %v550_v3  ;;  %vm288_vm14 = vcmask 24576   ;;  %v6982_v32 = vsel %vm279_vm0, %v6937_v54, 0.0  ;;  %v6986_v33 = vsel %vm279_vm0, %v6943_v58, 0.0  ;;  %1075 = vst.msk [vmem:[#allocation2 + $0x159] sm:$0xff] %vm279_vm0, %v1042_v30  ;;  %v6990_v1 = vadd.f32 %v6657_v2, %v439_v20  ;;  %1113 = vst.msk [vmem:[#allocation4 + $0x8] sm:$0xff] %vm279_vm0, %v1081_v8  ;;  %v1144_v13 = vld [vmem:[#allocation2 + $0x1] sm:$0xff] }
  0x45   : > { %548 = vadd.xlane.f32.xlu0 %v547_v10  ;;  %9702 = vst [vmem:[#allocation32_spill] sm:$0xff] %v6978_v31  ;;  %307 = vst.msk [vmem:[#allocation2 + $0x11] sm:$0x1] %vm288_vm14, %v9582_v0  ;;  %vm334_vm15 = vcmask 0   ;;  %vm945_vm1 = vcmp.gt.f32.partialorder %v6978_v31, 0.0  ;;  %vm977_vm2 = vcmp.lt.f32.partialorder %v6978_v31, 0.0  ;;  %v7067_v34 = vadd.f32 %v6657_v2, %v438_v25 }
  0x46   : > { %9703 = vst [vmem:[#allocation33_spill] sm:$0xff] %v6990_v1  ;;  %289 = vst.msk [vmem:[#allocation2] sm:$0x1] %vm288_vm14, %v9582_v0  ;;  %v7070_v36 = vadd.f32 %v6657_v2, %v441_v27  ;;  %v1009_v43 = vsel %vm977_vm2, -1.0, %v9582_v0  ;;  %vm948_vm3 = vcmp.gt.f32.partialorder %v6990_v1, 0.0  ;;  %vm980_vm4 = vcmp.lt.f32.partialorder %v6990_v1, 0.0 }
  0x47   : > { %290 = vst.msk [vmem:[#allocation2 + $0x18] sm:$0x1] %vm288_vm14, %v9582_v0  ;;  %291 = vst.msk [vmem:[#allocation2 + $0x30] sm:$0x1] %vm288_vm14, %v9582_v0  ;;  %v7147_v45 = vadd.f32 %v6657_v2, %v6971_v28  ;;  %v1041_v46 = vsel %vm945_vm1, 1.0, %v1009_v43  ;;  %v1012_v47 = vsel %vm980_vm4, -1.0, %v9582_v0 }
  0x48   : > { %292 = vst.msk [vmem:[#allocation2 + $0x48] sm:$0x1] %vm288_vm14, %v9582_v0  ;;  %293 = vst.msk [vmem:[#allocation2 + $0x60] sm:$0x1] %vm288_vm14, %v9582_v0  ;;  %557 = vadd.xlane.f32.xlu1 %v6975_v29  ;;  %vm947_vm5 = vcmp.gt.f32.partialorder %v7067_v34, 0.0  ;;  %vm979_vm6 = vcmp.lt.f32.partialorder %v7067_v34, 0.0 }
  0x49   : > { %294 = vst.msk [vmem:[#allocation2 + $0x78] sm:$0x1] %vm288_vm14, %v9582_v0  ;;  %295 = vst.msk [vmem:[#allocation2 + $0x90] sm:$0x1] %vm288_vm14, %v9582_v0  ;;  %554 = vadd.xlane.f32.xlu0 %v6982_v32  ;;  %v559_v48 = vsel %vm279_vm0, %v6978_v31, 0.0  ;;  %v1044_v2 = vsel %vm948_vm3, 1.0, %v1012_v47 }
  0x4a   : > { %296 = vst.msk [vmem:[#allocation2 + $0xa8] sm:$0x1] %vm288_vm14, %v9582_v0  ;;  %297 = vst.msk [vmem:[#allocation2 + $0xc0] sm:$0x1] %vm288_vm14, %v9582_v0  ;;  %v1011_v49 = vsel %vm979_vm6, -1.0, %v9582_v0  ;;  %vm950_vm7 = vcmp.gt.f32.partialorder %v7070_v36, 0.0 }
  0x4b   : > { %298 = vst.msk [vmem:[#allocation2 + $0xd8] sm:$0x1] %vm288_vm14, %v9582_v0  ;;  %299 = vst.msk [vmem:[#allocation2 + $0xf0] sm:$0x1] %vm288_vm14, %v9582_v0  ;;  %v1043_v50 = vsel %vm947_vm5, 1.0, %v1011_v49  ;;  %vm982_vm8 = vcmp.lt.f32.partialorder %v7070_v36, 0.0 }
  0x4c   : > { %300 = vst.msk [vmem:[#allocation2 + $0x108] sm:$0x1] %vm288_vm14, %v9582_v0  ;;  %301 = vst.msk [vmem:[#allocation2 + $0x120] sm:$0x1] %vm288_vm14, %v9582_v0  ;;  %vm949_vm9 = vcmp.gt.f32.partialorder %v7147_v45, 0.0  ;;  %v1014_v52 = vsel %vm982_vm8, -1.0, %v9582_v0  ;;  %563 = vadd.xlane.f32.xlu1 %v6986_v33 }
  0x4d   : > { %302 = vst.msk [vmem:[#allocation2 + $0x138] sm:$0x1] %vm288_vm14, %v9582_v0  ;;  %303 = vst.msk [vmem:[#allocation2 + $0x150] sm:$0x1] %vm288_vm14, %v9582_v0  ;;  %vm981_vm10 = vcmp.lt.f32.partialorder %v7147_v45, 0.0  ;;  %vm328_vm11 = vcmask 1024   ;;  %560 = vadd.xlane.f32.xlu0 %v559_v48 }
  0x4e   : > { %304 = vst.msk [vmem:[#allocation2 + $0x168] sm:$0x1] %vm288_vm14, %v9582_v0  ;;  %305 = vst.msk [vmem:[#allocation2 + $0x180] sm:$0x1] %vm288_vm14, %v9582_v0  ;;  %v1046_v53 = vsel %vm950_vm7, 1.0, %v1014_v52  ;;  %v1013_v55 = vsel %vm981_vm10, -1.0, %v9582_v0 }
  0x4f   : > { %306 = vst.msk [vmem:[#allocation2 + $0x198] sm:$0x1] %vm288_vm14, %v9582_v0  ;;  %308 = vst.msk [vmem:[#allocation2 + $0x29] sm:$0x1] %vm288_vm14, %v9582_v0  ;;  %v568_v60 = vsel %vm279_vm0, %v6990_v1, 0.0  ;;  %v565_v61 = vsel %vm279_vm0, %v7067_v34, 0.0 }
  0x50   : > { %309 = vst.msk [vmem:[#allocation2 + $0x41] sm:$0x1] %vm288_vm14, %v9582_v0  ;;  %310 = vst.msk [vmem:[#allocation2 + $0x59] sm:$0x1] %vm288_vm14, %v9582_v0  ;;  %v1045_v63 = vsel %vm949_vm9, 1.0, %v1013_v55  ;;  %569 = vadd.xlane.f32.xlu1 %v568_v60  ;;  %v574_v3 = vsel %vm279_vm0, %v7070_v36, 0.0 }
  0x51   : > { %311 = vst.msk [vmem:[#allocation2 + $0x71] sm:$0x1] %vm288_vm14, %v9582_v0  ;;  %312 = vst.msk [vmem:[#allocation2 + $0x89] sm:$0x1] %vm288_vm14, %v9582_v0  ;;  %566 = vadd.xlane.f32.xlu0 %v565_v61  ;;  %v571_v6 = vsel %vm279_vm0, %v7147_v45, 0.0  ;;  %v7187_v10 = vld [vmem:[#allocation2 + $0x18] sm:$0xff] }
  0x52   : > { %313 = vst.msk [vmem:[#allocation2 + $0xa1] sm:$0x1] %vm288_vm14, %v9582_v0  ;;  %314 = vst.msk [vmem:[#allocation2 + $0xb9] sm:$0x1] %vm288_vm14, %v9582_v0  ;;  %v7199_v15 = vld [vmem:[#allocation2 + $0x30] sm:$0xff]  ;;  %v7202_v20 = vld [vmem:[#allocation2 + $0x21] sm:$0xff] }
  0x53   : > { %315 = vst.msk [vmem:[#allocation2 + $0xd1] sm:$0x1] %vm288_vm14, %v9582_v0  ;;  %316 = vst.msk [vmem:[#allocation2 + $0xe9] sm:$0x1] %vm288_vm14, %v9582_v0  ;;  %v1080_v24 = vld [vmem:[#allocation2] sm:$0xff]  ;;  %v7204_v25 = vld [vmem:[#allocation2 + $0x38] sm:$0xff] }
  0x54   : > { %317 = vst.msk [vmem:[#allocation2 + $0x101] sm:$0x1] %vm288_vm14, %v9582_v0  ;;  %318 = vst.msk [vmem:[#allocation2 + $0x119] sm:$0x1] %vm288_vm14, %v9582_v0  ;;  %575 = vadd.xlane.f32.xlu1 %v574_v3  ;;  %v7208_v27 = vld [vmem:[#allocation2 + $0x31] sm:$0xff]  ;;  %v7215_v28 = vld [vmem:[#allocation2 + $0x48] sm:$0xff] }
  0x55   : > { %319 = vst.msk [vmem:[#allocation2 + $0x131] sm:$0x1] %vm288_vm14, %v9582_v0  ;;  %320 = vst.msk [vmem:[#allocation2 + $0x149] sm:$0x1] %vm288_vm14, %v9582_v0  ;;  %572 = vadd.xlane.f32.xlu0 %v571_v6  ;;  %v7219_v29 = vld [vmem:[#allocation2 + $0x39] sm:$0xff]  ;;  %v7221_v30 = vld [vmem:[#allocation2 + $0x50] sm:$0xff] }
  0x56   : > { %321 = vst.msk [vmem:[#allocation2 + $0x161] sm:$0x1] %vm288_vm14, %v9582_v0  ;;  %322 = vst.msk [vmem:[#allocation2 + $0x179] sm:$0x1] %vm288_vm14, %v9582_v0  ;;  %v7225_v32 = vld [vmem:[#allocation2 + $0x49] sm:$0xff]  ;;  %v7231_v33 = vld [vmem:[#allocation2 + $0x60] sm:$0xff] }
  0x57   : > { %323 = vst.msk [vmem:[#allocation2 + $0x191] sm:$0x1] %vm288_vm14, %v9582_v0  ;;  %324 = vst.msk [vmem:[#allocation2 + $0x1a9] sm:$0x1] %vm288_vm14, %v9582_v0  ;;  %v7235_v43 = vld [vmem:[#allocation2 + $0x51] sm:$0xff]  ;;  %v7241_v47 = vld [vmem:[#allocation2 + $0x61] sm:$0xff] }
  0x58   : > { %9704 = vst [vmem:[#allocation34_spill] sm:$0xff] %v7067_v34  ;;  %9705 = vst [vmem:[#allocation35_spill] sm:$0xff] %v7070_v36  ;;  %v7247_v48 = vld [vmem:[#allocation2 + $0x78] sm:$0xff]  ;;  %v7253_v49 = vld [vmem:[#allocation2 + $0x80] sm:$0xff]  ;;  %vm1304_vm12 = vcmask 64544   ;;  %vm1497_vm14 = vcmask 97344  }
  0x59   : > { %335 = vst.msk [vmem:[#allocation3] sm:$0x1] %vm334_vm15, %v9582_v0  ;;  %336 = vst.msk [vmem:[#allocation3 + $0x18] sm:$0x1] %vm334_vm15, %v9582_v0  ;;  %v7263_v52 = vld [vmem:[#allocation2 + $0x90] sm:$0xff]  ;;  %v7269_v55 = vld [vmem:[#allocation2 + $0x98] sm:$0xff] }
  0x5a   : > { %337 = vst.msk [vmem:[#allocation3 + $0x30] sm:$0x1] %vm334_vm15, %v9582_v0  ;;  %338 = vst.msk [vmem:[#allocation3 + $0x48] sm:$0x1] %vm334_vm15, %v9582_v0  ;;  %v7273_v60 = vld [vmem:[#allocation2 + $0x91] sm:$0xff]  ;;  %v7279_v61 = vld [vmem:[#allocation2 + $0xa8] sm:$0xff] }
  0x5b   : > { %339 = vst.msk [vmem:[#allocation3 + $0x60] sm:$0x1] %vm334_vm15, %v9582_v0  ;;  %340 = vst.msk [vmem:[#allocation3 + $0x78] sm:$0x1] %vm334_vm15, %v9582_v0  ;;  %v7285_v3 = vld [vmem:[#allocation2 + $0xb0] sm:$0xff]  ;;  %v7317_v1 = vld [vmem:[#allocation2 + $0xe0] sm:$0xff] }
  0x5c   : > { %341 = vst.msk [vmem:[#allocation3 + $0x90] sm:$0x1] %vm334_vm15, %v9582_v0  ;;  %342 = vst.msk [vmem:[#allocation3 + $0xa8] sm:$0x1] %vm334_vm15, %v9582_v0  ;;  %v7289_v6 = vld [vmem:[#allocation2 + $0xa9] sm:$0xff]  ;;  %v7299_v8 = vld [vmem:[#allocation2 + $0xb1] sm:$0xff] }
  0x5d   : > { %343 = vst.msk [vmem:[#allocation3 + $0xc0] sm:$0x1] %vm334_vm15, %v9582_v0  ;;  %344 = vst.msk [vmem:[#allocation3 + $0xd8] sm:$0x1] %vm334_vm15, %v9582_v0  ;;  %v7315_v36 = vld [vmem:[#allocation2 + $0xc9] sm:$0xff]  ;;  %v7331_v34 = vld [vmem:[#allocation2 + $0xe1] sm:$0xff] }
  0x5e   : > { %345 = vst.msk [vmem:[#allocation3 + $0xf0] sm:$0x1] %vm334_vm15, %v9582_v0  ;;  %346 = vst.msk [vmem:[#allocation3 + $0x108] sm:$0x1] %vm334_vm15, %v9582_v0  ;;  %v7327_v58 = vld [vmem:[#allocation2 + $0xf0] sm:$0xff]  ;;  %v7343_v39 = vld [vmem:[#allocation2 + $0x108] sm:$0xff] }
  0x5f   : > { %347 = vst.msk [vmem:[#allocation3 + $0x120] sm:$0x1] %vm334_vm15, %v9582_v0  ;;  %348 = vst.msk [vmem:[#allocation3 + $0x138] sm:$0x1] %vm334_vm15, %v9582_v0  ;;  %v7337_v31 = vld [vmem:[#allocation2 + $0xf1] sm:$0xff]  ;;  %v7347_v54 = vld [vmem:[#allocation2 + $0xf9] sm:$0xff] }
  0x60   : > { %349 = vst.msk [vmem:[#allocation3 + $0x150] sm:$0x1] %vm334_vm15, %v9582_v0  ;;  %350 = vst.msk [vmem:[#allocation3 + $0x168] sm:$0x1] %vm334_vm15, %v9582_v0  ;;  %v7353_v40 = vld [vmem:[#allocation2 + $0x109] sm:$0xff]  ;;  %v7359_v59 = vld [vmem:[#allocation2 + $0x120] sm:$0xff] }
  0x61   : > { %351 = vst.msk [vmem:[#allocation3 + $0x180] sm:$0x1] %vm334_vm15, %v9582_v0  ;;  %352 = vst.msk [vmem:[#allocation3 + $0x198] sm:$0x1] %vm334_vm15, %v9582_v0  ;;  %v7363_v26 = vld [vmem:[#allocation2 + $0x111] sm:$0xff]  ;;  %v7365_v42 = vld [vmem:[#allocation2 + $0x128] sm:$0xff] }
  0x62   : > { %354 = vst.msk [vmem:[#allocation3 + $0x29] sm:$0x1] %vm334_vm15, %v9582_v0  ;;  %355 = vst.msk [vmem:[#allocation3 + $0x41] sm:$0x1] %vm334_vm15, %v9582_v0  ;;  %v7369_v14 = vld [vmem:[#allocation2 + $0x121] sm:$0xff]  ;;  %v7375_v37 = vld [vmem:[#allocation2 + $0x138] sm:$0xff] }
  0x63   : > { %356 = vst.msk [vmem:[#allocation3 + $0x59] sm:$0x1] %vm334_vm15, %v9582_v0  ;;  %357 = vst.msk [vmem:[#allocation3 + $0x71] sm:$0x1] %vm334_vm15, %v9582_v0  ;;  %v7379_v57 = vld [vmem:[#allocation2 + $0x129] sm:$0xff]  ;;  %v7381_v9 = vld [vmem:[#allocation2 + $0x140] sm:$0xff] }
  0x64   : > { %358 = vst.msk [vmem:[#allocation3 + $0x89] sm:$0x1] %vm334_vm15, %v9582_v0  ;;  %359 = vst.msk [vmem:[#allocation3 + $0xa1] sm:$0x1] %vm334_vm15, %v9582_v0  ;;  %v7385_v38 = vld [vmem:[#allocation2 + $0x139] sm:$0xff]  ;;  %v7395_v35 = vld [vmem:[#allocation2 + $0x141] sm:$0xff] }
  0x65   : > { %360 = vst.msk [vmem:[#allocation3 + $0xb9] sm:$0x1] %vm334_vm15, %v9582_v0  ;;  %361 = vst.msk [vmem:[#allocation3 + $0xd1] sm:$0x1] %vm334_vm15, %v9582_v0  ;;  %1210 = vrot.lane.b32.xlu1 %v1145_v7, %s6572_s11  ;;  %v7295_v7 = vld [vmem:[#allocation2 + $0xc0] sm:$0xff]  ;;  %vm1883_vm1 = vcmask 162944  }
  0x66   : > { %362 = vst.msk [vmem:[#allocation3 + $0xe9] sm:$0x1] %vm334_vm15, %v9582_v0  ;;  %363 = vst.msk [vmem:[#allocation3 + $0x101] sm:$0x1] %vm334_vm15, %v9582_v0  ;;  %v1173_v62 = vld [vmem:[#allocation2 + $0x159] sm:$0xff]  ;;  %vm2076_vm2 = vcmask 195744  }
  0x67   : > { %364 = vst.msk [vmem:[#allocation3 + $0x119] sm:$0x1] %vm334_vm15, %v9582_v0  ;;  %365 = vst.msk [vmem:[#allocation3 + $0x131] sm:$0x1] %vm334_vm15, %v9582_v0  ;;  %vm2270_vm3 = vcmask 228544   ;;  %vm2823_vm4 = vcmask 1043456  }
  0x68   : > { %366 = vst.msk [vmem:[#allocation3 + $0x149] sm:$0x1] %vm334_vm15, %v9582_v0  ;;  %367 = vst.msk [vmem:[#allocation3 + $0x161] sm:$0x1] %vm334_vm15, %v9582_v0  ;;  %vm2463_vm5 = vcmask 261344   ;;  %vm9647_vm6 = vcmask 294144  }
  0x69   : > { %368 = vst.msk [vmem:[#allocation3 + $0x179] sm:$0x1] %vm334_vm15, %v9582_v0  ;;  %369 = vst.msk [vmem:[#allocation3 + $0x191] sm:$0x1] %vm334_vm15, %v9582_v0  ;;  %1212 = vrot.lane.b32.xlu1 %v7189_v11, %s6572_s11  ;;  %vm9646_vm7 = vcmask 293888  }
  0x6a   : > { %9706 = vst [vmem:[#allocation36_spill] sm:$0xff] %v7147_v45  ;;  %1074 = vst.msk [vmem:[#allocation2 + $0x151] sm:$0xff] %vm279_vm0, %v1041_v46  ;;  %v7237_v46 = vld [vmem:[#allocation2 + $0x68] sm:$0xff]  ;;  %v7321_v45 = vld [vmem:[#allocation2 + $0xd9] sm:$0xff] }
  0x6b   : > { %1077 = vst.msk [vmem:[#allocation2 + $0x171] sm:$0xff] %vm279_vm0, %v1044_v2  ;;  %1076 = vst.msk [vmem:[#allocation2 + $0x169] sm:$0xff] %vm279_vm0, %v1043_v50  ;;  %1208 = vrot.lane.b32.xlu0 %v1144_v13, %s6572_s11  ;;  %v7251_v2 = vld [vmem:[#allocation2 + $0x69] sm:$0xff]  ;;  %v7257_v50 = vld [vmem:[#allocation2 + $0x79] sm:$0xff] }
  0x6c   : > { %329 = vst.msk [vmem:[#allocation3 + $0x10] sm:$0x3] %vm328_vm11, %v9582_v0  ;;  %333 = vst.msk [vmem:[#allocation3 + $0x1a8] sm:$0x3] %vm328_vm11, %v9582_v0  ;;  %v7301_v13 = vld [vmem:[#allocation2 + $0xc8] sm:$0xff] }
  0x6d   : > { %1079 = vst.msk [vmem:[#allocation2 + $0x189] sm:$0xff] %vm279_vm0, %v1046_v53  ;;  %1078 = vst.msk [vmem:[#allocation2 + $0x181] sm:$0xff] %vm279_vm0, %v1045_v63  ;;  %1214 = vrot.lane.b32.xlu1 %v7202_v20, %s6572_s11  ;;  %v7267_v53 = vld [vmem:[#allocation2 + $0x81] sm:$0xff]  ;;  %v7283_v63 = vld [vmem:[#allocation2 + $0x99] sm:$0xff] }
  0x6e   : > { %353 = vst.msk [vmem:[#allocation3 + $0x11] sm:$0x1] %vm334_vm15, %v9582_v0  ;;  %370 = vst.msk [vmem:[#allocation3 + $0x1a9] sm:$0x1] %vm334_vm15, %v9582_v0  ;;  %v7311_v0 = vld [vmem:[#allocation2 + $0xd8] sm:$0xff]  ;;  %vm1690_vm15 = vcmask 130144  }
  0x6f   : > { %1114 = vst.msk [vmem:[#allocation4 + $0x10] sm:$0xff] %vm279_vm0, %v7187_v10  ;;  %1116 = vst.msk [vmem:[#allocation4 + $0x20] sm:$0xff] %vm279_vm0, %v7199_v15  ;;  %1216 = vrot.lane.b32.xlu0 %v7208_v27, %s6572_s11 }
  0x70   : > { %1112 = vst.msk [vmem:[#allocation4] sm:$0xff] %vm279_vm0, %v1080_v24  ;;  %1117 = vst.msk [vmem:[#allocation4 + $0x28] sm:$0xff] %vm279_vm0, %v7204_v25  ;;  %v7305_v24 = vld [vmem:[#allocation2 + $0xc1] sm:$0xff] }
  0x71   : > { %1118 = vst.msk [vmem:[#allocation4 + $0x30] sm:$0xff] %vm279_vm0, %v7215_v28  ;;  %1119 = vst.msk [vmem:[#allocation4 + $0x38] sm:$0xff] %vm279_vm0, %v7221_v30  ;;  %1218 = vrot.lane.b32.xlu1 %v7219_v29, %s6572_s11  ;;  %v7391_v4 = vld [vmem:[#allocation2 + $0x150] sm:$0xff]  ;;  %v7397_v56 = vld [vmem:[#allocation2 + $0x158] sm:$0xff] }
  0x72   : > { %1120 = vst.msk [vmem:[#allocation4 + $0x40] sm:$0xff] %vm279_vm0, %v7231_v33  ;;  %1121 = vst.msk [vmem:[#allocation4 + $0x48] sm:$0xff] %vm279_vm0, %v7237_v46  ;;  %v1172_v5 = vld [vmem:[#allocation2 + $0x151] sm:$0xff]  ;;  %v7405_v41 = vld [vmem:[#allocation2 + $0x168] sm:$0xff] }
  0x73   : > { %1220 = vrot.lane.b32.xlu0 %v7225_v32, %s6572_s11  ;;  %1122 = vst.msk [vmem:[#allocation4 + $0x50] sm:$0xff] %vm279_vm0, %v7247_v48  ;;  %1123 = vst.msk [vmem:[#allocation4 + $0x58] sm:$0xff] %vm279_vm0, %v7253_v49  ;;  %v7408_v22 = vld [vmem:[#allocation2 + $0x170] sm:$0xff] }
  0x74   : > { %1124 = vst.msk [vmem:[#allocation4 + $0x60] sm:$0xff] %vm279_vm0, %v7263_v52  ;;  %1125 = vst.msk [vmem:[#allocation4 + $0x68] sm:$0xff] %vm279_vm0, %v7269_v55  ;;  %v1174_v44 = vld [vmem:[#allocation2 + $0x169] sm:$0xff]  ;;  %v7416_v19 = vld [vmem:[#allocation2 + $0x171] sm:$0xff] }
  0x75   : > { %1222 = vrot.lane.b32.xlu1 %v7235_v43, %s6572_s11  ;;  %1126 = vst.msk [vmem:[#allocation4 + $0x70] sm:$0xff] %vm279_vm0, %v7279_v61  ;;  %1127 = vst.msk [vmem:[#allocation4 + $0x78] sm:$0xff] %vm279_vm0, %v7285_v3 }
  0x76   : > { %1128 = vst.msk [vmem:[#allocation4 + $0x80] sm:$0xff] %vm279_vm0, %v7295_v7  ;;  %1129 = vst.msk [vmem:[#allocation4 + $0x88] sm:$0xff] %vm279_vm0, %v7301_v13 }
  0x77   : > { %1224 = vrot.lane.b32.xlu0 %v7241_v47, %s6572_s11  ;;  %1130 = vst.msk [vmem:[#allocation4 + $0x90] sm:$0xff] %vm279_vm0, %v7311_v0  ;;  %1131 = vst.msk [vmem:[#allocation4 + $0x98] sm:$0xff] %vm279_vm0, %v7317_v1 }
  0x78   : > { %1132 = vst.msk [vmem:[#allocation4 + $0xa0] sm:$0xff] %vm279_vm0, %v7327_v58  ;;  %1133 = vst.msk [vmem:[#allocation4 + $0xa8] sm:$0xff] %vm279_vm0, %v7333_v51 }
  0x79   : > { %1226 = vrot.lane.b32.xlu1 %v7251_v2, %s6572_s11  ;;  %1134 = vst.msk [vmem:[#allocation4 + $0xb0] sm:$0xff] %vm279_vm0, %v7343_v39  ;;  %1135 = vst.msk [vmem:[#allocation4 + $0xb8] sm:$0xff] %vm279_vm0, %v7349_v16 }
  0x7a   : > { %1136 = vst.msk [vmem:[#allocation4 + $0xc0] sm:$0xff] %vm279_vm0, %v7359_v59  ;;  %9707 = vst [vmem:[#allocation37_spill] sm:$0xff] %v7369_v14 }
  0x7b   : > { %1228 = vrot.lane.b32.xlu0 %v7257_v50, %s6572_s11  ;;  %1137 = vst.msk [vmem:[#allocation4 + $0xc8] sm:$0xff] %vm279_vm0, %v7365_v42  ;;  %9708 = vst [vmem:[#allocation38_spill] sm:$0xff] %v7379_v57 }
  0x7c   : > { %1138 = vst.msk [vmem:[#allocation4 + $0xd0] sm:$0xff] %vm279_vm0, %v7375_v37  ;;  %9709 = vst [vmem:[#allocation39_spill] sm:$0xff] %v7385_v38 }
  0x7d   : > { %1230 = vrot.lane.b32.xlu1 %v7267_v53, %s6572_s11  ;;  %1139 = vst.msk [vmem:[#allocation4 + $0xd8] sm:$0xff] %vm279_vm0, %v7381_v9  ;;  %9710 = vst [vmem:[#allocation40_spill] sm:$0xff] %v7395_v35 }
  0x7e   : > { %1140 = vst.msk [vmem:[#allocation4 + $0xe0] sm:$0xff] %vm279_vm0, %v7391_v4  ;;  %1141 = vst.msk [vmem:[#allocation4 + $0xe8] sm:$0xff] %vm279_vm0, %v7397_v56 }
  0x7f   : > { %1232 = vrot.lane.b32.xlu0 %v7273_v60, %s6572_s11  ;;  %1142 = vst.msk [vmem:[#allocation4 + $0xf0] sm:$0xff] %vm279_vm0, %v7405_v41  ;;  %1143 = vst.msk [vmem:[#allocation4 + $0xf8] sm:$0xff] %vm279_vm0, %v7408_v22 }
  0x81   : > { %1234 = vrot.lane.b32.xlu1 %v7283_v63, %s6572_s11 }
  0x83   : > { %1236 = vrot.lane.b32.xlu0 %v7289_v6, %s6572_s11 }
  0x85   : > { %1238 = vrot.lane.b32.xlu1 %v7299_v8, %s6572_s11 }
  0x87   : > { %1240 = vrot.lane.b32.xlu0 %v7305_v24, %s6572_s11 }
  0x89   : > { %1242 = vrot.lane.b32.xlu1 %v7315_v36, %s6572_s11 }
  0x8b   : > { %1244 = vrot.lane.b32.xlu0 %v7321_v45, %s6572_s11 }
  0x8d   : > { %1246 = vrot.lane.b32.xlu1 %v7331_v34, %s6572_s11 }
  0x8f   : > { %1248 = vrot.lane.b32.xlu0 %v7337_v31, %s6572_s11 }
  0x91   : > { %1250 = vrot.lane.b32.xlu1 %v7347_v54, %s6572_s11 }
  0x93   : > { %1252 = vrot.lane.b32.xlu0 %v7353_v40, %s6572_s11 }
  0x95   : > { %1254 = vrot.lane.b32.xlu1 %v7363_v26, %s6572_s11 }
  0x97   : > { %1256 = vrot.lane.b32.xlu0 %v7369_v14, %s6572_s11 }
  0x99   : > { %1258 = vrot.lane.b32.xlu1 %v7379_v57, %s6572_s11 }
  0x9b   : > { %1260 = vrot.lane.b32.xlu0 %v7385_v38, %s6572_s11  ;;  %v7421_v38 = vld [vmem:[#allocation2 + $0x1a] sm:$0xff] }
  0x9c   : > { %9711 = vst [vmem:[#allocation41_spill] sm:$0xff] %v7421_v38 }
  0x9d   : > { %1262 = vrot.lane.b32.xlu1 %v7395_v35, %s6572_s11  ;;  %v1338_v35 = vld [vmem:[#allocation2 + $0xa] sm:$0xff] }
  0x9f   : > { %1264 = vrot.lane.b32.xlu0 %v1172_v5, %s6572_s11 }
  0xa1   : > { %1266 = vrot.lane.b32.xlu1 %v1173_v62, %s6572_s11 }
  0xa3   : > { %1268 = vrot.lane.b32.xlu0 %v1174_v44, %s6572_s11 }
  0xa5   : > { %v489_v17 = vpop.xlane.xlu1 %488  ;;  %1270 = vrot.lane.b32.xlu1 %v7416_v19, %s6572_s11 }
  0xa6   : > { %v483_v5 = vpop.xlane.xlu0 %482  ;;  %v580_v18 = vmul.f32 0.25, %v489_v17  ;;  %v7428_v17 = vld [vmem:[#allocation2 + $0x22] sm:$0xff] }
  0xa7   : > { %v578_v21 = vmul.f32 0.25, %v483_v5  ;;  %1401 = vrot.lane.b32.xlu0 %v1337_v23, %s6573_s12  ;;  %9712 = vst [vmem:[#allocation42_spill] sm:$0xff] %v7428_v17  ;;  %v7430_v5 = vld [vmem:[#allocation2 + $0x32] sm:$0xff] }
  0xa8   : > { %613 = vst.msk [vmem:[#allocation3 + $0x31] sm:$0xff] %vm325_vm13, %v580_v18  ;;  %9713 = vst [vmem:[#allocation43_spill] sm:$0xff] %v7430_v5 }
  0xa9   : > { %611 = vst.msk [vmem:[#allocation3 + $0x19] sm:$0xff] %vm325_vm13, %v578_v21  ;;  %v492_v44 = vpop.xlane.xlu1 %491  ;;  %1403 = vrot.lane.b32.xlu1 %v1338_v35, %s6573_s12 }
  0xaa   : > { %v486_v62 = vpop.xlane.xlu0 %485  ;;  %v581_v57 = vmul.f32 0.25, %v492_v44  ;;  %v7438_v44 = vld [vmem:[#allocation2 + $0x3a] sm:$0xff] }
  0xab   : > { %v579_v14 = vmul.f32 0.25, %v486_v62  ;;  %1405 = vrot.lane.b32.xlu0 %v7421_v38, %s6573_s12  ;;  %9714 = vst [vmem:[#allocation44_spill] sm:$0xff] %v7438_v44  ;;  %v7440_v62 = vld [vmem:[#allocation2 + $0x4a] sm:$0xff] }
  0xac   : > { %614 = vst.msk [vmem:[#allocation3 + $0x39] sm:$0xff] %vm325_vm13, %v581_v57  ;;  %9715 = vst [vmem:[#allocation45_spill] sm:$0xff] %v7440_v62 }
  0xad   : > { %612 = vst.msk [vmem:[#allocation3 + $0x21] sm:$0xff] %vm325_vm13, %v579_v14  ;;  %v498_v18 = vpop.xlane.xlu1 %497  ;;  %1407 = vrot.lane.b32.xlu1 %v7428_v17, %s6573_s12 }
  0xae   : > { %v495_v21 = vpop.xlane.xlu0 %494  ;;  %v583_v23 = vmul.f32 0.25, %v498_v18  ;;  %v7448_v18 = vld [vmem:[#allocation2 + $0x52] sm:$0xff] }
  0xaf   : > { %v582_v35 = vmul.f32 0.25, %v495_v21  ;;  %1409 = vrot.lane.b32.xlu0 %v7430_v5, %s6573_s12  ;;  %9716 = vst [vmem:[#allocation46_spill] sm:$0xff] %v7448_v18  ;;  %v7450_v21 = vld [vmem:[#allocation2 + $0x62] sm:$0xff] }
  0xb0   : > { %616 = vst.msk [vmem:[#allocation3 + $0x51] sm:$0xff] %vm325_vm13, %v583_v23  ;;  %9717 = vst [vmem:[#allocation47_spill] sm:$0xff] %v7450_v21 }
  0xb1   : > { %615 = vst.msk [vmem:[#allocation3 + $0x49] sm:$0xff] %vm325_vm13, %v582_v35  ;;  %v504_v57 = vpop.xlane.xlu1 %503  ;;  %1411 = vrot.lane.b32.xlu1 %v7438_v44, %s6573_s12 }
  0xb2   : > { %v501_v14 = vpop.xlane.xlu0 %500  ;;  %v585_v17 = vmul.f32 0.25, %v504_v57  ;;  %v7458_v57 = vld [vmem:[#allocation2 + $0x6a] sm:$0xff] }
  0xb3   : > { %v584_v38 = vmul.f32 0.25, %v501_v14  ;;  %1413 = vrot.lane.b32.xlu0 %v7440_v62, %s6573_s12  ;;  %9718 = vst [vmem:[#allocation48_spill] sm:$0xff] %v7458_v57  ;;  %v7460_v14 = vld [vmem:[#allocation2 + $0x7a] sm:$0xff] }
  0xb4   : > { %618 = vst.msk [vmem:[#allocation3 + $0x69] sm:$0xff] %vm325_vm13, %v585_v17  ;;  %9719 = vst [vmem:[#allocation49_spill] sm:$0xff] %v7460_v14 }
  0xb5   : > { %617 = vst.msk [vmem:[#allocation3 + $0x61] sm:$0xff] %vm325_vm13, %v584_v38  ;;  %v510_v23 = vpop.xlane.xlu1 %509  ;;  %1415 = vrot.lane.b32.xlu1 %v7448_v18, %s6573_s12 }
  0xb6   : > { %v507_v35 = vpop.xlane.xlu0 %506  ;;  %v587_v44 = vmul.f32 0.25, %v510_v23  ;;  %v7468_v23 = vld [vmem:[#allocation2 + $0x82] sm:$0xff] }
  0xb7   : > { %v586_v5 = vmul.f32 0.25, %v507_v35  ;;  %1417 = vrot.lane.b32.xlu0 %v7450_v21, %s6573_s12  ;;  %9720 = vst [vmem:[#allocation50_spill] sm:$0xff] %v7468_v23  ;;  %v7470_v35 = vld [vmem:[#allocation2 + $0x92] sm:$0xff] }
  0xb8   : > { %620 = vst.msk [vmem:[#allocation3 + $0x81] sm:$0xff] %vm325_vm13, %v587_v44  ;;  %9721 = vst [vmem:[#allocation51_spill] sm:$0xff] %v7470_v35 }
  0xb9   : > { %619 = vst.msk [vmem:[#allocation3 + $0x79] sm:$0xff] %vm325_vm13, %v586_v5  ;;  %v516_v17 = vpop.xlane.xlu1 %515  ;;  %1419 = vrot.lane.b32.xlu1 %v7458_v57, %s6573_s12 }
  0xba   : > { %v513_v38 = vpop.xlane.xlu0 %512  ;;  %v589_v18 = vmul.f32 0.25, %v516_v17  ;;  %v7478_v17 = vld [vmem:[#allocation2 + $0x9a] sm:$0xff] }
  0xbb   : > { %v588_v62 = vmul.f32 0.25, %v513_v38  ;;  %1421 = vrot.lane.b32.xlu0 %v7460_v14, %s6573_s12  ;;  %9722 = vst [vmem:[#allocation52_spill] sm:$0xff] %v7478_v17  ;;  %v7480_v38 = vld [vmem:[#allocation2 + $0xaa] sm:$0xff] }
  0xbc   : > { %622 = vst.msk [vmem:[#allocation3 + $0x99] sm:$0xff] %vm325_vm13, %v589_v18  ;;  %9723 = vst [vmem:[#allocation53_spill] sm:$0xff] %v7480_v38 }
  0xbd   : > { %621 = vst.msk [vmem:[#allocation3 + $0x91] sm:$0xff] %vm325_vm13, %v588_v62  ;;  %v522_v44 = vpop.xlane.xlu1 %521  ;;  %1423 = vrot.lane.b32.xlu1 %v7468_v23, %s6573_s12 }
  0xbe   : > { %v519_v5 = vpop.xlane.xlu0 %518  ;;  %v591_v57 = vmul.f32 0.25, %v522_v44  ;;  %v7488_v44 = vld [vmem:[#allocation2 + $0xb2] sm:$0xff] }
  0xbf   : > { %v590_v21 = vmul.f32 0.25, %v519_v5  ;;  %1425 = vrot.lane.b32.xlu0 %v7470_v35, %s6573_s12  ;;  %9724 = vst [vmem:[#allocation54_spill] sm:$0xff] %v7488_v44  ;;  %v7490_v5 = vld [vmem:[#allocation2 + $0xc2] sm:$0xff] }
  0xc0   : > { %624 = vst.msk [vmem:[#allocation3 + $0xb1] sm:$0xff] %vm325_vm13, %v591_v57  ;;  %9725 = vst [vmem:[#allocation55_spill] sm:$0xff] %v7490_v5 }
  0xc1   : > { %623 = vst.msk [vmem:[#allocation3 + $0xa9] sm:$0xff] %vm325_vm13, %v590_v21  ;;  %v528_v18 = vpop.xlane.xlu1 %527  ;;  %1427 = vrot.lane.b32.xlu1 %v7478_v17, %s6573_s12 }
  0xc2   : > { %v525_v62 = vpop.xlane.xlu0 %524  ;;  %v593_v23 = vmul.f32 0.25, %v528_v18  ;;  %v7498_v18 = vld [vmem:[#allocation2 + $0xca] sm:$0xff] }
  0xc3   : > { %v592_v14 = vmul.f32 0.25, %v525_v62  ;;  %1429 = vrot.lane.b32.xlu0 %v7480_v38, %s6573_s12  ;;  %9726 = vst [vmem:[#allocation56_spill] sm:$0xff] %v7498_v18  ;;  %v7500_v62 = vld [vmem:[#allocation2 + $0xda] sm:$0xff] }
  0xc4   : > { %626 = vst.msk [vmem:[#allocation3 + $0xc9] sm:$0xff] %vm325_vm13, %v593_v23  ;;  %9727 = vst [vmem:[#allocation57_spill] sm:$0xff] %v7500_v62 }
  0xc5   : > { %625 = vst.msk [vmem:[#allocation3 + $0xc1] sm:$0xff] %vm325_vm13, %v592_v14  ;;  %v534_v57 = vpop.xlane.xlu1 %533  ;;  %1431 = vrot.lane.b32.xlu1 %v7488_v44, %s6573_s12 }
  0xc6   : > { %v531_v21 = vpop.xlane.xlu0 %530  ;;  %v595_v17 = vmul.f32 0.25, %v534_v57  ;;  %v7508_v57 = vld [vmem:[#allocation2 + $0xe2] sm:$0xff] }
  0xc7   : > { %v594_v35 = vmul.f32 0.25, %v531_v21  ;;  %1433 = vrot.lane.b32.xlu0 %v7490_v5, %s6573_s12  ;;  %9728 = vst [vmem:[#allocation58_spill] sm:$0xff] %v7508_v57  ;;  %v7510_v21 = vld [vmem:[#allocation2 + $0xf2] sm:$0xff] }
  0xc8   : > { %628 = vst.msk [vmem:[#allocation3 + $0xe1] sm:$0xff] %vm325_vm13, %v595_v17  ;;  %9729 = vst [vmem:[#allocation59_spill] sm:$0xff] %v7510_v21 }
  0xc9   : > { %627 = vst.msk [vmem:[#allocation3 + $0xd9] sm:$0xff] %vm325_vm13, %v594_v35  ;;  %v540_v23 = vpop.xlane.xlu1 %539  ;;  %1435 = vrot.lane.b32.xlu1 %v7498_v18, %s6573_s12 }
  0xca   : > { %v537_v14 = vpop.xlane.xlu0 %536  ;;  %v597_v44 = vmul.f32 0.25, %v540_v23  ;;  %v7518_v23 = vld [vmem:[#allocation2 + $0xfa] sm:$0xff] }
  0xcb   : > { %v596_v38 = vmul.f32 0.25, %v537_v14  ;;  %1437 = vrot.lane.b32.xlu0 %v7500_v62, %s6573_s12  ;;  %9730 = vst [vmem:[#allocation60_spill] sm:$0xff] %v7518_v23  ;;  %v7520_v14 = vld [vmem:[#allocation2 + $0x10a] sm:$0xff] }
  0xcc   : > { %630 = vst.msk [vmem:[#allocation3 + $0xf9] sm:$0xff] %vm325_vm13, %v597_v44  ;;  %9731 = vst [vmem:[#allocation61_spill] sm:$0xff] %v7520_v14 }
  0xcd   : > { %629 = vst.msk [vmem:[#allocation3 + $0xf1] sm:$0xff] %vm325_vm13, %v596_v38  ;;  %v546_v17 = vpop.xlane.xlu1 %545  ;;  %1439 = vrot.lane.b32.xlu1 %v7508_v57, %s6573_s12 }
  0xce   : > { %v543_v35 = vpop.xlane.xlu0 %542  ;;  %v599_v18 = vmul.f32 0.25, %v546_v17  ;;  %v7528_v17 = vld [vmem:[#allocation2 + $0x112] sm:$0xff] }
  0xcf   : > { %v598_v5 = vmul.f32 0.25, %v543_v35  ;;  %1441 = vrot.lane.b32.xlu0 %v7510_v21, %s6573_s12  ;;  %9732 = vst [vmem:[#allocation62_spill] sm:$0xff] %v7528_v17  ;;  %v7530_v35 = vld [vmem:[#allocation2 + $0x122] sm:$0xff] }
  0xd0   : > { %632 = vst.msk [vmem:[#allocation3 + $0x111] sm:$0xff] %vm325_vm13, %v599_v18  ;;  %9733 = vst [vmem:[#allocation63_spill] sm:$0xff] %v7530_v35 }
  0xd1   : > { %631 = vst.msk [vmem:[#allocation3 + $0x109] sm:$0xff] %vm325_vm13, %v598_v5  ;;  %v552_v44 = vpop.xlane.xlu1 %551  ;;  %1443 = vrot.lane.b32.xlu1 %v7518_v23, %s6573_s12 }
  0xd2   : > { %v549_v38 = vpop.xlane.xlu0 %548  ;;  %v601_v57 = vmul.f32 0.25, %v552_v44  ;;  %v7538_v44 = vld [vmem:[#allocation2 + $0x12a] sm:$0xff] }
  0xd3   : > { %v600_v62 = vmul.f32 0.25, %v549_v38  ;;  %1445 = vrot.lane.b32.xlu0 %v7520_v14, %s6573_s12  ;;  %9734 = vst [vmem:[#allocation64_spill] sm:$0xff] %v7538_v44  ;;  %v7540_v38 = vld [vmem:[#allocation2 + $0x13a] sm:$0xff] }
  0xd4   : > { %634 = vst.msk [vmem:[#allocation3 + $0x129] sm:$0xff] %vm325_vm13, %v601_v57  ;;  %9735 = vst [vmem:[#allocation65_spill] sm:$0xff] %v7540_v38 }
  0xd5   : > { %633 = vst.msk [vmem:[#allocation3 + $0x121] sm:$0xff] %vm325_vm13, %v600_v62  ;;  %v558_v18 = vpop.xlane.xlu1 %557  ;;  %1447 = vrot.lane.b32.xlu1 %v7528_v17, %s6573_s12 }
  0xd6   : > { %v555_v5 = vpop.xlane.xlu0 %554  ;;  %v603_v23 = vmul.f32 0.25, %v558_v18  ;;  %v7548_v18 = vld [vmem:[#allocation2 + $0x142] sm:$0xff] }
  0xd7   : > { %v602_v21 = vmul.f32 0.25, %v555_v5  ;;  %1449 = vrot.lane.b32.xlu0 %v7530_v35, %s6573_s12  ;;  %9736 = vst [vmem:[#allocation66_spill] sm:$0xff] %v7548_v18  ;;  %v7550_v5 = vld [vmem:[#allocation2 + $0x152] sm:$0xff] }
  0xd8   : > { %636 = vst.msk [vmem:[#allocation3 + $0x141] sm:$0xff] %vm325_vm13, %v603_v23 }
  0xd9   : > { %635 = vst.msk [vmem:[#allocation3 + $0x139] sm:$0xff] %vm325_vm13, %v602_v21  ;;  %v564_v57 = vpop.xlane.xlu1 %563  ;;  %1451 = vrot.lane.b32.xlu1 %v7538_v44, %s6573_s12 }
  0xda   : > { %v561_v62 = vpop.xlane.xlu0 %560  ;;  %v605_v17 = vmul.f32 0.25, %v564_v57  ;;  %v7558_v57 = vld [vmem:[#allocation2 + $0x15a] sm:$0xff] }
  0xdb   : > { %v604_v14 = vmul.f32 0.25, %v561_v62  ;;  %1453 = vrot.lane.b32.xlu0 %v7540_v38, %s6573_s12  ;;  %v7560_v62 = vld [vmem:[#allocation2 + $0x16a] sm:$0xff] }
  0xdc   : > { %638 = vst.msk [vmem:[#allocation3 + $0x159] sm:$0xff] %vm325_vm13, %v605_v17 }
  0xdd   : > { %637 = vst.msk [vmem:[#allocation3 + $0x151] sm:$0xff] %vm325_vm13, %v604_v14  ;;  %v570_v23 = vpop.xlane.xlu1 %569  ;;  %1455 = vrot.lane.b32.xlu1 %v7548_v18, %s6573_s12 }
  0xde   : > { %v567_v21 = vpop.xlane.xlu0 %566  ;;  %v607_v44 = vmul.f32 0.25, %v570_v23  ;;  %v7568_v23 = vld [vmem:[#allocation2 + $0x172] sm:$0xff] }
  0xdf   : > { %v606_v35 = vmul.f32 0.25, %v567_v21  ;;  %1457 = vrot.lane.b32.xlu0 %v7550_v5, %s6573_s12 }
  0xe0   : > { %640 = vst.msk [vmem:[#allocation3 + $0x171] sm:$0xff] %vm325_vm13, %v607_v44 }
  0xe1   : > { %639 = vst.msk [vmem:[#allocation3 + $0x169] sm:$0xff] %vm325_vm13, %v606_v35  ;;  %v576_v17 = vpop.xlane.xlu1 %575  ;;  %1459 = vrot.lane.b32.xlu1 %v7558_v57, %s6573_s12 }
  0xe2   : > { %v573_v14 = vpop.xlane.xlu0 %572  ;;  %v609_v18 = vmul.f32 0.25, %v576_v17 }
  0xe3   : > { %v608_v38 = vmul.f32 0.25, %v573_v14  ;;  %1461 = vrot.lane.b32.xlu0 %v7560_v62, %s6573_s12 }
  0xe4   : > { %642 = vst.msk [vmem:[#allocation3 + $0x189] sm:$0xff] %vm325_vm13, %v609_v18 }
  0xe5   : > { %641 = vst.msk [vmem:[#allocation3 + $0x181] sm:$0xff] %vm325_vm13, %v608_v38  ;;  %v1211_v44 = vpop.permute.xlu1 %1210  ;;  %1463 = vrot.lane.b32.xlu1 %v7568_v23, %s6573_s12 }
  0xe6   : > { %v1209_v35 = vpop.permute.xlu0 %1208  ;;  %1306 = vst.msk [vmem:[#allocation4 + $0x8] sm:$0xff] %vm1304_vm12, %v1211_v44 }
  0xe7   : > { %1594 = vrot.lane.b32.xlu0 %v7187_v10, %s6574_s13  ;;  %1305 = vst.msk [vmem:[#allocation4] sm:$0xff] %vm1304_vm12, %v1209_v35 }
  0xe9   : > { %1596 = vrot.lane.b32.xlu1 %v7191_v12, %s6574_s13  ;;  %v1213_v21 = vpop.permute.xlu1 %1212 }
  0xea   : > { %v1217_v18 = vpop.permute.xlu0 %1216  ;;  %1307 = vst.msk [vmem:[#allocation4 + $0x10] sm:$0xff] %vm1304_vm12, %v1213_v21 }
  0xeb   : > { %1598 = vrot.lane.b32.xlu0 %v7199_v15, %s6574_s13  ;;  %1309 = vst.msk [vmem:[#allocation4 + $0x20] sm:$0xff] %vm1304_vm12, %v1217_v18 }
  0xed   : > { %1600 = vrot.lane.b32.xlu1 %v7204_v25, %s6574_s13  ;;  %v1215_v38 = vpop.permute.xlu1 %1214 }
  0xee   : > { %v1221_v17 = vpop.permute.xlu0 %1220  ;;  %1308 = vst.msk [vmem:[#allocation4 + $0x18] sm:$0xff] %vm1304_vm12, %v1215_v38 }
  0xef   : > { %1602 = vrot.lane.b32.xlu0 %v7215_v28, %s6574_s13  ;;  %1311 = vst.msk [vmem:[#allocation4 + $0x30] sm:$0xff] %vm1304_vm12, %v1221_v17 }
  0xf1   : > { %1604 = vrot.lane.b32.xlu1 %v7221_v30, %s6574_s13  ;;  %v1219_v10 = vpop.permute.xlu1 %1218 }
  0xf2   : > { %v1225_v12 = vpop.permute.xlu0 %1224  ;;  %1310 = vst.msk [vmem:[#allocation4 + $0x28] sm:$0xff] %vm1304_vm12, %v1219_v10 }
  0xf3   : > { %1606 = vrot.lane.b32.xlu0 %v7231_v33, %s6574_s13  ;;  %1313 = vst.msk [vmem:[#allocation4 + $0x40] sm:$0xff] %vm1304_vm12, %v1225_v12 }
  0xf5   : > { %1608 = vrot.lane.b32.xlu1 %v7237_v46, %s6574_s13  ;;  %v1223_v14 = vpop.permute.xlu1 %1222 }
  0xf6   : > { %v1229_v44 = vpop.permute.xlu0 %1228  ;;  %1312 = vst.msk [vmem:[#allocation4 + $0x38] sm:$0xff] %vm1304_vm12, %v1223_v14 }
  0xf7   : > { %1610 = vrot.lane.b32.xlu0 %v7247_v48, %s6574_s13  ;;  %1315 = vst.msk [vmem:[#allocation4 + $0x50] sm:$0xff] %vm1304_vm12, %v1229_v44 }
  0xf9   : > { %1612 = vrot.lane.b32.xlu1 %v7253_v49, %s6574_s13  ;;  %v1227_v35 = vpop.permute.xlu1 %1226 }
  0xfa   : > { %v1233_v21 = vpop.permute.xlu0 %1232  ;;  %1314 = vst.msk [vmem:[#allocation4 + $0x48] sm:$0xff] %vm1304_vm12, %v1227_v35 }
  0xfb   : > { %1614 = vrot.lane.b32.xlu0 %v7263_v52, %s6574_s13  ;;  %1317 = vst.msk [vmem:[#allocation4 + $0x60] sm:$0xff] %vm1304_vm12, %v1233_v21 }
  0xfd   : > { %1616 = vrot.lane.b32.xlu1 %v7269_v55, %s6574_s13  ;;  %v1231_v18 = vpop.permute.xlu1 %1230 }
  0xfe   : > { %v1237_v38 = vpop.permute.xlu0 %1236  ;;  %1316 = vst.msk [vmem:[#allocation4 + $0x58] sm:$0xff] %vm1304_vm12, %v1231_v18 }
  0xff   : > { %1618 = vrot.lane.b32.xlu0 %v7279_v61, %s6574_s13  ;;  %1319 = vst.msk [vmem:[#allocation4 + $0x70] sm:$0xff] %vm1304_vm12, %v1237_v38 }
 0x101   : > { %1620 = vrot.lane.b32.xlu1 %v7285_v3, %s6574_s13  ;;  %v1235_v17 = vpop.permute.xlu1 %1234 }
 0x102   : > { %v1241_v10 = vpop.permute.xlu0 %1240  ;;  %1318 = vst.msk [vmem:[#allocation4 + $0x68] sm:$0xff] %vm1304_vm12, %v1235_v17 }
 0x103   : > { %1622 = vrot.lane.b32.xlu0 %v7295_v7, %s6574_s13  ;;  %1321 = vst.msk [vmem:[#allocation4 + $0x80] sm:$0xff] %vm1304_vm12, %v1241_v10 }
 0x105   : > { %1624 = vrot.lane.b32.xlu1 %v7301_v13, %s6574_s13  ;;  %v1239_v12 = vpop.permute.xlu1 %1238 }
 0x106   : > { %v1245_v14 = vpop.permute.xlu0 %1244  ;;  %1320 = vst.msk [vmem:[#allocation4 + $0x78] sm:$0xff] %vm1304_vm12, %v1239_v12 }
 0x107   : > { %1626 = vrot.lane.b32.xlu0 %v7311_v0, %s6574_s13  ;;  %1323 = vst.msk [vmem:[#allocation4 + $0x90] sm:$0xff] %vm1304_vm12, %v1245_v14 }
 0x109   : > { %1628 = vrot.lane.b32.xlu1 %v7317_v1, %s6574_s13  ;;  %v1243_v44 = vpop.permute.xlu1 %1242 }
 0x10a   : > { %v1249_v35 = vpop.permute.xlu0 %1248  ;;  %1322 = vst.msk [vmem:[#allocation4 + $0x88] sm:$0xff] %vm1304_vm12, %v1243_v44 }
 0x10b   : > { %1630 = vrot.lane.b32.xlu0 %v7327_v58, %s6574_s13  ;;  %1325 = vst.msk [vmem:[#allocation4 + $0xa0] sm:$0xff] %vm1304_vm12, %v1249_v35 }
 0x10d   : > { %1632 = vrot.lane.b32.xlu1 %v7333_v51, %s6574_s13  ;;  %v1247_v21 = vpop.permute.xlu1 %1246 }
 0x10e   : > { %v1253_v18 = vpop.permute.xlu0 %1252  ;;  %1324 = vst.msk [vmem:[#allocation4 + $0x98] sm:$0xff] %vm1304_vm12, %v1247_v21 }
 0x10f   : > { %1634 = vrot.lane.b32.xlu0 %v7343_v39, %s6574_s13  ;;  %1327 = vst.msk [vmem:[#allocation4 + $0xb0] sm:$0xff] %vm1304_vm12, %v1253_v18  ;;  %v7662_v18 = vld [vmem:[#allocation2 + $0x180] sm:$0xff] }
 0x111   : > { %1636 = vrot.lane.b32.xlu1 %v7349_v16, %s6574_s13  ;;  %v1251_v38 = vpop.permute.xlu1 %1250 }
 0x112   : > { %v1257_v17 = vpop.permute.xlu0 %1256  ;;  %1326 = vst.msk [vmem:[#allocation4 + $0xa8] sm:$0xff] %vm1304_vm12, %v1251_v38 }
 0x113   : > { %1638 = vrot.lane.b32.xlu0 %v7359_v59, %s6574_s13  ;;  %1329 = vst.msk [vmem:[#allocation4 + $0xc0] sm:$0xff] %vm1304_vm12, %v1257_v17 }
 0x115   : > { %1640 = vrot.lane.b32.xlu1 %v7365_v42, %s6574_s13  ;;  %v1255_v10 = vpop.permute.xlu1 %1254 }
 0x116   : > { %v1261_v12 = vpop.permute.xlu0 %1260  ;;  %1328 = vst.msk [vmem:[#allocation4 + $0xb8] sm:$0xff] %vm1304_vm12, %v1255_v10  ;;  %v7669_v10 = vld [vmem:[#allocation2 + $0x188] sm:$0xff] }
 0x117   : > { %1642 = vrot.lane.b32.xlu0 %v7375_v37, %s6574_s13  ;;  %1331 = vst.msk [vmem:[#allocation4 + $0xd0] sm:$0xff] %vm1304_vm12, %v1261_v12 }
 0x119   : > { %1644 = vrot.lane.b32.xlu1 %v7381_v9, %s6574_s13  ;;  %v1259_v14 = vpop.permute.xlu1 %1258 }
 0x11a   : > { %v1265_v44 = vpop.permute.xlu0 %1264  ;;  %1330 = vst.msk [vmem:[#allocation4 + $0xc8] sm:$0xff] %vm1304_vm12, %v1259_v14 }
 0x11b   : > { %1646 = vrot.lane.b32.xlu0 %v7391_v4, %s6574_s13  ;;  %1333 = vst.msk [vmem:[#allocation4 + $0xe0] sm:$0xff] %vm1304_vm12, %v1265_v44 }
 0x11d   : > { %1648 = vrot.lane.b32.xlu1 %v7397_v56, %s6574_s13  ;;  %v1263_v35 = vpop.permute.xlu1 %1262 }
 0x11e   : > { %v1269_v21 = vpop.permute.xlu0 %1268  ;;  %1332 = vst.msk [vmem:[#allocation4 + $0xd8] sm:$0xff] %vm1304_vm12, %v1263_v35 }
 0x11f   : > { %1650 = vrot.lane.b32.xlu0 %v7405_v41, %s6574_s13  ;;  %1335 = vst.msk [vmem:[#allocation4 + $0xf0] sm:$0xff] %vm1304_vm12, %v1269_v21 }
 0x121   : > { %1652 = vrot.lane.b32.xlu1 %v7408_v22, %s6574_s13  ;;  %v1267_v38 = vpop.permute.xlu1 %1266 }
 0x122   : > { %v1402_v17 = vpop.permute.xlu0 %1401  ;;  %1334 = vst.msk [vmem:[#allocation4 + $0xe8] sm:$0xff] %vm1304_vm12, %v1267_v38 }
 0x123   : > { %1654 = vrot.lane.b32.xlu0 %v7662_v18, %s6574_s13  ;;  %1498 = vst.msk [vmem:[#allocation4] sm:$0xff] %vm1497_vm14, %v1402_v17 }
 0x125   : > { %1656 = vrot.lane.b32.xlu1 %v7669_v10, %s6574_s13  ;;  %v1271_v12 = vpop.permute.xlu1 %1270 }
 0x126   : > { %v1406_v14 = vpop.permute.xlu0 %1405  ;;  %1336 = vst.msk [vmem:[#allocation4 + $0xf8] sm:$0xff] %vm1304_vm12, %v1271_v12 }
 0x127   : > { %1787 = vrot.lane.b32.xlu0 %v7189_v11, %s6575_s14  ;;  %1500 = vst.msk [vmem:[#allocation4 + $0x10] sm:$0xff] %vm1497_vm14, %v1406_v14  ;;  %v9740_v14 = vld [vmem:[#allocation40_spill] sm:$0xff] }
 0x129   : > { %1789 = vrot.lane.b32.xlu1 %v7202_v20, %s6575_s14  ;;  %v1404_v44 = vpop.permute.xlu1 %1403 }
 0x12a   : > { %v1410_v35 = vpop.permute.xlu0 %1409  ;;  %1499 = vst.msk [vmem:[#allocation4 + $0x8] sm:$0xff] %vm1497_vm14, %v1404_v44 }
 0x12b   : > { %1791 = vrot.lane.b32.xlu0 %v7208_v27, %s6575_s14  ;;  %1502 = vst.msk [vmem:[#allocation4 + $0x20] sm:$0xff] %vm1497_vm14, %v1410_v35 }
 0x12d   : > { %1793 = vrot.lane.b32.xlu1 %v7219_v29, %s6575_s14  ;;  %v1408_v21 = vpop.permute.xlu1 %1407 }
 0x12e   : > { %v1414_v38 = vpop.permute.xlu0 %1413  ;;  %1501 = vst.msk [vmem:[#allocation4 + $0x18] sm:$0xff] %vm1497_vm14, %v1408_v21  ;;  %v7757_v21 = vld [vmem:[#allocation2 + $0x159] sm:$0xff] }
 0x12f   : > { %1795 = vrot.lane.b32.xlu0 %v7225_v32, %s6575_s14  ;;  %1504 = vst.msk [vmem:[#allocation4 + $0x30] sm:$0xff] %vm1497_vm14, %v1414_v38  ;;  %v7760_v38 = vld [vmem:[#allocation2 + $0x169] sm:$0xff] }
 0x131   : > { %1797 = vrot.lane.b32.xlu1 %v7235_v43, %s6575_s14  ;;  %v1412_v11 = vpop.permute.xlu1 %1411 }
 0x132   : > { %v1418_v20 = vpop.permute.xlu0 %1417  ;;  %1503 = vst.msk [vmem:[#allocation4 + $0x28] sm:$0xff] %vm1497_vm14, %v1412_v11 }
 0x133   : > { %1799 = vrot.lane.b32.xlu0 %v7241_v47, %s6575_s14  ;;  %1506 = vst.msk [vmem:[#allocation4 + $0x40] sm:$0xff] %vm1497_vm14, %v1418_v20 }
 0x135   : > { %1801 = vrot.lane.b32.xlu1 %v7251_v2, %s6575_s14  ;;  %v1416_v27 = vpop.permute.xlu1 %1415 }
 0x136   : > { %v1422_v29 = vpop.permute.xlu0 %1421  ;;  %1505 = vst.msk [vmem:[#allocation4 + $0x38] sm:$0xff] %vm1497_vm14, %v1416_v27  ;;  %v7768_v27 = vld [vmem:[#allocation2 + $0x181] sm:$0xff] }
 0x137   : > { %1803 = vrot.lane.b32.xlu0 %v7257_v50, %s6575_s14  ;;  %1508 = vst.msk [vmem:[#allocation4 + $0x50] sm:$0xff] %vm1497_vm14, %v1422_v29 }
 0x139   : > { %1805 = vrot.lane.b32.xlu1 %v7267_v53, %s6575_s14  ;;  %v1420_v32 = vpop.permute.xlu1 %1419 }
 0x13a   : > { %v1426_v43 = vpop.permute.xlu0 %1425  ;;  %1507 = vst.msk [vmem:[#allocation4 + $0x48] sm:$0xff] %vm1497_vm14, %v1420_v32 }
 0x13b   : > { %1807 = vrot.lane.b32.xlu0 %v7273_v60, %s6575_s14  ;;  %1510 = vst.msk [vmem:[#allocation4 + $0x60] sm:$0xff] %vm1497_vm14, %v1426_v43  ;;  %v7775_v43 = vld [vmem:[#allocation2 + $0x189] sm:$0xff] }
 0x13d   : > { %1809 = vrot.lane.b32.xlu1 %v7283_v63, %s6575_s14  ;;  %v1424_v47 = vpop.permute.xlu1 %1423 }
 0x13e   : > { %v1430_v2 = vpop.permute.xlu0 %1429  ;;  %1509 = vst.msk [vmem:[#allocation4 + $0x58] sm:$0xff] %vm1497_vm14, %v1424_v47 }
 0x13f   : > { %1811 = vrot.lane.b32.xlu0 %v7289_v6, %s6575_s14  ;;  %1512 = vst.msk [vmem:[#allocation4 + $0x70] sm:$0xff] %vm1497_vm14, %v1430_v2 }
 0x141   : > { %1813 = vrot.lane.b32.xlu1 %v7299_v8, %s6575_s14  ;;  %v1428_v50 = vpop.permute.xlu1 %1427 }
 0x142   : > { %v1434_v53 = vpop.permute.xlu0 %1433  ;;  %1511 = vst.msk [vmem:[#allocation4 + $0x68] sm:$0xff] %vm1497_vm14, %v1428_v50  ;;  %v9742_v50 = vld [vmem:[#allocation42_spill] sm:$0xff] }
 0x143   : > { %1815 = vrot.lane.b32.xlu0 %v7305_v24, %s6575_s14  ;;  %1514 = vst.msk [vmem:[#allocation4 + $0x80] sm:$0xff] %vm1497_vm14, %v1434_v53 }
 0x145   : > { %1817 = vrot.lane.b32.xlu1 %v7315_v36, %s6575_s14  ;;  %v1432_v60 = vpop.permute.xlu1 %1431 }
 0x146   : > { %v1438_v63 = vpop.permute.xlu0 %1437  ;;  %1513 = vst.msk [vmem:[#allocation4 + $0x78] sm:$0xff] %vm1497_vm14, %v1432_v60 }
 0x147   : > { %1819 = vrot.lane.b32.xlu0 %v7321_v45, %s6575_s14  ;;  %1516 = vst.msk [vmem:[#allocation4 + $0x90] sm:$0xff] %vm1497_vm14, %v1438_v63  ;;  %v9743_v63 = vld [vmem:[#allocation43_spill] sm:$0xff] }
 0x149   : > { %1821 = vrot.lane.b32.xlu1 %v7331_v34, %s6575_s14  ;;  %v1436_v6 = vpop.permute.xlu1 %1435 }
 0x14a   : > { %v1442_v8 = vpop.permute.xlu0 %1441  ;;  %1515 = vst.msk [vmem:[#allocation4 + $0x88] sm:$0xff] %vm1497_vm14, %v1436_v6  ;;  %v9744_v6 = vld [vmem:[#allocation44_spill] sm:$0xff] }
 0x14b   : > { %1823 = vrot.lane.b32.xlu0 %v7337_v31, %s6575_s14  ;;  %1518 = vst.msk [vmem:[#allocation4 + $0xa0] sm:$0xff] %vm1497_vm14, %v1442_v8  ;;  %v9737_v31 = vld [vmem:[#allocation37_spill] sm:$0xff] }
 0x14d   : > { %1825 = vrot.lane.b32.xlu1 %v7347_v54, %s6575_s14  ;;  %v1440_v36 = vpop.permute.xlu1 %1439  ;;  %v9738_v54 = vld [vmem:[#allocation38_spill] sm:$0xff] }
 0x14e   : > { %v1446_v24 = vpop.permute.xlu0 %1445  ;;  %1517 = vst.msk [vmem:[#allocation4 + $0x98] sm:$0xff] %vm1497_vm14, %v1440_v36 }
 0x14f   : > { %1827 = vrot.lane.b32.xlu0 %v7353_v40, %s6575_s14  ;;  %1520 = vst.msk [vmem:[#allocation4 + $0xb0] sm:$0xff] %vm1497_vm14, %v1446_v24  ;;  %v9739_v40 = vld [vmem:[#allocation39_spill] sm:$0xff]  ;;  %v9745_v24 = vld [vmem:[#allocation45_spill] sm:$0xff] }
 0x151   : > { %1829 = vrot.lane.b32.xlu1 %v7363_v26, %s6575_s14  ;;  %v1444_v34 = vpop.permute.xlu1 %1443  ;;  %v7750_v26 = vld [vmem:[#allocation2 + $0x151] sm:$0xff] }
 0x152   : > { %v1450_v45 = vpop.permute.xlu0 %1449  ;;  %1519 = vst.msk [vmem:[#allocation4 + $0xa8] sm:$0xff] %vm1497_vm14, %v1444_v34  ;;  %v9746_v34 = vld [vmem:[#allocation46_spill] sm:$0xff] }
 0x153   : > { %1831 = vrot.lane.b32.xlu0 %v9737_v31, %s6575_s14  ;;  %1522 = vst.msk [vmem:[#allocation4 + $0xc0] sm:$0xff] %vm1497_vm14, %v1450_v45 }
 0x155   : > { %1833 = vrot.lane.b32.xlu1 %v9738_v54, %s6575_s14  ;;  %v1448_v17 = vpop.permute.xlu1 %1447  ;;  %v9747_v54 = vld [vmem:[#allocation47_spill] sm:$0xff] }
 0x156   : > { %v1454_v12 = vpop.permute.xlu0 %1453  ;;  %1521 = vst.msk [vmem:[#allocation4 + $0xb8] sm:$0xff] %vm1497_vm14, %v1448_v17  ;;  %v9748_v17 = vld [vmem:[#allocation48_spill] sm:$0xff] }
 0x157   : > { %1835 = vrot.lane.b32.xlu0 %v9739_v40, %s6575_s14  ;;  %1524 = vst.msk [vmem:[#allocation4 + $0xd0] sm:$0xff] %vm1497_vm14, %v1454_v12 }
 0x159   : > { %1837 = vrot.lane.b32.xlu1 %v9740_v14, %s6575_s14  ;;  %v1452_v44 = vpop.permute.xlu1 %1451  ;;  %v9749_v14 = vld [vmem:[#allocation49_spill] sm:$0xff] }
 0x15a   : > { %v1458_v35 = vpop.permute.xlu0 %1457  ;;  %1523 = vst.msk [vmem:[#allocation4 + $0xc8] sm:$0xff] %vm1497_vm14, %v1452_v44  ;;  %v9750_v44 = vld [vmem:[#allocation50_spill] sm:$0xff] }
 0x15b   : > { %1839 = vrot.lane.b32.xlu0 %v7750_v26, %s6575_s14  ;;  %1526 = vst.msk [vmem:[#allocation4 + $0xe0] sm:$0xff] %vm1497_vm14, %v1458_v35 }
 0x15d   : > { %1841 = vrot.lane.b32.xlu1 %v7757_v21, %s6575_s14  ;;  %v1456_v11 = vpop.permute.xlu1 %1455 }
 0x15e   : > { %v1462_v20 = vpop.permute.xlu0 %1461  ;;  %1525 = vst.msk [vmem:[#allocation4 + $0xd8] sm:$0xff] %vm1497_vm14, %v1456_v11 }
 0x15f   : > { %1843 = vrot.lane.b32.xlu0 %v7760_v38, %s6575_s14  ;;  %1528 = vst.msk [vmem:[#allocation4 + $0xf0] sm:$0xff] %vm1497_vm14, %v1462_v20  ;;  %v9751_v20 = vld [vmem:[#allocation51_spill] sm:$0xff] }
 0x161   : > { %1845 = vrot.lane.b32.xlu1 %v7416_v19, %s6575_s14  ;;  %v1460_v29 = vpop.permute.xlu1 %1459  ;;  %v9741_v19 = vld [vmem:[#allocation41_spill] sm:$0xff] }
 0x162   : > { %v1595_v32 = vpop.permute.xlu0 %1594  ;;  %1527 = vst.msk [vmem:[#allocation4 + $0xe8] sm:$0xff] %vm1497_vm14, %v1460_v29  ;;  %v9752_v29 = vld [vmem:[#allocation52_spill] sm:$0xff] }
 0x163   : > { %1847 = vrot.lane.b32.xlu0 %v7768_v27, %s6575_s14  ;;  %1691 = vst.msk [vmem:[#allocation4] sm:$0xff] %vm1690_vm15, %v1595_v32 }
 0x165   : > { %1849 = vrot.lane.b32.xlu1 %v7775_v43, %s6575_s14  ;;  %v1464_v47 = vpop.permute.xlu1 %1463 }
 0x166   : > { %v1599_v2 = vpop.permute.xlu0 %1598  ;;  %1529 = vst.msk [vmem:[#allocation4 + $0xf8] sm:$0xff] %vm1497_vm14, %v1464_v47 }
 0x167   : > { %1980 = vrot.lane.b32.xlu0 %v9741_v19, %s6576_s15  ;;  %1693 = vst.msk [vmem:[#allocation4 + $0x10] sm:$0xff] %vm1690_vm15, %v1599_v2  ;;  %v9753_v2 = vld [vmem:[#allocation53_spill] sm:$0xff]  ;;  %v9754_v19 = vld [vmem:[#allocation54_spill] sm:$0xff] }
 0x169   : > { %1982 = vrot.lane.b32.xlu1 %v9742_v50, %s6576_s15  ;;  %v1597_v53 = vpop.permute.xlu1 %1596 }
 0x16a   : > { %v1603_v60 = vpop.permute.xlu0 %1602  ;;  %1692 = vst.msk [vmem:[#allocation4 + $0x8] sm:$0xff] %vm1690_vm15, %v1597_v53 }
 0x16b   : > { %1984 = vrot.lane.b32.xlu0 %v9743_v63, %s6576_s15  ;;  %1695 = vst.msk [vmem:[#allocation4 + $0x20] sm:$0xff] %vm1690_vm15, %v1603_v60  ;;  %v9755_v60 = vld [vmem:[#allocation55_spill] sm:$0xff]  ;;  %v9756_v63 = vld [vmem:[#allocation56_spill] sm:$0xff] }
 0x16d   : > { %1986 = vrot.lane.b32.xlu1 %v9744_v6, %s6576_s15  ;;  %v1601_v8 = vpop.permute.xlu1 %1600 }
 0x16e   : > { %v1607_v36 = vpop.permute.xlu0 %1606  ;;  %1694 = vst.msk [vmem:[#allocation4 + $0x18] sm:$0xff] %vm1690_vm15, %v1601_v8 }
 0x16f   : > { %1988 = vrot.lane.b32.xlu0 %v9745_v24, %s6576_s15  ;;  %1697 = vst.msk [vmem:[#allocation4 + $0x30] sm:$0xff] %vm1690_vm15, %v1607_v36  ;;  %v9757_v36 = vld [vmem:[#allocation57_spill] sm:$0xff]  ;;  %v9758_v24 = vld [vmem:[#allocation58_spill] sm:$0xff] }
 0x171   : > { %1990 = vrot.lane.b32.xlu1 %v9746_v34, %s6576_s15  ;;  %v1605_v45 = vpop.permute.xlu1 %1604 }
 0x172   : > { %v1611_v31 = vpop.permute.xlu0 %1610  ;;  %1696 = vst.msk [vmem:[#allocation4 + $0x28] sm:$0xff] %vm1690_vm15, %v1605_v45 }
 0x173   : > { %1992 = vrot.lane.b32.xlu0 %v9747_v54, %s6576_s15  ;;  %1699 = vst.msk [vmem:[#allocation4 + $0x40] sm:$0xff] %vm1690_vm15, %v1611_v31  ;;  %v9759_v31 = vld [vmem:[#allocation59_spill] sm:$0xff]  ;;  %v9760_v54 = vld [vmem:[#allocation60_spill] sm:$0xff] }
 0x175   : > { %1994 = vrot.lane.b32.xlu1 %v9748_v17, %s6576_s15  ;;  %v1609_v12 = vpop.permute.xlu1 %1608 }
 0x176   : > { %v1615_v40 = vpop.permute.xlu0 %1614  ;;  %1698 = vst.msk [vmem:[#allocation4 + $0x38] sm:$0xff] %vm1690_vm15, %v1609_v12 }
 0x177   : > { %1996 = vrot.lane.b32.xlu0 %v9749_v14, %s6576_s15  ;;  %1701 = vst.msk [vmem:[#allocation4 + $0x50] sm:$0xff] %vm1690_vm15, %v1615_v40  ;;  %v9761_v40 = vld [vmem:[#allocation61_spill] sm:$0xff]  ;;  %v9762_v14 = vld [vmem:[#allocation62_spill] sm:$0xff] }
 0x179   : > { %1998 = vrot.lane.b32.xlu1 %v9750_v44, %s6576_s15  ;;  %v1613_v35 = vpop.permute.xlu1 %1612 }
 0x17a   : > { %v1619_v11 = vpop.permute.xlu0 %1618  ;;  %1700 = vst.msk [vmem:[#allocation4 + $0x48] sm:$0xff] %vm1690_vm15, %v1613_v35 }
 0x17b   : > { %2000 = vrot.lane.b32.xlu0 %v9751_v20, %s6576_s15  ;;  %1703 = vst.msk [vmem:[#allocation4 + $0x60] sm:$0xff] %vm1690_vm15, %v1619_v11  ;;  %v9763_v11 = vld [vmem:[#allocation63_spill] sm:$0xff]  ;;  %v9764_v20 = vld [vmem:[#allocation64_spill] sm:$0xff] }
 0x17d   : > { %2002 = vrot.lane.b32.xlu1 %v9752_v29, %s6576_s15  ;;  %v1617_v32 = vpop.permute.xlu1 %1616 }
 0x17e   : > { %v1623_v47 = vpop.permute.xlu0 %1622  ;;  %1702 = vst.msk [vmem:[#allocation4 + $0x58] sm:$0xff] %vm1690_vm15, %v1617_v32 }
 0x17f   : > { %2004 = vrot.lane.b32.xlu0 %v9753_v2, %s6576_s15  ;;  %1705 = vst.msk [vmem:[#allocation4 + $0x70] sm:$0xff] %vm1690_vm15, %v1623_v47  ;;  %v9765_v47 = vld [vmem:[#allocation65_spill] sm:$0xff]  ;;  %v9766_v2 = vld [vmem:[#allocation66_spill] sm:$0xff] }
 0x181   : > { %2006 = vrot.lane.b32.xlu1 %v9754_v19, %s6576_s15  ;;  %v1621_v50 = vpop.permute.xlu1 %1620 }
 0x182   : > { %v1627_v53 = vpop.permute.xlu0 %1626  ;;  %1704 = vst.msk [vmem:[#allocation4 + $0x68] sm:$0xff] %vm1690_vm15, %v1621_v50 }
 0x183   : > { %2008 = vrot.lane.b32.xlu0 %v9755_v60, %s6576_s15  ;;  %1707 = vst.msk [vmem:[#allocation4 + $0x80] sm:$0xff] %vm1690_vm15, %v1627_v53 }
 0x185   : > { %2010 = vrot.lane.b32.xlu1 %v9756_v63, %s6576_s15  ;;  %v1625_v6 = vpop.permute.xlu1 %1624  ;;  %v7868_v63 = vld [vmem:[#allocation2 + $0x182] sm:$0xff] }
 0x186   : > { %v1631_v8 = vpop.permute.xlu0 %1630  ;;  %1706 = vst.msk [vmem:[#allocation4 + $0x78] sm:$0xff] %vm1690_vm15, %v1625_v6 }
 0x187   : > { %2012 = vrot.lane.b32.xlu0 %v9757_v36, %s6576_s15  ;;  %1709 = vst.msk [vmem:[#allocation4 + $0x90] sm:$0xff] %vm1690_vm15, %v1631_v8 }
 0x189   : > { %2014 = vrot.lane.b32.xlu1 %v9758_v24, %s6576_s15  ;;  %v1629_v34 = vpop.permute.xlu1 %1628 }
 0x18a   : > { %v1635_v45 = vpop.permute.xlu0 %1634  ;;  %1708 = vst.msk [vmem:[#allocation4 + $0x88] sm:$0xff] %vm1690_vm15, %v1629_v34 }
 0x18b   : > { %2016 = vrot.lane.b32.xlu0 %v9759_v31, %s6576_s15  ;;  %1711 = vst.msk [vmem:[#allocation4 + $0xa0] sm:$0xff] %vm1690_vm15, %v1635_v45  ;;  %v2303_v45 = vld [vmem:[#allocation2 + $0x31] sm:$0xff]  ;;  %v6578_v31 = vmov 0  }
 0x18c   : > { %6561 = vset.pattern.permute.xlu0 %v6578_v31  ;;  %6562 = vset.pattern.permute.xlu1 %v6578_v31 }
 0x18d   : > { %2018 = vrot.lane.b32.xlu1 %v9760_v54, %s6576_s15  ;;  %v1633_v17 = vpop.permute.xlu1 %1632 }
 0x18e   : > { %v1639_v12 = vpop.permute.xlu0 %1638  ;;  %1710 = vst.msk [vmem:[#allocation4 + $0x98] sm:$0xff] %vm1690_vm15, %v1633_v17  ;;  %v2305_v17 = vld [vmem:[#allocation2 + $0x49] sm:$0xff] }
 0x18f   : > { %2020 = vrot.lane.b32.xlu0 %v9761_v40, %s6576_s15  ;;  %1713 = vst.msk [vmem:[#allocation4 + $0xb0] sm:$0xff] %vm1690_vm15, %v1639_v12 }
 0x191   : > { %2022 = vrot.lane.b32.xlu1 %v9762_v14, %s6576_s15  ;;  %v1637_v44 = vpop.permute.xlu1 %1636  ;;  %v2306_v14 = vld [vmem:[#allocation2 + $0x51] sm:$0xff] }
 0x192   : > { %v1643_v35 = vpop.permute.xlu0 %1642  ;;  %1712 = vst.msk [vmem:[#allocation4 + $0xa8] sm:$0xff] %vm1690_vm15, %v1637_v44  ;;  %v2307_v44 = vld [vmem:[#allocation2 + $0x61] sm:$0xff] }
 0x193   : > { %2024 = vrot.lane.b32.xlu0 %v9763_v11, %s6576_s15  ;;  %1715 = vst.msk [vmem:[#allocation4 + $0xc0] sm:$0xff] %vm1690_vm15, %v1643_v35 }
 0x195   : > { %2026 = vrot.lane.b32.xlu1 %v9764_v20, %s6576_s15  ;;  %v1641_v29 = vpop.permute.xlu1 %1640  ;;  %v2308_v20 = vld [vmem:[#allocation2 + $0x69] sm:$0xff] }
 0x196   : > { %v1647_v32 = vpop.permute.xlu0 %1646  ;;  %1714 = vst.msk [vmem:[#allocation4 + $0xb8] sm:$0xff] %vm1690_vm15, %v1641_v29  ;;  %v2309_v29 = vld [vmem:[#allocation2 + $0x79] sm:$0xff] }
 0x197   : > { %2028 = vrot.lane.b32.xlu0 %v9765_v47, %s6576_s15  ;;  %1717 = vst.msk [vmem:[#allocation4 + $0xd0] sm:$0xff] %vm1690_vm15, %v1647_v32 }
 0x199   : > { %2030 = vrot.lane.b32.xlu1 %v9766_v2, %s6576_s15  ;;  %v1645_v19 = vpop.permute.xlu1 %1644  ;;  %v2310_v2 = vld [vmem:[#allocation2 + $0x81] sm:$0xff] }
 0x19a   : > { %v1651_v50 = vpop.permute.xlu0 %1650  ;;  %1716 = vst.msk [vmem:[#allocation4 + $0xc8] sm:$0xff] %vm1690_vm15, %v1645_v19  ;;  %v2311_v19 = vld [vmem:[#allocation2 + $0x91] sm:$0xff] }
 0x19b   : > { %2032 = vrot.lane.b32.xlu0 %v7550_v5, %s6576_s15  ;;  %1719 = vst.msk [vmem:[#allocation4 + $0xe0] sm:$0xff] %vm1690_vm15, %v1651_v50 }
 0x19d   : > { %2034 = vrot.lane.b32.xlu1 %v7558_v57, %s6576_s15  ;;  %v1649_v53 = vpop.permute.xlu1 %1648  ;;  %v7875_v57 = vld [vmem:[#allocation2 + $0x18a] sm:$0xff] }
 0x19e   : > { %v1655_v60 = vpop.permute.xlu0 %1654  ;;  %1718 = vst.msk [vmem:[#allocation4 + $0xd8] sm:$0xff] %vm1690_vm15, %v1649_v53 }
 0x19f   : > { %2036 = vrot.lane.b32.xlu0 %v7560_v62, %s6576_s15  ;;  %1721 = vst.msk [vmem:[#allocation4 + $0xf0] sm:$0xff] %vm1690_vm15, %v1655_v60  ;;  %v2312_v60 = vld [vmem:[#allocation2 + $0x99] sm:$0xff] }
 0x1a1   : > { %2038 = vrot.lane.b32.xlu1 %v7568_v23, %s6576_s15  ;;  %v1653_v5 = vpop.permute.xlu1 %1652 }
 0x1a2   : > { %v1788_v6 = vpop.permute.xlu0 %1787  ;;  %1720 = vst.msk [vmem:[#allocation4 + $0xe8] sm:$0xff] %vm1690_vm15, %v1653_v5  ;;  %v2313_v5 = vld [vmem:[#allocation2 + $0xa9] sm:$0xff] }
 0x1a3   : > { %2040 = vrot.lane.b32.xlu0 %v7868_v63, %s6576_s15  ;;  %1884 = vst.msk [vmem:[#allocation4] sm:$0xff] %vm1883_vm1, %v1788_v6 }
 0x1a5   : > { %2042 = vrot.lane.b32.xlu1 %v7875_v57, %s6576_s15  ;;  %v1657_v62 = vpop.permute.xlu1 %1656 }
 0x1a6   : > { %v1792_v8 = vpop.permute.xlu0 %1791  ;;  %1722 = vst.msk [vmem:[#allocation4 + $0xf8] sm:$0xff] %vm1690_vm15, %v1657_v62 }
 0x1a7   : > { %2174 = vrot.lane.b32.xlu0 %v7199_v15, %s6577_s16  ;;  %1886 = vst.msk [vmem:[#allocation4 + $0x10] sm:$0xff] %vm1883_vm1, %v1792_v8  ;;  %v2314_v8 = vld [vmem:[#allocation2 + $0xb1] sm:$0xff] }
 0x1a9   : > { %2176 = vrot.lane.b32.xlu1 %v7204_v25, %s6577_s16  ;;  %v1790_v23 = vpop.permute.xlu1 %1789 }
 0x1aa   : > { %v1796_v36 = vpop.permute.xlu0 %1795  ;;  %1885 = vst.msk [vmem:[#allocation4 + $0x8] sm:$0xff] %vm1883_vm1, %v1790_v23  ;;  %v2315_v23 = vld [vmem:[#allocation2 + $0xc1] sm:$0xff] }
 0x1ab   : > { %2178 = vrot.lane.b32.xlu0 %v7215_v28, %s6577_s16  ;;  %1888 = vst.msk [vmem:[#allocation4 + $0x20] sm:$0xff] %vm1883_vm1, %v1796_v36 }
 0x1ad   : > { %2180 = vrot.lane.b32.xlu1 %v7221_v30, %s6577_s16  ;;  %v1794_v24 = vpop.permute.xlu1 %1793 }
 0x1ae   : > { %v1800_v34 = vpop.permute.xlu0 %1799  ;;  %1887 = vst.msk [vmem:[#allocation4 + $0x18] sm:$0xff] %vm1883_vm1, %v1794_v24 }
 0x1af   : > { %2182 = vrot.lane.b32.xlu0 %v7231_v33, %s6577_s16  ;;  %1890 = vst.msk [vmem:[#allocation4 + $0x30] sm:$0xff] %vm1883_vm1, %v1800_v34  ;;  %v2316_v34 = vld [vmem:[#allocation2 + $0xc9] sm:$0xff] }
 0x1b1   : > { %2184 = vrot.lane.b32.xlu1 %v7237_v46, %s6577_s16  ;;  %v1798_v15 = vpop.permute.xlu1 %1797 }
 0x1b2   : > { %v1804_v25 = vpop.permute.xlu0 %1803  ;;  %1889 = vst.msk [vmem:[#allocation4 + $0x28] sm:$0xff] %vm1883_vm1, %v1798_v15  ;;  %v2317_v15 = vld [vmem:[#allocation2 + $0xd9] sm:$0xff] }
 0x1b3   : > { %2186 = vrot.lane.b32.xlu0 %v7247_v48, %s6577_s16  ;;  %1892 = vst.msk [vmem:[#allocation4 + $0x40] sm:$0xff] %vm1883_vm1, %v1804_v25 }
 0x1b5   : > { %2188 = vrot.lane.b32.xlu1 %v7253_v49, %s6577_s16  ;;  %v1802_v28 = vpop.permute.xlu1 %1801 }
 0x1b6   : > { %v1808_v30 = vpop.permute.xlu0 %1807  ;;  %1891 = vst.msk [vmem:[#allocation4 + $0x38] sm:$0xff] %vm1883_vm1, %v1802_v28 }
 0x1b7   : > { %2190 = vrot.lane.b32.xlu0 %v7263_v52, %s6577_s16  ;;  %1894 = vst.msk [vmem:[#allocation4 + $0x50] sm:$0xff] %vm1883_vm1, %v1808_v30  ;;  %v2318_v30 = vld [vmem:[#allocation2 + $0xe1] sm:$0xff] }
 0x1b9   : > { %2192 = vrot.lane.b32.xlu1 %v7269_v55, %s6577_s16  ;;  %v1806_v33 = vpop.permute.xlu1 %1805 }
 0x1ba   : > { %v1812_v46 = vpop.permute.xlu0 %1811  ;;  %1893 = vst.msk [vmem:[#allocation4 + $0x48] sm:$0xff] %vm1883_vm1, %v1806_v33  ;;  %v2319_v33 = vld [vmem:[#allocation2 + $0xf1] sm:$0xff] }
 0x1bb   : > { %2194 = vrot.lane.b32.xlu0 %v7279_v61, %s6577_s16  ;;  %1896 = vst.msk [vmem:[#allocation4 + $0x60] sm:$0xff] %vm1883_vm1, %v1812_v46 }
 0x1bd   : > { %2196 = vrot.lane.b32.xlu1 %v7285_v3, %s6577_s16  ;;  %v1810_v48 = vpop.permute.xlu1 %1809 }
 0x1be   : > { %v1816_v49 = vpop.permute.xlu0 %1815  ;;  %1895 = vst.msk [vmem:[#allocation4 + $0x58] sm:$0xff] %vm1883_vm1, %v1810_v48 }
 0x1bf   : > { %2198 = vrot.lane.b32.xlu0 %v7295_v7, %s6577_s16  ;;  %1898 = vst.msk [vmem:[#allocation4 + $0x70] sm:$0xff] %vm1883_vm1, %v1816_v49  ;;  %v2320_v49 = vld [vmem:[#allocation2 + $0xf9] sm:$0xff] }
 0x1c1   : > { %2200 = vrot.lane.b32.xlu1 %v7301_v13, %s6577_s16  ;;  %v1814_v52 = vpop.permute.xlu1 %1813 }
 0x1c2   : > { %v1820_v55 = vpop.permute.xlu0 %1819  ;;  %1897 = vst.msk [vmem:[#allocation4 + $0x68] sm:$0xff] %vm1883_vm1, %v1814_v52  ;;  %v2321_v52 = vld [vmem:[#allocation2 + $0x109] sm:$0xff] }
 0x1c3   : > { %2202 = vrot.lane.b32.xlu0 %v7311_v0, %s6577_s16  ;;  %1900 = vst.msk [vmem:[#allocation4 + $0x80] sm:$0xff] %vm1883_vm1, %v1820_v55 }
 0x1c5   : > { %2204 = vrot.lane.b32.xlu1 %v7317_v1, %s6577_s16  ;;  %v1818_v61 = vpop.permute.xlu1 %1817 }
 0x1c6   : > { %v1824_v3 = vpop.permute.xlu0 %1823  ;;  %1899 = vst.msk [vmem:[#allocation4 + $0x78] sm:$0xff] %vm1883_vm1, %v1818_v61 }
 0x1c7   : > { %2206 = vrot.lane.b32.xlu0 %v7327_v58, %s6577_s16  ;;  %1902 = vst.msk [vmem:[#allocation4 + $0x90] sm:$0xff] %vm1883_vm1, %v1824_v3  ;;  %v2322_v3 = vld [vmem:[#allocation2 + $0x111] sm:$0xff] }
 0x1c9   : > { %2208 = vrot.lane.b32.xlu1 %v7333_v51, %s6577_s16  ;;  %v1822_v7 = vpop.permute.xlu1 %1821 }
 0x1ca   : > { %v1828_v13 = vpop.permute.xlu0 %1827  ;;  %1901 = vst.msk [vmem:[#allocation4 + $0x88] sm:$0xff] %vm1883_vm1, %v1822_v7  ;;  %v2323_v7 = vld [vmem:[#allocation2 + $0x121] sm:$0xff] }
 0x1cb   : > { %2210 = vrot.lane.b32.xlu0 %v7343_v39, %s6577_s16  ;;  %1904 = vst.msk [vmem:[#allocation4 + $0xa0] sm:$0xff] %vm1883_vm1, %v1828_v13 }
 0x1cd   : > { %2212 = vrot.lane.b32.xlu1 %v7349_v16, %s6577_s16  ;;  %v1826_v0 = vpop.permute.xlu1 %1825 }
 0x1ce   : > { %v1832_v1 = vpop.permute.xlu0 %1831  ;;  %1903 = vst.msk [vmem:[#allocation4 + $0x98] sm:$0xff] %vm1883_vm1, %v1826_v0 }
 0x1cf   : > { %2214 = vrot.lane.b32.xlu0 %v7359_v59, %s6577_s16  ;;  %1906 = vst.msk [vmem:[#allocation4 + $0xb0] sm:$0xff] %vm1883_vm1, %v1832_v1  ;;  %v2324_v1 = vld [vmem:[#allocation2 + $0x129] sm:$0xff] }
 0x1d1   : > { %2216 = vrot.lane.b32.xlu1 %v7365_v42, %s6577_s16  ;;  %v1830_v51 = vpop.permute.xlu1 %1829 }
 0x1d2   : > { %v1836_v58 = vpop.permute.xlu0 %1835  ;;  %1905 = vst.msk [vmem:[#allocation4 + $0xa8] sm:$0xff] %vm1883_vm1, %v1830_v51  ;;  %v2325_v51 = vld [vmem:[#allocation2 + $0x139] sm:$0xff] }
 0x1d3   : > { %2218 = vrot.lane.b32.xlu0 %v7375_v37, %s6577_s16  ;;  %1908 = vst.msk [vmem:[#allocation4 + $0xc0] sm:$0xff] %vm1883_vm1, %v1836_v58 }
 0x1d5   : > { %2220 = vrot.lane.b32.xlu1 %v7381_v9, %s6577_s16  ;;  %v1834_v16 = vpop.permute.xlu1 %1833 }
 0x1d6   : > { %v1840_v39 = vpop.permute.xlu0 %1839  ;;  %1907 = vst.msk [vmem:[#allocation4 + $0xb8] sm:$0xff] %vm1883_vm1, %v1834_v16 }
 0x1d7   : > { %2222 = vrot.lane.b32.xlu0 %v7391_v4, %s6577_s16  ;;  %1910 = vst.msk [vmem:[#allocation4 + $0xd0] sm:$0xff] %vm1883_vm1, %v1840_v39  ;;  %v2326_v39 = vld [vmem:[#allocation2 + $0x141] sm:$0xff] }
 0x1d9   : > { %2224 = vrot.lane.b32.xlu1 %v7397_v56, %s6577_s16  ;;  %v1838_v42 = vpop.permute.xlu1 %1837  ;;  %v2140_v56 = vld [vmem:[#allocation2 + $0x198] sm:$0xff] }
 0x1da   : > { %v1844_v59 = vpop.permute.xlu0 %1843  ;;  %1909 = vst.msk [vmem:[#allocation4 + $0xc8] sm:$0xff] %vm1883_vm1, %v1838_v42 }
 0x1db   : > { %2226 = vrot.lane.b32.xlu0 %v7405_v41, %s6577_s16  ;;  %1912 = vst.msk [vmem:[#allocation4 + $0xe0] sm:$0xff] %vm1883_vm1, %v1844_v59 }
 0x1dd   : > { %2228 = vrot.lane.b32.xlu1 %v7408_v22, %s6577_s16  ;;  %v1842_v9 = vpop.permute.xlu1 %1841  ;;  %v2141_v22 = vld [vmem:[#allocation2 + $0x1a0] sm:$0xff] }
 0x1de   : > { %v1848_v37 = vpop.permute.xlu0 %1847  ;;  %1911 = vst.msk [vmem:[#allocation4 + $0xd8] sm:$0xff] %vm1883_vm1, %v1842_v9 }
 0x1df   : > { %2230 = vrot.lane.b32.xlu0 %v7662_v18, %s6577_s16  ;;  %1914 = vst.msk [vmem:[#allocation4 + $0xf0] sm:$0xff] %vm1883_vm1, %v1848_v37 }
 0x1e1   : > { %2232 = vrot.lane.b32.xlu1 %v7669_v10, %s6577_s16  ;;  %v1846_v41 = vpop.permute.xlu1 %1845  ;;  %v2304_v10 = vld [vmem:[#allocation2 + $0x39] sm:$0xff] }
 0x1e2   : > { %v1981_v4 = vpop.permute.xlu0 %1980  ;;  %1913 = vst.msk [vmem:[#allocation4 + $0xe8] sm:$0xff] %vm1883_vm1, %v1846_v41 }
 0x1e3   : > { %2234 = vrot.lane.b32.xlu0 %v2140_v56, %s6577_s16  ;;  %2077 = vst.msk [vmem:[#allocation4] sm:$0xff] %vm2076_vm2, %v1981_v4  ;;  %v2330_v56 = vld [vmem:[#allocation2 + $0x171] sm:$0xff] }
 0x1e5   : > { %2236 = vrot.lane.b32.xlu1 %v2141_v22, %s6577_s16  ;;  %v1850_v18 = vpop.permute.xlu1 %1849  ;;  %v2334_v22 = vld [vmem:[#allocation2 + $0x1a1] sm:$0xff] }
 0x1e6   : > { %v1985_v54 = vpop.permute.xlu0 %1984  ;;  %1915 = vst.msk [vmem:[#allocation4 + $0xf8] sm:$0xff] %vm1883_vm1, %v1850_v18  ;;  %v2721_v18 = vld [vmem:[%s9577_s3] sm:$0xff] }
 0x1e7   : > { %2367 = vrot.lane.b32.xlu0 %v2303_v45, %s6579_s17  ;;  %2079 = vst.msk [vmem:[#allocation4 + $0x10] sm:$0xff] %vm2076_vm2, %v1985_v54  ;;  %v2496_v45 = vld [vmem:[#allocation2 + $0x32] sm:$0xff]  ;;  %v2722_v54 = vld [vmem:[%s9577_s3 + $0x8] sm:$0xff] }
 0x1e9   : > { %2369 = vrot.lane.b32.xlu1 %v2304_v10, %s6579_s17  ;;  %v1983_v12 = vpop.permute.xlu1 %1982  ;;  %v2498_v10 = vld [vmem:[#allocation2 + $0x4a] sm:$0xff] }
 0x1ea   : > { %v1989_v40 = vpop.permute.xlu0 %1988  ;;  %2078 = vst.msk [vmem:[#allocation4 + $0x8] sm:$0xff] %vm2076_vm2, %v1983_v12 }
 0x1eb   : > { %2371 = vrot.lane.b32.xlu0 %v2305_v17, %s6579_s17  ;;  %2081 = vst.msk [vmem:[#allocation4 + $0x20] sm:$0xff] %vm2076_vm2, %v1989_v40  ;;  %v6527_v17 = vpack.c.bf16 %v2722_v54, %v2721_v18 }
 0x1ed   : > { %2373 = vrot.lane.b32.xlu1 %v2306_v14, %s6579_s17  ;;  %v1987_v35 = vpop.permute.xlu1 %1986  ;;  %6528 = vmatprep.subr.bf16.mxu0 %v6527_v17  ;;  %v2499_v14 = vld [vmem:[#allocation2 + $0x52] sm:$0xff] }
 0x1ee   : > { %v1993_v11 = vpop.permute.xlu0 %1992  ;;  %2080 = vst.msk [vmem:[#allocation4 + $0x18] sm:$0xff] %vm2076_vm2, %v1987_v35  ;;  %6530 = vmatpush3.bf16.msra.mxu0 %v6527_v17  ;;  %v2724_v35 = vld [vmem:[%s9577_s3 + $0x18] sm:$0xff]  ;;  %v753_v17 = vld [vmem:[#allocation3 + $0x1a] sm:$0xff] }
 0x1ef   : > { %2375 = vrot.lane.b32.xlu0 %v2307_v44, %s6579_s17  ;;  %2083 = vst.msk [vmem:[#allocation4 + $0x30] sm:$0xff] %vm2076_vm2, %v1993_v11  ;;  %v2723_v44 = vld [vmem:[%s9577_s3 + $0x10] sm:$0xff]  ;;  %v2500_v11 = vld [vmem:[#allocation2 + $0x62] sm:$0xff] }
 0x1f1   : > { %2377 = vrot.lane.b32.xlu1 %v2308_v20, %s6579_s17  ;;  %v1991_v32 = vpop.permute.xlu1 %1990  ;;  %v6531_v20 = vpack.c.bf16 %v2724_v35, %v2723_v44  ;;  %v684_v44 = vld [vmem:[#allocation3 + $0x39] sm:$0xff] }
 0x1f2   : > { %v1997_v47 = vpop.permute.xlu0 %1996  ;;  %2082 = vst.msk [vmem:[#allocation4 + $0x28] sm:$0xff] %vm2076_vm2, %v1991_v32 }
 0x1f3   : > { %2379 = vrot.lane.b32.xlu0 %v2309_v29, %s6579_s17  ;;  %2085 = vst.msk [vmem:[#allocation4 + $0x40] sm:$0xff] %vm2076_vm2, %v1997_v47  ;;  %6532 = vmatprep.subr.bf16.mxu0 %v6531_v20  ;;  %v2501_v47 = vld [vmem:[#allocation2 + $0x6a] sm:$0xff] }
 0x1f4   : > { %6534 = vmatpush3.bf16.msra.mxu0 %v6531_v20  ;;  %v647_v20 = vld [vmem:[#allocation3 + $0x30] sm:$0xff] }
 0x1f5   : > { %2381 = vrot.lane.b32.xlu1 %v2310_v2, %s6579_s17  ;;  %v1995_v50 = vpop.permute.xlu1 %1994  ;;  %v2725_v2 = vld [vmem:[%s9577_s3 + $0x20] sm:$0xf] }
 0x1f6   : > { %v2001_v53 = vpop.permute.xlu0 %2000  ;;  %2084 = vst.msk [vmem:[#allocation4 + $0x38] sm:$0xff] %vm2076_vm2, %v1995_v50  ;;  %6419 = vmatprep.subr.msk.mxu0 %vm2823_vm4, %v2725_v2 }
 0x1f7   : > { %2383 = vrot.lane.b32.xlu0 %v2311_v19, %s6579_s17  ;;  %2087 = vst.msk [vmem:[#allocation4 + $0x50] sm:$0xff] %vm2076_vm2, %v2001_v53  ;;  %v2502_v19 = vld [vmem:[#allocation2 + $0x7a] sm:$0xff] }
 0x1f8   : > { %6420 = vmatpush3.msk.msra.mxu0 %vm2823_vm4, %v2725_v2  ;;  %v754_v2 = vld [vmem:[#allocation3 + $0x22] sm:$0xff] }
 0x1f9   : > { %2385 = vrot.lane.b32.xlu1 %v2312_v60, %s6579_s17  ;;  %v1999_v6 = vpop.permute.xlu1 %1998  ;;  %v2503_v60 = vld [vmem:[#allocation2 + $0x82] sm:$0xff] }
 0x1fa   : > { %v2005_v62 = vpop.permute.xlu0 %2004  ;;  %2086 = vst.msk [vmem:[#allocation4 + $0x48] sm:$0xff] %vm2076_vm2, %v1999_v6 }
 0x1fb   : > { %2387 = vrot.lane.b32.xlu0 %v2313_v5, %s6579_s17  ;;  %2089 = vst.msk [vmem:[#allocation4 + $0x60] sm:$0xff] %vm2076_vm2, %v2005_v62  ;;  %v2504_v5 = vld [vmem:[#allocation2 + $0x92] sm:$0xff] }
 0x1fd   : > { %2389 = vrot.lane.b32.xlu1 %v2314_v8, %s6579_s17  ;;  %v2003_v36 = vpop.permute.xlu1 %2002  ;;  %v2505_v8 = vld [vmem:[#allocation2 + $0x9a] sm:$0xff] }
 0x1fe   : > { %v2009_v24 = vpop.permute.xlu0 %2008  ;;  %2088 = vst.msk [vmem:[#allocation4 + $0x58] sm:$0xff] %vm2076_vm2, %v2003_v36 }
 0x1ff   : > { %2391 = vrot.lane.b32.xlu0 %v2315_v23, %s6579_s17  ;;  %2091 = vst.msk [vmem:[#allocation4 + $0x70] sm:$0xff] %vm2076_vm2, %v2009_v24  ;;  %v2506_v23 = vld [vmem:[#allocation2 + $0xaa] sm:$0xff] }
 0x201   : > { %2393 = vrot.lane.b32.xlu1 %v2316_v34, %s6579_s17  ;;  %v2007_v25 = vpop.permute.xlu1 %2006  ;;  %v2507_v34 = vld [vmem:[#allocation2 + $0xb2] sm:$0xff] }
 0x202   : > { %v2013_v28 = vpop.permute.xlu0 %2012  ;;  %2090 = vst.msk [vmem:[#allocation4 + $0x68] sm:$0xff] %vm2076_vm2, %v2007_v25 }
 0x203   : > { %2395 = vrot.lane.b32.xlu0 %v2317_v15, %s6579_s17  ;;  %2093 = vst.msk [vmem:[#allocation4 + $0x80] sm:$0xff] %vm2076_vm2, %v2013_v28  ;;  %v2508_v15 = vld [vmem:[#allocation2 + $0xc2] sm:$0xff] }
 0x205   : > { %2397 = vrot.lane.b32.xlu1 %v2318_v30, %s6579_s17  ;;  %v2011_v46 = vpop.permute.xlu1 %2010  ;;  %v2509_v30 = vld [vmem:[#allocation2 + $0xca] sm:$0xff] }
 0x206   : > { %v2017_v48 = vpop.permute.xlu0 %2016  ;;  %2092 = vst.msk [vmem:[#allocation4 + $0x78] sm:$0xff] %vm2076_vm2, %v2011_v46 }
 0x207   : > { %2399 = vrot.lane.b32.xlu0 %v2319_v33, %s6579_s17  ;;  %2095 = vst.msk [vmem:[#allocation4 + $0x90] sm:$0xff] %vm2076_vm2, %v2017_v48  ;;  %v2510_v33 = vld [vmem:[#allocation2 + $0xda] sm:$0xff] }
 0x209   : > { %2401 = vrot.lane.b32.xlu1 %v2320_v49, %s6579_s17  ;;  %v2015_v55 = vpop.permute.xlu1 %2014  ;;  %v2511_v49 = vld [vmem:[#allocation2 + $0xe2] sm:$0xff] }
 0x20a   : > { %v2021_v61 = vpop.permute.xlu0 %2020  ;;  %2094 = vst.msk [vmem:[#allocation4 + $0x88] sm:$0xff] %vm2076_vm2, %v2015_v55 }
 0x20b   : > { %2403 = vrot.lane.b32.xlu0 %v2321_v52, %s6579_s17  ;;  %2097 = vst.msk [vmem:[#allocation4 + $0xa0] sm:$0xff] %vm2076_vm2, %v2021_v61  ;;  %v2512_v52 = vld [vmem:[#allocation2 + $0xf2] sm:$0xff] }
 0x20d   : > { %2405 = vrot.lane.b32.xlu1 %v2322_v3, %s6579_s17  ;;  %v2019_v13 = vpop.permute.xlu1 %2018  ;;  %v2513_v3 = vld [vmem:[#allocation2 + $0xfa] sm:$0xff] }
 0x20e   : > { %v2025_v0 = vpop.permute.xlu0 %2024  ;;  %2096 = vst.msk [vmem:[#allocation4 + $0x98] sm:$0xff] %vm2076_vm2, %v2019_v13 }
 0x20f   : > { %2407 = vrot.lane.b32.xlu0 %v2323_v7, %s6579_s17  ;;  %2099 = vst.msk [vmem:[#allocation4 + $0xb0] sm:$0xff] %vm2076_vm2, %v2025_v0  ;;  %v2514_v7 = vld [vmem:[#allocation2 + $0x10a] sm:$0xff] }
 0x211   : > { %2409 = vrot.lane.b32.xlu1 %v2324_v1, %s6579_s17  ;;  %v2023_v58 = vpop.permute.xlu1 %2022  ;;  %v2515_v1 = vld [vmem:[#allocation2 + $0x112] sm:$0xff] }
 0x212   : > { %v2029_v16 = vpop.permute.xlu0 %2028  ;;  %2098 = vst.msk [vmem:[#allocation4 + $0xa8] sm:$0xff] %vm2076_vm2, %v2023_v58 }
 0x213   : > { %2411 = vrot.lane.b32.xlu0 %v2325_v51, %s6579_s17  ;;  %2101 = vst.msk [vmem:[#allocation4 + $0xc0] sm:$0xff] %vm2076_vm2, %v2029_v16  ;;  %v2516_v51 = vld [vmem:[#allocation2 + $0x122] sm:$0xff] }
 0x215   : > { %2413 = vrot.lane.b32.xlu1 %v2326_v39, %s6579_s17  ;;  %v2027_v42 = vpop.permute.xlu1 %2026  ;;  %v2517_v39 = vld [vmem:[#allocation2 + $0x12a] sm:$0xff] }
 0x216   : > { %v2033_v59 = vpop.permute.xlu0 %2032  ;;  %2100 = vst.msk [vmem:[#allocation4 + $0xb8] sm:$0xff] %vm2076_vm2, %v2027_v42  ;;  %v2518_v42 = vld [vmem:[#allocation2 + $0x13a] sm:$0xff] }
 0x217   : > { %2415 = vrot.lane.b32.xlu0 %v7750_v26, %s6579_s17  ;;  %2103 = vst.msk [vmem:[#allocation4 + $0xd0] sm:$0xff] %vm2076_vm2, %v2033_v59  ;;  %v2333_v26 = vld [vmem:[#allocation2 + $0x199] sm:$0xff]  ;;  %v679_v59 = vld [vmem:[#allocation3 + $0x1] sm:$0xff] }
 0x219   : > { %2417 = vrot.lane.b32.xlu1 %v7757_v21, %s6579_s17  ;;  %v2031_v9 = vpop.permute.xlu1 %2030 }
 0x21a   : > { %v2037_v37 = vpop.permute.xlu0 %2036  ;;  %2102 = vst.msk [vmem:[#allocation4 + $0xc8] sm:$0xff] %vm2076_vm2, %v2031_v9 }
 0x21b   : > { %2419 = vrot.lane.b32.xlu0 %v7760_v38, %s6579_s17  ;;  %2105 = vst.msk [vmem:[#allocation4 + $0xe0] sm:$0xff] %vm2076_vm2, %v2037_v37 }
 0x21d   : > { %2421 = vrot.lane.b32.xlu1 %v2330_v56, %s6579_s17  ;;  %v2035_v41 = vpop.permute.xlu1 %2034  ;;  %v643_v56 = vld [vmem:[#allocation3] sm:$0xff] }
 0x21e   : > { %v2041_v4 = vpop.permute.xlu0 %2040  ;;  %2104 = vst.msk [vmem:[#allocation4 + $0xd8] sm:$0xff] %vm2076_vm2, %v2035_v41  ;;  %v645_v41 = vld [vmem:[#allocation3 + $0x18] sm:$0xff] }
 0x21f   : > { %2423 = vrot.lane.b32.xlu0 %v7768_v27, %s6579_s17  ;;  %2107 = vst.msk [vmem:[#allocation4 + $0xf0] sm:$0xff] %vm2076_vm2, %v2041_v4  ;;  %v681_v4 = vld [vmem:[#allocation3 + $0x19] sm:$0xff] }
 0x221   : > { %2425 = vrot.lane.b32.xlu1 %v7775_v43, %s6579_s17  ;;  %v2039_v21 = vpop.permute.xlu1 %2038  ;;  %v2497_v43 = vld [vmem:[#allocation2 + $0x3a] sm:$0xff] }
 0x222   : > { %v2175_v38 = vpop.permute.xlu0 %2174  ;;  %2106 = vst.msk [vmem:[#allocation4 + $0xe8] sm:$0xff] %vm2076_vm2, %v2039_v21  ;;  %v2520_v21 = vld [vmem:[#allocation2 + $0x152] sm:$0xff] }
 0x223   : > { %2427 = vrot.lane.b32.xlu0 %v2333_v26, %s6579_s17  ;;  %2271 = vst.msk [vmem:[#allocation4] sm:$0xff] %vm2270_vm3, %v2175_v38  ;;  %v2519_v26 = vld [vmem:[#allocation2 + $0x142] sm:$0xff]  ;;  %v644_v38 = vld [vmem:[#allocation3 + $0x8] sm:$0xff] }
 0x225   : > { %2429 = vrot.lane.b32.xlu1 %v2334_v22, %s6579_s17  ;;  %v2043_v27 = vpop.permute.xlu1 %2042  ;;  %v715_v22 = vadd.f32 %v679_v59, %v643_v56  ;;  %v690_v59 = vld [vmem:[#allocation3 + $0x81] sm:$0xff]  ;;  %v757_v56 = vld [vmem:[#allocation3 + $0x4a] sm:$0xff] }
 0x226   : > { %v2179_v31 = vpop.permute.xlu0 %2178  ;;  %2108 = vst.msk [vmem:[#allocation4 + $0xf8] sm:$0xff] %vm2076_vm2, %v2043_v27  ;;  %v646_v27 = vld [vmem:[#allocation3 + $0x20] sm:$0xff] }
 0x227   : > { %2560 = vrot.lane.b32.xlu0 %v2496_v45, %s6580_s18  ;;  %2273 = vst.msk [vmem:[#allocation4 + $0x10] sm:$0xff] %vm2270_vm3, %v2179_v31  ;;  %v717_v45 = vadd.f32 %v681_v4, %v645_v41  ;;  %v680_v31 = vld [vmem:[#allocation3 + $0x9] sm:$0xff] }
 0x228   : > { %v716_v35 = vadd.f32 %v680_v31, %v644_v38  ;;  %v689_v31 = vld [vmem:[#allocation3 + $0x79] sm:$0xff] }
 0x229   : > { %2562 = vrot.lane.b32.xlu1 %v2497_v43, %s6580_s18  ;;  %v2177_v12 = vpop.permute.xlu1 %2176  ;;  %v682_v43 = vld [vmem:[#allocation3 + $0x21] sm:$0xff] }
 0x22a   : > { %v2183_v40 = vpop.permute.xlu0 %2182  ;;  %2272 = vst.msk [vmem:[#allocation4 + $0x8] sm:$0xff] %vm2270_vm3, %v2177_v12  ;;  %v2521_v12 = vld [vmem:[#allocation2 + $0x15a] sm:$0xff] }
 0x22b   : > { %2564 = vrot.lane.b32.xlu0 %v2498_v10, %s6580_s18  ;;  %2275 = vst.msk [vmem:[#allocation4 + $0x20] sm:$0xff] %vm2270_vm3, %v2183_v40  ;;  %v751_v10 = vld [vmem:[#allocation3 + $0x2] sm:$0xff]  ;;  %v2522_v40 = vld [vmem:[#allocation2 + $0x16a] sm:$0xff] }
 0x22d   : > { %2566 = vrot.lane.b32.xlu1 %v2499_v14, %s6580_s18  ;;  %v2181_v29 = vpop.permute.xlu1 %2180  ;;  %v648_v14 = vld [vmem:[#allocation3 + $0x38] sm:$0xff] }
 0x22e   : > { %v2187_v32 = vpop.permute.xlu0 %2186  ;;  %2274 = vst.msk [vmem:[#allocation4 + $0x18] sm:$0xff] %vm2270_vm3, %v2181_v29  ;;  %v787_v29 = vadd.f32 %v751_v10, %v715_v22  ;;  %v656_v10 = vld [vmem:[#allocation3 + $0x98] sm:$0xff] }
 0x22f   : > { %2568 = vrot.lane.b32.xlu0 %v2500_v11, %s6580_s18  ;;  %2277 = vst.msk [vmem:[#allocation4 + $0x30] sm:$0xff] %vm2270_vm3, %v2187_v32  ;;  %v718_v11 = vadd.f32 %v682_v43, %v646_v27  ;;  %v8111_v32 = vadd.f32 %v753_v17, %v717_v45  ;;  %v653_v27 = vld [vmem:[#allocation3 + $0x78] sm:$0xff] }
 0x230   : > { %v692_v17 = vld [vmem:[#allocation3 + $0x99] sm:$0xff] }
 0x231   : > { %2570 = vrot.lane.b32.xlu1 %v2501_v47, %s6580_s18  ;;  %v2185_v50 = vpop.permute.xlu1 %2184  ;;  %v752_v47 = vld [vmem:[#allocation3 + $0xa] sm:$0xff] }
 0x232   : > { %v2191_v53 = vpop.permute.xlu0 %2190  ;;  %2276 = vst.msk [vmem:[#allocation4 + $0x28] sm:$0xff] %vm2270_vm3, %v2185_v50 }
 0x233   : > { %2572 = vrot.lane.b32.xlu0 %v2502_v19, %s6580_s18  ;;  %2279 = vst.msk [vmem:[#allocation4 + $0x40] sm:$0xff] %vm2270_vm3, %v2191_v53  ;;  %v683_v53 = vld [vmem:[#allocation3 + $0x31] sm:$0xff] }
 0x235   : > { %2574 = vrot.lane.b32.xlu1 %v2503_v60, %s6580_s18  ;;  %v2189_v6 = vpop.permute.xlu1 %2188  ;;  %v650_v60 = vld [vmem:[#allocation3 + $0x50] sm:$0xff] }
 0x236   : > { %v2195_v62 = vpop.permute.xlu0 %2194  ;;  %2278 = vst.msk [vmem:[#allocation4 + $0x38] sm:$0xff] %vm2270_vm3, %v2189_v6  ;;  %v2523_v6 = vld [vmem:[#allocation2 + $0x172] sm:$0xff] }
 0x237   : > { %2576 = vrot.lane.b32.xlu0 %v2504_v5, %s6580_s18  ;;  %2281 = vst.msk [vmem:[#allocation4 + $0x50] sm:$0xff] %vm2270_vm3, %v2195_v62  ;;  %v686_v5 = vld [vmem:[#allocation3 + $0x51] sm:$0xff]  ;;  %v720_v62 = vadd.f32 %v684_v44, %v648_v14 }
 0x239   : > { %2578 = vrot.lane.b32.xlu1 %v2505_v8, %s6580_s18  ;;  %v2193_v36 = vpop.permute.xlu1 %2192  ;;  %v755_v8 = vld [vmem:[#allocation3 + $0x32] sm:$0xff] }
 0x23a   : > { %v2199_v24 = vpop.permute.xlu0 %2198  ;;  %2280 = vst.msk [vmem:[#allocation4 + $0x48] sm:$0xff] %vm2270_vm3, %v2193_v36  ;;  %v790_v36 = vadd.f32 %v754_v2, %v718_v11  ;;  %v762_v11 = vld [vmem:[#allocation3 + $0x82] sm:$0xff] }
 0x23b   : > { %2580 = vrot.lane.b32.xlu0 %v2506_v23, %s6580_s18  ;;  %2283 = vst.msk [vmem:[#allocation4 + $0x60] sm:$0xff] %vm2270_vm3, %v2199_v24  ;;  %v788_v23 = vadd.f32 %v752_v47, %v716_v35  ;;  %v719_v24 = vadd.f32 %v683_v53, %v647_v20  ;;  %v725_v20 = vadd.f32 %v689_v31, %v653_v27 }
 0x23d   : > { %2582 = vrot.lane.b32.xlu1 %v2507_v34, %s6580_s18  ;;  %v2197_v25 = vpop.permute.xlu1 %2196  ;;  %v823_v34 = vadd.f32 %v8111_v32, %v787_v29 }
 0x23e   : > { %v2203_v28 = vpop.permute.xlu0 %2202  ;;  %2282 = vst.msk [vmem:[#allocation4 + $0x58] sm:$0xff] %vm2270_vm3, %v2197_v25  ;;  %v649_v25 = vld [vmem:[#allocation3 + $0x48] sm:$0xff] }
 0x23f   : > { %2584 = vrot.lane.b32.xlu0 %v2508_v15, %s6580_s18  ;;  %2285 = vst.msk [vmem:[#allocation4 + $0x70] sm:$0xff] %vm2270_vm3, %v2203_v28  ;;  %v722_v15 = vadd.f32 %v686_v5, %v650_v60  ;;  %v685_v28 = vld [vmem:[#allocation3 + $0x49] sm:$0xff] }
 0x241   : > { %2586 = vrot.lane.b32.xlu1 %v2509_v30, %s6580_s18  ;;  %v2201_v46 = vpop.permute.xlu1 %2200 }
 0x242   : > { %v2207_v48 = vpop.permute.xlu0 %2206  ;;  %2284 = vst.msk [vmem:[#allocation4 + $0x68] sm:$0xff] %vm2270_vm3, %v2201_v46  ;;  %v756_v46 = vld [vmem:[#allocation3 + $0x3a] sm:$0xff] }
 0x243   : > { %2588 = vrot.lane.b32.xlu0 %v2510_v33, %s6580_s18  ;;  %2287 = vst.msk [vmem:[#allocation4 + $0x80] sm:$0xff] %vm2270_vm3, %v2207_v48  ;;  %v652_v48 = vld [vmem:[#allocation3 + $0x68] sm:$0xff] }
 0x245   : > { %2590 = vrot.lane.b32.xlu1 %v2511_v49, %s6580_s18  ;;  %v2205_v55 = vpop.permute.xlu1 %2204  ;;  %v688_v49 = vld [vmem:[#allocation3 + $0x69] sm:$0xff] }
 0x246   : > { %v2211_v61 = vpop.permute.xlu0 %2210  ;;  %2286 = vst.msk [vmem:[#allocation4 + $0x78] sm:$0xff] %vm2270_vm3, %v2205_v55  ;;  %v792_v55 = vadd.f32 %v756_v46, %v720_v62  ;;  %v694_v62 = vld [vmem:[#allocation3 + $0xb1] sm:$0xff] }
 0x247   : > { %2592 = vrot.lane.b32.xlu0 %v2512_v52, %s6580_s18  ;;  %2289 = vst.msk [vmem:[#allocation4 + $0x90] sm:$0xff] %vm2270_vm3, %v2211_v61  ;;  %v791_v52 = vadd.f32 %v755_v8, %v719_v24  ;;  %v2526_v61 = vld [vmem:[#allocation2 + $0x19a] sm:$0xff] }
 0x249   : > { %2594 = vrot.lane.b32.xlu1 %v2513_v3, %s6580_s18  ;;  %v2209_v13 = vpop.permute.xlu1 %2208  ;;  %v824_v3 = vadd.f32 %v790_v36, %v788_v23  ;;  %v761_v23 = vld [vmem:[#allocation3 + $0x7a] sm:$0xff] }
 0x24a   : > { %v2215_v0 = vpop.permute.xlu0 %2214  ;;  %2288 = vst.msk [vmem:[#allocation4 + $0x88] sm:$0xff] %vm2270_vm3, %v2209_v13  ;;  %v721_v13 = vadd.f32 %v685_v28, %v649_v25 }
 0x24b   : > { %2596 = vrot.lane.b32.xlu0 %v2514_v7, %s6580_s18  ;;  %2291 = vst.msk [vmem:[#allocation4 + $0xa0] sm:$0xff] %vm2270_vm3, %v2215_v0  ;;  %v758_v7 = vld [vmem:[#allocation3 + $0x52] sm:$0xff]  ;;  %v855_v0 = vadd.f32 %v823_v34, %v791_v52  ;;  %v856_v41 = vadd.f32 %v824_v3, %v792_v55  ;;  %v797_v34 = vadd.f32 %v761_v23, %v725_v20  ;;  %v660_v3 = vld [vmem:[#allocation3 + $0xc8] sm:$0xff] }
 0x24c   : > { %v793_v4 = vadd.f32 %v757_v56, %v721_v13  ;;  %v695_v56 = vld [vmem:[#allocation3 + $0xc1] sm:$0xff]  ;;  %v664_v20 = vld [vmem:[#allocation3 + $0xf8] sm:$0xff]  ;;  %v663_v23 = vld [vmem:[#allocation3 + $0xf0] sm:$0xff] }
 0x24d   : > { %2598 = vrot.lane.b32.xlu1 %v2515_v1, %s6580_s18  ;;  %v2213_v58 = vpop.permute.xlu1 %2212  ;;  %v794_v1 = vadd.f32 %v758_v7, %v722_v15  ;;  %v887_v38 = vmul.f32 0.11111111, %v855_v0  ;;  %v888_v14 = vmul.f32 0.11111111, %v856_v41  ;;  %v764_v15 = vld [vmem:[#allocation3 + $0x9a] sm:$0xff]  ;;  %v696_v7 = vld [vmem:[#allocation3 + $0xc9] sm:$0xff] }
 0x24e   : > { %v2219_v16 = vpop.permute.xlu0 %2218  ;;  %2290 = vst.msk [vmem:[#allocation4 + $0x98] sm:$0xff] %vm2270_vm3, %v2213_v58  ;;  %v651_v58 = vld [vmem:[#allocation3 + $0x60] sm:$0xff]  ;;  %v827_v5 = vadd.f32 %v793_v4, %v791_v52  ;;  %v763_v0 = vld [vmem:[#allocation3 + $0x92] sm:$0xff] }
 0x24f   : > { %2600 = vrot.lane.b32.xlu0 %v2516_v51, %s6580_s18  ;;  %2293 = vst.msk [vmem:[#allocation4 + $0xb0] sm:$0xff] %vm2270_vm3, %v2219_v16  ;;  %v724_v51 = vadd.f32 %v688_v49, %v652_v48  ;;  %v687_v16 = vld [vmem:[#allocation3 + $0x61] sm:$0xff]  ;;  %v693_v49 = vld [vmem:[#allocation3 + $0xa9] sm:$0xff] }
 0x250   : > { %v657_v48 = vld [vmem:[#allocation3 + $0xa8] sm:$0xff] }
 0x251   : > { %2602 = vrot.lane.b32.xlu1 %v2517_v39, %s6580_s18  ;;  %v2217_v9 = vpop.permute.xlu1 %2216 }
 0x252   : > { %v2223_v37 = vpop.permute.xlu0 %2222  ;;  %2292 = vst.msk [vmem:[#allocation4 + $0xa8] sm:$0xff] %vm2270_vm3, %v2217_v9  ;;  %v2527_v9 = vld [vmem:[#allocation2 + $0x1a2] sm:$0xff] }
 0x253   : > { %2604 = vrot.lane.b32.xlu0 %v2518_v42, %s6580_s18  ;;  %2295 = vst.msk [vmem:[#allocation4 + $0xc0] sm:$0xff] %vm2270_vm3, %v2223_v37  ;;  %v826_v37 = vadd.f32 %v792_v55, %v790_v36 }
 0x255   : > { %2606 = vrot.lane.b32.xlu1 %v2519_v26, %s6580_s18  ;;  %v2221_v18 = vpop.permute.xlu1 %2220  ;;  %v760_v26 = vld [vmem:[#allocation3 + $0x6a] sm:$0xff]  ;;  %v858_v22 = vadd.f32 %v826_v37, %v794_v1  ;;  %v659_v37 = vld [vmem:[#allocation3 + $0xc0] sm:$0xff] }
 0x256   : > { %v2227_v54 = vpop.permute.xlu0 %2226  ;;  %2294 = vst.msk [vmem:[#allocation4 + $0xb8] sm:$0xff] %vm2270_vm3, %v2221_v18 }
 0x257   : > { %2608 = vrot.lane.b32.xlu0 %v2520_v21, %s6580_s18  ;;  %2297 = vst.msk [vmem:[#allocation4 + $0xd0] sm:$0xff] %vm2270_vm3, %v2227_v54  ;;  %v723_v21 = vadd.f32 %v687_v16, %v651_v58  ;;  %v825_v54 = vadd.f32 %v791_v52, %v8111_v32  ;;  %v890_v29 = vmul.f32 0.11111111, %v858_v22  ;;  %v691_v32 = vld [vmem:[#allocation3 + $0x91] sm:$0xff] }
 0x258   : > { %v766_v16 = vld [vmem:[#allocation3 + $0xb2] sm:$0xff] }
 0x259   : > { %2610 = vrot.lane.b32.xlu1 %v2521_v12, %s6580_s18  ;;  %v2225_v19 = vpop.permute.xlu1 %2224  ;;  %v828_v12 = vadd.f32 %v794_v1, %v792_v55  ;;  %v857_v44 = vadd.f32 %v825_v54, %v793_v4 }
 0x25a   : > { %v2231_v50 = vpop.permute.xlu0 %2230  ;;  %2296 = vst.msk [vmem:[#allocation4 + $0xc8] sm:$0xff] %vm2270_vm3, %v2225_v19  ;;  %v728_v19 = vadd.f32 %v692_v17, %v656_v10 }
 0x25b   : > { %2612 = vrot.lane.b32.xlu0 %v2522_v40, %s6580_s18  ;;  %2299 = vst.msk [vmem:[#allocation4 + $0xe0] sm:$0xff] %vm2270_vm3, %v2231_v50  ;;  %v759_v40 = vld [vmem:[#allocation3 + $0x62] sm:$0xff]  ;;  %v655_v50 = vld [vmem:[#allocation3 + $0x90] sm:$0xff]  ;;  %v889_v36 = vmul.f32 0.11111111, %v857_v44 }
 0x25c   : > { %v795_v35 = vadd.f32 %v759_v40, %v723_v21  ;;  %v727_v25 = vadd.f32 %v691_v32, %v655_v50  ;;  %v662_v21 = vld [vmem:[#allocation3 + $0xe0] sm:$0xff]  ;;  %v661_v40 = vld [vmem:[#allocation3 + $0xd8] sm:$0xff] }
 0x25d   : > { %2614 = vrot.lane.b32.xlu1 %v2523_v6, %s6580_s18  ;;  %v2229_v30 = vpop.permute.xlu1 %2228  ;;  %v658_v6 = vld [vmem:[#allocation3 + $0xb0] sm:$0xff] }
 0x25e   : > { %v2235_v33 = vpop.permute.xlu0 %2234  ;;  %2298 = vst.msk [vmem:[#allocation4 + $0xd8] sm:$0xff] %vm2270_vm3, %v2229_v30  ;;  %v859_v24 = vadd.f32 %v827_v5, %v795_v35  ;;  %v730_v46 = vadd.f32 %v694_v62, %v658_v6  ;;  %v799_v58 = vadd.f32 %v763_v0, %v727_v25  ;;  %v666_v25 = vld [vmem:[#allocation3 + $0x110] sm:$0xff]  ;;  %v665_v0 = vld [vmem:[#allocation3 + $0x108] sm:$0xff] }
 0x25f   : > { %2616 = vrot.lane.b32.xlu0 %v7868_v63, %s6580_s18  ;;  %2301 = vst.msk [vmem:[#allocation4 + $0xf0] sm:$0xff] %vm2270_vm3, %v2235_v33  ;;  %v654_v63 = vld [vmem:[#allocation3 + $0x80] sm:$0xff]  ;;  %v800_v33 = vadd.f32 %v764_v15, %v728_v19 }
 0x260   : > { %v726_v45 = vadd.f32 %v690_v59, %v654_v63  ;;  %v802_v59 = vadd.f32 %v766_v16, %v730_v46 }
 0x261   : > { %2618 = vrot.lane.b32.xlu1 %v7875_v57, %s6580_s18  ;;  %v2233_v39 = vpop.permute.xlu1 %2232  ;;  %v796_v57 = vadd.f32 %v760_v26, %v724_v51  ;;  %v831_v26 = vadd.f32 %v797_v34, %v795_v35 }
 0x262   : > { %v2368_v42 = vpop.permute.xlu0 %2367  ;;  %2300 = vst.msk [vmem:[#allocation4 + $0xe8] sm:$0xff] %vm2270_vm3, %v2233_v39  ;;  %v798_v2 = vadd.f32 %v762_v11, %v726_v45  ;;  %v729_v39 = vadd.f32 %v693_v49, %v657_v48  ;;  %v833_v11 = vadd.f32 %v799_v58, %v797_v34 }
 0x263   : > { %2620 = vrot.lane.b32.xlu0 %v2526_v61, %s6580_s18  ;;  %2464 = vst.msk [vmem:[#allocation4] sm:$0xff] %vm2463_vm5, %v2368_v42  ;;  %v860_v47 = vadd.f32 %v828_v12, %v796_v57  ;;  %v830_v8 = vadd.f32 %v796_v57, %v794_v1  ;;  %v829_v61 = vadd.f32 %v795_v35, %v793_v4  ;;  %v891_v1 = vmul.f32 0.11111111, %v859_v24 }
 0x264   : > { %v832_v13 = vadd.f32 %v798_v2, %v796_v57  ;;  %v834_v22 = vadd.f32 %v800_v33, %v798_v2  ;;  %v765_v57 = vld [vmem:[#allocation3 + $0xaa] sm:$0xff]  ;;  %v863_v27 = vadd.f32 %v831_v26, %v799_v58 }
 0x265   : > { %2622 = vrot.lane.b32.xlu1 %v2527_v9, %s6580_s18  ;;  %v2237_v43 = vpop.permute.xlu1 %2236  ;;  %v892_v28 = vmul.f32 0.11111111, %v860_v47  ;;  %v862_v30 = vadd.f32 %v830_v8, %v798_v2  ;;  %v861_v51 = vadd.f32 %v829_v61, %v797_v34  ;;  %v732_v9 = vadd.f32 %v696_v7, %v660_v3  ;;  %v767_v2 = vld [vmem:[#allocation3 + $0xc2] sm:$0xff] }
 0x266   : > { %v2372_v18 = vpop.permute.xlu0 %2371  ;;  %2302 = vst.msk [vmem:[#allocation4 + $0xf8] sm:$0xff] %vm2270_vm3, %v2237_v43  ;;  %v864_v63 = vadd.f32 %v832_v13, %v800_v33  ;;  %v801_v31 = vadd.f32 %v765_v57, %v729_v39  ;;  %v768_v43 = vld [vmem:[#allocation3 + $0xca] sm:$0xff]  ;;  %v866_v10 = vadd.f32 %v834_v22, %v802_v59  ;;  %v836_v47 = vadd.f32 %v802_v59, %v800_v33  ;;  %v769_v33 = vld [vmem:[#allocation3 + $0xda] sm:$0xff] }
 0x267   : > { %3054 = vperm.xlu0 %6561, %v887_v38   ;;  %2466 = vst.msk [vmem:[#allocation4 + $0x10] sm:$0xff] %vm2463_vm5, %v2372_v18  ;;  %v894_v42 = vmul.f32 0.11111111, %v862_v30  ;;  %v698_v38 = vld [vmem:[#allocation3 + $0xe1] sm:$0xff]  ;;  %v893_v45 = vmul.f32 0.11111111, %v861_v51  ;;  %v731_v18 = vadd.f32 %v695_v56, %v659_v37  ;;  %v804_v17 = vadd.f32 %v768_v43, %v732_v9 }
 0x268   : > { %v896_v54 = vmul.f32 0.11111111, %v864_v63  ;;  %v734_v12 = vadd.f32 %v698_v38, %v662_v21  ;;  %v895_v19 = vmul.f32 0.11111111, %v863_v27  ;;  %v865_v50 = vadd.f32 %v833_v11, %v801_v31  ;;  %v668_v39 = vld [vmem:[#allocation3 + $0x128] sm:$0xff]  ;;  %v667_v57 = vld [vmem:[#allocation3 + $0x120] sm:$0xff] }
 0x269   : > { %v2370_v53 = vpop.permute.xlu1 %2369  ;;  %3059 = vperm.xlu1 %6562, %v888_v14   ;;  %v697_v14 = vld [vmem:[#allocation3 + $0xd9] sm:$0xff]  ;;  %v803_v32 = vadd.f32 %v767_v2, %v731_v18  ;;  %v898_v5 = vmul.f32 0.11111111, %v866_v10  ;;  %v868_v6 = vadd.f32 %v836_v47, %v804_v17  ;;  %v835_v15 = vadd.f32 %v801_v31, %v799_v58 }
 0x26a   : > { %v2376_v60 = vpop.permute.xlu0 %2375  ;;  %2465 = vst.msk [vmem:[#allocation4 + $0x8] sm:$0xff] %vm2463_vm5, %v2370_v53  ;;  %v770_v53 = vld [vmem:[#allocation3 + $0xe2] sm:$0xff]  ;;  %v838_v30 = vadd.f32 %v804_v17, %v802_v59  ;;  %v897_v46 = vmul.f32 0.11111111, %v865_v50  ;;  %v771_v59 = vld [vmem:[#allocation3 + $0xf2] sm:$0xff] }
 0x26b   : > { %3069 = vperm.xlu0 %6561, %v890_v29   ;;  %2468 = vst.msk [vmem:[#allocation4 + $0x20] sm:$0xff] %vm2463_vm5, %v2376_v60  ;;  %v700_v29 = vld [vmem:[#allocation3 + $0xf9] sm:$0xff]  ;;  %v733_v60 = vadd.f32 %v697_v14, %v661_v40  ;;  %v806_v62 = vadd.f32 %v770_v53, %v734_v12  ;;  %v867_v48 = vadd.f32 %v835_v15, %v803_v32  ;;  %v900_v61 = vmul.f32 0.11111111, %v868_v6 }
 0x26c   : > { %v736_v8 = vadd.f32 %v700_v29, %v664_v20  ;;  %v837_v16 = vadd.f32 %v803_v32, %v801_v31  ;;  %v670_v18 = vld [vmem:[#allocation3 + $0x140] sm:$0xff]  ;;  %v669_v2 = vld [vmem:[#allocation3 + $0x138] sm:$0xff] }
 0x26d   : > { %v2374_v52 = vpop.permute.xlu1 %2373  ;;  %3064 = vperm.xlu1 %6562, %v889_v36   ;;  %v699_v36 = vld [vmem:[#allocation3 + $0xf1] sm:$0xff]  ;;  %v805_v49 = vadd.f32 %v769_v33, %v733_v60  ;;  %v870_v3 = vadd.f32 %v838_v30, %v806_v62  ;;  %v840_v63 = vadd.f32 %v806_v62, %v804_v17  ;;  %v899_v9 = vmul.f32 0.11111111, %v867_v48 }
 0x26e   : > { %v2380_v55 = vpop.permute.xlu0 %2379  ;;  %2467 = vst.msk [vmem:[#allocation4 + $0x18] sm:$0xff] %vm2463_vm5, %v2374_v52  ;;  %v772_v52 = vld [vmem:[#allocation3 + $0xfa] sm:$0xff]  ;;  %v773_v17 = vld [vmem:[#allocation3 + $0x10a] sm:$0xff] }
 0x26f   : > { %3079 = vperm.xlu0 %6561, %v892_v28   ;;  %2470 = vst.msk [vmem:[#allocation4 + $0x30] sm:$0xff] %vm2463_vm5, %v2380_v55  ;;  %v702_v28 = vld [vmem:[#allocation3 + $0x111] sm:$0xff]  ;;  %v735_v55 = vadd.f32 %v699_v36, %v663_v23  ;;  %v808_v7 = vadd.f32 %v772_v52, %v736_v8  ;;  %v869_v37 = vadd.f32 %v837_v16, %v805_v49  ;;  %v902_v26 = vmul.f32 0.11111111, %v870_v3 }
 0x270   : > { %v738_v13 = vadd.f32 %v702_v28, %v666_v25  ;;  %v839_v43 = vadd.f32 %v805_v49, %v803_v32  ;;  %v672_v60 = vld [vmem:[#allocation3 + $0x158] sm:$0xff]  ;;  %v671_v33 = vld [vmem:[#allocation3 + $0x150] sm:$0xff] }
 0x271   : > { %v2378_v41 = vpop.permute.xlu1 %2377  ;;  %3074 = vperm.xlu1 %6562, %v891_v1   ;;  %v701_v1 = vld [vmem:[#allocation3 + $0x109] sm:$0xff]  ;;  %v807_v56 = vadd.f32 %v771_v59, %v735_v55  ;;  %v872_v21 = vadd.f32 %v840_v63, %v808_v7  ;;  %v842_v10 = vadd.f32 %v808_v7, %v806_v62  ;;  %v901_v12 = vmul.f32 0.11111111, %v869_v37 }
 0x272   : > { %v2384_v4 = vpop.permute.xlu0 %2383  ;;  %2469 = vst.msk [vmem:[#allocation4 + $0x28] sm:$0xff] %vm2463_vm5, %v2378_v41  ;;  %v774_v41 = vld [vmem:[#allocation3 + $0x112] sm:$0xff]  ;;  %v775_v62 = vld [vmem:[#allocation3 + $0x122] sm:$0xff] }
 0x273   : > { %3089 = vperm.xlu0 %6561, %v894_v42   ;;  %2472 = vst.msk [vmem:[#allocation4 + $0x40] sm:$0xff] %vm2463_vm5, %v2384_v4  ;;  %v704_v42 = vld [vmem:[#allocation3 + $0x129] sm:$0xff]  ;;  %v737_v4 = vadd.f32 %v701_v1, %v665_v0  ;;  %v810_v38 = vadd.f32 %v774_v41, %v738_v13  ;;  %v871_v40 = vadd.f32 %v839_v43, %v807_v56  ;;  %v904_v11 = vmul.f32 0.11111111, %v872_v21 }
 0x274   : > { %v740_v22 = vadd.f32 %v704_v42, %v668_v39  ;;  %v841_v53 = vadd.f32 %v807_v56, %v805_v49  ;;  %v674_v55 = vld [vmem:[#allocation3 + $0x170] sm:$0xff]  ;;  %v673_v59 = vld [vmem:[#allocation3 + $0x168] sm:$0xff] }
 0x275   : > { %v2382_v44 = vpop.permute.xlu1 %2381  ;;  %3084 = vperm.xlu1 %6562, %v893_v45   ;;  %v703_v45 = vld [vmem:[#allocation3 + $0x121] sm:$0xff]  ;;  %v809_v14 = vadd.f32 %v773_v17, %v737_v4  ;;  %v874_v20 = vadd.f32 %v842_v10, %v810_v38  ;;  %v844_v6 = vadd.f32 %v810_v38, %v808_v7  ;;  %v903_v8 = vmul.f32 0.11111111, %v871_v40 }
 0x276   : > { %v2388_v35 = vpop.permute.xlu0 %2387  ;;  %2471 = vst.msk [vmem:[#allocation4 + $0x38] sm:$0xff] %vm2463_vm5, %v2382_v44  ;;  %v776_v44 = vld [vmem:[#allocation3 + $0x12a] sm:$0xff]  ;;  %v777_v7 = vld [vmem:[#allocation3 + $0x13a] sm:$0xff] }
 0x277   : > { %3099 = vperm.xlu0 %6561, %v896_v54   ;;  %2474 = vst.msk [vmem:[#allocation4 + $0x50] sm:$0xff] %vm2463_vm5, %v2388_v35  ;;  %v706_v54 = vld [vmem:[#allocation3 + $0x141] sm:$0xff]  ;;  %v739_v35 = vadd.f32 %v703_v45, %v667_v57  ;;  %v812_v29 = vadd.f32 %v776_v44, %v740_v22  ;;  %v873_v23 = vadd.f32 %v841_v53, %v809_v14  ;;  %v906_v15 = vmul.f32 0.11111111, %v874_v20 }
 0x278   : > { %v742_v47 = vadd.f32 %v706_v54, %v670_v18  ;;  %v843_v52 = vadd.f32 %v809_v14, %v807_v56  ;;  %v676_v4 = vld [vmem:[#allocation3 + $0x188] sm:$0xff]  ;;  %v675_v17 = vld [vmem:[#allocation3 + $0x180] sm:$0xff] }
 0x279   : > { %v2386_v24 = vpop.permute.xlu1 %2385  ;;  %3094 = vperm.xlu1 %6562, %v895_v19   ;;  %v705_v19 = vld [vmem:[#allocation3 + $0x139] sm:$0xff]  ;;  %v811_v36 = vadd.f32 %v775_v62, %v739_v35  ;;  %v876_v25 = vadd.f32 %v844_v6, %v812_v29  ;;  %v846_v3 = vadd.f32 %v812_v29, %v810_v38  ;;  %v905_v13 = vmul.f32 0.11111111, %v873_v23 }
 0x27a   : > { %v2392_v34 = vpop.permute.xlu0 %2391  ;;  %2473 = vst.msk [vmem:[#allocation4 + $0x48] sm:$0xff] %vm2463_vm5, %v2386_v24  ;;  %v778_v24 = vld [vmem:[#allocation3 + $0x142] sm:$0xff]  ;;  %v779_v38 = vld [vmem:[#allocation3 + $0x152] sm:$0xff] }
 0x27b   : > { %3109 = vperm.xlu0 %6561, %v898_v5   ;;  %2476 = vst.msk [vmem:[#allocation4 + $0x60] sm:$0xff] %vm2463_vm5, %v2392_v34  ;;  %v708_v5 = vld [vmem:[#allocation3 + $0x159] sm:$0xff]  ;;  %v741_v34 = vadd.f32 %v705_v19, %v669_v2  ;;  %v814_v28 = vadd.f32 %v778_v24, %v742_v47  ;;  %v875_v0 = vadd.f32 %v843_v52, %v811_v36  ;;  %v908_v16 = vmul.f32 0.11111111, %v876_v25  ;;  %v783_v25 = vld [vmem:[#allocation3 + $0x182] sm:$0xff] }
 0x27c   : > { %v744_v30 = vadd.f32 %v708_v5, %v672_v60  ;;  %v845_v41 = vadd.f32 %v811_v36, %v809_v14  ;;  %v678_v35 = vld [vmem:[#allocation3 + $0x1a0] sm:$0xff]  ;;  %v677_v62 = vld [vmem:[#allocation3 + $0x198] sm:$0xff] }
 0x27d   : > { %v2390_v51 = vpop.permute.xlu1 %2389  ;;  %3104 = vperm.xlu1 %6562, %v897_v46   ;;  %v707_v46 = vld [vmem:[#allocation3 + $0x151] sm:$0xff]  ;;  %v813_v1 = vadd.f32 %v777_v7, %v741_v34  ;;  %v878_v39 = vadd.f32 %v846_v3, %v814_v28  ;;  %v848_v21 = vadd.f32 %v814_v28, %v812_v29  ;;  %v907_v22 = vmul.f32 0.11111111, %v875_v0  ;;  %v786_v34 = vld [vmem:[#allocation3 + $0x1a2] sm:$0xff] }
 0x27e   : > { %v2396_v58 = vpop.permute.xlu0 %2395  ;;  %2475 = vst.msk [vmem:[#allocation4 + $0x58] sm:$0xff] %vm2463_vm5, %v2390_v51  ;;  %v780_v51 = vld [vmem:[#allocation3 + $0x15a] sm:$0xff]  ;;  %v781_v29 = vld [vmem:[#allocation3 + $0x16a] sm:$0xff] }
 0x27f   : > { %3119 = vperm.xlu0 %6561, %v900_v61   ;;  %2478 = vst.msk [vmem:[#allocation4 + $0x70] sm:$0xff] %vm2463_vm5, %v2396_v58  ;;  %v710_v61 = vld [vmem:[#allocation3 + $0x171] sm:$0xff]  ;;  %v743_v58 = vadd.f32 %v707_v46, %v671_v33  ;;  %v816_v42 = vadd.f32 %v780_v51, %v744_v30  ;;  %v877_v57 = vadd.f32 %v845_v41, %v813_v1  ;;  %v910_v43 = vmul.f32 0.11111111, %v878_v39 }
 0x280   : > { %v746_v63 = vadd.f32 %v710_v61, %v674_v55  ;;  %v847_v44 = vadd.f32 %v813_v1, %v811_v36  ;;  %v785_v61 = vld [vmem:[#allocation3 + $0x19a] sm:$0xff] }
 0x281   : > { %v2394_v27 = vpop.permute.xlu1 %2393  ;;  %3114 = vperm.xlu1 %6562, %v899_v9   ;;  %v709_v9 = vld [vmem:[#allocation3 + $0x169] sm:$0xff]  ;;  %v815_v45 = vadd.f32 %v779_v38, %v743_v58  ;;  %v880_v18 = vadd.f32 %v848_v21, %v816_v42  ;;  %v850_v20 = vadd.f32 %v816_v42, %v814_v28  ;;  %v909_v47 = vmul.f32 0.11111111, %v877_v57 }
 0x282   : > { %v2400_v31 = vpop.permute.xlu0 %2399  ;;  %2477 = vst.msk [vmem:[#allocation4 + $0x68] sm:$0xff] %vm2463_vm5, %v2394_v27  ;;  %v782_v27 = vld [vmem:[#allocation3 + $0x172] sm:$0xff] }
 0x283   : > { %3129 = vperm.xlu0 %6561, %v902_v26   ;;  %2480 = vst.msk [vmem:[#allocation4 + $0x80] sm:$0xff] %vm2463_vm5, %v2400_v31  ;;  %v712_v26 = vld [vmem:[#allocation3 + $0x189] sm:$0xff]  ;;  %v745_v31 = vadd.f32 %v709_v9, %v673_v59  ;;  %v818_v54 = vadd.f32 %v782_v27, %v746_v63  ;;  %v879_v2 = vadd.f32 %v847_v44, %v815_v45  ;;  %v912_v53 = vmul.f32 0.11111111, %v880_v18 }
 0x284   : > { %v748_v10 = vadd.f32 %v712_v26, %v676_v4  ;;  %v849_v24 = vadd.f32 %v815_v45, %v813_v1 }
 0x285   : > { %v2398_v50 = vpop.permute.xlu1 %2397  ;;  %3124 = vperm.xlu1 %6562, %v901_v12   ;;  %v711_v12 = vld [vmem:[#allocation3 + $0x181] sm:$0xff]  ;;  %v817_v19 = vadd.f32 %v781_v29, %v745_v31  ;;  %v882_v60 = vadd.f32 %v850_v20, %v818_v54  ;;  %v911_v28 = vmul.f32 0.11111111, %v879_v2 }
 0x286   : > { %v2404_v32 = vpop.permute.xlu0 %2403  ;;  %2479 = vst.msk [vmem:[#allocation4 + $0x78] sm:$0xff] %vm2463_vm5, %v2398_v50  ;;  %v784_v50 = vld [vmem:[#allocation3 + $0x18a] sm:$0xff] }
 0x287   : > { %3139 = vperm.xlu0 %6561, %v904_v11   ;;  %2482 = vst.msk [vmem:[#allocation4 + $0x90] sm:$0xff] %vm2463_vm5, %v2404_v32  ;;  %v714_v11 = vld [vmem:[#allocation3 + $0x1a1] sm:$0xff]  ;;  %v747_v32 = vadd.f32 %v711_v12, %v675_v17  ;;  %v820_v5 = vadd.f32 %v784_v50, %v748_v10  ;;  %v881_v30 = vadd.f32 %v849_v24, %v817_v19 }
 0x288   : > { %v750_v6 = vadd.f32 %v714_v11, %v678_v35 }
 0x289   : > { %v2402_v48 = vpop.permute.xlu1 %2401  ;;  %3134 = vperm.xlu1 %6562, %v903_v8   ;;  %v713_v8 = vld [vmem:[#allocation3 + $0x199] sm:$0xff]  ;;  %v819_v33 = vadd.f32 %v783_v25, %v747_v32  ;;  %v854_v55 = vadd.f32 %v820_v5, %v818_v54  ;;  %v913_v0 = vmul.f32 0.11111111, %v881_v30 }
 0x28a   : > { %v2408_v49 = vpop.permute.xlu0 %2407  ;;  %2481 = vst.msk [vmem:[#allocation4 + $0x88] sm:$0xff] %vm2463_vm5, %v2402_v48  ;;  %v749_v46 = vadd.f32 %v713_v8, %v677_v62  ;;  %v914_v48 = vmul.f32 0.11111111, %v882_v60  ;;  %v822_v52 = vadd.f32 %v786_v34, %v750_v6 }
 0x28b   : > { %3149 = vperm.xlu0 %6561, %v906_v15   ;;  %2484 = vst.msk [vmem:[#allocation4 + $0xa0] sm:$0xff] %vm2463_vm5, %v2408_v49  ;;  %v852_v15 = vadd.f32 %v818_v54, %v816_v42  ;;  %v853_v58 = vadd.f32 %v819_v33, %v817_v19 }
 0x28c   : > { %v821_v51 = vadd.f32 %v785_v61, %v749_v46  ;;  %v886_v39 = vadd.f32 %v854_v55, %v822_v52 }
 0x28d   : > { %v2406_v37 = vpop.permute.xlu1 %2405  ;;  %3144 = vperm.xlu1 %6562, %v905_v13   ;;  %v884_v49 = vadd.f32 %v852_v15, %v820_v5  ;;  %v851_v13 = vadd.f32 %v817_v19, %v815_v45 }
 0x28e   : > { %v2412_v56 = vpop.permute.xlu0 %2411  ;;  %2483 = vst.msk [vmem:[#allocation4 + $0x98] sm:$0xff] %vm2463_vm5, %v2406_v37  ;;  %v885_v9 = vadd.f32 %v853_v58, %v821_v51  ;;  %v918_v37 = vmul.f32 0.11111111, %v886_v39 }
 0x28f   : > { %3159 = vperm.xlu0 %6561, %v908_v16   ;;  %2486 = vst.msk [vmem:[#allocation4 + $0xb0] sm:$0xff] %vm2463_vm5, %v2412_v56  ;;  %v883_v1 = vadd.f32 %v851_v13, %v819_v33  ;;  %v916_v16 = vmul.f32 0.11111111, %v884_v49 }
 0x290   : > { %v917_v4 = vmul.f32 0.11111111, %v885_v9 }
 0x291   : > { %v2410_v40 = vpop.permute.xlu1 %2409  ;;  %3154 = vperm.xlu1 %6562, %v907_v22   ;;  %v915_v59 = vmul.f32 0.11111111, %v883_v1 }
 0x292   : > { %v2416_v14 = vpop.permute.xlu0 %2415  ;;  %2485 = vst.msk [vmem:[#allocation4 + $0xa8] sm:$0xff] %vm2463_vm5, %v2410_v40 }
 0x293   : > { %3169 = vperm.xlu0 %6561, %v910_v43   ;;  %2488 = vst.msk [vmem:[#allocation4 + $0xc0] sm:$0xff] %vm2463_vm5, %v2416_v14 }
 0x295   : > { %v2414_v23 = vpop.permute.xlu1 %2413  ;;  %3164 = vperm.xlu1 %6562, %v909_v47  }
 0x296   : > { %v2420_v36 = vpop.permute.xlu0 %2419  ;;  %2487 = vst.msk [vmem:[#allocation4 + $0xb8] sm:$0xff] %vm2463_vm5, %v2414_v23 }
 0x297   : > { %3179 = vperm.xlu0 %6561, %v912_v53   ;;  %2490 = vst.msk [vmem:[#allocation4 + $0xd0] sm:$0xff] %vm2463_vm5, %v2420_v36 }
 0x299   : > { %v2418_v3 = vpop.permute.xlu1 %2417  ;;  %3174 = vperm.xlu1 %6562, %v911_v28  }
 0x29a   : > { %v2424_v7 = vpop.permute.xlu0 %2423  ;;  %2489 = vst.msk [vmem:[#allocation4 + $0xc8] sm:$0xff] %vm2463_vm5, %v2418_v3 }
 0x29b   : > { %3189 = vperm.xlu0 %6561, %v914_v48   ;;  %2492 = vst.msk [vmem:[#allocation4 + $0xe0] sm:$0xff] %vm2463_vm5, %v2424_v7 }
 0x29d   : > { %v2422_v42 = vpop.permute.xlu1 %2421  ;;  %3184 = vperm.xlu1 %6562, %v913_v0  }
 0x29e   : > { %v2428_v63 = vpop.permute.xlu0 %2427  ;;  %2491 = vst.msk [vmem:[#allocation4 + $0xd8] sm:$0xff] %vm2463_vm5, %v2422_v42 }
 0x29f   : > { %3199 = vperm.xlu0 %6561, %v916_v16   ;;  %2494 = vst.msk [vmem:[#allocation4 + $0xf0] sm:$0xff] %vm2463_vm5, %v2428_v63 }
 0x2a1   : > { %v2426_v56 = vpop.permute.xlu1 %2425  ;;  %3194 = vperm.xlu1 %6562, %v915_v59  }
 0x2a2   : > { %v2561_v41 = vpop.permute.xlu0 %2560  ;;  %2493 = vst.msk [vmem:[#allocation4 + $0xe8] sm:$0xff] %vm2463_vm5, %v2426_v56 }
 0x2a3   : > { %3209 = vperm.xlu0 %6561, %v918_v37   ;;  %2657 = vst.msk [vmem:[#allocation4] sm:$0xff] %vm9647_vm6, %v2561_v41 }
 0x2a5   : > { %v2430_v26 = vpop.permute.xlu1 %2429  ;;  %3204 = vperm.xlu1 %6562, %v917_v4  }
 0x2a6   : > { %v2565_v21 = vpop.permute.xlu0 %2564  ;;  %2495 = vst.msk [vmem:[#allocation4 + $0xf8] sm:$0xff] %vm2463_vm5, %v2430_v26 }
 0x2a7   : > { %2659 = vst.msk [vmem:[#allocation4 + $0x10] sm:$0xff] %vm9647_vm6, %v2565_v21 }
 0x2a9   : > { %v2563_v38 = vpop.permute.xlu1 %2562 }
 0x2aa   : > { %v2569_v22 = vpop.permute.xlu0 %2568  ;;  %v2689_v57 = vld [vmem:[#allocation4] sm:$0xff]  ;;  %2658 = vst.msk [vmem:[#allocation4 + $0x8] sm:$0xff] %vm9647_vm6, %v2563_v38 }
 0x2ab   : > { %2661 = vst.msk [vmem:[#allocation4 + $0x20] sm:$0xff] %vm9647_vm6, %v2569_v22  ;;  %6421 = vmatprep.mubr.msk.f32.mxu0 %vm9646_vm7, %v2689_v57 }
 0x2ad   : > { %v2567_v45 = vpop.permute.xlu1 %2566 }
 0x2ae   : > { %v2573_v27 = vpop.permute.xlu0 %2572  ;;  %2660 = vst.msk [vmem:[#allocation4 + $0x18] sm:$0xff] %vm9647_vm6, %v2567_v45  ;;  %v2691_v31 = vld [vmem:[#allocation4 + $0x10] sm:$0xff] }
 0x2af   : > { %2663 = vst.msk [vmem:[#allocation4 + $0x30] sm:$0xff] %vm9647_vm6, %v2573_v27 }
 0x2b1   : > { %v2571_v43 = vpop.permute.xlu1 %2570  ;;  %v2690_v18 = vld [vmem:[#allocation4 + $0x8] sm:$0xff] }
 0x2b2   : > { %v2577_v54 = vpop.permute.xlu0 %2576  ;;  %2662 = vst.msk [vmem:[#allocation4 + $0x28] sm:$0xff] %vm9647_vm6, %v2571_v43  ;;  %6422 = vmatmul.mubr.msk.f32.vlgmr.msra.gmra.mrb[0].mxu0 %vm9646_vm7, %v2690_v18  ;;  %v2693_v10 = vld [vmem:[#allocation4 + $0x20] sm:$0xff] }
 0x2b3   : > { %2665 = vst.msk [vmem:[#allocation4 + $0x40] sm:$0xff] %vm9647_vm6, %v2577_v54  ;;  %6424 = vmatprep.mubr.msk.f32.mxu0 %vm9646_vm7, %v2691_v31 }
 0x2b5   : > { %v2575_v17 = vpop.permute.xlu1 %2574  ;;  %v2692_v12 = vld [vmem:[#allocation4 + $0x18] sm:$0xff] }
 0x2b6   : > { %v2581_v40 = vpop.permute.xlu0 %2580  ;;  %2664 = vst.msk [vmem:[#allocation4 + $0x38] sm:$0xff] %vm9647_vm6, %v2575_v17  ;;  %6425 = vmatmul.mubr.msk.f32.gmra.mrb[2].mxu0 %vm9646_vm7, %v2692_v12  ;;  %v2695_v14 = vld [vmem:[#allocation4 + $0x30] sm:$0xff] }
 0x2b7   : > { %2667 = vst.msk [vmem:[#allocation4 + $0x50] sm:$0xff] %vm9647_vm6, %v2581_v40  ;;  %6427 = vmatprep.mubr.msk.f32.mxu0 %vm9646_vm7, %v2693_v10  ;;  %v8231_v10 = vld [vmem:[%s9578_s4] ss:$0 sm:$0xff] }
 0x2b9   : > { %v2579_v44 = vpop.permute.xlu1 %2578  ;;  %v2694_v35 = vld [vmem:[#allocation4 + $0x28] sm:$0xff] }
 0x2ba   : > { %v2585_v11 = vpop.permute.xlu0 %2584  ;;  %2666 = vst.msk [vmem:[#allocation4 + $0x48] sm:$0xff] %vm9647_vm6, %v2579_v44  ;;  %6428 = vmatmul.mubr.msk.f32.gmra.mrb[4].mxu0 %vm9646_vm7, %v2694_v35  ;;  %v2697_v20 = vld [vmem:[#allocation4 + $0x40] sm:$0xff] }
 0x2bb   : > { %2669 = vst.msk [vmem:[#allocation4 + $0x60] sm:$0xff] %vm9647_vm6, %v2585_v11  ;;  %6430 = vmatprep.mubr.msk.f32.mxu0 %vm9646_vm7, %v2695_v14 }
 0x2bd   : > { %v2583_v29 = vpop.permute.xlu1 %2582  ;;  %v2696_v47 = vld [vmem:[#allocation4 + $0x38] sm:$0xff] }
 0x2be   : > { %v2589_v2 = vpop.permute.xlu0 %2588  ;;  %2668 = vst.msk [vmem:[#allocation4 + $0x58] sm:$0xff] %vm9647_vm6, %v2583_v29  ;;  %6431 = vmatmul.mubr.msk.f32.gmra.mrb[6].mxu0 %vm9646_vm7, %v2696_v47  ;;  %v2699_v19 = vld [vmem:[#allocation4 + $0x50] sm:$0xff]  ;;  %v8239_v29 = vld [vmem:[%s9579_s5] ss:$0 sm:$0xff] }
 0x2bf   : > { %2671 = vst.msk [vmem:[#allocation4 + $0x70] sm:$0xff] %vm9647_vm6, %v2589_v2  ;;  %6433 = vmatprep.mubr.msk.f32.mxu0 %vm9646_vm7, %v2697_v20  ;;  %v9767_v2 = vmov 0.0  }
 0x2c1   : > { %v2587_v50 = vpop.permute.xlu1 %2586  ;;  %v2698_v32 = vld [vmem:[#allocation4 + $0x48] sm:$0xff] }
 0x2c2   : > { %v2593_v53 = vpop.permute.xlu0 %2592  ;;  %2670 = vst.msk [vmem:[#allocation4 + $0x68] sm:$0xff] %vm9647_vm6, %v2587_v50  ;;  %6434 = vmatmul.mubr.msk.f32.gmra.mrb[8].mxu0 %vm9646_vm7, %v2698_v32  ;;  %v2701_v60 = vld [vmem:[#allocation4 + $0x60] sm:$0xff] }
 0x2c3   : > { %2673 = vst.msk [vmem:[#allocation4 + $0x80] sm:$0xff] %vm9647_vm6, %v2593_v53  ;;  %6436 = vmatprep.mubr.msk.f32.mxu0 %vm9646_vm7, %v2699_v19 }
 0x2c5   : > { %v2591_v5 = vpop.permute.xlu1 %2590  ;;  %v2700_v6 = vld [vmem:[#allocation4 + $0x58] sm:$0xff] }
 0x2c6   : > { %v2597_v62 = vpop.permute.xlu0 %2596  ;;  %2672 = vst.msk [vmem:[#allocation4 + $0x78] sm:$0xff] %vm9647_vm6, %v2591_v5  ;;  %6437 = vmatmul.mubr.msk.f32.gmra.mrb[10].mxu0 %vm9646_vm7, %v2700_v6  ;;  %v2703_v8 = vld [vmem:[#allocation4 + $0x70] sm:$0xff] }
 0x2c7   : > { %2675 = vst.msk [vmem:[#allocation4 + $0x90] sm:$0xff] %vm9647_vm6, %v2597_v62  ;;  %6439 = vmatprep.mubr.msk.f32.mxu0 %vm9646_vm7, %v2701_v60 }
 0x2c9   : > { %v2595_v23 = vpop.permute.xlu1 %2594  ;;  %v2702_v36 = vld [vmem:[#allocation4 + $0x68] sm:$0xff] }
 0x2ca   : > { %v2601_v24 = vpop.permute.xlu0 %2600  ;;  %2674 = vst.msk [vmem:[#allocation4 + $0x88] sm:$0xff] %vm9647_vm6, %v2595_v23  ;;  %6440 = vmatmul.mubr.msk.f32.gmra.mrb[12].mxu0 %vm9646_vm7, %v2702_v36  ;;  %v2705_v34 = vld [vmem:[#allocation4 + $0x80] sm:$0xff] }
 0x2cb   : > { %2677 = vst.msk [vmem:[#allocation4 + $0xa0] sm:$0xff] %vm9647_vm6, %v2601_v24  ;;  %6442 = vmatprep.mubr.msk.f32.mxu0 %vm9646_vm7, %v2703_v8 }
 0x2cd   : > { %v2599_v15 = vpop.permute.xlu1 %2598  ;;  %v2704_v25 = vld [vmem:[#allocation4 + $0x78] sm:$0xff] }
 0x2ce   : > { %v2605_v28 = vpop.permute.xlu0 %2604  ;;  %2676 = vst.msk [vmem:[#allocation4 + $0x98] sm:$0xff] %vm9647_vm6, %v2599_v15  ;;  %6443 = vmatmul.mubr.msk.f32.gmra.mrb[14].mxu0 %vm9646_vm7, %v2704_v25  ;;  %v2707_v30 = vld [vmem:[#allocation4 + $0x90] sm:$0xff] }
 0x2cf   : > { %2679 = vst.msk [vmem:[#allocation4 + $0xb0] sm:$0xff] %vm9647_vm6, %v2605_v28  ;;  %6445 = vmatprep.mubr.msk.f32.mxu0 %vm9646_vm7, %v2705_v34 }
 0x2d1   : > { %v2603_v33 = vpop.permute.xlu1 %2602  ;;  %v2706_v46 = vld [vmem:[#allocation4 + $0x88] sm:$0xff] }
 0x2d2   : > { %v2609_v48 = vpop.permute.xlu0 %2608  ;;  %2678 = vst.msk [vmem:[#allocation4 + $0xa8] sm:$0xff] %vm9647_vm6, %v2603_v33  ;;  %6446 = vmatmul.mubr.msk.f32.gmra.mrb[16].mxu0 %vm9646_vm7, %v2706_v46  ;;  %v2709_v49 = vld [vmem:[#allocation4 + $0xa0] sm:$0xff] }
 0x2d3   : > { %2681 = vst.msk [vmem:[#allocation4 + $0xc0] sm:$0xff] %vm9647_vm6, %v2609_v48  ;;  %6448 = vmatprep.mubr.msk.f32.mxu0 %vm9646_vm7, %v2707_v30  ;;  %v9768_v30 = vld [vmem:[#allocation8_spill] sm:$0xff] }
 0x2d5   : > { %v2607_v52 = vpop.permute.xlu1 %2606  ;;  %v2708_v55 = vld [vmem:[#allocation4 + $0x98] sm:$0xff] }
 0x2d6   : > { %v2613_v61 = vpop.permute.xlu0 %2612  ;;  %2680 = vst.msk [vmem:[#allocation4 + $0xb8] sm:$0xff] %vm9647_vm6, %v2607_v52  ;;  %6449 = vmatmul.mubr.msk.f32.gmra.mrb[18].mxu0 %vm9646_vm7, %v2708_v55  ;;  %v2711_v3 = vld [vmem:[#allocation4 + $0xb0] sm:$0xff] }
 0x2d7   : > { %2683 = vst.msk [vmem:[#allocation4 + $0xd0] sm:$0xff] %vm9647_vm6, %v2613_v61  ;;  %6451 = vmatprep.mubr.msk.f32.mxu0 %vm9646_vm7, %v2709_v49 }
 0x2d9   : > { %v2611_v7 = vpop.permute.xlu1 %2610  ;;  %v2710_v13 = vld [vmem:[#allocation4 + $0xa8] sm:$0xff] }
 0x2da   : > { %v2617_v0 = vpop.permute.xlu0 %2616  ;;  %2682 = vst.msk [vmem:[#allocation4 + $0xc8] sm:$0xff] %vm9647_vm6, %v2611_v7  ;;  %6452 = vmatmul.mubr.msk.f32.gmra.mrb[20].mxu0 %vm9646_vm7, %v2710_v13  ;;  %v2713_v1 = vld [vmem:[#allocation4 + $0xc0] sm:$0xff] }
 0x2db   : > { %2685 = vst.msk [vmem:[#allocation4 + $0xe0] sm:$0xff] %vm9647_vm6, %v2617_v0  ;;  %6454 = vmatprep.mubr.msk.f32.mxu0 %vm9646_vm7, %v2711_v3 }
 0x2dd   : > { %v2615_v51 = vpop.permute.xlu1 %2614  ;;  %v2712_v58 = vld [vmem:[#allocation4 + $0xb8] sm:$0xff] }
 0x2de   : > { %v2621_v16 = vpop.permute.xlu0 %2620  ;;  %2684 = vst.msk [vmem:[#allocation4 + $0xd8] sm:$0xff] %vm9647_vm6, %v2615_v51  ;;  %6455 = vmatmul.mubr.msk.f32.gmra.mrb[22].mxu0 %vm9646_vm7, %v2712_v58  ;;  %v2715_v39 = vld [vmem:[#allocation4 + $0xd0] sm:$0xff]  ;;  %v9769_v58 = vld [vmem:[#allocation6_spill] sm:$0xff] }
 0x2df   : > { %2687 = vst.msk [vmem:[#allocation4 + $0xf0] sm:$0xff] %vm9647_vm6, %v2621_v16  ;;  %6457 = vmatprep.mubr.msk.f32.mxu0 %vm9646_vm7, %v2713_v1 }
 0x2e1   : > { %v2619_v42 = vpop.permute.xlu1 %2618  ;;  %v2714_v63 = vld [vmem:[#allocation4 + $0xc8] sm:$0xff] }
 0x2e2   : > { %2686 = vst.msk [vmem:[#allocation4 + $0xe8] sm:$0xff] %vm9647_vm6, %v2619_v42  ;;  %6458 = vmatmul.mubr.msk.f32.gmra.mrb[24].mxu0 %vm9646_vm7, %v2714_v63  ;;  %v2717_v59 = vld [vmem:[#allocation4 + $0xe0] sm:$0xff] }
 0x2e3   : > { %6460 = vmatprep.mubr.msk.f32.mxu0 %vm9646_vm7, %v2715_v39 }
 0x2e5   : > { %v2623_v9 = vpop.permute.xlu1 %2622  ;;  %v2716_v37 = vld [vmem:[#allocation4 + $0xd8] sm:$0xff] }
 0x2e6   : > { %2688 = vst.msk [vmem:[#allocation4 + $0xf8] sm:$0xff] %vm9647_vm6, %v2623_v9  ;;  %6461 = vmatmul.mubr.msk.f32.gmra.mrb[26].mxu0 %vm9646_vm7, %v2716_v37  ;;  %v2719_v56 = vld [vmem:[#allocation4 + $0xf0] sm:$0xff]  ;;  %v3055_v26 = vpop.permute.xlu0 %3054 }
 0x2e7   : > { %6463 = vmatprep.mubr.msk.f32.mxu0 %vm9646_vm7, %v2717_v59 }
 0x2e9   : > { %v2718_v41 = vld [vmem:[#allocation4 + $0xe8] sm:$0xff]  ;;  %v3060_v21 = vpop.permute.xlu1 %3059 }
 0x2ea   : > { %6464 = vmatmul.mubr.msk.f32.gmra.mrb[28].mxu0 %vm9646_vm7, %v2718_v41  ;;  %v3070_v38 = vpop.permute.xlu0 %3069 }
 0x2eb   : > { %6466 = vmatprep.mubr.msk.f32.mxu0 %vm9646_vm7, %v2719_v56 }
 0x2ed   : > { %v2720_v4 = vld [vmem:[#allocation4 + $0xf8] sm:$0xff]  ;;  %v3065_v22 = vpop.permute.xlu1 %3064 }
 0x2ee   : > { %6467 = vmatmul.mubr.msk.f32.gmra.mrb[30].mxu0 %vm9646_vm7, %v2720_v4  ;;  %v3080_v57 = vpop.permute.xlu0 %3079 }
 0x2f1   : > { %v3075_v45 = vpop.permute.xlu1 %3074 }
 0x2f2   : > { %v3090_v27 = vpop.permute.xlu0 %3089 }
 0x2f5   : > { %v8226_v31 = vpop.permute.xlu1 %3084 }
 0x2f6   : > { %v8233_v12 = vpop.permute.xlu0 %3099 }
 0x2f9   : > { %v8241_v47 = vpop.permute.xlu1 %3094 }
 0x2fa   : > { %v8248_v23 = vpop.permute.xlu0 %3109 }
 0x2fd   : > { %v8255_v49 = vpop.permute.xlu1 %3104 }
 0x2fe   : > { %v8265_v63 = vpop.permute.xlu0 %3119 }
 0x385   : > { %v6423_v43 = vpop.f32.mrb[0].mxu0 }
 0x386   : > { %v3213_v18 = vmul.f32 %v6423_v43, %v3060_v21  ;;  %v2893_v54 = vpop.f32.mrb[1].mxu0 }
 0x387   : > { %v3212_v17 = vmul.f32 %v3055_v26, %v2893_v54  ;;  %v9770_v54 = vld [vmem:[#allocation5_spill] sm:$0xff] }
 0x388   : > { %v3245_v40 = vmax.f32 %v3213_v18, 0.0 }
 0x389   : > { %v3244_v14 = vmax.f32 %v3212_v17, 0.0  ;;  %v6426_v44 = vpop.f32.mrb[2].mxu0 }
 0x38a   : > { %v3284_v35 = vmul.f32 %v8231_v10, %v3245_v40  ;;  %vm3823_vm8 = vcmp.gt.f32.partialorder %v3245_v40, 0.0  ;;  %vm3855_vm9 = vcmp.lt.f32.partialorder %v3245_v40, 0.0  ;;  %v3215_v11 = vmul.f32 %v6426_v44, %v3070_v38  ;;  %v2903_v20 = vpop.f32.mrb[3].mxu0 }
 0x38b   : > { %v3887_v19 = vsel %vm3855_vm9, -1.0, %v9767_v2  ;;  %v3283_v50 = vmul.f32 %v8231_v10, %v3244_v14  ;;  %vm3822_vm10 = vcmp.gt.f32.partialorder %v3244_v14, 0.0  ;;  %vm3854_vm11 = vcmp.lt.f32.partialorder %v3244_v14, 0.0 }
 0x38c   : > { %v3919_v32 = vsel %vm3823_vm8, 1.0, %v3887_v19  ;;  %v3886_v53 = vsel %vm3854_vm11, -1.0, %v9767_v2  ;;  %v3247_v60 = vmax.f32 %v3215_v11, 0.0  ;;  %v3214_v5 = vmul.f32 %v3065_v22, %v2903_v20  ;;  %v8296_v19 = vpop.permute.xlu0 %3129 }
 0x38d   : > { %3951 = vst.msk [vmem:[#allocation2 + $0x21] sm:$0xff] %vm279_vm0, %v3919_v32  ;;  %v3918_v6 = vsel %vm3822_vm10, 1.0, %v3886_v53  ;;  %v6429_v62 = vpop.f32.mrb[4].mxu0  ;;  %v3323_v8 = vadd.f32 %v8239_v29, %v3284_v35  ;;  %v3322_v34 = vadd.f32 %v8239_v29, %v3283_v50 }
 0x38e   : > { %3950 = vst.msk [vmem:[#allocation2 + $0x19] sm:$0xff] %vm279_vm0, %v3918_v6  ;;  %vm3825_vm9 = vcmp.gt.f32.partialorder %v3247_v60, 0.0  ;;  %vm3857_vm7 = vcmp.lt.f32.partialorder %v3247_v60, 0.0  ;;  %v3246_v36 = vmax.f32 %v3214_v5, 0.0  ;;  %v2913_v24 = vpop.f32.mrb[5].mxu0  ;;  %v3217_v25 = vmul.f32 %v6429_v62, %v3080_v57 }
 0x38f   : > { %v3889_v15 = vsel %vm3857_vm7, -1.0, %v9767_v2  ;;  %v3216_v28 = vmul.f32 %v3075_v45, %v2913_v24  ;;  %v3355_v33 = vadd.f32 %v3323_v8, %v9768_v30  ;;  %v3286_v13 = vmul.f32 %v8231_v10, %v3247_v60 }
 0x390   : > { %v3921_v46 = vsel %vm3825_vm9, 1.0, %v3889_v15  ;;  %v3285_v48 = vmul.f32 %v8231_v10, %v3246_v36  ;;  %vm3824_vm8 = vcmp.gt.f32.partialorder %v3246_v36, 0.0  ;;  %vm3856_vm10 = vcmp.lt.f32.partialorder %v3246_v36, 0.0 }
 0x391   : > { %3953 = vst.msk [vmem:[#allocation2 + $0x39] sm:$0xff] %vm279_vm0, %v3921_v46  ;;  %v3888_v52 = vsel %vm3856_vm10, -1.0, %v9767_v2  ;;  %v3249_v55 = vmax.f32 %v3217_v25, 0.0  ;;  %v3248_v61 = vmax.f32 %v3216_v28, 0.0  ;;  %v3389_v3 = vsel %vm279_vm0, %v3355_v33, 0.0  ;;  %v6432_v7 = vpop.f32.mrb[6].mxu0 }
 0x392   : > { %v3920_v0 = vsel %vm3824_vm8, 1.0, %v3888_v52  ;;  %3390 = vadd.xlane.f32.xlu0 %v3389_v3  ;;  %v3219_v1 = vmul.f32 %v6432_v7, %v3090_v27  ;;  %v2923_v51 = vpop.f32.mrb[7].mxu0  ;;  %v3354_v16 = vadd.f32 %v3322_v34, %v9769_v58  ;;  %v3324_v42 = vadd.f32 %v8239_v29, %v3285_v48  ;;  %v8279_v27 = vpop.permute.xlu1 %3114  ;;  %v9771_v46 = vld [vmem:[#allocation10_spill] sm:$0xff]  ;;  %v9772_v52 = vld [vmem:[#allocation7_spill] sm:$0xff] }
 0x393   : > { %3952 = vst.msk [vmem:[#allocation2 + $0x31] sm:$0xff] %vm279_vm0, %v3920_v0  ;;  %vm3827_vm7 = vcmp.gt.f32.partialorder %v3249_v55, 0.0  ;;  %vm3859_vm11 = vcmp.lt.f32.partialorder %v3249_v55, 0.0  ;;  %v3287_v39 = vmul.f32 %v8231_v10, %v3248_v61  ;;  %vm3826_vm9 = vcmp.gt.f32.partialorder %v3248_v61, 0.0 }
 0x394   : > { %v3891_v59 = vsel %vm3859_vm11, -1.0, %v9767_v2  ;;  %vm3858_vm10 = vcmp.lt.f32.partialorder %v3248_v61, 0.0  ;;  %v3251_v9 = vmax.f32 %v3219_v1, 0.0  ;;  %v3218_v41 = vmul.f32 %v8226_v31, %v2923_v51  ;;  %v3140_v1 = vpop.permute.xlu0 %3139 }
 0x395   : > { %v3923_v37 = vsel %vm3827_vm7, 1.0, %v3891_v59  ;;  %v3890_v56 = vsel %vm3858_vm10, -1.0, %v9767_v2  ;;  %v3386_v4 = vsel %vm279_vm0, %v3354_v16, 0.0  ;;  %v6435_v26 = vpop.f32.mrb[8].mxu0  ;;  %v8272_v21 = vmul.f32 %v8231_v10, %v3249_v55  ;;  %v8275_v57 = vld [vmem:[#allocation2 + $0x18] sm:$0xff]  ;;  %v8277_v45 = vld [vmem:[#allocation2 + $0x20] sm:$0xff] }
 0x396   : > { %3955 = vst.msk [vmem:[#allocation2 + $0x51] sm:$0xff] %vm279_vm0, %v3923_v37  ;;  %v3922_v38 = vsel %vm3826_vm9, 1.0, %v3890_v56  ;;  %vm3829_vm8 = vcmp.gt.f32.partialorder %v3251_v9, 0.0  ;;  %vm3861_vm6 = vcmp.lt.f32.partialorder %v3251_v9, 0.0  ;;  %3387 = vadd.xlane.f32.xlu1 %v3386_v4  ;;  %v2933_v22 = vpop.f32.mrb[9].mxu0  ;;  %v3250_v43 = vmax.f32 %v3218_v41, 0.0 }
 0x397   : > { %3954 = vst.msk [vmem:[#allocation2 + $0x49] sm:$0xff] %vm279_vm0, %v3922_v38  ;;  %v3893_v31 = vsel %vm3861_vm6, -1.0, %v9767_v2  ;;  %v3221_v18 = vmul.f32 %v6435_v26, %v8233_v12  ;;  %v3356_v17 = vadd.f32 %v3324_v42, %v9770_v54  ;;  %4016 = vst.msk [vmem:[#allocation4 + $0x10] sm:$0xff] %vm279_vm0, %v8275_v57  ;;  %v8290_v40 = vmul.f32 %v8231_v10, %v3251_v9 }
 0x398   : > { %4017 = vst.msk [vmem:[#allocation4 + $0x18] sm:$0xff] %vm279_vm0, %v8277_v45  ;;  %v3925_v14 = vsel %vm3829_vm8, 1.0, %v3893_v31  ;;  %v3220_v44 = vmul.f32 %v8241_v47, %v2933_v22  ;;  %v3326_v35 = vadd.f32 %v8239_v29, %v3287_v39  ;;  %vm3828_vm6 = vcmp.gt.f32.partialorder %v3250_v43, 0.0 }
 0x399   : > { %3957 = vst.msk [vmem:[#allocation2 + $0x69] sm:$0xff] %vm279_vm0, %v3925_v14  ;;  %vm3860_vm7 = vcmp.lt.f32.partialorder %v3250_v43, 0.0  ;;  %v3253_v12 = vmax.f32 %v3221_v18, 0.0  ;;  %v6438_v11 = vpop.f32.mrb[10].mxu0  ;;  %v3325_v20 = vadd.f32 %v8239_v29, %v3286_v13  ;;  %v3392_v32 = vsel %vm279_vm0, %v3356_v17, 0.0 }
 0x39a   : > { %v3892_v50 = vsel %vm3860_vm7, -1.0, %v9767_v2  ;;  %v3252_v53 = vmax.f32 %v3220_v44, 0.0  ;;  %v3223_v60 = vmul.f32 %v6438_v11, %v8248_v23  ;;  %v2943_v47 = vpop.f32.mrb[11].mxu0  ;;  %v3289_v5 = vmul.f32 %v8231_v10, %v3250_v43  ;;  %3393 = vadd.xlane.f32.xlu0 %v3392_v32  ;;  %v8302_v62 = vld [vmem:[#allocation2 + $0x30] sm:$0xff]  ;;  %v8304_v8 = vld [vmem:[#allocation2 + $0x38] sm:$0xff]  ;;  %v3125_v23 = vpop.permute.xlu1 %3124 }
 0x39b   : > { %v3924_v6 = vsel %vm3828_vm6, 1.0, %v3892_v50  ;;  %vm3831_vm11 = vcmp.gt.f32.partialorder %v3253_v12, 0.0  ;;  %vm3863_vm9 = vcmp.lt.f32.partialorder %v3253_v12, 0.0  ;;  %v8308_v36 = vmul.f32 %v8231_v10, %v3253_v12  ;;  %4019 = vst.msk [vmem:[#allocation4 + $0x28] sm:$0xff] %vm279_vm0, %v8304_v8  ;;  %4018 = vst.msk [vmem:[#allocation4 + $0x20] sm:$0xff] %vm279_vm0, %v8302_v62 }
 0x39c   : > { %3956 = vst.msk [vmem:[#allocation2 + $0x61] sm:$0xff] %vm279_vm0, %v3924_v6  ;;  %v3895_v24 = vsel %vm3863_vm9, -1.0, %v9767_v2  ;;  %vm3830_vm10 = vcmp.gt.f32.partialorder %v3252_v53, 0.0  ;;  %vm3862_vm8 = vcmp.lt.f32.partialorder %v3252_v53, 0.0  ;;  %v3255_v25 = vmax.f32 %v3223_v60, 0.0 }
 0x39d   : > { %v3927_v34 = vsel %vm3831_vm11, 1.0, %v3895_v24  ;;  %v3894_v15 = vsel %vm3862_vm8, -1.0, %v9767_v2  ;;  %v3222_v28 = vmul.f32 %v8255_v49, %v2943_v47  ;;  %v6441_v30 = vpop.f32.mrb[12].mxu0  ;;  %v3358_v48 = vadd.f32 %v3326_v35, %v9771_v46  ;;  %v9773_v35 = vld [vmem:[#allocation12_spill] sm:$0xff] }
 0x39e   : > { %3959 = vst.msk [vmem:[#allocation2 + $0x81] sm:$0xff] %vm279_vm0, %v3927_v34  ;;  %v3926_v33 = vsel %vm3830_vm10, 1.0, %v3894_v15  ;;  %v3357_v55 = vadd.f32 %v3325_v20, %v9772_v52  ;;  %v3225_v61 = vmul.f32 %v6441_v30, %v8265_v63  ;;  %v2953_v3 = vpop.f32.mrb[13].mxu0  ;;  %v8321_v7 = vld [vmem:[#allocation2 + $0x48] sm:$0xff]  ;;  %v3291_v13 = vmul.f32 %v8231_v10, %v3252_v53  ;;  %v8325_v0 = vld [vmem:[#allocation2 + $0x50] sm:$0xff]  ;;  %v3135_v41 = vpop.permute.xlu1 %3134 }
 0x39f   : > { %3958 = vst.msk [vmem:[#allocation2 + $0x79] sm:$0xff] %vm279_vm0, %v3926_v33  ;;  %vm3833_vm6 = vcmp.gt.f32.partialorder %v3255_v25, 0.0  ;;  %vm3865_vm7 = vcmp.lt.f32.partialorder %v3255_v25, 0.0  ;;  %v3254_v49 = vmax.f32 %v3222_v28, 0.0  ;;  %4020 = vst.msk [vmem:[#allocation4 + $0x30] sm:$0xff] %vm279_vm0, %v8321_v7  ;;  %v3398_v58 = vsel %vm279_vm0, %v3358_v48, 0.0 }
 0x3a0   : > { %v3897_v51 = vsel %vm3865_vm7, -1.0, %v9767_v2  ;;  %v3395_v16 = vsel %vm279_vm0, %v3357_v55, 0.0  ;;  %v3257_v39 = vmax.f32 %v3225_v61, 0.0  ;;  %4021 = vst.msk [vmem:[#allocation4 + $0x38] sm:$0xff] %vm279_vm0, %v8325_v0  ;;  %v8335_v42 = vmul.f32 %v8231_v10, %v3255_v25  ;;  %3399 = vadd.xlane.f32.xlu1 %v3398_v58  ;;  %v9775_v48 = vld [vmem:[#allocation14_spill] sm:$0xff]  ;;  %v9776_v55 = vld [vmem:[#allocation11_spill] sm:$0xff] }
 0x3a1   : > { %v3929_v63 = vsel %vm3833_vm6, 1.0, %v3897_v51  ;;  %vm3832_vm11 = vcmp.gt.f32.partialorder %v3254_v49, 0.0  ;;  %vm3864_vm9 = vcmp.lt.f32.partialorder %v3254_v49, 0.0  ;;  %3396 = vadd.xlane.f32.xlu0 %v3395_v16  ;;  %v6444_v59 = vpop.f32.mrb[14].mxu0  ;;  %v8339_v9 = vmul.f32 %v8231_v10, %v3254_v49 }
 0x3a2   : > { %3961 = vst.msk [vmem:[#allocation2 + $0x99] sm:$0xff] %vm279_vm0, %v3929_v63  ;;  %v3896_v37 = vsel %vm3864_vm9, -1.0, %v9767_v2  ;;  %vm3835_vm10 = vcmp.gt.f32.partialorder %v3257_v39, 0.0  ;;  %vm3867_vm8 = vcmp.lt.f32.partialorder %v3257_v39, 0.0  ;;  %v2963_v56 = vpop.f32.mrb[15].mxu0  ;;  %v3224_v38 = vmul.f32 %v8279_v27, %v2953_v3  ;;  %v3145_v25 = vpop.permute.xlu1 %3144 }
 0x3a3   : > { %v3928_v4 = vsel %vm3832_vm11, 1.0, %v3896_v37  ;;  %v3899_v26 = vsel %vm3867_vm8, -1.0, %v9767_v2  ;;  %v3328_v22 = vadd.f32 %v8239_v29, %v3289_v5  ;;  %v8345_v31 = vld [vmem:[#allocation2 + $0x60] sm:$0xff]  ;;  %v3327_v18 = vadd.f32 %v8239_v29, %v8272_v21  ;;  %v8351_v14 = vld [vmem:[#allocation2 + $0x68] sm:$0xff]  ;;  %v3150_v21 = vpop.permute.xlu0 %3149 }
 0x3a4   : > { %3960 = vst.msk [vmem:[#allocation2 + $0x91] sm:$0xff] %vm279_vm0, %v3928_v4  ;;  %v3931_v43 = vsel %vm3835_vm10, 1.0, %v3899_v26  ;;  %v3227_v54 = vmul.f32 %v6444_v59, %v8296_v19  ;;  %v3226_v17 = vmul.f32 %v3125_v23, %v2963_v56  ;;  %4022 = vst.msk [vmem:[#allocation4 + $0x40] sm:$0xff] %vm279_vm0, %v8345_v31  ;;  %v8356_v27 = vmul.f32 %v8231_v10, %v3257_v39  ;;  %v9774_v19 = vld [vmem:[#allocation9_spill] sm:$0xff] }
 0x3a5   : > { %3963 = vst.msk [vmem:[#allocation2 + $0xb1] sm:$0xff] %vm279_vm0, %v3931_v43  ;;  %v3256_v44 = vmax.f32 %v3224_v38, 0.0  ;;  %v3360_v12 = vadd.f32 %v3328_v22, %v9773_v35  ;;  %v3330_v11 = vadd.f32 %v8239_v29, %v3291_v13  ;;  %v6447_v20 = vpop.f32.mrb[16].mxu0  ;;  %4023 = vst.msk [vmem:[#allocation4 + $0x48] sm:$0xff] %vm279_vm0, %v8351_v14  ;;  %v3359_v50 = vadd.f32 %v3327_v18, %v9774_v19  ;;  %v9777_v38 = vld [vmem:[#allocation16_spill] sm:$0xff] }
 0x3a6   : > { %v3259_v32 = vmax.f32 %v3227_v54, 0.0  ;;  %v3258_v53 = vmax.f32 %v3226_v17, 0.0  ;;  %v3329_v60 = vadd.f32 %v8239_v29, %v8290_v40  ;;  %v2973_v47 = vpop.f32.mrb[17].mxu0  ;;  %v8366_v5 = vld [vmem:[#allocation2 + $0x78] sm:$0xff]  ;;  %v3229_v24 = vmul.f32 %v6447_v20, %v3140_v1  ;;  %v8369_v23 = vld [vmem:[#allocation2 + $0x80] sm:$0xff]  ;;  %v3155_v17 = vpop.permute.xlu1 %3154 }
 0x3a7   : > { %vm3834_vm6 = vcmp.gt.f32.partialorder %v3256_v44, 0.0  ;;  %vm3866_vm7 = vcmp.lt.f32.partialorder %v3256_v44, 0.0  ;;  %v3404_v6 = vsel %vm279_vm0, %v3360_v12, 0.0  ;;  %4024 = vst.msk [vmem:[#allocation4 + $0x50] sm:$0xff] %vm279_vm0, %v8366_v5  ;;  %v3295_v34 = vmul.f32 %v8231_v10, %v3256_v44  ;;  %4025 = vst.msk [vmem:[#allocation4 + $0x58] sm:$0xff] %vm279_vm0, %v8369_v23  ;;  %v3160_v16 = vpop.permute.xlu0 %3159  ;;  %v9778_v20 = vld [vmem:[#allocation13_spill] sm:$0xff] }
 0x3a8   : > { %v3898_v15 = vsel %vm3866_vm7, -1.0, %v9767_v2  ;;  %3405 = vadd.xlane.f32.xlu1 %v3404_v6  ;;  %v3401_v40 = vsel %vm279_vm0, %v3359_v50, 0.0  ;;  %vm3837_vm11 = vcmp.gt.f32.partialorder %v3259_v32, 0.0  ;;  %v8379_v30 = vmul.f32 %v8231_v10, %v3259_v32 }
 0x3a9   : > { %v3930_v28 = vsel %vm3834_vm6, 1.0, %v3898_v15  ;;  %3402 = vadd.xlane.f32.xlu0 %v3401_v40  ;;  %vm3869_vm9 = vcmp.lt.f32.partialorder %v3259_v32, 0.0  ;;  %vm3836_vm10 = vcmp.gt.f32.partialorder %v3258_v53, 0.0  ;;  %v6450_v33 = vpop.f32.mrb[18].mxu0  ;;  %vm3868_vm8 = vcmp.lt.f32.partialorder %v3258_v53, 0.0 }
 0x3aa   : > { %3962 = vst.msk [vmem:[#allocation2 + $0xa9] sm:$0xff] %vm279_vm0, %v3930_v28  ;;  %v3901_v46 = vsel %vm3869_vm9, -1.0, %v9767_v2  ;;  %v3362_v52 = vadd.f32 %v3330_v11, %v9775_v48  ;;  %v3361_v61 = vadd.f32 %v3329_v60, %v9776_v55  ;;  %v2983_v3 = vpop.f32.mrb[19].mxu0  ;;  %v3900_v49 = vsel %vm3868_vm8, -1.0, %v9767_v2 }
 0x3ab   : > { %v3933_v13 = vsel %vm3837_vm11, 1.0, %v3901_v46  ;;  %v3261_v1 = vmax.f32 %v3229_v24, 0.0  ;;  %v3228_v51 = vmul.f32 %v3135_v41, %v2973_v47  ;;  %v8386_v58 = vld [vmem:[#allocation2 + $0x90] sm:$0xff]  ;;  %v3932_v39 = vsel %vm3836_vm10, 1.0, %v3900_v49  ;;  %v8393_v56 = vld [vmem:[#allocation2 + $0x98] sm:$0xff]  ;;  %v3170_v6 = vpop.permute.xlu0 %3169  ;;  %v3165_v49 = vpop.permute.xlu1 %3164 }
 0x3ac   : > { %3965 = vst.msk [vmem:[#allocation2 + $0xc9] sm:$0xff] %vm279_vm0, %v3933_v13  ;;  %v3410_v63 = vsel %vm279_vm0, %v3362_v52, 0.0  ;;  %v3407_v59 = vsel %vm279_vm0, %v3361_v61, 0.0  ;;  %v3332_v37 = vadd.f32 %v8239_v29, %v8339_v9  ;;  %4026 = vst.msk [vmem:[#allocation4 + $0x60] sm:$0xff] %vm279_vm0, %v8386_v58  ;;  %v3297_v41 = vmul.f32 %v8231_v10, %v3258_v53  ;;  %v9780_v46 = vld [vmem:[#allocation15_spill] sm:$0xff] }
 0x3ad   : > { %3964 = vst.msk [vmem:[#allocation2 + $0xc1] sm:$0xff] %vm279_vm0, %v3932_v39  ;;  %3411 = vadd.xlane.f32.xlu1 %v3410_v63  ;;  %3408 = vadd.xlane.f32.xlu0 %v3407_v59  ;;  %vm3839_vm6 = vcmp.gt.f32.partialorder %v3261_v1, 0.0  ;;  %vm3871_vm7 = vcmp.lt.f32.partialorder %v3261_v1, 0.0  ;;  %v3260_v4 = vmax.f32 %v3228_v51, 0.0  ;;  %v6453_v26 = vpop.f32.mrb[20].mxu0  ;;  %4027 = vst.msk [vmem:[#allocation4 + $0x68] sm:$0xff] %vm279_vm0, %v8393_v56  ;;  %v3331_v43 = vadd.f32 %v8239_v29, %v8308_v36 }
 0x3ae   : > { %v3903_v9 = vsel %vm3871_vm7, -1.0, %v9767_v2  ;;  %v3364_v22 = vadd.f32 %v3332_v37, %v9777_v38  ;;  %v3231_v18 = vmul.f32 %v6450_v33, %v3150_v21  ;;  %v2993_v54 = vpop.f32.mrb[21].mxu0  ;;  %v8406_v44 = vmul.f32 %v8231_v10, %v3261_v1 }
 0x3af   : > { %v3935_v35 = vsel %vm3839_vm6, 1.0, %v3903_v9  ;;  %vm3838_vm11 = vcmp.gt.f32.partialorder %v3260_v4, 0.0  ;;  %vm3870_vm9 = vcmp.lt.f32.partialorder %v3260_v4, 0.0  ;;  %v3363_v19 = vadd.f32 %v3331_v43, %v9778_v20  ;;  %v9781_v9 = vld [vmem:[#allocation20_spill] sm:$0xff] }
 0x3b0   : > { %3967 = vst.msk [vmem:[#allocation2 + $0xe1] sm:$0xff] %vm279_vm0, %v3935_v35  ;;  %v3902_v12 = vsel %vm3870_vm9, -1.0, %v9767_v2  ;;  %v3416_v11 = vsel %vm279_vm0, %v3364_v22, 0.0  ;;  %v3263_v50 = vmax.f32 %v3231_v18, 0.0  ;;  %v3230_v36 = vmul.f32 %v3145_v25, %v2983_v3  ;;  %v9779_v25 = vld [vmem:[#allocation18_spill] sm:$0xff]  ;;  %v3180_v18 = vpop.permute.xlu0 %3179 }
 0x3b1   : > { %v3934_v32 = vsel %vm3838_vm11, 1.0, %v3902_v12  ;;  %3417 = vadd.xlane.f32.xlu1 %v3416_v11  ;;  %v3334_v21 = vadd.f32 %v8239_v29, %v3295_v34  ;;  %v3333_v53 = vadd.f32 %v8239_v29, %v8335_v42  ;;  %v6456_v60 = vpop.f32.mrb[22].mxu0  ;;  %v8415_v47 = vld [vmem:[#allocation2 + $0xa8] sm:$0xff]  ;;  %v3299_v24 = vmul.f32 %v8231_v10, %v3260_v4  ;;  %v8420_v28 = vld [vmem:[#allocation2 + $0xb0] sm:$0xff] }
 0x3b2   : > { %3966 = vst.msk [vmem:[#allocation2 + $0xd9] sm:$0xff] %vm279_vm0, %v3934_v32  ;;  %v3413_v15 = vsel %vm279_vm0, %v3363_v19, 0.0  ;;  %vm3841_vm10 = vcmp.gt.f32.partialorder %v3263_v50, 0.0  ;;  %vm3873_vm8 = vcmp.lt.f32.partialorder %v3263_v50, 0.0  ;;  %v3003_v40 = vpop.f32.mrb[23].mxu0  ;;  %4028 = vst.msk [vmem:[#allocation4 + $0x70] sm:$0xff] %vm279_vm0, %v8415_v47  ;;  %v3233_v55 = vmul.f32 %v6453_v26, %v3160_v16 }
 0x3b3   : > { %3414 = vadd.xlane.f32.xlu0 %v3413_v15  ;;  %v3905_v42 = vsel %vm3873_vm8, -1.0, %v9767_v2  ;;  %v3262_v34 = vmax.f32 %v3230_v36, 0.0  ;;  %v3366_v33 = vadd.f32 %v3334_v21, %v9779_v25  ;;  %v3365_v48 = vadd.f32 %v3333_v53, %v9780_v46  ;;  %4029 = vst.msk [vmem:[#allocation4 + $0x78] sm:$0xff] %vm279_vm0, %v8420_v28  ;;  %v9782_v19 = vld [vmem:[#allocation17_spill] sm:$0xff]  ;;  %v3175_v53 = vpop.permute.xlu1 %3174 }
 0x3b4   : > { %v3937_v52 = vsel %vm3841_vm10, 1.0, %v3905_v42  ;;  %v3232_v61 = vmul.f32 %v3155_v17, %v2993_v54  ;;  %v3336_v3 = vadd.f32 %v8239_v29, %v3297_v41  ;;  %v8430_v13 = vld [vmem:[#allocation2 + $0xc0] sm:$0xff]  ;;  %v8433_v1 = vmul.f32 %v8231_v10, %v3263_v50  ;;  %v8437_v63 = vld [vmem:[#allocation2 + $0xc8] sm:$0xff] }
 0x3b5   : > { %3969 = vst.msk [vmem:[#allocation2 + $0xf9] sm:$0xff] %vm279_vm0, %v3937_v52  ;;  %vm3840_vm6 = vcmp.gt.f32.partialorder %v3262_v34, 0.0  ;;  %vm3872_vm7 = vcmp.lt.f32.partialorder %v3262_v34, 0.0  ;;  %v3422_v51 = vsel %vm279_vm0, %v3366_v33, 0.0  ;;  %v6459_v39 = vpop.f32.mrb[24].mxu0  ;;  %4030 = vst.msk [vmem:[#allocation4 + $0x80] sm:$0xff] %vm279_vm0, %v8430_v13  ;;  %v3335_v22 = vadd.f32 %v8239_v29, %v8356_v27 }
 0x3b6   : > { %v3904_v16 = vsel %vm3872_vm7, -1.0, %v9767_v2  ;;  %3423 = vadd.xlane.f32.xlu1 %v3422_v51  ;;  %v3419_v59 = vsel %vm279_vm0, %v3365_v48, 0.0  ;;  %v3265_v37 = vmax.f32 %v3233_v55, 0.0  ;;  %v3264_v41 = vmax.f32 %v3232_v61, 0.0  ;;  %v3013_v4 = vpop.f32.mrb[25].mxu0  ;;  %4031 = vst.msk [vmem:[#allocation4 + $0x88] sm:$0xff] %vm279_vm0, %v8437_v63  ;;  %v3190_v61 = vpop.permute.xlu0 %3189 }
 0x3b7   : > { %v3936_v26 = vsel %vm3840_vm6, 1.0, %v3904_v16  ;;  %3420 = vadd.xlane.f32.xlu0 %v3419_v59  ;;  %v3368_v38 = vadd.f32 %v3336_v3, %v9781_v9  ;;  %v3235_v43 = vmul.f32 %v6456_v60, %v3170_v6  ;;  %v3301_v54 = vmul.f32 %v8231_v10, %v3262_v34  ;;  %v9784_v48 = vld [vmem:[#allocation19_spill] sm:$0xff] }
 0x3b8   : > { %3968 = vst.msk [vmem:[#allocation2 + $0xf1] sm:$0xff] %vm279_vm0, %v3936_v26  ;;  %v8451_v17 = vmul.f32 %v8231_v10, %v3265_v37  ;;  %vm3843_vm11 = vcmp.gt.f32.partialorder %v3265_v37, 0.0  ;;  %vm3875_vm9 = vcmp.lt.f32.partialorder %v3265_v37, 0.0  ;;  %vm3842_vm10 = vcmp.gt.f32.partialorder %v3264_v41, 0.0 }
 0x3b9   : > { %v3907_v35 = vsel %vm3875_vm9, -1.0, %v9767_v2  ;;  %vm3874_vm8 = vcmp.lt.f32.partialorder %v3264_v41, 0.0  ;;  %v3428_v12 = vsel %vm279_vm0, %v3368_v38, 0.0  ;;  %v6462_v11 = vpop.f32.mrb[26].mxu0  ;;  %v3367_v50 = vadd.f32 %v3335_v22, %v9782_v19  ;;  %v8459_v21 = vld [vmem:[#allocation2 + $0xd8] sm:$0xff]  ;;  %v8465_v34 = vld [vmem:[#allocation2 + $0xe0] sm:$0xff] }
 0x3ba   : > { %v3939_v20 = vsel %vm3843_vm11, 1.0, %v3907_v35  ;;  %v3906_v27 = vsel %vm3874_vm8, -1.0, %v9767_v2  ;;  %3429 = vadd.xlane.f32.xlu1 %v3428_v12  ;;  %v3267_v32 = vmax.f32 %v3235_v43, 0.0  ;;  %v8457_v36 = vpop.f32.mrb[27].mxu0  ;;  %v3234_v6 = vmul.f32 %v3165_v49, %v3003_v40  ;;  %4032 = vst.msk [vmem:[#allocation4 + $0x90] sm:$0xff] %vm279_vm0, %v8459_v21  ;;  %4033 = vst.msk [vmem:[#allocation4 + $0x98] sm:$0xff] %vm279_vm0, %v8465_v34  ;;  %v3185_v43 = vpop.permute.xlu1 %3184 }
 0x3bb   : > { %3971 = vst.msk [vmem:[#allocation2 + $0x111] sm:$0xff] %vm279_vm0, %v3939_v20  ;;  %v3938_v60 = vsel %vm3842_vm10, 1.0, %v3906_v27  ;;  %v3338_v15 = vadd.f32 %v8239_v29, %v3299_v24  ;;  %v3337_v42 = vadd.f32 %v8239_v29, %v8379_v30  ;;  %v3303_v25 = vmul.f32 %v8231_v10, %v3264_v41  ;;  %v9783_v40 = vld [vmem:[#allocation22_spill] sm:$0xff] }
 0x3bc   : > { %3970 = vst.msk [vmem:[#allocation2 + $0x109] sm:$0xff] %vm279_vm0, %v3938_v60  ;;  %v3425_v33 = vsel %vm279_vm0, %v3367_v50, 0.0  ;;  %vm3845_vm6 = vcmp.gt.f32.partialorder %v3267_v32, 0.0  ;;  %vm3877_vm7 = vcmp.lt.f32.partialorder %v3267_v32, 0.0  ;;  %v3266_v30 = vmax.f32 %v3234_v6, 0.0 }
 0x3bd   : > { %3426 = vadd.xlane.f32.xlu0 %v3425_v33  ;;  %v3909_v24 = vsel %vm3877_vm7, -1.0, %v9767_v2  ;;  %v3370_v46 = vadd.f32 %v3338_v15, %v9783_v40  ;;  %v3369_v52 = vadd.f32 %v3337_v42, %v9784_v48  ;;  %v8477_v55 = vpop.f32.mrb[28].mxu0  ;;  %v3237_v49 = vmul.f32 %v6459_v39, %v3180_v18  ;;  %v9786_v15 = vld [vmem:[#allocation21_spill] sm:$0xff] }
 0x3be   : > { %v3941_v3 = vsel %vm3845_vm6, 1.0, %v3909_v24  ;;  %v3236_v51 = vmul.f32 %v3175_v53, %v3013_v4  ;;  %v3340_v16 = vadd.f32 %v8239_v29, %v3301_v54  ;;  %v3033_v59 = vpop.f32.mrb[29].mxu0  ;;  %v8481_v37 = vmul.f32 %v8231_v10, %v3267_v32  ;;  %v9785_v54 = vld [vmem:[#allocation24_spill] sm:$0xff] }
 0x3bf   : > { %3973 = vst.msk [vmem:[#allocation2 + $0x129] sm:$0xff] %vm279_vm0, %v3941_v3  ;;  %vm3844_vm11 = vcmp.gt.f32.partialorder %v3266_v30, 0.0  ;;  %vm3876_vm9 = vcmp.lt.f32.partialorder %v3266_v30, 0.0  ;;  %v3434_v41 = vsel %vm279_vm0, %v3370_v46, 0.0  ;;  %v8485_v26 = vld [vmem:[#allocation2 + $0xf0] sm:$0xff]  ;;  %v3431_v39 = vsel %vm279_vm0, %v3369_v52, 0.0 }
 0x3c0   : > { %v3908_v9 = vsel %vm3876_vm9, -1.0, %v9767_v2  ;;  %3435 = vadd.xlane.f32.xlu1 %v3434_v41  ;;  %v3269_v4 = vmax.f32 %v3237_v49, 0.0  ;;  %v3268_v38 = vmax.f32 %v3236_v51, 0.0  ;;  %v8489_v22 = vld [vmem:[#allocation2 + $0xf8] sm:$0xff]  ;;  %4034 = vst.msk [vmem:[#allocation4 + $0xa0] sm:$0xff] %vm279_vm0, %v8485_v26  ;;  %v3372_v35 = vadd.f32 %v3340_v16, %v9785_v54  ;;  %v9788_v16 = vld [vmem:[#allocation23_spill] sm:$0xff] }
 0x3c1   : > { %v3940_v18 = vsel %vm3844_vm11, 1.0, %v3908_v9  ;;  %3432 = vadd.xlane.f32.xlu0 %v3431_v39  ;;  %v3339_v12 = vadd.f32 %v8239_v29, %v8406_v44  ;;  %v3239_v20 = vmul.f32 %v6462_v11, %v3190_v61  ;;  %v6468_v27 = vpop.f32.mrb[30].mxu0  ;;  %4035 = vst.msk [vmem:[#allocation4 + $0xa8] sm:$0xff] %vm279_vm0, %v8489_v22  ;;  %v3305_v19 = vmul.f32 %v8231_v10, %v3266_v30  ;;  %v3200_v11 = vpop.permute.xlu0 %3199 }
 0x3c2   : > { %3972 = vst.msk [vmem:[#allocation2 + $0x121] sm:$0xff] %vm279_vm0, %v3940_v18  ;;  %v8501_v50 = vmul.f32 %v8231_v10, %v3269_v4  ;;  %vm3847_vm10 = vcmp.gt.f32.partialorder %v3269_v4, 0.0  ;;  %vm3879_vm8 = vcmp.lt.f32.partialorder %v3269_v4, 0.0  ;;  %v8503_v32 = vpop.f32.mrb[31].mxu0  ;;  %vm3846_vm6 = vcmp.gt.f32.partialorder %v3268_v38, 0.0 }
 0x3c3   : > { %v3911_v53 = vsel %vm3879_vm8, -1.0, %v9767_v2  ;;  %vm3878_vm7 = vcmp.lt.f32.partialorder %v3268_v38, 0.0  ;;  %v3440_v44 = vsel %vm279_vm0, %v3372_v35, 0.0  ;;  %v3371_v42 = vadd.f32 %v3339_v12, %v9786_v15  ;;  %v8509_v24 = vld [vmem:[#allocation2 + $0x108] sm:$0xff]  ;;  %v8511_v30 = vld [vmem:[#allocation2 + $0x110] sm:$0xff] }
 0x3c4   : > { %v3943_v60 = vsel %vm3847_vm10, 1.0, %v3911_v53  ;;  %v3910_v6 = vsel %vm3878_vm7, -1.0, %v9767_v2  ;;  %3441 = vadd.xlane.f32.xlu1 %v3440_v44  ;;  %v3271_v33 = vmax.f32 %v3239_v20, 0.0  ;;  %v3238_v46 = vmul.f32 %v3185_v43, %v8457_v36  ;;  %4037 = vst.msk [vmem:[#allocation4 + $0xb8] sm:$0xff] %vm279_vm0, %v8511_v30  ;;  %4036 = vst.msk [vmem:[#allocation4 + $0xb0] sm:$0xff] %vm279_vm0, %v8509_v24  ;;  %v3195_v36 = vpop.permute.xlu1 %3194  ;;  %v9789_v44 = vld [vmem:[#allocation28_spill] sm:$0xff] }
 0x3c5   : > { %3975 = vst.msk [vmem:[#allocation2 + $0x141] sm:$0xff] %vm279_vm0, %v3943_v60  ;;  %v3942_v40 = vsel %vm3846_vm6, 1.0, %v3910_v6  ;;  %v3342_v48 = vadd.f32 %v8239_v29, %v3303_v25  ;;  %v3341_v52 = vadd.f32 %v8239_v29, %v8433_v1  ;;  %v3307_v61 = vmul.f32 %v8231_v10, %v3268_v38  ;;  %v9787_v1 = vld [vmem:[#allocation26_spill] sm:$0xff]  ;;  %v3210_v35 = vpop.permute.xlu0 %3209 }
 0x3c6   : > { %3974 = vst.msk [vmem:[#allocation2 + $0x139] sm:$0xff] %vm279_vm0, %v3942_v40  ;;  %v3437_v3 = vsel %vm279_vm0, %v3371_v42, 0.0  ;;  %vm3849_vm11 = vcmp.gt.f32.partialorder %v3271_v33, 0.0  ;;  %vm3881_vm9 = vcmp.lt.f32.partialorder %v3271_v33, 0.0  ;;  %v3270_v49 = vmax.f32 %v3238_v46, 0.0 }
 0x3c7   : > { %3438 = vadd.xlane.f32.xlu0 %v3437_v3  ;;  %v3913_v25 = vsel %vm3881_vm9, -1.0, %v9767_v2  ;;  %v3374_v51 = vadd.f32 %v3342_v48, %v9787_v1  ;;  %v3373_v41 = vadd.f32 %v3341_v52, %v9788_v16  ;;  %v3241_v39 = vmul.f32 %v8477_v55, %v3200_v11  ;;  %v9790_v48 = vld [vmem:[#allocation25_spill] sm:$0xff] }
 0x3c8   : > { %v3945_v9 = vsel %vm3849_vm11, 1.0, %v3913_v25  ;;  %v3240_v4 = vmul.f32 %v3195_v36, %v3033_v59  ;;  %v3344_v38 = vadd.f32 %v8239_v29, %v3305_v19  ;;  %v8531_v43 = vmul.f32 %v8231_v10, %v3271_v33  ;;  %v3205_v46 = vpop.permute.xlu1 %3204 }
 0x3c9   : > { %3977 = vst.msk [vmem:[#allocation2 + $0x159] sm:$0xff] %vm279_vm0, %v3945_v9  ;;  %vm3848_vm10 = vcmp.gt.f32.partialorder %v3270_v49, 0.0  ;;  %vm3880_vm8 = vcmp.lt.f32.partialorder %v3270_v49, 0.0  ;;  %v3446_v18 = vsel %vm279_vm0, %v3374_v51, 0.0  ;;  %v8535_v54 = vld [vmem:[#allocation2 + $0x120] sm:$0xff]  ;;  %v3443_v55 = vsel %vm279_vm0, %v3373_v41, 0.0 }
 0x3ca   : > { %v3912_v12 = vsel %vm3880_vm8, -1.0, %v9767_v2  ;;  %3447 = vadd.xlane.f32.xlu1 %v3446_v18  ;;  %v3273_v59 = vmax.f32 %v3241_v39, 0.0  ;;  %v3272_v20 = vmax.f32 %v3240_v4, 0.0  ;;  %v8539_v19 = vld [vmem:[#allocation2 + $0x128] sm:$0xff]  ;;  %4038 = vst.msk [vmem:[#allocation4 + $0xc0] sm:$0xff] %vm279_vm0, %v8535_v54  ;;  %v3376_v11 = vadd.f32 %v3344_v38, %v9789_v44  ;;  %v9792_v4 = vld [vmem:[#allocation27_spill] sm:$0xff] }
 0x3cb   : > { %v3944_v53 = vsel %vm3848_vm10, 1.0, %v3912_v12  ;;  %3444 = vadd.xlane.f32.xlu0 %v3443_v55  ;;  %v3343_v60 = vadd.f32 %v8239_v29, %v8451_v17  ;;  %v3243_v6 = vmul.f32 %v6468_v27, %v3210_v35  ;;  %4039 = vst.msk [vmem:[#allocation4 + $0xc8] sm:$0xff] %vm279_vm0, %v8539_v19  ;;  %v3309_v15 = vmul.f32 %v8231_v10, %v3270_v49  ;;  %v9791_v39 = vld [vmem:[#allocation30_spill] sm:$0xff] }
 0x3cc   : > { %3976 = vst.msk [vmem:[#allocation2 + $0x151] sm:$0xff] %vm279_vm0, %v3944_v53  ;;  %vm3851_vm6 = vcmp.gt.f32.partialorder %v3273_v59, 0.0  ;;  %vm3883_vm7 = vcmp.lt.f32.partialorder %v3273_v59, 0.0  ;;  %v3311_v42 = vmul.f32 %v8231_v10, %v3272_v20  ;;  %vm3850_vm11 = vcmp.gt.f32.partialorder %v3272_v20, 0.0 }
 0x3cd   : > { %v3915_v33 = vsel %vm3883_vm7, -1.0, %v9767_v2  ;;  %vm3882_vm9 = vcmp.lt.f32.partialorder %v3272_v20, 0.0  ;;  %v3452_v40 = vsel %vm279_vm0, %v3376_v11, 0.0  ;;  %v3375_v52 = vadd.f32 %v3343_v60, %v9790_v48  ;;  %v8555_v36 = vld [vmem:[#allocation2 + $0x138] sm:$0xff]  ;;  %v8557_v25 = vld [vmem:[#allocation2 + $0x140] sm:$0xff] }
 0x3ce   : > { %v3947_v17 = vsel %vm3851_vm6, 1.0, %v3915_v33  ;;  %v3914_v27 = vsel %vm3882_vm9, -1.0, %v9767_v2  ;;  %3453 = vadd.xlane.f32.xlu1 %v3452_v40  ;;  %v3275_v3 = vmax.f32 %v3243_v6, 0.0  ;;  %v3242_v1 = vmul.f32 %v3205_v46, %v8503_v32  ;;  %4041 = vst.msk [vmem:[#allocation4 + $0xd8] sm:$0xff] %vm279_vm0, %v8557_v25  ;;  %4040 = vst.msk [vmem:[#allocation4 + $0xd0] sm:$0xff] %vm279_vm0, %v8555_v36  ;;  %v9793_v60 = vld [vmem:[#allocation32_spill] sm:$0xff] }
 0x3cf   : > { %3979 = vst.msk [vmem:[#allocation2 + $0x171] sm:$0xff] %vm279_vm0, %v3947_v17  ;;  %v3946_v49 = vsel %vm3850_vm11, 1.0, %v3914_v27  ;;  %v3346_v51 = vadd.f32 %v8239_v29, %v3307_v61  ;;  %v3345_v16 = vadd.f32 %v8239_v29, %v8481_v37  ;;  %v3312_v41 = vmul.f32 %v8231_v10, %v3273_v59  ;;  %v9795_v40 = vld [vmem:[#allocation34_spill] sm:$0xff] }
 0x3d0   : > { %3978 = vst.msk [vmem:[#allocation2 + $0x169] sm:$0xff] %vm279_vm0, %v3946_v49  ;;  %v3449_v9 = vsel %vm279_vm0, %v3375_v52, 0.0  ;;  %vm3853_vm10 = vcmp.gt.f32.partialorder %v3275_v3, 0.0  ;;  %vm3885_vm8 = vcmp.lt.f32.partialorder %v3275_v3, 0.0  ;;  %v3274_v61 = vmax.f32 %v3242_v1, 0.0  ;;  %v9796_v1 = vld [vmem:[#allocation31_spill] sm:$0xff] }
 0x3d1   : > { %3450 = vadd.xlane.f32.xlu0 %v3449_v9  ;;  %v3917_v32 = vsel %vm3885_vm8, -1.0, %v9767_v2  ;;  %v3378_v37 = vadd.f32 %v3346_v51, %v9791_v39  ;;  %v3377_v38 = vadd.f32 %v3345_v16, %v9792_v4  ;;  %v3348_v35 = vadd.f32 %v8239_v29, %v3309_v15 }
 0x3d2   : > { %v3949_v18 = vsel %vm3853_vm10, 1.0, %v3917_v32  ;;  %v3347_v12 = vadd.f32 %v8239_v29, %v8501_v50  ;;  %v3350_v55 = vadd.f32 %v8239_v29, %v3311_v42  ;;  %v3313_v59 = vmul.f32 %v8231_v10, %v3274_v61  ;;  %v9794_v50 = vld [vmem:[#allocation29_spill] sm:$0xff]  ;;  %v9797_v32 = vld [vmem:[#allocation36_spill] sm:$0xff] }
 0x3d3   : > { %3981 = vst.msk [vmem:[#allocation2 + $0x189] sm:$0xff] %vm279_vm0, %v3949_v18  ;;  %vm3852_vm6 = vcmp.gt.f32.partialorder %v3274_v61, 0.0  ;;  %vm3884_vm7 = vcmp.lt.f32.partialorder %v3274_v61, 0.0  ;;  %v3458_v20 = vsel %vm279_vm0, %v3378_v37, 0.0  ;;  %v8581_v53 = vld [vmem:[#allocation2 + $0x150] sm:$0xff]  ;;  %v3455_v11 = vsel %vm279_vm0, %v3377_v38, 0.0 }
 0x3d4   : > { %v3916_v44 = vsel %vm3884_vm7, -1.0, %v9767_v2  ;;  %3459 = vadd.xlane.f32.xlu1 %v3458_v20  ;;  %v3380_v6 = vadd.f32 %v3348_v35, %v9793_v60  ;;  %v3379_v15 = vadd.f32 %v3347_v12, %v9794_v50  ;;  %v8587_v42 = vld [vmem:[#allocation2 + $0x158] sm:$0xff]  ;;  %4042 = vst.msk [vmem:[#allocation4 + $0xe0] sm:$0xff] %vm279_vm0, %v8581_v53  ;;  %v3382_v46 = vadd.f32 %v3350_v55, %v9795_v40  ;;  %v9799_v38 = vld [vmem:[#allocation35_spill] sm:$0xff]  ;;  %v4046_v12 = vld [vmem:[#allocation2 + $0x1] sm:$0xff] }
 0x3d5   : > { %v3948_v33 = vsel %vm3852_vm6, 1.0, %v3916_v44  ;;  %3456 = vadd.xlane.f32.xlu0 %v3455_v11  ;;  %v3349_v17 = vadd.f32 %v8239_v29, %v8531_v43  ;;  %v3352_v2 = vadd.f32 %v8239_v29, %v3313_v59  ;;  %4043 = vst.msk [vmem:[#allocation4 + $0xe8] sm:$0xff] %vm279_vm0, %v8587_v42  ;;  %v3314_v52 = vmul.f32 %v8231_v10, %v3275_v3  ;;  %v9798_v3 = vld [vmem:[#allocation33_spill] sm:$0xff]  ;;  %v4047_v44 = vld [vmem:[#allocation2 + $0x9] sm:$0xff]  ;;  %v8632_v11 = vld [vmem:[#allocation2 + $0x31] sm:$0xff] }
 0x3d6   : > { %3980 = vst.msk [vmem:[#allocation2 + $0x181] sm:$0xff] %vm279_vm0, %v3948_v33  ;;  %v3464_v27 = vsel %vm279_vm0, %v3380_v6, 0.0  ;;  %v3461_v49 = vsel %vm279_vm0, %v3379_v15, 0.0  ;;  %v3351_v43 = vadd.f32 %v8239_v29, %v3312_v41  ;;  %v3470_v9 = vsel %vm279_vm0, %v3382_v46, 0.0  ;;  %v3982_v55 = vld [vmem:[#allocation2] sm:$0xff]  ;;  %v8640_v6 = vld [vmem:[#allocation2 + $0x49] sm:$0xff] }
 0x3d7   : > { %v8599_v48 = vld [vmem:[#allocation2 + $0x168] sm:$0xff]  ;;  %v3381_v51 = vadd.f32 %v3349_v17, %v9796_v1  ;;  %v8605_v16 = vld [vmem:[#allocation2 + $0x170] sm:$0xff]  ;;  %v3384_v61 = vadd.f32 %v3352_v2, %v9797_v32  ;;  %v3353_v41 = vadd.f32 %v8239_v29, %v3314_v52  ;;  %4014 = vst.msk [vmem:[#allocation4] sm:$0xff] %vm279_vm0, %v3982_v55  ;;  %v8622_v59 = vld [vmem:[#allocation2 + $0x19] sm:$0xff] }
 0x3d8   : > { %3465 = vadd.xlane.f32.xlu1 %v3464_v27  ;;  %4044 = vst.msk [vmem:[#allocation4 + $0xf0] sm:$0xff] %vm279_vm0, %v8599_v48  ;;  %4045 = vst.msk [vmem:[#allocation4 + $0xf8] sm:$0xff] %vm279_vm0, %v8605_v16  ;;  %v3383_v39 = vadd.f32 %v3351_v43, %v9798_v3  ;;  %v3983_v29 = vld [vmem:[#allocation2 + $0x8] sm:$0xff]  ;;  %v8636_v60 = vld [vmem:[#allocation2 + $0x39] sm:$0xff] }
 0x3d9   : > { %3462 = vadd.xlane.f32.xlu0 %v3461_v49  ;;  %v3467_v10 = vsel %vm279_vm0, %v3381_v51, 0.0  ;;  %v3476_v37 = vsel %vm279_vm0, %v3384_v61, 0.0  ;;  %v3385_v18 = vadd.f32 %v3353_v41, %v9799_v38  ;;  %4015 = vst.msk [vmem:[#allocation4 + $0x8] sm:$0xff] %vm279_vm0, %v3983_v29  ;;  %v8627_v20 = vld [vmem:[#allocation2 + $0x21] sm:$0xff]  ;;  %v8644_v50 = vld [vmem:[#allocation2 + $0x51] sm:$0xff]  ;;  %v8652_v33 = vld [vmem:[#allocation2 + $0x69] sm:$0xff] }
 0x3da   : > { %v3473_v4 = vsel %vm279_vm0, %v3383_v39, 0.0  ;;  %v8648_v15 = vld [vmem:[#allocation2 + $0x61] sm:$0xff]  ;;  %v8656_v40 = vld [vmem:[#allocation2 + $0x79] sm:$0xff]  ;;  %v8664_v17 = vld [vmem:[#allocation2 + $0x91] sm:$0xff] }
 0x3db   : > { %v3479_v35 = vsel %vm279_vm0, %v3385_v18, 0.0  ;;  %v8660_v46 = vld [vmem:[#allocation2 + $0x81] sm:$0xff]  ;;  %v8668_v2 = vld [vmem:[#allocation2 + $0x99] sm:$0xff]  ;;  %v8672_v27 = vld [vmem:[#allocation2 + $0xa9] sm:$0xff] }
 0x3dc   : > { %3471 = vadd.xlane.f32.xlu1 %v3470_v9  ;;  %v8676_v52 = vld [vmem:[#allocation2 + $0xb1] sm:$0xff]  ;;  %v8680_v49 = vld [vmem:[#allocation2 + $0xc1] sm:$0xff]  ;;  %v8684_v1 = vld [vmem:[#allocation2 + $0xc9] sm:$0xff] }
 0x3dd   : > { %3468 = vadd.xlane.f32.xlu0 %v3467_v10  ;;  %v8688_v51 = vld [vmem:[#allocation2 + $0xd9] sm:$0xff]  ;;  %v8692_v43 = vld [vmem:[#allocation2 + $0xe1] sm:$0xff]  ;;  %v8696_v9 = vld [vmem:[#allocation2 + $0xf1] sm:$0xff] }
 0x3de   : > { %v8700_v32 = vld [vmem:[#allocation2 + $0xf9] sm:$0xff]  ;;  %v8704_v10 = vld [vmem:[#allocation2 + $0x109] sm:$0xff]  ;;  %v8708_v39 = vld [vmem:[#allocation2 + $0x111] sm:$0xff] }
 0x3df   : > { %v8717_v38 = vld [vmem:[#allocation2 + $0x129] sm:$0xff]  ;;  %v8722_v18 = vld [vmem:[#allocation2 + $0x139] sm:$0xff]  ;;  %v8726_v55 = vld [vmem:[#allocation2 + $0x141] sm:$0xff] }
 0x3e0   : > { %3477 = vadd.xlane.f32.xlu1 %v3476_v37  ;;  %v8713_v37 = vld [vmem:[#allocation2 + $0x121] sm:$0xff]  ;;  %9801 = vst [vmem:[#allocation38_spill] sm:$0xff] %v8717_v38  ;;  %9802 = vst [vmem:[#allocation39_spill] sm:$0xff] %v8722_v18  ;;  %v8731_v29 = vld [vmem:[#allocation2 + $0x151] sm:$0xff] }
 0x3e1   : > { %3474 = vadd.xlane.f32.xlu0 %v3473_v4  ;;  %9800 = vst [vmem:[#allocation37_spill] sm:$0xff] %v8713_v37  ;;  %9803 = vst [vmem:[#allocation40_spill] sm:$0xff] %v8726_v55 }
 0x3e2   : > { %9804 = vst [vmem:[#allocation41_spill] sm:$0xff] %v8731_v29 }
 0x3e5   : > { %3480 = vadd.xlane.f32.xlu0 %v3479_v35 }
 0x3f1   : > { %4110 = vrot.lane.b32.xlu1 %v4046_v12, %s6572_s11 }
 0x3f5   : > { %4114 = vrot.lane.b32.xlu1 %v8622_v59, %s6572_s11 }
 0x3f9   : > { %4116 = vrot.lane.b32.xlu1 %v8627_v20, %s6572_s11 }
 0x3fb   : > { %4112 = vrot.lane.b32.xlu0 %v4047_v44, %s6572_s11  ;;  %v8735_v44 = vld [vmem:[#allocation2 + $0x159] sm:$0xff] }
 0x3fc   : > { %9805 = vst [vmem:[#allocation42_spill] sm:$0xff] %v8735_v44 }
 0x3fd   : > { %4118 = vrot.lane.b32.xlu1 %v8632_v11, %s6572_s11 }
 0x3ff   : > { %4120 = vrot.lane.b32.xlu0 %v8636_v60, %s6572_s11 }
 0x401   : > { %4122 = vrot.lane.b32.xlu1 %v8640_v6, %s6572_s11 }
 0x403   : > { %4124 = vrot.lane.b32.xlu0 %v8644_v50, %s6572_s11 }
 0x405   : > { %4126 = vrot.lane.b32.xlu1 %v8648_v15, %s6572_s11 }
 0x407   : > { %4128 = vrot.lane.b32.xlu0 %v8652_v33, %s6572_s11 }
 0x409   : > { %4130 = vrot.lane.b32.xlu1 %v8656_v40, %s6572_s11 }
 0x40b   : > { %4132 = vrot.lane.b32.xlu0 %v8660_v46, %s6572_s11 }
 0x40d   : > { %4134 = vrot.lane.b32.xlu1 %v8664_v17, %s6572_s11 }
 0x40f   : > { %4136 = vrot.lane.b32.xlu0 %v8668_v2, %s6572_s11 }
 0x411   : > { %4138 = vrot.lane.b32.xlu1 %v8672_v27, %s6572_s11 }
 0x413   : > { %4140 = vrot.lane.b32.xlu0 %v8676_v52, %s6572_s11 }
 0x415   : > { %4142 = vrot.lane.b32.xlu1 %v8680_v49, %s6572_s11 }
 0x417   : > { %4144 = vrot.lane.b32.xlu0 %v8684_v1, %s6572_s11 }
 0x419   : > { %4146 = vrot.lane.b32.xlu1 %v8688_v51, %s6572_s11 }
 0x41b   : > { %4148 = vrot.lane.b32.xlu0 %v8692_v43, %s6572_s11 }
 0x41d   : > { %4150 = vrot.lane.b32.xlu1 %v8696_v9, %s6572_s11 }
 0x41f   : > { %4152 = vrot.lane.b32.xlu0 %v8700_v32, %s6572_s11  ;;  %v3391_v61 = vpop.xlane.xlu0 %3390 }
 0x420   : > { %v3483_v3 = vmul.f32 0.25, %v3391_v61 }
 0x421   : > { %4154 = vrot.lane.b32.xlu1 %v8704_v10, %s6572_s11 }
 0x422   : > { %3515 = vst.msk [vmem:[#allocation3 + $0x21] sm:$0xff] %vm325_vm13, %v3483_v3 }
 0x423   : > { %4156 = vrot.lane.b32.xlu0 %v8708_v39, %s6572_s11  ;;  %v3388_v41 = vpop.xlane.xlu1 %3387 }
 0x424   : > { %v3482_v4 = vmul.f32 0.25, %v3388_v41 }
 0x425   : > { %4158 = vrot.lane.b32.xlu1 %v8713_v37, %s6572_s11 }
 0x426   : > { %3514 = vst.msk [vmem:[#allocation3 + $0x19] sm:$0xff] %vm325_vm13, %v3482_v4 }
 0x427   : > { %4160 = vrot.lane.b32.xlu0 %v8717_v38, %s6572_s11  ;;  %v3394_v35 = vpop.xlane.xlu0 %3393 }
 0x428   : > { %v3484_v12 = vmul.f32 0.25, %v3394_v35  ;;  %v8739_v35 = vld [vmem:[#allocation2 + $0x169] sm:$0xff] }
 0x429   : > { %4162 = vrot.lane.b32.xlu1 %v8722_v18, %s6572_s11  ;;  %9806 = vst [vmem:[#allocation43_spill] sm:$0xff] %v8739_v35 }
 0x42a   : > { %3516 = vst.msk [vmem:[#allocation3 + $0x31] sm:$0xff] %vm325_vm13, %v3484_v12  ;;  %v8745_v12 = vld [vmem:[#allocation2 + $0x171] sm:$0xff] }
 0x42b   : > { %4164 = vrot.lane.b32.xlu0 %v8726_v55, %s6572_s11  ;;  %9807 = vst [vmem:[#allocation44_spill] sm:$0xff] %v8745_v12  ;;  %v4239_v55 = vld [vmem:[#allocation2 + $0xa] sm:$0xff] }
 0x42d   : > { %4166 = vrot.lane.b32.xlu1 %v8731_v29, %s6572_s11  ;;  %v3400_v61 = vpop.xlane.xlu1 %3399  ;;  %v4238_v29 = vld [vmem:[#allocation2 + $0x2] sm:$0xff] }
 0x42e   : > { %v3397_v3 = vpop.xlane.xlu0 %3396  ;;  %v3486_v41 = vmul.f32 0.25, %v3400_v61 }
 0x42f   : > { %4168 = vrot.lane.b32.xlu0 %v8735_v44, %s6572_s11  ;;  %v3485_v4 = vmul.f32 0.25, %v3397_v3 }
 0x430   : > { %3518 = vst.msk [vmem:[#allocation3 + $0x49] sm:$0xff] %vm325_vm13, %v3486_v41  ;;  %v8757_v41 = vld [vmem:[#allocation2 + $0x22] sm:$0xff] }
 0x431   : > { %4170 = vrot.lane.b32.xlu1 %v8739_v35, %s6572_s11  ;;  %3517 = vst.msk [vmem:[#allocation3 + $0x39] sm:$0xff] %vm325_vm13, %v3485_v4  ;;  %v8751_v35 = vld [vmem:[#allocation2 + $0x1a] sm:$0xff]  ;;  %9809 = vst [vmem:[#allocation46_spill] sm:$0xff] %v8757_v41 }
 0x432   : > { %9808 = vst [vmem:[#allocation45_spill] sm:$0xff] %v8751_v35 }
 0x433   : > { %4172 = vrot.lane.b32.xlu0 %v8745_v12, %s6572_s11 }
 0x435   : > { %4302 = vrot.lane.b32.xlu1 %v4238_v29, %s6573_s12  ;;  %v3406_v61 = vpop.xlane.xlu1 %3405 }
 0x436   : > { %v3488_v3 = vmul.f32 0.25, %v3406_v61  ;;  %v3403_v44 = vpop.xlane.xlu0 %3402 }
 0x437   : > { %4304 = vrot.lane.b32.xlu0 %v4239_v55, %s6573_s12  ;;  %v3487_v18 = vmul.f32 0.25, %v3403_v44  ;;  %v8761_v55 = vld [vmem:[#allocation2 + $0x32] sm:$0xff]  ;;  %v8767_v44 = vld [vmem:[#allocation2 + $0x3a] sm:$0xff] }
 0x438   : > { %3520 = vst.msk [vmem:[#allocation3 + $0x61] sm:$0xff] %vm325_vm13, %v3488_v3  ;;  %9810 = vst [vmem:[#allocation47_spill] sm:$0xff] %v8761_v55 }
 0x439   : > { %4306 = vrot.lane.b32.xlu1 %v8751_v35, %s6573_s12  ;;  %3519 = vst.msk [vmem:[#allocation3 + $0x51] sm:$0xff] %vm325_vm13, %v3487_v18  ;;  %9811 = vst [vmem:[#allocation48_spill] sm:$0xff] %v8767_v44  ;;  %v8771_v35 = vld [vmem:[#allocation2 + $0x4a] sm:$0xff] }
 0x43a   : > { %v3412_v4 = vpop.xlane.xlu1 %3411  ;;  %v3409_v12 = vpop.xlane.xlu0 %3408  ;;  %9812 = vst [vmem:[#allocation49_spill] sm:$0xff] %v8771_v35 }
 0x43b   : > { %4308 = vrot.lane.b32.xlu0 %v8757_v41, %s6573_s12  ;;  %v3490_v29 = vmul.f32 0.25, %v3412_v4  ;;  %v3489_v61 = vmul.f32 0.25, %v3409_v12 }
 0x43d   : > { %4310 = vrot.lane.b32.xlu1 %v8761_v55, %s6573_s12  ;;  %3522 = vst.msk [vmem:[#allocation3 + $0x79] sm:$0xff] %vm325_vm13, %v3490_v29  ;;  %3521 = vst.msk [vmem:[#allocation3 + $0x69] sm:$0xff] %vm325_vm13, %v3489_v61  ;;  %v8776_v55 = vld [vmem:[#allocation2 + $0x52] sm:$0xff]  ;;  %v8781_v61 = vld [vmem:[#allocation2 + $0x62] sm:$0xff] }
 0x43e   : > { %v3418_v18 = vpop.xlane.xlu1 %3417  ;;  %9813 = vst [vmem:[#allocation50_spill] sm:$0xff] %v8776_v55  ;;  %9814 = vst [vmem:[#allocation51_spill] sm:$0xff] %v8781_v61 }
 0x43f   : > { %4312 = vrot.lane.b32.xlu0 %v8767_v44, %s6573_s12  ;;  %v3492_v3 = vmul.f32 0.25, %v3418_v18 }
 0x440   : > { %v3415_v4 = vpop.xlane.xlu0 %3414 }
 0x441   : > { %4314 = vrot.lane.b32.xlu1 %v8771_v35, %s6573_s12  ;;  %3524 = vst.msk [vmem:[#allocation3 + $0x91] sm:$0xff] %vm325_vm13, %v3492_v3  ;;  %v3491_v12 = vmul.f32 0.25, %v3415_v4  ;;  %v8785_v35 = vld [vmem:[#allocation2 + $0x6a] sm:$0xff]  ;;  %v8791_v4 = vld [vmem:[#allocation2 + $0x7a] sm:$0xff] }
 0x442   : > { %9815 = vst [vmem:[#allocation52_spill] sm:$0xff] %v8785_v35  ;;  %9816 = vst [vmem:[#allocation53_spill] sm:$0xff] %v8791_v4 }
 0x443   : > { %4316 = vrot.lane.b32.xlu0 %v8776_v55, %s6573_s12  ;;  %3523 = vst.msk [vmem:[#allocation3 + $0x81] sm:$0xff] %vm325_vm13, %v3491_v12  ;;  %v3424_v29 = vpop.xlane.xlu1 %3423  ;;  %v4261_v55 = vld [vmem:[#allocation2 + $0x112] sm:$0xff] }
 0x444   : > { %v3494_v18 = vmul.f32 0.25, %v3424_v29  ;;  %v3421_v44 = vpop.xlane.xlu0 %3420  ;;  %v8795_v29 = vld [vmem:[#allocation2 + $0x82] sm:$0xff] }
 0x445   : > { %4318 = vrot.lane.b32.xlu1 %v8781_v61, %s6573_s12  ;;  %v3493_v41 = vmul.f32 0.25, %v3421_v44  ;;  %9817 = vst [vmem:[#allocation54_spill] sm:$0xff] %v8795_v29  ;;  %v8800_v61 = vld [vmem:[#allocation2 + $0x92] sm:$0xff] }
 0x446   : > { %3526 = vst.msk [vmem:[#allocation3 + $0xa9] sm:$0xff] %vm325_vm13, %v3494_v18  ;;  %9818 = vst [vmem:[#allocation55_spill] sm:$0xff] %v8800_v61 }
 0x447   : > { %4320 = vrot.lane.b32.xlu0 %v8785_v35, %s6573_s12  ;;  %3525 = vst.msk [vmem:[#allocation3 + $0x99] sm:$0xff] %vm325_vm13, %v3493_v41  ;;  %v3430_v3 = vpop.xlane.xlu1 %3429 }
 0x448   : > { %v3496_v12 = vmul.f32 0.25, %v3430_v3  ;;  %v8805_v3 = vld [vmem:[#allocation2 + $0x9a] sm:$0xff] }
 0x449   : > { %4322 = vrot.lane.b32.xlu1 %v8791_v4, %s6573_s12  ;;  %9819 = vst [vmem:[#allocation56_spill] sm:$0xff] %v8805_v3 }
 0x44a   : > { %3528 = vst.msk [vmem:[#allocation3 + $0xc1] sm:$0xff] %vm325_vm13, %v3496_v12  ;;  %v3427_v44 = vpop.xlane.xlu0 %3426 }
 0x44b   : > { %4324 = vrot.lane.b32.xlu0 %v8795_v29, %s6573_s12  ;;  %v3495_v18 = vmul.f32 0.25, %v3427_v44  ;;  %v8810_v29 = vld [vmem:[#allocation2 + $0xaa] sm:$0xff] }
 0x44c   : > { %9820 = vst [vmem:[#allocation57_spill] sm:$0xff] %v8810_v29 }
 0x44d   : > { %4326 = vrot.lane.b32.xlu1 %v8800_v61, %s6573_s12  ;;  %3527 = vst.msk [vmem:[#allocation3 + $0xb1] sm:$0xff] %vm325_vm13, %v3495_v18  ;;  %v3436_v41 = vpop.xlane.xlu1 %3435  ;;  %v8815_v18 = vld [vmem:[#allocation2 + $0xb2] sm:$0xff] }
 0x44e   : > { %v3498_v4 = vmul.f32 0.25, %v3436_v41  ;;  %v3433_v35 = vpop.xlane.xlu0 %3432  ;;  %9821 = vst [vmem:[#allocation58_spill] sm:$0xff] %v8815_v18  ;;  %v8820_v41 = vld [vmem:[#allocation2 + $0xc2] sm:$0xff] }
 0x44f   : > { %4328 = vrot.lane.b32.xlu0 %v8805_v3, %s6573_s12  ;;  %v3497_v12 = vmul.f32 0.25, %v3433_v35  ;;  %9822 = vst [vmem:[#allocation59_spill] sm:$0xff] %v8820_v41  ;;  %v8824_v3 = vld [vmem:[#allocation2 + $0xca] sm:$0xff] }
 0x450   : > { %3530 = vst.msk [vmem:[#allocation3 + $0xd9] sm:$0xff] %vm325_vm13, %v3498_v4  ;;  %9823 = vst [vmem:[#allocation60_spill] sm:$0xff] %v8824_v3 }
 0x451   : > { %4330 = vrot.lane.b32.xlu1 %v8810_v29, %s6573_s12  ;;  %3529 = vst.msk [vmem:[#allocation3 + $0xc9] sm:$0xff] %vm325_vm13, %v3497_v12  ;;  %v3442_v44 = vpop.xlane.xlu1 %3441  ;;  %v8829_v29 = vld [vmem:[#allocation2 + $0xda] sm:$0xff] }
 0x452   : > { %v3500_v61 = vmul.f32 0.25, %v3442_v44  ;;  %9824 = vst [vmem:[#allocation61_spill] sm:$0xff] %v8829_v29 }
 0x453   : > { %4332 = vrot.lane.b32.xlu0 %v8815_v18, %s6573_s12 }
 0x454   : > { %3532 = vst.msk [vmem:[#allocation3 + $0xf1] sm:$0xff] %vm325_vm13, %v3500_v61  ;;  %v3439_v35 = vpop.xlane.xlu0 %3438 }
 0x455   : > { %4334 = vrot.lane.b32.xlu1 %v8820_v41, %s6573_s12  ;;  %v3499_v4 = vmul.f32 0.25, %v3439_v35  ;;  %v8834_v41 = vld [vmem:[#allocation2 + $0xe2] sm:$0xff] }
 0x456   : > { %9825 = vst [vmem:[#allocation62_spill] sm:$0xff] %v8834_v41 }
 0x457   : > { %3531 = vst.msk [vmem:[#allocation3 + $0xe1] sm:$0xff] %vm325_vm13, %v3499_v4  ;;  %4336 = vrot.lane.b32.xlu0 %v8824_v3, %s6573_s12  ;;  %v3448_v12 = vpop.xlane.xlu1 %3447  ;;  %v8839_v3 = vld [vmem:[#allocation2 + $0xf2] sm:$0xff] }
 0x458   : > { %v3502_v44 = vmul.f32 0.25, %v3448_v12  ;;  %v3445_v18 = vpop.xlane.xlu0 %3444  ;;  %9826 = vst [vmem:[#allocation63_spill] sm:$0xff] %v8839_v3 }
 0x459   : > { %4338 = vrot.lane.b32.xlu1 %v8829_v29, %s6573_s12  ;;  %v3501_v61 = vmul.f32 0.25, %v3445_v18  ;;  %v4259_v18 = vld [vmem:[#allocation2 + $0xfa] sm:$0xff] }
 0x45a   : > { %3534 = vst.msk [vmem:[#allocation3 + $0x109] sm:$0xff] %vm325_vm13, %v3502_v44  ;;  %v4260_v44 = vld [vmem:[#allocation2 + $0x10a] sm:$0xff] }
 0x45b   : > { %3533 = vst.msk [vmem:[#allocation3 + $0xf9] sm:$0xff] %vm325_vm13, %v3501_v61  ;;  %4340 = vrot.lane.b32.xlu0 %v8834_v41, %s6573_s12  ;;  %v3454_v35 = vpop.xlane.xlu1 %3453 }
 0x45c   : > { %v3504_v4 = vmul.f32 0.25, %v3454_v35 }
 0x45d   : > { %4342 = vrot.lane.b32.xlu1 %v8839_v3, %s6573_s12 }
 0x45e   : > { %3536 = vst.msk [vmem:[#allocation3 + $0x121] sm:$0xff] %vm325_vm13, %v3504_v4  ;;  %v3451_v12 = vpop.xlane.xlu0 %3450  ;;  %v4262_v4 = vld [vmem:[#allocation2 + $0x122] sm:$0xff] }
 0x45f   : > { %v3503_v29 = vmul.f32 0.25, %v3451_v12  ;;  %4344 = vrot.lane.b32.xlu0 %v4259_v18, %s6573_s12 }
 0x461   : > { %3535 = vst.msk [vmem:[#allocation3 + $0x111] sm:$0xff] %vm325_vm13, %v3503_v29  ;;  %v3460_v61 = vpop.xlane.xlu1 %3459  ;;  %4346 = vrot.lane.b32.xlu1 %v4260_v44, %s6573_s12  ;;  %v4263_v29 = vld [vmem:[#allocation2 + $0x12a] sm:$0xff]  ;;  %v4264_v44 = vld [vmem:[#allocation2 + $0x13a] sm:$0xff] }
 0x462   : > { %v3506_v41 = vmul.f32 0.25, %v3460_v61  ;;  %v3457_v35 = vpop.xlane.xlu0 %3456 }
 0x463   : > { %v3505_v38 = vmul.f32 0.25, %v3457_v35  ;;  %4348 = vrot.lane.b32.xlu0 %v4261_v55, %s6573_s12 }
 0x464   : > { %3538 = vst.msk [vmem:[#allocation3 + $0x139] sm:$0xff] %vm325_vm13, %v3506_v41 }
 0x465   : > { %3537 = vst.msk [vmem:[#allocation3 + $0x129] sm:$0xff] %vm325_vm13, %v3505_v38  ;;  %v3466_v12 = vpop.xlane.xlu1 %3465  ;;  %4350 = vrot.lane.b32.xlu1 %v4262_v4, %s6573_s12  ;;  %v4265_v38 = vld [vmem:[#allocation2 + $0x142] sm:$0xff]  ;;  %v4266_v4 = vld [vmem:[#allocation2 + $0x152] sm:$0xff] }
 0x466   : > { %v3508_v18 = vmul.f32 0.25, %v3466_v12  ;;  %v3463_v3 = vpop.xlane.xlu0 %3462 }
 0x467   : > { %v3507_v37 = vmul.f32 0.25, %v3463_v3  ;;  %4352 = vrot.lane.b32.xlu0 %v4263_v29, %s6573_s12 }
 0x468   : > { %3540 = vst.msk [vmem:[#allocation3 + $0x151] sm:$0xff] %vm325_vm13, %v3508_v18 }
 0x469   : > { %3539 = vst.msk [vmem:[#allocation3 + $0x141] sm:$0xff] %vm325_vm13, %v3507_v37  ;;  %v3472_v55 = vpop.xlane.xlu1 %3471  ;;  %4354 = vrot.lane.b32.xlu1 %v4264_v44, %s6573_s12  ;;  %v4267_v37 = vld [vmem:[#allocation2 + $0x15a] sm:$0xff]  ;;  %v4268_v44 = vld [vmem:[#allocation2 + $0x16a] sm:$0xff] }
 0x46a   : > { %v3510_v41 = vmul.f32 0.25, %v3472_v55  ;;  %v3469_v61 = vpop.xlane.xlu0 %3468 }
 0x46b   : > { %v3509_v35 = vmul.f32 0.25, %v3469_v61  ;;  %4356 = vrot.lane.b32.xlu0 %v4265_v38, %s6573_s12  ;;  %v4269_v61 = vld [vmem:[#allocation2 + $0x172] sm:$0xff] }
 0x46c   : > { %3542 = vst.msk [vmem:[#allocation3 + $0x169] sm:$0xff] %vm325_vm13, %v3510_v41 }
 0x46d   : > { %3541 = vst.msk [vmem:[#allocation3 + $0x159] sm:$0xff] %vm325_vm13, %v3509_v35  ;;  %v3478_v3 = vpop.xlane.xlu1 %3477  ;;  %4358 = vrot.lane.b32.xlu1 %v4266_v4, %s6573_s12 }
 0x46e   : > { %v3512_v12 = vmul.f32 0.25, %v3478_v3  ;;  %v3475_v18 = vpop.xlane.xlu0 %3474 }
 0x46f   : > { %v3511_v29 = vmul.f32 0.25, %v3475_v18  ;;  %4360 = vrot.lane.b32.xlu0 %v4267_v37, %s6573_s12 }
 0x470   : > { %3544 = vst.msk [vmem:[#allocation3 + $0x181] sm:$0xff] %vm325_vm13, %v3512_v12 }
 0x471   : > { %3543 = vst.msk [vmem:[#allocation3 + $0x171] sm:$0xff] %vm325_vm13, %v3511_v29  ;;  %v4111_v55 = vpop.permute.xlu1 %4110  ;;  %4362 = vrot.lane.b32.xlu1 %v4268_v44, %s6573_s12 }
 0x472   : > { %4206 = vst.msk [vmem:[#allocation4] sm:$0xff] %vm1304_vm12, %v4111_v55  ;;  %v3481_v41 = vpop.xlane.xlu0 %3480 }
 0x473   : > { %v3513_v38 = vmul.f32 0.25, %v3481_v41  ;;  %4364 = vrot.lane.b32.xlu0 %v4269_v61, %s6573_s12 }
 0x475   : > { %3545 = vst.msk [vmem:[#allocation3 + $0x189] sm:$0xff] %vm325_vm13, %v3513_v38  ;;  %v4115_v35 = vpop.permute.xlu1 %4114  ;;  %4494 = vrot.lane.b32.xlu1 %v8275_v57, %s6574_s13  ;;  %vm9854_vm13 = vcmask 294144  }
 0x476   : > { %4208 = vst.msk [vmem:[#allocation4 + $0x10] sm:$0xff] %vm1304_vm12, %v4115_v35  ;;  %v4113_v4 = vpop.permute.xlu0 %4112 }
 0x477   : > { %4207 = vst.msk [vmem:[#allocation4 + $0x8] sm:$0xff] %vm1304_vm12, %v4113_v4  ;;  %4496 = vrot.lane.b32.xlu0 %v8277_v45, %s6574_s13 }
 0x479   : > { %v4117_v3 = vpop.permute.xlu1 %4116  ;;  %4498 = vrot.lane.b32.xlu1 %v8302_v62, %s6574_s13 }
 0x47a   : > { %4209 = vst.msk [vmem:[#allocation4 + $0x18] sm:$0xff] %vm1304_vm12, %v4117_v3  ;;  %v4121_v12 = vpop.permute.xlu0 %4120 }
 0x47b   : > { %4211 = vst.msk [vmem:[#allocation4 + $0x28] sm:$0xff] %vm1304_vm12, %v4121_v12  ;;  %4500 = vrot.lane.b32.xlu0 %v8304_v8, %s6574_s13 }
 0x47d   : > { %v4119_v57 = vpop.permute.xlu1 %4118  ;;  %4502 = vrot.lane.b32.xlu1 %v8321_v7, %s6574_s13 }
 0x47e   : > { %4210 = vst.msk [vmem:[#allocation4 + $0x20] sm:$0xff] %vm1304_vm12, %v4119_v57  ;;  %v4125_v18 = vpop.permute.xlu0 %4124 }
 0x47f   : > { %4213 = vst.msk [vmem:[#allocation4 + $0x38] sm:$0xff] %vm1304_vm12, %v4125_v18  ;;  %4504 = vrot.lane.b32.xlu0 %v8325_v0, %s6574_s13 }
 0x481   : > { %v4123_v45 = vpop.permute.xlu1 %4122  ;;  %4506 = vrot.lane.b32.xlu1 %v8345_v31, %s6574_s13 }
 0x482   : > { %4212 = vst.msk [vmem:[#allocation4 + $0x30] sm:$0xff] %vm1304_vm12, %v4123_v45  ;;  %v4129_v37 = vpop.permute.xlu0 %4128 }
 0x483   : > { %4215 = vst.msk [vmem:[#allocation4 + $0x48] sm:$0xff] %vm1304_vm12, %v4129_v37  ;;  %4508 = vrot.lane.b32.xlu0 %v8351_v14, %s6574_s13 }
 0x485   : > { %v4127_v29 = vpop.permute.xlu1 %4126  ;;  %4510 = vrot.lane.b32.xlu1 %v8366_v5, %s6574_s13 }
 0x486   : > { %4214 = vst.msk [vmem:[#allocation4 + $0x40] sm:$0xff] %vm1304_vm12, %v4127_v29  ;;  %v4133_v44 = vpop.permute.xlu0 %4132 }
 0x487   : > { %4217 = vst.msk [vmem:[#allocation4 + $0x58] sm:$0xff] %vm1304_vm12, %v4133_v44  ;;  %4512 = vrot.lane.b32.xlu0 %v8369_v23, %s6574_s13 }
 0x489   : > { %v4131_v55 = vpop.permute.xlu1 %4130  ;;  %4514 = vrot.lane.b32.xlu1 %v8386_v58, %s6574_s13 }
 0x48a   : > { %4216 = vst.msk [vmem:[#allocation4 + $0x50] sm:$0xff] %vm1304_vm12, %v4131_v55  ;;  %v4137_v41 = vpop.permute.xlu0 %4136 }
 0x48b   : > { %4219 = vst.msk [vmem:[#allocation4 + $0x68] sm:$0xff] %vm1304_vm12, %v4137_v41  ;;  %4516 = vrot.lane.b32.xlu0 %v8393_v56, %s6574_s13 }
 0x48d   : > { %v4135_v61 = vpop.permute.xlu1 %4134  ;;  %4518 = vrot.lane.b32.xlu1 %v8415_v47, %s6574_s13 }
 0x48e   : > { %4218 = vst.msk [vmem:[#allocation4 + $0x60] sm:$0xff] %vm1304_vm12, %v4135_v61  ;;  %v4141_v38 = vpop.permute.xlu0 %4140 }
 0x48f   : > { %4221 = vst.msk [vmem:[#allocation4 + $0x78] sm:$0xff] %vm1304_vm12, %v4141_v38  ;;  %4520 = vrot.lane.b32.xlu0 %v8420_v28, %s6574_s13 }
 0x491   : > { %v4139_v35 = vpop.permute.xlu1 %4138  ;;  %4522 = vrot.lane.b32.xlu1 %v8430_v13, %s6574_s13 }
 0x492   : > { %4220 = vst.msk [vmem:[#allocation4 + $0x70] sm:$0xff] %vm1304_vm12, %v4139_v35  ;;  %v4145_v4 = vpop.permute.xlu0 %4144 }
 0x493   : > { %4223 = vst.msk [vmem:[#allocation4 + $0x88] sm:$0xff] %vm1304_vm12, %v4145_v4  ;;  %4524 = vrot.lane.b32.xlu0 %v8437_v63, %s6574_s13 }
 0x495   : > { %v4143_v3 = vpop.permute.xlu1 %4142  ;;  %4526 = vrot.lane.b32.xlu1 %v8459_v21, %s6574_s13 }
 0x496   : > { %4222 = vst.msk [vmem:[#allocation4 + $0x80] sm:$0xff] %vm1304_vm12, %v4143_v3  ;;  %v4149_v12 = vpop.permute.xlu0 %4148 }
 0x497   : > { %4225 = vst.msk [vmem:[#allocation4 + $0x98] sm:$0xff] %vm1304_vm12, %v4149_v12  ;;  %4528 = vrot.lane.b32.xlu0 %v8465_v34, %s6574_s13 }
 0x499   : > { %v4147_v57 = vpop.permute.xlu1 %4146  ;;  %4530 = vrot.lane.b32.xlu1 %v8485_v26, %s6574_s13 }
 0x49a   : > { %4224 = vst.msk [vmem:[#allocation4 + $0x90] sm:$0xff] %vm1304_vm12, %v4147_v57  ;;  %v4153_v18 = vpop.permute.xlu0 %4152 }
 0x49b   : > { %4227 = vst.msk [vmem:[#allocation4 + $0xa8] sm:$0xff] %vm1304_vm12, %v4153_v18  ;;  %4532 = vrot.lane.b32.xlu0 %v8489_v22, %s6574_s13  ;;  %v9829_v18 = vld [vmem:[#allocation39_spill] sm:$0xff] }
 0x49d   : > { %v4151_v45 = vpop.permute.xlu1 %4150  ;;  %4534 = vrot.lane.b32.xlu1 %v8509_v24, %s6574_s13 }
 0x49e   : > { %4226 = vst.msk [vmem:[#allocation4 + $0xa0] sm:$0xff] %vm1304_vm12, %v4151_v45  ;;  %v4157_v37 = vpop.permute.xlu0 %4156 }
 0x49f   : > { %4229 = vst.msk [vmem:[#allocation4 + $0xb8] sm:$0xff] %vm1304_vm12, %v4157_v37  ;;  %4536 = vrot.lane.b32.xlu0 %v8511_v30, %s6574_s13 }
 0x4a1   : > { %v4155_v29 = vpop.permute.xlu1 %4154  ;;  %4538 = vrot.lane.b32.xlu1 %v8535_v54, %s6574_s13 }
 0x4a2   : > { %4228 = vst.msk [vmem:[#allocation4 + $0xb0] sm:$0xff] %vm1304_vm12, %v4155_v29  ;;  %v4161_v44 = vpop.permute.xlu0 %4160  ;;  %v9831_v29 = vld [vmem:[#allocation41_spill] sm:$0xff] }
 0x4a3   : > { %4231 = vst.msk [vmem:[#allocation4 + $0xc8] sm:$0xff] %vm1304_vm12, %v4161_v44  ;;  %4540 = vrot.lane.b32.xlu0 %v8539_v19, %s6574_s13 }
 0x4a5   : > { %v4159_v55 = vpop.permute.xlu1 %4158  ;;  %4542 = vrot.lane.b32.xlu1 %v8555_v36, %s6574_s13 }
 0x4a6   : > { %4230 = vst.msk [vmem:[#allocation4 + $0xc0] sm:$0xff] %vm1304_vm12, %v4159_v55  ;;  %v4165_v41 = vpop.permute.xlu0 %4164  ;;  %v9832_v55 = vld [vmem:[#allocation42_spill] sm:$0xff] }
 0x4a7   : > { %4233 = vst.msk [vmem:[#allocation4 + $0xd8] sm:$0xff] %vm1304_vm12, %v4165_v41  ;;  %4544 = vrot.lane.b32.xlu0 %v8557_v25, %s6574_s13  ;;  %v4460_v25 = vld [vmem:[#allocation2 + $0x180] sm:$0xff] }
 0x4a9   : > { %v4163_v61 = vpop.permute.xlu1 %4162  ;;  %4546 = vrot.lane.b32.xlu1 %v8581_v53, %s6574_s13 }
 0x4aa   : > { %4232 = vst.msk [vmem:[#allocation4 + $0xd0] sm:$0xff] %vm1304_vm12, %v4163_v61  ;;  %v4169_v38 = vpop.permute.xlu0 %4168  ;;  %v9833_v61 = vld [vmem:[#allocation43_spill] sm:$0xff] }
 0x4ab   : > { %4235 = vst.msk [vmem:[#allocation4 + $0xe8] sm:$0xff] %vm1304_vm12, %v4169_v38  ;;  %4548 = vrot.lane.b32.xlu0 %v8587_v42, %s6574_s13  ;;  %v4461_v42 = vld [vmem:[#allocation2 + $0x188] sm:$0xff] }
 0x4ad   : > { %v4167_v19 = vpop.permute.xlu1 %4166  ;;  %4550 = vrot.lane.b32.xlu1 %v8599_v48, %s6574_s13 }
 0x4ae   : > { %4234 = vst.msk [vmem:[#allocation4 + $0xe0] sm:$0xff] %vm1304_vm12, %v4167_v19  ;;  %v4173_v36 = vpop.permute.xlu0 %4172  ;;  %v9834_v19 = vld [vmem:[#allocation44_spill] sm:$0xff] }
 0x4af   : > { %4237 = vst.msk [vmem:[#allocation4 + $0xf8] sm:$0xff] %vm1304_vm12, %v4173_v36  ;;  %4552 = vrot.lane.b32.xlu0 %v8605_v16, %s6574_s13  ;;  %v9050_v36 = vld [vmem:[#allocation2 + $0x181] sm:$0xff] }
 0x4b1   : > { %v4171_v53 = vpop.permute.xlu1 %4170  ;;  %4554 = vrot.lane.b32.xlu1 %v4460_v25, %s6574_s13 }
 0x4b2   : > { %4236 = vst.msk [vmem:[#allocation4 + $0xf0] sm:$0xff] %vm1304_vm12, %v4171_v53  ;;  %v4305_v35 = vpop.permute.xlu0 %4304  ;;  %vm9855_vm12 = vmmov %vm9854_vm13 }
 0x4b3   : > { %4399 = vst.msk [vmem:[#allocation4 + $0x8] sm:$0xff] %vm1497_vm14, %v4305_v35  ;;  %4556 = vrot.lane.b32.xlu0 %v4461_v42, %s6574_s13  ;;  %v9055_v35 = vld [vmem:[#allocation2 + $0x189] sm:$0xff]  ;;  %v9835_v42 = vld [vmem:[#allocation45_spill] sm:$0xff] }
 0x4b5   : > { %v4303_v48 = vpop.permute.xlu1 %4302  ;;  %4686 = vrot.lane.b32.xlu1 %v8622_v59, %s6575_s14 }
 0x4b6   : > { %4398 = vst.msk [vmem:[#allocation4] sm:$0xff] %vm1497_vm14, %v4303_v48  ;;  %v4309_v4 = vpop.permute.xlu0 %4308 }
 0x4b7   : > { %4401 = vst.msk [vmem:[#allocation4 + $0x18] sm:$0xff] %vm1497_vm14, %v4309_v4  ;;  %4688 = vrot.lane.b32.xlu0 %v8627_v20, %s6575_s14 }
 0x4b9   : > { %v4307_v16 = vpop.permute.xlu1 %4306  ;;  %4690 = vrot.lane.b32.xlu1 %v8632_v11, %s6575_s14 }
 0x4ba   : > { %4400 = vst.msk [vmem:[#allocation4 + $0x10] sm:$0xff] %vm1497_vm14, %v4307_v16  ;;  %v4313_v3 = vpop.permute.xlu0 %4312  ;;  %v9836_v16 = vld [vmem:[#allocation46_spill] sm:$0xff] }
 0x4bb   : > { %4403 = vst.msk [vmem:[#allocation4 + $0x28] sm:$0xff] %vm1497_vm14, %v4313_v3  ;;  %4692 = vrot.lane.b32.xlu0 %v8636_v60, %s6575_s14  ;;  %v9837_v3 = vld [vmem:[#allocation47_spill] sm:$0xff] }
 0x4bd   : > { %v4311_v59 = vpop.permute.xlu1 %4310  ;;  %4694 = vrot.lane.b32.xlu1 %v8640_v6, %s6575_s14 }
 0x4be   : > { %4402 = vst.msk [vmem:[#allocation4 + $0x20] sm:$0xff] %vm1497_vm14, %v4311_v59  ;;  %v4317_v12 = vpop.permute.xlu0 %4316 }
 0x4bf   : > { %4405 = vst.msk [vmem:[#allocation4 + $0x38] sm:$0xff] %vm1497_vm14, %v4317_v12  ;;  %4696 = vrot.lane.b32.xlu0 %v8644_v50, %s6575_s14 }
 0x4c1   : > { %v4315_v20 = vpop.permute.xlu1 %4314  ;;  %4698 = vrot.lane.b32.xlu1 %v8648_v15, %s6575_s14 }
 0x4c2   : > { %4404 = vst.msk [vmem:[#allocation4 + $0x30] sm:$0xff] %vm1497_vm14, %v4315_v20  ;;  %v4321_v11 = vpop.permute.xlu0 %4320  ;;  %v9838_v20 = vld [vmem:[#allocation48_spill] sm:$0xff] }
 0x4c3   : > { %4407 = vst.msk [vmem:[#allocation4 + $0x48] sm:$0xff] %vm1497_vm14, %v4321_v11  ;;  %4700 = vrot.lane.b32.xlu0 %v8652_v33, %s6575_s14  ;;  %v9839_v11 = vld [vmem:[#allocation49_spill] sm:$0xff] }
 0x4c5   : > { %v4319_v60 = vpop.permute.xlu1 %4318  ;;  %4702 = vrot.lane.b32.xlu1 %v8656_v40, %s6575_s14 }
 0x4c6   : > { %4406 = vst.msk [vmem:[#allocation4 + $0x40] sm:$0xff] %vm1497_vm14, %v4319_v60  ;;  %v4325_v6 = vpop.permute.xlu0 %4324 }
 0x4c7   : > { %4409 = vst.msk [vmem:[#allocation4 + $0x58] sm:$0xff] %vm1497_vm14, %v4325_v6  ;;  %4704 = vrot.lane.b32.xlu0 %v8660_v46, %s6575_s14 }
 0x4c9   : > { %v4323_v50 = vpop.permute.xlu1 %4322  ;;  %4706 = vrot.lane.b32.xlu1 %v8664_v17, %s6575_s14 }
 0x4ca   : > { %4408 = vst.msk [vmem:[#allocation4 + $0x50] sm:$0xff] %vm1497_vm14, %v4323_v50  ;;  %v4329_v15 = vpop.permute.xlu0 %4328  ;;  %v9840_v50 = vld [vmem:[#allocation50_spill] sm:$0xff] }
 0x4cb   : > { %4411 = vst.msk [vmem:[#allocation4 + $0x68] sm:$0xff] %vm1497_vm14, %v4329_v15  ;;  %4708 = vrot.lane.b32.xlu0 %v8668_v2, %s6575_s14  ;;  %v9841_v15 = vld [vmem:[#allocation51_spill] sm:$0xff] }
 0x4cd   : > { %v4327_v33 = vpop.permute.xlu1 %4326  ;;  %4710 = vrot.lane.b32.xlu1 %v8672_v27, %s6575_s14 }
 0x4ce   : > { %4410 = vst.msk [vmem:[#allocation4 + $0x60] sm:$0xff] %vm1497_vm14, %v4327_v33  ;;  %v4333_v40 = vpop.permute.xlu0 %4332 }
 0x4cf   : > { %4413 = vst.msk [vmem:[#allocation4 + $0x78] sm:$0xff] %vm1497_vm14, %v4333_v40  ;;  %4712 = vrot.lane.b32.xlu0 %v8676_v52, %s6575_s14 }
 0x4d1   : > { %v4331_v46 = vpop.permute.xlu1 %4330  ;;  %4714 = vrot.lane.b32.xlu1 %v8680_v49, %s6575_s14 }
 0x4d2   : > { %4412 = vst.msk [vmem:[#allocation4 + $0x70] sm:$0xff] %vm1497_vm14, %v4331_v46  ;;  %v4337_v17 = vpop.permute.xlu0 %4336  ;;  %v9842_v46 = vld [vmem:[#allocation52_spill] sm:$0xff] }
 0x4d3   : > { %4415 = vst.msk [vmem:[#allocation4 + $0x88] sm:$0xff] %vm1497_vm14, %v4337_v17  ;;  %4716 = vrot.lane.b32.xlu0 %v8684_v1, %s6575_s14  ;;  %v9843_v17 = vld [vmem:[#allocation53_spill] sm:$0xff] }
 0x4d5   : > { %v4335_v2 = vpop.permute.xlu1 %4334  ;;  %4718 = vrot.lane.b32.xlu1 %v8688_v51, %s6575_s14 }
 0x4d6   : > { %4414 = vst.msk [vmem:[#allocation4 + $0x80] sm:$0xff] %vm1497_vm14, %v4335_v2  ;;  %v4341_v27 = vpop.permute.xlu0 %4340 }
 0x4d7   : > { %4417 = vst.msk [vmem:[#allocation4 + $0x98] sm:$0xff] %vm1497_vm14, %v4341_v27  ;;  %4720 = vrot.lane.b32.xlu0 %v8692_v43, %s6575_s14 }
 0x4d9   : > { %v4339_v52 = vpop.permute.xlu1 %4338  ;;  %4722 = vrot.lane.b32.xlu1 %v8696_v9, %s6575_s14  ;;  %v9827_v9 = vld [vmem:[#allocation37_spill] sm:$0xff] }
 0x4da   : > { %4416 = vst.msk [vmem:[#allocation4 + $0x90] sm:$0xff] %vm1497_vm14, %v4339_v52  ;;  %v4345_v49 = vpop.permute.xlu0 %4344  ;;  %v9844_v52 = vld [vmem:[#allocation54_spill] sm:$0xff] }
 0x4db   : > { %4419 = vst.msk [vmem:[#allocation4 + $0xa8] sm:$0xff] %vm1497_vm14, %v4345_v49  ;;  %4724 = vrot.lane.b32.xlu0 %v8700_v32, %s6575_s14  ;;  %v9828_v32 = vld [vmem:[#allocation38_spill] sm:$0xff]  ;;  %v9845_v49 = vld [vmem:[#allocation55_spill] sm:$0xff] }
 0x4dd   : > { %v4343_v1 = vpop.permute.xlu1 %4342  ;;  %4726 = vrot.lane.b32.xlu1 %v8704_v10, %s6575_s14 }
 0x4de   : > { %4418 = vst.msk [vmem:[#allocation4 + $0xa0] sm:$0xff] %vm1497_vm14, %v4343_v1  ;;  %v4349_v51 = vpop.permute.xlu0 %4348 }
 0x4df   : > { %4421 = vst.msk [vmem:[#allocation4 + $0xb8] sm:$0xff] %vm1497_vm14, %v4349_v51  ;;  %4728 = vrot.lane.b32.xlu0 %v8708_v39, %s6575_s14  ;;  %v9830_v39 = vld [vmem:[#allocation40_spill] sm:$0xff] }
 0x4e1   : > { %v4347_v43 = vpop.permute.xlu1 %4346  ;;  %4730 = vrot.lane.b32.xlu1 %v9827_v9, %s6575_s14  ;;  %v9847_v9 = vld [vmem:[#allocation57_spill] sm:$0xff] }
 0x4e2   : > { %4420 = vst.msk [vmem:[#allocation4 + $0xb0] sm:$0xff] %vm1497_vm14, %v4347_v43  ;;  %v4353_v57 = vpop.permute.xlu0 %4352  ;;  %v9846_v43 = vld [vmem:[#allocation56_spill] sm:$0xff] }
 0x4e3   : > { %4423 = vst.msk [vmem:[#allocation4 + $0xc8] sm:$0xff] %vm1497_vm14, %v4353_v57  ;;  %4732 = vrot.lane.b32.xlu0 %v9828_v32, %s6575_s14 }
 0x4e5   : > { %v4351_v10 = vpop.permute.xlu1 %4350  ;;  %4734 = vrot.lane.b32.xlu1 %v9829_v18, %s6575_s14  ;;  %v9849_v18 = vld [vmem:[#allocation59_spill] sm:$0xff] }
 0x4e6   : > { %4422 = vst.msk [vmem:[#allocation4 + $0xc0] sm:$0xff] %vm1497_vm14, %v4351_v10  ;;  %v4357_v45 = vpop.permute.xlu0 %4356  ;;  %v9848_v10 = vld [vmem:[#allocation58_spill] sm:$0xff] }
 0x4e7   : > { %4425 = vst.msk [vmem:[#allocation4 + $0xd8] sm:$0xff] %vm1497_vm14, %v4357_v45  ;;  %4736 = vrot.lane.b32.xlu0 %v9830_v39, %s6575_s14 }
 0x4e9   : > { %v4355_v37 = vpop.permute.xlu1 %4354  ;;  %4738 = vrot.lane.b32.xlu1 %v9831_v29, %s6575_s14  ;;  %v9851_v29 = vld [vmem:[#allocation61_spill] sm:$0xff] }
 0x4ea   : > { %4424 = vst.msk [vmem:[#allocation4 + $0xd0] sm:$0xff] %vm1497_vm14, %v4355_v37  ;;  %v4361_v44 = vpop.permute.xlu0 %4360  ;;  %v9850_v37 = vld [vmem:[#allocation60_spill] sm:$0xff] }
 0x4eb   : > { %4427 = vst.msk [vmem:[#allocation4 + $0xe8] sm:$0xff] %vm1497_vm14, %v4361_v44  ;;  %4740 = vrot.lane.b32.xlu0 %v9832_v55, %s6575_s14 }
 0x4ed   : > { %v4359_v41 = vpop.permute.xlu1 %4358  ;;  %4742 = vrot.lane.b32.xlu1 %v9833_v61, %s6575_s14  ;;  %v9853_v61 = vld [vmem:[#allocation63_spill] sm:$0xff] }
 0x4ee   : > { %4426 = vst.msk [vmem:[#allocation4 + $0xe0] sm:$0xff] %vm1497_vm14, %v4359_v41  ;;  %v4365_v38 = vpop.permute.xlu0 %4364  ;;  %v9852_v41 = vld [vmem:[#allocation62_spill] sm:$0xff] }
 0x4ef   : > { %4429 = vst.msk [vmem:[#allocation4 + $0xf8] sm:$0xff] %vm1497_vm14, %v4365_v38  ;;  %4744 = vrot.lane.b32.xlu0 %v9834_v19, %s6575_s14 }
 0x4f1   : > { %4746 = vrot.lane.b32.xlu1 %v9050_v36, %s6575_s14  ;;  %v4363_v25 = vpop.permute.xlu1 %4362 }
 0x4f2   : > { %4428 = vst.msk [vmem:[#allocation4 + $0xf0] sm:$0xff] %vm1497_vm14, %v4363_v25  ;;  %v4497_v53 = vpop.permute.xlu0 %4496  ;;  %vm9856_vm14 = vcmask 293888  }
 0x4f3   : > { %4591 = vst.msk [vmem:[#allocation4 + $0x8] sm:$0xff] %vm1690_vm15, %v4497_v53  ;;  %4748 = vrot.lane.b32.xlu0 %v9055_v35, %s6575_s14 }
 0x4f5   : > { %4878 = vrot.lane.b32.xlu1 %v9835_v42, %s6576_s15  ;;  %v4495_v48 = vpop.permute.xlu1 %4494  ;;  %v5198_v42 = vld [vmem:[#allocation2 + $0x31] sm:$0xff] }
 0x4f6   : > { %4590 = vst.msk [vmem:[#allocation4] sm:$0xff] %vm1690_vm15, %v4495_v48  ;;  %v4501_v4 = vpop.permute.xlu0 %4500  ;;  %v5199_v48 = vld [vmem:[#allocation2 + $0x39] sm:$0xff] }
 0x4f7   : > { %4593 = vst.msk [vmem:[#allocation4 + $0x18] sm:$0xff] %vm1690_vm15, %v4501_v4  ;;  %4880 = vrot.lane.b32.xlu0 %v9836_v16, %s6576_s15 }
 0x4f9   : > { %4882 = vrot.lane.b32.xlu1 %v9837_v3, %s6576_s15  ;;  %v4499_v59 = vpop.permute.xlu1 %4498  ;;  %v5615_v3 = vld [vmem:[%s9580_s6 + $0x8] sm:$0xff] }
 0x4fa   : > { %4592 = vst.msk [vmem:[#allocation4 + $0x10] sm:$0xff] %vm1690_vm15, %v4499_v59  ;;  %v4505_v12 = vpop.permute.xlu0 %4504  ;;  %v5391_v59 = vld [vmem:[#allocation2 + $0x3a] sm:$0xff] }
 0x4fb   : > { %4595 = vst.msk [vmem:[#allocation4 + $0x28] sm:$0xff] %vm1690_vm15, %v4505_v12  ;;  %4884 = vrot.lane.b32.xlu0 %v9838_v20, %s6576_s15 }
 0x4fd   : > { %4886 = vrot.lane.b32.xlu1 %v9839_v11, %s6576_s15  ;;  %v4503_v60 = vpop.permute.xlu1 %4502 }
 0x4fe   : > { %4594 = vst.msk [vmem:[#allocation4 + $0x20] sm:$0xff] %vm1690_vm15, %v4503_v60  ;;  %v4509_v6 = vpop.permute.xlu0 %4508  ;;  %v5616_v60 = vld [vmem:[%s9580_s6 + $0x10] sm:$0xff] }
 0x4ff   : > { %4597 = vst.msk [vmem:[#allocation4 + $0x38] sm:$0xff] %vm1690_vm15, %v4509_v6  ;;  %4888 = vrot.lane.b32.xlu0 %v9840_v50, %s6576_s15  ;;  %v5617_v6 = vld [vmem:[%s9580_s6 + $0x18] sm:$0xff] }
 0x500   : > { %v6539_v50 = vpack.c.bf16 %v5617_v6, %v5616_v60 }
 0x501   : > { %4890 = vrot.lane.b32.xlu1 %v9841_v15, %s6576_s15  ;;  %v4507_v33 = vpop.permute.xlu1 %4506 }
 0x502   : > { %4596 = vst.msk [vmem:[#allocation4 + $0x30] sm:$0xff] %vm1690_vm15, %v4507_v33  ;;  %v4513_v40 = vpop.permute.xlu0 %4512 }
 0x503   : > { %4599 = vst.msk [vmem:[#allocation4 + $0x48] sm:$0xff] %vm1690_vm15, %v4513_v40  ;;  %4892 = vrot.lane.b32.xlu0 %v9842_v46, %s6576_s15  ;;  %v5200_v40 = vld [vmem:[#allocation2 + $0x49] sm:$0xff]  ;;  %v5201_v46 = vld [vmem:[#allocation2 + $0x51] sm:$0xff] }
 0x505   : > { %4894 = vrot.lane.b32.xlu1 %v9843_v17, %s6576_s15  ;;  %v4511_v2 = vpop.permute.xlu1 %4510 }
 0x506   : > { %4598 = vst.msk [vmem:[#allocation4 + $0x40] sm:$0xff] %vm1690_vm15, %v4511_v2  ;;  %v4517_v27 = vpop.permute.xlu0 %4516  ;;  %v5392_v2 = vld [vmem:[#allocation2 + $0x4a] sm:$0xff] }
 0x507   : > { %4601 = vst.msk [vmem:[#allocation4 + $0x58] sm:$0xff] %vm1690_vm15, %v4517_v27  ;;  %4896 = vrot.lane.b32.xlu0 %v9844_v52, %s6576_s15  ;;  %v5393_v27 = vld [vmem:[#allocation2 + $0x52] sm:$0xff] }
 0x509   : > { %4898 = vrot.lane.b32.xlu1 %v9845_v49, %s6576_s15  ;;  %v4515_v1 = vpop.permute.xlu1 %4514 }
 0x50a   : > { %4600 = vst.msk [vmem:[#allocation4 + $0x50] sm:$0xff] %vm1690_vm15, %v4515_v1  ;;  %v4521_v51 = vpop.permute.xlu0 %4520 }
 0x50b   : > { %4603 = vst.msk [vmem:[#allocation4 + $0x68] sm:$0xff] %vm1690_vm15, %v4521_v51  ;;  %4900 = vrot.lane.b32.xlu0 %v9846_v43, %s6576_s15  ;;  %v5202_v43 = vld [vmem:[#allocation2 + $0x61] sm:$0xff] }
 0x50d   : > { %4902 = vrot.lane.b32.xlu1 %v9847_v9, %s6576_s15  ;;  %v4519_v57 = vpop.permute.xlu1 %4518  ;;  %v5203_v9 = vld [vmem:[#allocation2 + $0x69] sm:$0xff] }
 0x50e   : > { %4602 = vst.msk [vmem:[#allocation4 + $0x60] sm:$0xff] %vm1690_vm15, %v4519_v57  ;;  %v4525_v32 = vpop.permute.xlu0 %4524 }
 0x50f   : > { %4605 = vst.msk [vmem:[#allocation4 + $0x78] sm:$0xff] %vm1690_vm15, %v4525_v32  ;;  %4904 = vrot.lane.b32.xlu0 %v9848_v10, %s6576_s15 }
 0x511   : > { %4906 = vrot.lane.b32.xlu1 %v9849_v18, %s6576_s15  ;;  %v4523_v45 = vpop.permute.xlu1 %4522 }
 0x512   : > { %4604 = vst.msk [vmem:[#allocation4 + $0x70] sm:$0xff] %vm1690_vm15, %v4523_v45  ;;  %v4529_v39 = vpop.permute.xlu0 %4528 }
 0x513   : > { %4607 = vst.msk [vmem:[#allocation4 + $0x88] sm:$0xff] %vm1690_vm15, %v4529_v39  ;;  %4908 = vrot.lane.b32.xlu0 %v9850_v37, %s6576_s15  ;;  %v5204_v37 = vld [vmem:[#allocation2 + $0x79] sm:$0xff] }
 0x515   : > { %4910 = vrot.lane.b32.xlu1 %v9851_v29, %s6576_s15  ;;  %v4527_v44 = vpop.permute.xlu1 %4526  ;;  %v5205_v29 = vld [vmem:[#allocation2 + $0x81] sm:$0xff] }
 0x516   : > { %4606 = vst.msk [vmem:[#allocation4 + $0x80] sm:$0xff] %vm1690_vm15, %v4527_v44  ;;  %v4533_v55 = vpop.permute.xlu0 %4532 }
 0x517   : > { %4609 = vst.msk [vmem:[#allocation4 + $0x98] sm:$0xff] %vm1690_vm15, %v4533_v55  ;;  %4912 = vrot.lane.b32.xlu0 %v9852_v41, %s6576_s15 }
 0x519   : > { %4914 = vrot.lane.b32.xlu1 %v9853_v61, %s6576_s15  ;;  %v4531_v38 = vpop.permute.xlu1 %4530 }
 0x51a   : > { %4608 = vst.msk [vmem:[#allocation4 + $0x90] sm:$0xff] %vm1690_vm15, %v4531_v38  ;;  %v4537_v19 = vpop.permute.xlu0 %4536 }
 0x51b   : > { %4611 = vst.msk [vmem:[#allocation4 + $0xa8] sm:$0xff] %vm1690_vm15, %v4537_v19  ;;  %5070 = vrot.lane.b32.xlu0 %v8302_v62, %s6577_s16  ;;  %v5390_v62 = vld [vmem:[#allocation2 + $0x32] sm:$0xff] }
 0x51d   : > { %5072 = vrot.lane.b32.xlu1 %v8304_v8, %s6577_s16  ;;  %v4535_v25 = vpop.permute.xlu1 %4534  ;;  %v5614_v8 = vld [vmem:[%s9580_s6] sm:$0xff] }
 0x51e   : > { %4610 = vst.msk [vmem:[#allocation4 + $0xa0] sm:$0xff] %vm1690_vm15, %v4535_v25  ;;  %v4541_v53 = vpop.permute.xlu0 %4540  ;;  %v6535_v12 = vpack.c.bf16 %v5615_v3, %v5614_v8  ;;  %v5206_v25 = vld [vmem:[#allocation2 + $0x91] sm:$0xff]  ;;  %v5208_v3 = vld [vmem:[#allocation2 + $0xa9] sm:$0xff] }
 0x51f   : > { %4613 = vst.msk [vmem:[#allocation4 + $0xb8] sm:$0xff] %vm1690_vm15, %v4541_v53  ;;  %5262 = vrot.lane.b32.xlu0 %v5198_v42, %s6579_s17  ;;  %v5207_v53 = vld [vmem:[#allocation2 + $0x99] sm:$0xff] }
 0x520   : > { %6536 = vmatprep.subr.bf16.mxu1 %v6535_v12 }
 0x521   : > { %5264 = vrot.lane.b32.xlu1 %v5199_v48, %s6579_s17  ;;  %v4539_v4 = vpop.permute.xlu1 %4538  ;;  %6538 = vmatpush3.bf16.msra.mxu1 %v6535_v12 }
 0x522   : > { %4612 = vst.msk [vmem:[#allocation4 + $0xb0] sm:$0xff] %vm1690_vm15, %v4539_v4  ;;  %v4545_v16 = vpop.permute.xlu0 %4544  ;;  %6540 = vmatprep.subr.bf16.mxu1 %v6539_v50 }
 0x523   : > { %4615 = vst.msk [vmem:[#allocation4 + $0xc8] sm:$0xff] %vm1690_vm15, %v4545_v16  ;;  %5454 = vrot.lane.b32.xlu0 %v5390_v62, %s6580_s18 }
 0x525   : > { %5456 = vrot.lane.b32.xlu1 %v5391_v59, %s6580_s18  ;;  %v4543_v20 = vpop.permute.xlu1 %4542  ;;  %6542 = vmatpush3.bf16.msra.mxu1 %v6539_v50  ;;  %v5209_v59 = vld [vmem:[#allocation2 + $0xb1] sm:$0xff] }
 0x526   : > { %4614 = vst.msk [vmem:[#allocation4 + $0xc0] sm:$0xff] %vm1690_vm15, %v4543_v20  ;;  %v4549_v11 = vpop.permute.xlu0 %4548 }
 0x527   : > { %4617 = vst.msk [vmem:[#allocation4 + $0xd8] sm:$0xff] %vm1690_vm15, %v4549_v11  ;;  %5074 = vrot.lane.b32.xlu0 %v8321_v7, %s6577_s16  ;;  %v5618_v7 = vld [vmem:[%s9580_s6 + $0x20] sm:$0xf] }
 0x528   : > { %6477 = vmatprep.subr.msk.mxu1 %vm2823_vm4, %v5618_v7 }
 0x529   : > { %5076 = vrot.lane.b32.xlu1 %v8325_v0, %s6577_s16  ;;  %v4547_v15 = vpop.permute.xlu1 %4546  ;;  %6478 = vmatpush3.msk.msra.mxu1 %vm2823_vm4, %v5618_v7  ;;  %vm9859_vm4 = vmmov %vm9855_vm12 }
 0x52a   : > { %4616 = vst.msk [vmem:[#allocation4 + $0xd0] sm:$0xff] %vm1690_vm15, %v4547_v15  ;;  %v4553_v33 = vpop.permute.xlu0 %4552  ;;  %v5210_v15 = vld [vmem:[#allocation2 + $0xc1] sm:$0xff]  ;;  %vm9861_vm9 = vmmov %vm9859_vm4 }
 0x52b   : > { %4619 = vst.msk [vmem:[#allocation4 + $0xe8] sm:$0xff] %vm1690_vm15, %v4553_v33  ;;  %5266 = vrot.lane.b32.xlu0 %v5200_v40, %s6579_s17  ;;  %v5211_v33 = vld [vmem:[#allocation2 + $0xc9] sm:$0xff]  ;;  %vm9863_vm8 = vmmov %vm9859_vm4 }
 0x52c   : > { %vm9865_vm7 = vmmov %vm9859_vm4 }
 0x52d   : > { %5268 = vrot.lane.b32.xlu1 %v5201_v46, %s6579_s17  ;;  %v4551_v0 = vpop.permute.xlu1 %4550 }
 0x52e   : > { %4618 = vst.msk [vmem:[#allocation4 + $0xe0] sm:$0xff] %vm1690_vm15, %v4551_v0  ;;  %v4557_v17 = vpop.permute.xlu0 %4556 }
 0x52f   : > { %4621 = vst.msk [vmem:[#allocation4 + $0xf8] sm:$0xff] %vm1690_vm15, %v4557_v17  ;;  %5458 = vrot.lane.b32.xlu0 %v5392_v2, %s6580_s18 }
 0x531   : > { %5460 = vrot.lane.b32.xlu1 %v5393_v27, %s6580_s18  ;;  %v4555_v52 = vpop.permute.xlu1 %4554  ;;  %v5212_v27 = vld [vmem:[#allocation2 + $0xd9] sm:$0xff] }
 0x532   : > { %4620 = vst.msk [vmem:[#allocation4 + $0xf0] sm:$0xff] %vm1690_vm15, %v4555_v52  ;;  %v4689_v49 = vpop.permute.xlu0 %4688  ;;  %v5213_v52 = vld [vmem:[#allocation2 + $0xe1] sm:$0xff]  ;;  %vm9857_vm15 = vmmov %vm9855_vm12 }
 0x533   : > { %4783 = vst.msk [vmem:[#allocation4 + $0x8] sm:$0xff] %vm1883_vm1, %v4689_v49  ;;  %5078 = vrot.lane.b32.xlu0 %v8345_v31, %s6577_s16  ;;  %v5394_v31 = vld [vmem:[#allocation2 + $0x62] sm:$0xff] }
 0x535   : > { %5080 = vrot.lane.b32.xlu1 %v8351_v14, %s6577_s16  ;;  %v4687_v1 = vpop.permute.xlu1 %4686  ;;  %v5395_v14 = vld [vmem:[#allocation2 + $0x6a] sm:$0xff] }
 0x536   : > { %4782 = vst.msk [vmem:[#allocation4] sm:$0xff] %vm1883_vm1, %v4687_v1  ;;  %v4693_v51 = vpop.permute.xlu0 %4692 }
 0x537   : > { %4785 = vst.msk [vmem:[#allocation4 + $0x18] sm:$0xff] %vm1883_vm1, %v4693_v51  ;;  %5270 = vrot.lane.b32.xlu0 %v5202_v43, %s6579_s17 }
 0x539   : > { %5272 = vrot.lane.b32.xlu1 %v5203_v9, %s6579_s17  ;;  %v4691_v57 = vpop.permute.xlu1 %4690 }
 0x53a   : > { %4784 = vst.msk [vmem:[#allocation4 + $0x10] sm:$0xff] %vm1883_vm1, %v4691_v57  ;;  %v4697_v32 = vpop.permute.xlu0 %4696 }
 0x53b   : > { %4787 = vst.msk [vmem:[#allocation4 + $0x28] sm:$0xff] %vm1883_vm1, %v4697_v32  ;;  %5462 = vrot.lane.b32.xlu0 %v5394_v31, %s6580_s18  ;;  %v5214_v32 = vld [vmem:[#allocation2 + $0xf1] sm:$0xff]  ;;  %v5215_v31 = vld [vmem:[#allocation2 + $0xf9] sm:$0xff] }
 0x53d   : > { %5464 = vrot.lane.b32.xlu1 %v5395_v14, %s6580_s18  ;;  %v4695_v10 = vpop.permute.xlu1 %4694 }
 0x53e   : > { %4786 = vst.msk [vmem:[#allocation4 + $0x20] sm:$0xff] %vm1883_vm1, %v4695_v10  ;;  %v4701_v18 = vpop.permute.xlu0 %4700 }
 0x53f   : > { %4789 = vst.msk [vmem:[#allocation4 + $0x38] sm:$0xff] %vm1883_vm1, %v4701_v18  ;;  %5082 = vrot.lane.b32.xlu0 %v8366_v5, %s6577_s16  ;;  %v5396_v5 = vld [vmem:[#allocation2 + $0x7a] sm:$0xff] }
 0x541   : > { %5084 = vrot.lane.b32.xlu1 %v8369_v23, %s6577_s16  ;;  %v4699_v45 = vpop.permute.xlu1 %4698  ;;  %v5397_v23 = vld [vmem:[#allocation2 + $0x82] sm:$0xff] }
 0x542   : > { %4788 = vst.msk [vmem:[#allocation4 + $0x30] sm:$0xff] %vm1883_vm1, %v4699_v45  ;;  %v4705_v39 = vpop.permute.xlu0 %4704 }
 0x543   : > { %4791 = vst.msk [vmem:[#allocation4 + $0x48] sm:$0xff] %vm1883_vm1, %v4705_v39  ;;  %5274 = vrot.lane.b32.xlu0 %v5204_v37, %s6579_s17 }
 0x545   : > { %5276 = vrot.lane.b32.xlu1 %v5205_v29, %s6579_s17  ;;  %v4703_v44 = vpop.permute.xlu1 %4702  ;;  %v5216_v29 = vld [vmem:[#allocation2 + $0x109] sm:$0xff] }
 0x546   : > { %4790 = vst.msk [vmem:[#allocation4 + $0x40] sm:$0xff] %vm1883_vm1, %v4703_v44  ;;  %v4709_v55 = vpop.permute.xlu0 %4708 }
 0x547   : > { %4793 = vst.msk [vmem:[#allocation4 + $0x58] sm:$0xff] %vm1883_vm1, %v4709_v55  ;;  %5466 = vrot.lane.b32.xlu0 %v5396_v5, %s6580_s18  ;;  %v5217_v5 = vld [vmem:[#allocation2 + $0x111] sm:$0xff] }
 0x549   : > { %5468 = vrot.lane.b32.xlu1 %v5397_v23, %s6580_s18  ;;  %v4707_v41 = vpop.permute.xlu1 %4706 }
 0x54a   : > { %4792 = vst.msk [vmem:[#allocation4 + $0x50] sm:$0xff] %vm1883_vm1, %v4707_v41  ;;  %v4713_v61 = vpop.permute.xlu0 %4712 }
 0x54b   : > { %4795 = vst.msk [vmem:[#allocation4 + $0x68] sm:$0xff] %vm1883_vm1, %v4713_v61  ;;  %5086 = vrot.lane.b32.xlu0 %v8386_v58, %s6577_s16  ;;  %v5398_v58 = vld [vmem:[#allocation2 + $0x92] sm:$0xff] }
 0x54d   : > { %5088 = vrot.lane.b32.xlu1 %v8393_v56, %s6577_s16  ;;  %v4711_v38 = vpop.permute.xlu1 %4710  ;;  %v5399_v56 = vld [vmem:[#allocation2 + $0x9a] sm:$0xff] }
 0x54e   : > { %4794 = vst.msk [vmem:[#allocation4 + $0x60] sm:$0xff] %vm1883_vm1, %v4711_v38  ;;  %v4717_v19 = vpop.permute.xlu0 %4716 }
 0x54f   : > { %4797 = vst.msk [vmem:[#allocation4 + $0x78] sm:$0xff] %vm1883_vm1, %v4717_v19  ;;  %5278 = vrot.lane.b32.xlu0 %v5206_v25, %s6579_s17 }
 0x551   : > { %5280 = vrot.lane.b32.xlu1 %v5207_v53, %s6579_s17  ;;  %v4715_v42 = vpop.permute.xlu1 %4714  ;;  %v5027_v53 = vld [vmem:[#allocation2 + $0x128] sm:$0xff] }
 0x552   : > { %4796 = vst.msk [vmem:[#allocation4 + $0x70] sm:$0xff] %vm1883_vm1, %v4715_v42  ;;  %v4721_v48 = vpop.permute.xlu0 %4720  ;;  %v5218_v42 = vld [vmem:[#allocation2 + $0x121] sm:$0xff] }
 0x553   : > { %4799 = vst.msk [vmem:[#allocation4 + $0x88] sm:$0xff] %vm1883_vm1, %v4721_v48  ;;  %5470 = vrot.lane.b32.xlu0 %v5398_v58, %s6580_s18 }
 0x555   : > { %5472 = vrot.lane.b32.xlu1 %v5399_v56, %s6580_s18  ;;  %v4719_v4 = vpop.permute.xlu1 %4718  ;;  %v5219_v56 = vld [vmem:[#allocation2 + $0x129] sm:$0xff] }
 0x556   : > { %4798 = vst.msk [vmem:[#allocation4 + $0x80] sm:$0xff] %vm1883_vm1, %v4719_v4  ;;  %v4725_v16 = vpop.permute.xlu0 %4724 }
 0x557   : > { %4801 = vst.msk [vmem:[#allocation4 + $0x98] sm:$0xff] %vm1883_vm1, %v4725_v16  ;;  %5090 = vrot.lane.b32.xlu0 %v8415_v47, %s6577_s16  ;;  %v5400_v47 = vld [vmem:[#allocation2 + $0xaa] sm:$0xff] }
 0x559   : > { %5092 = vrot.lane.b32.xlu1 %v8420_v28, %s6577_s16  ;;  %v4723_v62 = vpop.permute.xlu1 %4722  ;;  %v5401_v28 = vld [vmem:[#allocation2 + $0xb2] sm:$0xff] }
 0x55a   : > { %4800 = vst.msk [vmem:[#allocation4 + $0x90] sm:$0xff] %vm1883_vm1, %v4723_v62  ;;  %v4729_v8 = vpop.permute.xlu0 %4728  ;;  %v5411_v62 = vld [vmem:[#allocation2 + $0x12a] sm:$0xff] }
 0x55b   : > { %4803 = vst.msk [vmem:[#allocation4 + $0xa8] sm:$0xff] %vm1883_vm1, %v4729_v8  ;;  %5282 = vrot.lane.b32.xlu0 %v5208_v3, %s6579_s17 }
 0x55d   : > { %5284 = vrot.lane.b32.xlu1 %v5209_v59, %s6579_s17  ;;  %v4727_v12 = vpop.permute.xlu1 %4726 }
 0x55e   : > { %4802 = vst.msk [vmem:[#allocation4 + $0xa0] sm:$0xff] %vm1883_vm1, %v4727_v12  ;;  %v4733_v20 = vpop.permute.xlu0 %4732  ;;  %v5028_v12 = vld [vmem:[#allocation2 + $0x138] sm:$0xff] }
 0x55f   : > { %4805 = vst.msk [vmem:[#allocation4 + $0xb8] sm:$0xff] %vm1883_vm1, %v4733_v20  ;;  %5474 = vrot.lane.b32.xlu0 %v5400_v47, %s6580_s18 }
 0x561   : > { %5476 = vrot.lane.b32.xlu1 %v5401_v28, %s6580_s18  ;;  %v4731_v11 = vpop.permute.xlu1 %4730  ;;  %v5029_v28 = vld [vmem:[#allocation2 + $0x140] sm:$0xff] }
 0x562   : > { %4804 = vst.msk [vmem:[#allocation4 + $0xb0] sm:$0xff] %vm1883_vm1, %v4731_v11  ;;  %v4737_v60 = vpop.permute.xlu0 %4736  ;;  %v5220_v11 = vld [vmem:[#allocation2 + $0x139] sm:$0xff] }
 0x563   : > { %4807 = vst.msk [vmem:[#allocation4 + $0xc8] sm:$0xff] %vm1883_vm1, %v4737_v60  ;;  %5094 = vrot.lane.b32.xlu0 %v8430_v13, %s6577_s16  ;;  %v5402_v13 = vld [vmem:[#allocation2 + $0xc2] sm:$0xff] }
 0x565   : > { %5096 = vrot.lane.b32.xlu1 %v8437_v63, %s6577_s16  ;;  %v4735_v6 = vpop.permute.xlu1 %4734  ;;  %v5403_v63 = vld [vmem:[#allocation2 + $0xca] sm:$0xff] }
 0x566   : > { %4806 = vst.msk [vmem:[#allocation4 + $0xc0] sm:$0xff] %vm1883_vm1, %v4735_v6  ;;  %v4741_v50 = vpop.permute.xlu0 %4740 }
 0x567   : > { %4809 = vst.msk [vmem:[#allocation4 + $0xd8] sm:$0xff] %vm1883_vm1, %v4741_v50  ;;  %5286 = vrot.lane.b32.xlu0 %v5210_v15, %s6579_s17  ;;  %v5221_v15 = vld [vmem:[#allocation2 + $0x141] sm:$0xff] }
 0x569   : > { %5288 = vrot.lane.b32.xlu1 %v5211_v33, %s6579_s17  ;;  %v4739_v40 = vpop.permute.xlu1 %4738  ;;  %v5412_v33 = vld [vmem:[#allocation2 + $0x13a] sm:$0xff] }
 0x56a   : > { %4808 = vst.msk [vmem:[#allocation4 + $0xd0] sm:$0xff] %vm1883_vm1, %v4739_v40  ;;  %v4745_v7 = vpop.permute.xlu0 %4744 }
 0x56b   : > { %4811 = vst.msk [vmem:[#allocation4 + $0xe8] sm:$0xff] %vm1883_vm1, %v4745_v7  ;;  %5478 = vrot.lane.b32.xlu0 %v5402_v13, %s6580_s18 }
 0x56d   : > { %5480 = vrot.lane.b32.xlu1 %v5403_v63, %s6580_s18  ;;  %v4743_v46 = vpop.permute.xlu1 %4742  ;;  %v5413_v63 = vld [vmem:[#allocation2 + $0x142] sm:$0xff] }
 0x56e   : > { %4810 = vst.msk [vmem:[#allocation4 + $0xe0] sm:$0xff] %vm1883_vm1, %v4743_v46  ;;  %v4749_v0 = vpop.permute.xlu0 %4748 }
 0x56f   : > { %4813 = vst.msk [vmem:[#allocation4 + $0xf8] sm:$0xff] %vm1883_vm1, %v4749_v0  ;;  %5098 = vrot.lane.b32.xlu0 %v8459_v21, %s6577_s16  ;;  %v5404_v21 = vld [vmem:[#allocation2 + $0xda] sm:$0xff] }
 0x571   : > { %5100 = vrot.lane.b32.xlu1 %v8465_v34, %s6577_s16  ;;  %v4747_v17 = vpop.permute.xlu1 %4746  ;;  %v5405_v34 = vld [vmem:[#allocation2 + $0xe2] sm:$0xff] }
 0x572   : > { %4812 = vst.msk [vmem:[#allocation4 + $0xf0] sm:$0xff] %vm1883_vm1, %v4747_v17  ;;  %v4881_v2 = vpop.permute.xlu0 %4880  ;;  %vm9858_vm1 = vmmov %vm9856_vm14  ;;  %v5030_v17 = vld [vmem:[#allocation2 + $0x150] sm:$0xff] }
 0x573   : > { %4975 = vst.msk [vmem:[#allocation4 + $0x8] sm:$0xff] %vm2076_vm2, %v4881_v2  ;;  %5290 = vrot.lane.b32.xlu0 %v5212_v27, %s6579_s17  ;;  %vm9860_vm11 = vmmov %vm9858_vm1 }
 0x574   : > { %vm9862_vm10 = vmmov %vm9858_vm1 }
 0x575   : > { %5292 = vrot.lane.b32.xlu1 %v5213_v52, %s6579_s17  ;;  %v4879_v49 = vpop.permute.xlu1 %4878  ;;  %vm9864_vm6 = vmmov %vm9858_vm1 }
 0x576   : > { %4974 = vst.msk [vmem:[#allocation4] sm:$0xff] %vm2076_vm2, %v4879_v49  ;;  %v4885_v1 = vpop.permute.xlu0 %4884  ;;  %v5031_v49 = vld [vmem:[#allocation2 + $0x158] sm:$0xff] }
 0x577   : > { %4977 = vst.msk [vmem:[#allocation4 + $0x18] sm:$0xff] %vm2076_vm2, %v4885_v1  ;;  %5482 = vrot.lane.b32.xlu0 %v5404_v21, %s6580_s18  ;;  %v5222_v1 = vld [vmem:[#allocation2 + $0x151] sm:$0xff] }
 0x579   : > { %5484 = vrot.lane.b32.xlu1 %v5405_v34, %s6580_s18  ;;  %v4883_v51 = vpop.permute.xlu1 %4882 }
 0x57a   : > { %4976 = vst.msk [vmem:[#allocation4 + $0x10] sm:$0xff] %vm2076_vm2, %v4883_v51  ;;  %v4889_v43 = vpop.permute.xlu0 %4888  ;;  %v5223_v51 = vld [vmem:[#allocation2 + $0x159] sm:$0xff] }
 0x57b   : > { %4979 = vst.msk [vmem:[#allocation4 + $0x28] sm:$0xff] %vm2076_vm2, %v4889_v43  ;;  %5102 = vrot.lane.b32.xlu0 %v8485_v26, %s6577_s16  ;;  %v5406_v26 = vld [vmem:[#allocation2 + $0xf2] sm:$0xff] }
 0x57d   : > { %5104 = vrot.lane.b32.xlu1 %v8489_v22, %s6577_s16  ;;  %v4887_v9 = vpop.permute.xlu1 %4886  ;;  %v5407_v22 = vld [vmem:[#allocation2 + $0xfa] sm:$0xff] }
 0x57e   : > { %4978 = vst.msk [vmem:[#allocation4 + $0x20] sm:$0xff] %vm2076_vm2, %v4887_v9  ;;  %v4893_v57 = vpop.permute.xlu0 %4892  ;;  %v5414_v9 = vld [vmem:[#allocation2 + $0x152] sm:$0xff] }
 0x57f   : > { %4981 = vst.msk [vmem:[#allocation4 + $0x38] sm:$0xff] %vm2076_vm2, %v4893_v57  ;;  %5294 = vrot.lane.b32.xlu0 %v5214_v32, %s6579_s17 }
 0x581   : > { %5296 = vrot.lane.b32.xlu1 %v5215_v31, %s6579_s17  ;;  %v4891_v14 = vpop.permute.xlu1 %4890  ;;  %v5415_v31 = vld [vmem:[#allocation2 + $0x15a] sm:$0xff] }
 0x582   : > { %4980 = vst.msk [vmem:[#allocation4 + $0x30] sm:$0xff] %vm2076_vm2, %v4891_v14  ;;  %v4897_v10 = vpop.permute.xlu0 %4896 }
 0x583   : > { %4983 = vst.msk [vmem:[#allocation4 + $0x48] sm:$0xff] %vm2076_vm2, %v4897_v10  ;;  %5486 = vrot.lane.b32.xlu0 %v5406_v26, %s6580_s18 }
 0x585   : > { %5488 = vrot.lane.b32.xlu1 %v5407_v22, %s6580_s18  ;;  %v4895_v18 = vpop.permute.xlu1 %4894 }
 0x586   : > { %4982 = vst.msk [vmem:[#allocation4 + $0x40] sm:$0xff] %vm2076_vm2, %v4895_v18  ;;  %v4901_v45 = vpop.permute.xlu0 %4900 }
 0x587   : > { %4985 = vst.msk [vmem:[#allocation4 + $0x58] sm:$0xff] %vm2076_vm2, %v4901_v45  ;;  %4916 = vrot.lane.b32.xlu0 %v5407_v22, %s6576_s15  ;;  %v5032_v22 = vld [vmem:[#allocation2 + $0x168] sm:$0xff] }
 0x589   : > { %5106 = vrot.lane.b32.xlu1 %v8509_v24, %s6577_s16  ;;  %v4899_v39 = vpop.permute.xlu1 %4898  ;;  %v5408_v24 = vld [vmem:[#allocation2 + $0x10a] sm:$0xff] }
 0x58a   : > { %4984 = vst.msk [vmem:[#allocation4 + $0x50] sm:$0xff] %vm2076_vm2, %v4899_v39  ;;  %v4905_v37 = vpop.permute.xlu0 %4904  ;;  %v5033_v39 = vld [vmem:[#allocation2 + $0x170] sm:$0xff] }
 0x58b   : > { %4987 = vst.msk [vmem:[#allocation4 + $0x68] sm:$0xff] %vm2076_vm2, %v4905_v37  ;;  %5108 = vrot.lane.b32.xlu0 %v8511_v30, %s6577_s16  ;;  %v5409_v30 = vld [vmem:[#allocation2 + $0x112] sm:$0xff] }
 0x58d   : > { %5298 = vrot.lane.b32.xlu1 %v5216_v29, %s6579_s17  ;;  %v4903_v44 = vpop.permute.xlu1 %4902  ;;  %v5224_v29 = vld [vmem:[#allocation2 + $0x169] sm:$0xff] }
 0x58e   : > { %4986 = vst.msk [vmem:[#allocation4 + $0x60] sm:$0xff] %vm2076_vm2, %v4903_v44  ;;  %v4909_v55 = vpop.permute.xlu0 %4908 }
 0x58f   : > { %4989 = vst.msk [vmem:[#allocation4 + $0x78] sm:$0xff] %vm2076_vm2, %v4909_v55  ;;  %5300 = vrot.lane.b32.xlu0 %v5217_v5, %s6579_s17  ;;  %v5225_v5 = vld [vmem:[#allocation2 + $0x171] sm:$0xff] }
 0x591   : > { %5490 = vrot.lane.b32.xlu1 %v5408_v24, %s6580_s18  ;;  %v4907_v23 = vpop.permute.xlu1 %4906 }
 0x592   : > { %4988 = vst.msk [vmem:[#allocation4 + $0x70] sm:$0xff] %vm2076_vm2, %v4907_v23  ;;  %v4913_v41 = vpop.permute.xlu0 %4912 }
 0x593   : > { %4991 = vst.msk [vmem:[#allocation4 + $0x88] sm:$0xff] %vm2076_vm2, %v4913_v41  ;;  %4918 = vrot.lane.b32.xlu0 %v5408_v24, %s6576_s15  ;;  %v5416_v24 = vld [vmem:[#allocation2 + $0x16a] sm:$0xff] }
 0x595   : > { %5492 = vrot.lane.b32.xlu1 %v5409_v30, %s6580_s18  ;;  %v4911_v61 = vpop.permute.xlu1 %4910 }
 0x596   : > { %4990 = vst.msk [vmem:[#allocation4 + $0x80] sm:$0xff] %vm2076_vm2, %v4911_v61  ;;  %v5071_v38 = vpop.permute.xlu0 %5070  ;;  %v5417_v61 = vld [vmem:[#allocation2 + $0x172] sm:$0xff] }
 0x597   : > { %5166 = vst.msk [vmem:[#allocation4] sm:$0xff] %vm2270_vm3, %v5071_v38  ;;  %4920 = vrot.lane.b32.xlu0 %v5409_v30, %s6576_s15 }
 0x599   : > { %5110 = vrot.lane.b32.xlu1 %v8535_v54, %s6577_s16  ;;  %v4915_v19 = vpop.permute.xlu1 %4914  ;;  %v5410_v54 = vld [vmem:[#allocation2 + $0x122] sm:$0xff] }
 0x59a   : > { %4992 = vst.msk [vmem:[#allocation4 + $0x90] sm:$0xff] %vm2076_vm2, %v4915_v19  ;;  %v5263_v25 = vpop.permute.xlu0 %5262 }
 0x59b   : > { %5358 = vst.msk [vmem:[#allocation4] sm:$0xff] %vm2463_vm5, %v5263_v25  ;;  %5112 = vrot.lane.b32.xlu0 %v5027_v53, %s6577_s16  ;;  %v5034_v53 = vld [vmem:[#allocation2 + $0x180] sm:$0xff] }
 0x59d   : > { %5302 = vrot.lane.b32.xlu1 %v5218_v42, %s6579_s17  ;;  %v5073_v48 = vpop.permute.xlu1 %5072 }
 0x59e   : > { %5167 = vst.msk [vmem:[#allocation4 + $0x8] sm:$0xff] %vm2270_vm3, %v5073_v48  ;;  %v5455_v58 = vpop.permute.xlu0 %5454 }
 0x59f   : > { %5550 = vst.msk [vmem:[#allocation4] sm:$0xff] %vm9854_vm13, %v5455_v58  ;;  %5304 = vrot.lane.b32.xlu0 %v5219_v56, %s6579_s17  ;;  %vm9866_vm13 = vmmov %vm9858_vm1  ;;  %v5035_v58 = vld [vmem:[#allocation2 + $0x188] sm:$0xff] }
 0x5a1   : > { %5494 = vrot.lane.b32.xlu1 %v5410_v54, %s6580_s18  ;;  %v5265_v4 = vpop.permute.xlu1 %5264 }
 0x5a2   : > { %5359 = vst.msk [vmem:[#allocation4 + $0x8] sm:$0xff] %vm2463_vm5, %v5265_v4  ;;  %v5075_v16 = vpop.permute.xlu0 %5074 }
 0x5a3   : > { %5168 = vst.msk [vmem:[#allocation4 + $0x10] sm:$0xff] %vm2270_vm3, %v5075_v16  ;;  %4922 = vrot.lane.b32.xlu0 %v5410_v54, %s6576_s15  ;;  %v5418_v16 = vld [vmem:[#allocation2 + $0x182] sm:$0xff] }
 0x5a5   : > { %5496 = vrot.lane.b32.xlu1 %v5411_v62, %s6580_s18  ;;  %v5457_v8 = vpop.permute.xlu1 %5456 }
 0x5a6   : > { %5551 = vst.msk [vmem:[#allocation4 + $0x8] sm:$0xff] %vm9855_vm12, %v5457_v8  ;;  %v5267_v3 = vpop.permute.xlu0 %5266  ;;  %v5582_v59 = vld [vmem:[#allocation4] sm:$0xff]  ;;  %vm9867_vm12 = vmmov %vm9859_vm4  ;;  %v3546_v8 = vld [vmem:[#allocation3] sm:$0xff] }
 0x5a7   : > { %5360 = vst.msk [vmem:[#allocation4 + $0x10] sm:$0xff] %vm2463_vm5, %v5267_v3  ;;  %4924 = vrot.lane.b32.xlu0 %v5411_v62, %s6576_s15  ;;  %6479 = vmatprep.mubr.msk.f32.mxu1 %vm9856_vm14, %v5582_v59  ;;  %vm9868_vm14 = vmmov %vm9858_vm1  ;;  %v3582_v3 = vld [vmem:[#allocation3 + $0x1] sm:$0xff] }
 0x5a9   : > { %5114 = vrot.lane.b32.xlu1 %v5028_v12, %s6577_s16  ;;  %v5077_v20 = vpop.permute.xlu1 %5076  ;;  %v3548_v12 = vld [vmem:[#allocation3 + $0x18] sm:$0xff] }
 0x5aa   : > { %5169 = vst.msk [vmem:[#allocation4 + $0x18] sm:$0xff] %vm2270_vm3, %v5077_v20  ;;  %v5459_v47 = vpop.permute.xlu0 %5458  ;;  %v3584_v20 = vld [vmem:[#allocation3 + $0x19] sm:$0xff] }
 0x5ab   : > { %5552 = vst.msk [vmem:[#allocation4 + $0x10] sm:$0xff] %vm9857_vm15, %v5459_v47  ;;  %5116 = vrot.lane.b32.xlu0 %v5029_v28, %s6577_s16  ;;  %vm9869_vm15 = vmmov %vm9859_vm4  ;;  %v3547_v47 = vld [vmem:[#allocation3 + $0x8] sm:$0xff]  ;;  %v5419_v28 = vld [vmem:[#allocation2 + $0x18a] sm:$0xff] }
 0x5ad   : > { %5306 = vrot.lane.b32.xlu1 %v5220_v11, %s6579_s17  ;;  %v5269_v60 = vpop.permute.xlu1 %5268  ;;  %v5583_v6 = vld [vmem:[#allocation4 + $0x8] sm:$0xff]  ;;  %v3549_v11 = vld [vmem:[#allocation3 + $0x20] sm:$0xff] }
 0x5ae   : > { %5361 = vst.msk [vmem:[#allocation4 + $0x18] sm:$0xff] %vm2463_vm5, %v5269_v60  ;;  %v5079_v50 = vpop.permute.xlu0 %5078  ;;  %6480 = vmatmul.mubr.msk.f32.vlgmr.msra.gmra.mrb[0].mxu1 %vm9858_vm1, %v5583_v6  ;;  %v3585_v60 = vld [vmem:[#allocation3 + $0x21] sm:$0xff] }
 0x5af   : > { %5170 = vst.msk [vmem:[#allocation4 + $0x20] sm:$0xff] %vm2270_vm3, %v5079_v50  ;;  %5308 = vrot.lane.b32.xlu0 %v5221_v15, %s6579_s17  ;;  %v3550_v50 = vld [vmem:[#allocation3 + $0x30] sm:$0xff] }
 0x5b0   : > { %v3586_v15 = vld [vmem:[#allocation3 + $0x31] sm:$0xff] }
 0x5b1   : > { %5498 = vrot.lane.b32.xlu1 %v5412_v33, %s6580_s18  ;;  %v5461_v40 = vpop.permute.xlu1 %5460 }
 0x5b2   : > { %5553 = vst.msk [vmem:[#allocation4 + $0x18] sm:$0xff] %vm9859_vm4, %v5461_v40  ;;  %v5271_v7 = vpop.permute.xlu0 %5270  ;;  %v5584_v13 = vld [vmem:[#allocation4 + $0x10] sm:$0xff]  ;;  %v3620_v40 = vadd.f32 %v3584_v20, %v3548_v12 }
 0x5b3   : > { %5362 = vst.msk [vmem:[#allocation4 + $0x20] sm:$0xff] %vm2463_vm5, %v5271_v7  ;;  %4926 = vrot.lane.b32.xlu0 %v5412_v33, %s6576_s15  ;;  %6482 = vmatprep.mubr.msk.f32.mxu1 %vm9860_vm11, %v5584_v13  ;;  %vm9870_vm11 = vmmov %vm9858_vm1  ;;  %v3618_v33 = vadd.f32 %v3582_v3, %v3546_v8  ;;  %v3654_v7 = vld [vmem:[#allocation3 + $0x2] sm:$0xff] }
 0x5b5   : > { %5500 = vrot.lane.b32.xlu1 %v5413_v63, %s6580_s18  ;;  %v5081_v46 = vpop.permute.xlu1 %5080 }
 0x5b6   : > { %5171 = vst.msk [vmem:[#allocation4 + $0x28] sm:$0xff] %vm2270_vm3, %v5081_v46  ;;  %v5463_v0 = vpop.permute.xlu0 %5462  ;;  %v3551_v46 = vld [vmem:[#allocation3 + $0x38] sm:$0xff] }
 0x5b7   : > { %5554 = vst.msk [vmem:[#allocation4 + $0x20] sm:$0xff] %vm9861_vm9, %v5463_v0  ;;  %4928 = vrot.lane.b32.xlu0 %v5413_v63, %s6576_s15  ;;  %vm9871_vm9 = vmmov %vm9859_vm4  ;;  %v5036_v63 = vld [vmem:[#allocation2 + $0x198] sm:$0xff]  ;;  %v3587_v0 = vld [vmem:[#allocation3 + $0x39] sm:$0xff] }
 0x5b9   : > { %5118 = vrot.lane.b32.xlu1 %v5030_v17, %s6577_s16  ;;  %v5273_v2 = vpop.permute.xlu1 %5272  ;;  %v5585_v27 = vld [vmem:[#allocation4 + $0x18] sm:$0xff] }
 0x5ba   : > { %5363 = vst.msk [vmem:[#allocation4 + $0x28] sm:$0xff] %vm2463_vm5, %v5273_v2  ;;  %v5083_v52 = vpop.permute.xlu0 %5082  ;;  %6483 = vmatmul.mubr.msk.f32.gmra.mrb[2].mxu1 %vm9862_vm10, %v5585_v27  ;;  %vm9872_vm10 = vmmov %vm9858_vm1  ;;  %v3621_v2 = vadd.f32 %v3585_v60, %v3549_v11  ;;  %v3655_v27 = vld [vmem:[#allocation3 + $0xa] sm:$0xff]  ;;  %v3556_v11 = vld [vmem:[#allocation3 + $0x78] sm:$0xff] }
 0x5bb   : > { %5172 = vst.msk [vmem:[#allocation4 + $0x30] sm:$0xff] %vm2270_vm3, %v5083_v52  ;;  %5120 = vrot.lane.b32.xlu0 %v5031_v49, %s6577_s16  ;;  %v5037_v52 = vld [vmem:[#allocation2 + $0x1a0] sm:$0xff]  ;;  %v3656_v49 = vld [vmem:[#allocation3 + $0x1a] sm:$0xff] }
 0x5bc   : > { %v3592_v60 = vld [vmem:[#allocation3 + $0x79] sm:$0xff] }
 0x5bd   : > { %5310 = vrot.lane.b32.xlu1 %v5222_v1, %s6579_s17  ;;  %v5465_v21 = vpop.permute.xlu1 %5464  ;;  %v3658_v1 = vld [vmem:[#allocation3 + $0x32] sm:$0xff] }
 0x5be   : > { %5555 = vst.msk [vmem:[#allocation4 + $0x28] sm:$0xff] %vm9863_vm8, %v5465_v21  ;;  %v5275_v34 = vpop.permute.xlu0 %5274  ;;  %v5586_v43 = vld [vmem:[#allocation4 + $0x20] sm:$0xff]  ;;  %vm9873_vm8 = vmmov %vm9859_vm4  ;;  %v3657_v21 = vld [vmem:[#allocation3 + $0x22] sm:$0xff] }
 0x5bf   : > { %5364 = vst.msk [vmem:[#allocation4 + $0x30] sm:$0xff] %vm2463_vm5, %v5275_v34  ;;  %5312 = vrot.lane.b32.xlu0 %v5223_v51, %s6579_s17  ;;  %6485 = vmatprep.mubr.msk.f32.mxu1 %vm9864_vm6, %v5586_v43  ;;  %vm9874_vm6 = vmmov %vm9858_vm1  ;;  %v3622_v43 = vadd.f32 %v3586_v15, %v3550_v50 }
 0x5c1   : > { %5502 = vrot.lane.b32.xlu1 %v5414_v9, %s6580_s18  ;;  %v5085_v57 = vpop.permute.xlu1 %5084 }
 0x5c2   : > { %5173 = vst.msk [vmem:[#allocation4 + $0x38] sm:$0xff] %vm2270_vm3, %v5085_v57  ;;  %v5467_v32 = vpop.permute.xlu0 %5466  ;;  %v3692_v57 = vadd.f32 %v3656_v49, %v3620_v40  ;;  %v3663_v40 = vld [vmem:[#allocation3 + $0x6a] sm:$0xff] }
 0x5c3   : > { %5556 = vst.msk [vmem:[#allocation4 + $0x30] sm:$0xff] %vm9865_vm7, %v5467_v32  ;;  %4930 = vrot.lane.b32.xlu0 %v5414_v9, %s6576_s15  ;;  %vm9875_vm7 = vmmov %vm9859_vm4  ;;  %v3690_v9 = vadd.f32 %v3654_v7, %v3618_v33  ;;  %v3623_v32 = vadd.f32 %v3587_v0, %v3551_v46  ;;  %v3558_v49 = vld [vmem:[#allocation3 + $0x90] sm:$0xff] }
 0x5c5   : > { %5504 = vrot.lane.b32.xlu1 %v5415_v31, %s6580_s18  ;;  %v5277_v14 = vpop.permute.xlu1 %5276  ;;  %v5587_v10 = vld [vmem:[#allocation4 + $0x28] sm:$0xff] }
 0x5c6   : > { %5365 = vst.msk [vmem:[#allocation4 + $0x38] sm:$0xff] %vm2463_vm5, %v5277_v14  ;;  %v5087_v26 = vpop.permute.xlu0 %5086  ;;  %6486 = vmatmul.mubr.msk.f32.gmra.mrb[4].mxu1 %vm9866_vm13, %v5587_v10  ;;  %v3588_v14 = vld [vmem:[#allocation3 + $0x49] sm:$0xff]  ;;  %vm9876_vm13 = vmmov %vm9858_vm1 }
 0x5c7   : > { %5174 = vst.msk [vmem:[#allocation4 + $0x40] sm:$0xff] %vm2270_vm3, %v5087_v26  ;;  %4932 = vrot.lane.b32.xlu0 %v5415_v31, %s6576_s15  ;;  %v3552_v31 = vld [vmem:[#allocation3 + $0x48] sm:$0xff] }
 0x5c8   : > { %v5228_v26 = vld [vmem:[#allocation2 + $0x199] sm:$0xff] }
 0x5c9   : > { %5122 = vrot.lane.b32.xlu1 %v5032_v22, %s6577_s16  ;;  %v5469_v18 = vpop.permute.xlu1 %5468  ;;  %v3553_v22 = vld [vmem:[#allocation3 + $0x50] sm:$0xff] }
 0x5ca   : > { %5557 = vst.msk [vmem:[#allocation4 + $0x38] sm:$0xff] %vm9867_vm12, %v5469_v18  ;;  %v5279_v45 = vpop.permute.xlu0 %5278  ;;  %v5588_v37 = vld [vmem:[#allocation4 + $0x30] sm:$0xff]  ;;  %v3589_v18 = vld [vmem:[#allocation3 + $0x51] sm:$0xff]  ;;  %vm9877_vm12 = vmmov %vm9859_vm4 }
 0x5cb   : > { %5366 = vst.msk [vmem:[#allocation4 + $0x40] sm:$0xff] %vm2463_vm5, %v5279_v45  ;;  %5124 = vrot.lane.b32.xlu0 %v5033_v39, %s6577_s16  ;;  %6488 = vmatprep.mubr.msk.f32.mxu1 %vm9868_vm14, %v5588_v37  ;;  %v3694_v45 = vadd.f32 %v3658_v1, %v3622_v43  ;;  %v3693_v37 = vadd.f32 %v3657_v21, %v3621_v2  ;;  %vm9878_vm14 = vmmov %vm9858_vm1  ;;  %v3595_v43 = vld [vmem:[#allocation3 + $0x99] sm:$0xff] }
 0x5cd   : > { %5314 = vrot.lane.b32.xlu1 %v5224_v29, %s6579_s17  ;;  %v5089_v44 = vpop.permute.xlu1 %5088  ;;  %v5229_v29 = vld [vmem:[#allocation2 + $0x1a1] sm:$0xff] }
 0x5ce   : > { %5175 = vst.msk [vmem:[#allocation4 + $0x48] sm:$0xff] %vm2270_vm3, %v5089_v44  ;;  %v5471_v55 = vpop.permute.xlu0 %5470  ;;  %v3659_v44 = vld [vmem:[#allocation3 + $0x3a] sm:$0xff] }
 0x5cf   : > { %5558 = vst.msk [vmem:[#allocation4 + $0x40] sm:$0xff] %vm9869_vm15, %v5471_v55  ;;  %5316 = vrot.lane.b32.xlu0 %v5225_v5, %s6579_s17  ;;  %v3660_v55 = vld [vmem:[#allocation3 + $0x4a] sm:$0xff]  ;;  %vm9879_vm15 = vmmov %vm9859_vm4 }
 0x5d1   : > { %5506 = vrot.lane.b32.xlu1 %v5416_v24, %s6580_s18  ;;  %v5281_v23 = vpop.permute.xlu1 %5280  ;;  %v5589_v41 = vld [vmem:[#allocation4 + $0x38] sm:$0xff] }
 0x5d2   : > { %5367 = vst.msk [vmem:[#allocation4 + $0x48] sm:$0xff] %vm2463_vm5, %v5281_v23  ;;  %v5091_v30 = vpop.permute.xlu0 %5090  ;;  %6489 = vmatmul.mubr.msk.f32.gmra.mrb[6].mxu1 %vm9858_vm1, %v5589_v41  ;;  %v3695_v23 = vadd.f32 %v3659_v44, %v3623_v32  ;;  %v3624_v41 = vadd.f32 %v3588_v14, %v3552_v31  ;;  %v3665_v31 = vld [vmem:[#allocation3 + $0x82] sm:$0xff] }
 0x5d3   : > { %5176 = vst.msk [vmem:[#allocation4 + $0x50] sm:$0xff] %vm2270_vm3, %v5091_v30  ;;  %4934 = vrot.lane.b32.xlu0 %v5416_v24, %s6576_s15  ;;  %v3726_v24 = vadd.f32 %v3692_v57, %v3690_v9  ;;  %v3625_v30 = vadd.f32 %v3589_v18, %v3553_v22  ;;  %v3596_v44 = vld [vmem:[#allocation3 + $0xa9] sm:$0xff] }
 0x5d4   : > { %v3729_v15 = vadd.f32 %v3695_v23, %v3693_v37 }
 0x5d5   : > { %5508 = vrot.lane.b32.xlu1 %v5417_v61, %s6580_s18  ;;  %v5473_v38 = vpop.permute.xlu1 %5472 }
 0x5d6   : > { %5559 = vst.msk [vmem:[#allocation4 + $0x48] sm:$0xff] %vm9859_vm4, %v5473_v38  ;;  %v5283_v19 = vpop.permute.xlu0 %5282  ;;  %v5590_v25 = vld [vmem:[#allocation4 + $0x40] sm:$0xff]  ;;  %v3555_v38 = vld [vmem:[#allocation3 + $0x68] sm:$0xff] }
 0x5d7   : > { %5368 = vst.msk [vmem:[#allocation4 + $0x50] sm:$0xff] %vm2463_vm5, %v5283_v19  ;;  %4936 = vrot.lane.b32.xlu0 %v5417_v61, %s6576_s15  ;;  %6491 = vmatprep.mubr.msk.f32.mxu1 %vm9870_vm11, %v5590_v25  ;;  %v3554_v61 = vld [vmem:[#allocation3 + $0x60] sm:$0xff]  ;;  %v3591_v19 = vld [vmem:[#allocation3 + $0x69] sm:$0xff]  ;;  %vm9880_vm11 = vmmov %vm9858_vm1 }
 0x5d8   : > { %v3627_v8 = vadd.f32 %v3591_v19, %v3555_v38 }
 0x5d9   : > { %5126 = vrot.lane.b32.xlu1 %v5034_v53, %s6577_s16  ;;  %v5093_v42 = vpop.permute.xlu1 %5092 }
 0x5da   : > { %5177 = vst.msk [vmem:[#allocation4 + $0x58] sm:$0xff] %vm2270_vm3, %v5093_v42  ;;  %v5475_v48 = vpop.permute.xlu0 %5474  ;;  %v5420_v42 = vld [vmem:[#allocation2 + $0x19a] sm:$0xff]  ;;  %v9388_v7 = vadd.f32 %v3663_v40, %v3627_v8 }
 0x5db   : > { %5560 = vst.msk [vmem:[#allocation4 + $0x50] sm:$0xff] %vm9871_vm9, %v5475_v48  ;;  %5128 = vrot.lane.b32.xlu0 %v5035_v58, %s6577_s16  ;;  %v3590_v48 = vld [vmem:[#allocation3 + $0x61] sm:$0xff]  ;;  %v3758_v58 = vadd.f32 %v3726_v24, %v3694_v45  ;;  %vm9881_vm9 = vmmov %vm9859_vm4 }
 0x5dc   : > { %v3626_v20 = vadd.f32 %v3590_v48, %v3554_v61 }
 0x5dd   : > { %5318 = vrot.lane.b32.xlu1 %v9050_v36, %s6579_s17  ;;  %v5285_v56 = vpop.permute.xlu1 %5284  ;;  %v5591_v54 = vld [vmem:[#allocation4 + $0x48] sm:$0xff] }
 0x5de   : > { %5369 = vst.msk [vmem:[#allocation4 + $0x58] sm:$0xff] %vm2463_vm5, %v5285_v56  ;;  %v5095_v4 = vpop.permute.xlu0 %5094  ;;  %6492 = vmatmul.mubr.msk.f32.gmra.mrb[8].mxu1 %vm9872_vm10, %v5591_v54  ;;  %v3696_v54 = vadd.f32 %v3660_v55, %v3624_v41  ;;  %v3597_v41 = vld [vmem:[#allocation3 + $0xb1] sm:$0xff]  ;;  %vm9882_vm10 = vmmov %vm9858_vm1 }
 0x5df   : > { %5178 = vst.msk [vmem:[#allocation4 + $0x60] sm:$0xff] %vm2270_vm3, %v5095_v4  ;;  %5320 = vrot.lane.b32.xlu0 %v9055_v35, %s6579_s17  ;;  %v3583_v35 = vld [vmem:[#allocation3 + $0x9] sm:$0xff]  ;;  %v5421_v4 = vld [vmem:[#allocation2 + $0x1a2] sm:$0xff] }
 0x5e0   : > { %v3619_v17 = vadd.f32 %v3583_v35, %v3547_v47  ;;  %v3557_v47 = vld [vmem:[#allocation3 + $0x80] sm:$0xff] }
 0x5e1   : > { %v5477_v62 = vpop.permute.xlu1 %5476  ;;  %5510 = vrot.lane.b32.xlu1 %v5418_v16, %s6580_s18  ;;  %v3593_v35 = vld [vmem:[#allocation3 + $0x81] sm:$0xff] }
 0x5e2   : > { %5561 = vst.msk [vmem:[#allocation4 + $0x58] sm:$0xff] %vm9873_vm8, %v5477_v62  ;;  %v5287_v36 = vpop.permute.xlu0 %5286  ;;  %v5592_v59 = vld [vmem:[#allocation4 + $0x50] sm:$0xff]  ;;  %v3691_v39 = vadd.f32 %v3655_v27, %v3619_v17  ;;  %v3730_v27 = vadd.f32 %v3696_v54, %v3694_v45  ;;  %vm9883_vm8 = vmmov %vm9859_vm4 }
 0x5e3   : > { %5370 = vst.msk [vmem:[#allocation4 + $0x60] sm:$0xff] %vm2463_vm5, %v5287_v36  ;;  %4938 = vrot.lane.b32.xlu0 %v5418_v16, %s6576_s15  ;;  %6494 = vmatprep.mubr.msk.f32.mxu1 %vm9874_vm6, %v5592_v59  ;;  %v3661_v16 = vld [vmem:[#allocation3 + $0x52] sm:$0xff]  ;;  %v3662_v62 = vld [vmem:[#allocation3 + $0x62] sm:$0xff]  ;;  %v3728_v59 = vadd.f32 %v3694_v45, %v3692_v57  ;;  %vm9884_vm6 = vmmov %vm9858_vm1 }
 0x5e4   : > { %v3727_v56 = vadd.f32 %v3693_v37, %v3691_v39  ;;  %v3697_v12 = vadd.f32 %v3661_v16, %v3625_v30  ;;  %v3698_v33 = vadd.f32 %v3662_v62, %v3626_v20  ;;  %v3563_v16 = vld [vmem:[#allocation3 + $0xc8] sm:$0xff] }
 0x5e5   : > { %v5097_v6 = vpop.permute.xlu1 %5096  ;;  %5512 = vrot.lane.b32.xlu1 %v5419_v28, %s6580_s18  ;;  %v3760_v50 = vadd.f32 %v3728_v59, %v3696_v54  ;;  %v3599_v62 = vld [vmem:[#allocation3 + $0xc9] sm:$0xff] }
 0x5e6   : > { %5179 = vst.msk [vmem:[#allocation4 + $0x68] sm:$0xff] %vm2270_vm3, %v5097_v6  ;;  %v5479_v13 = vpop.permute.xlu0 %5478  ;;  %v3759_v36 = vadd.f32 %v3727_v56, %v3695_v23  ;;  %v3790_v6 = vmul.f32 0.11111111, %v3758_v58  ;;  %v3761_v2 = vadd.f32 %v3729_v15, %v3697_v12  ;;  %v3731_v21 = vadd.f32 %v3697_v12, %v3695_v23  ;;  %v3561_v23 = vld [vmem:[#allocation3 + $0xb0] sm:$0xff] }
 0x5e7   : > { %5562 = vst.msk [vmem:[#allocation4 + $0x60] sm:$0xff] %vm9875_vm7, %v5479_v13  ;;  %4940 = vrot.lane.b32.xlu0 %v5419_v28, %s6576_s15  ;;  %v3664_v13 = vld [vmem:[#allocation3 + $0x7a] sm:$0xff]  ;;  %v3792_v9 = vmul.f32 0.11111111, %v3760_v50  ;;  %v3762_v57 = vadd.f32 %v3730_v27, %v3698_v33  ;;  %v3732_v45 = vadd.f32 %v3698_v33, %v3696_v54  ;;  %v3733_v24 = vadd.f32 %v9388_v7, %v3697_v12  ;;  %vm9885_vm7 = vmmov %vm9858_vm1 }
 0x5e8   : > { %v3791_v0 = vmul.f32 0.11111111, %v3759_v36  ;;  %v3763_v14 = vadd.f32 %v3731_v21, %v9388_v7  ;;  %v3793_v18 = vmul.f32 0.11111111, %v3761_v2  ;;  %v3598_v36 = vld [vmem:[#allocation3 + $0xc1] sm:$0xff] }
 0x5e9   : > { %v5289_v34 = vpop.permute.xlu1 %5288  ;;  %5130 = vrot.lane.b32.xlu1 %v5036_v63, %s6577_s16  ;;  %v5593_v51 = vld [vmem:[#allocation4 + $0x58] sm:$0xff]  ;;  %v3629_v63 = vadd.f32 %v3593_v35, %v3557_v47  ;;  %v3794_v30 = vmul.f32 0.11111111, %v3762_v57 }
 0x5ea   : > { %5371 = vst.msk [vmem:[#allocation4 + $0x68] sm:$0xff] %vm2463_vm5, %v5289_v34  ;;  %v5099_v10 = vpop.permute.xlu0 %5098  ;;  %6495 = vmatmul.mubr.msk.f32.gmra.mrb[10].mxu1 %vm9876_vm13, %v5593_v51  ;;  %v3594_v34 = vld [vmem:[#allocation3 + $0x91] sm:$0xff]  ;;  %v3795_v19 = vmul.f32 0.11111111, %v3763_v14  ;;  %vm9886_vm13 = vmmov %vm9859_vm4 }
 0x5eb   : > { %5180 = vst.msk [vmem:[#allocation4 + $0x70] sm:$0xff] %vm2270_vm3, %v5099_v10  ;;  %5132 = vrot.lane.b32.xlu0 %v5037_v52, %s6577_s16  ;;  %v3628_v52 = vadd.f32 %v3592_v60, %v3556_v11  ;;  %v3559_v51 = vld [vmem:[#allocation3 + $0x98] sm:$0xff]  ;;  %v9394_v10 = vadd.f32 %v3665_v31, %v3629_v63  ;;  %v3630_v39 = vadd.f32 %v3594_v34, %v3558_v49  ;;  %v3670_v11 = vld [vmem:[#allocation3 + $0xc2] sm:$0xff]  ;;  %v3566_v14 = vld [vmem:[#allocation3 + $0xf0] sm:$0xff] }
 0x5ec   : > { %v3631_v37 = vadd.f32 %v3595_v43, %v3559_v51  ;;  %v3635_v60 = vadd.f32 %v3599_v62, %v3563_v16  ;;  %v3565_v63 = vld [vmem:[#allocation3 + $0xe0] sm:$0xff] }
 0x5ed   : > { %v5481_v5 = vpop.permute.xlu1 %5480  ;;  %5322 = vrot.lane.b32.xlu1 %v5228_v26, %s6579_s17  ;;  %v3700_v32 = vadd.f32 %v3664_v13, %v3628_v52  ;;  %v3666_v26 = vld [vmem:[#allocation3 + $0x92] sm:$0xff]  ;;  %v3735_v20 = vadd.f32 %v9394_v10, %v9388_v7  ;;  %v3672_v34 = vld [vmem:[#allocation3 + $0xda] sm:$0xff] }
 0x5ee   : > { %5563 = vst.msk [vmem:[#allocation4 + $0x68] sm:$0xff] %vm9877_vm12, %v5481_v5  ;;  %v5291_v25 = vpop.permute.xlu0 %5290  ;;  %v5594_v53 = vld [vmem:[#allocation4 + $0x60] sm:$0xff]  ;;  %v3702_v38 = vadd.f32 %v3666_v26, %v3630_v39  ;;  %v3564_v7 = vld [vmem:[#allocation3 + $0xd8] sm:$0xff]  ;;  %vm9887_vm12 = vmmov %vm9859_vm4 }
 0x5ef   : > { %5372 = vst.msk [vmem:[#allocation4 + $0x70] sm:$0xff] %vm2463_vm5, %v5291_v25  ;;  %5324 = vrot.lane.b32.xlu0 %v5229_v29, %s6579_s17  ;;  %6497 = vmatprep.mubr.msk.f32.mxu1 %vm9878_vm14, %v5594_v53  ;;  %v3560_v29 = vld [vmem:[#allocation3 + $0xa8] sm:$0xff]  ;;  %v3764_v61 = vadd.f32 %v3732_v45, %v3700_v32  ;;  %v3765_v25 = vadd.f32 %v3733_v24, %v9394_v10  ;;  %v3667_v53 = vld [vmem:[#allocation3 + $0x9a] sm:$0xff]  ;;  %v3602_v26 = vld [vmem:[#allocation3 + $0xf1] sm:$0xff]  ;;  %s9505_s17 = scalar_lea.vmem %s9581_s7, %s6335_s26 }
 0x5f0   : > { %v3734_v58 = vadd.f32 %v3700_v32, %v3698_v33  ;;  %v3703_v56 = vadd.f32 %v3667_v53, %v3631_v37  ;;  %v3632_v54 = vadd.f32 %v3596_v44, %v3560_v29  ;;  %v3736_v33 = vadd.f32 %v3702_v38, %v3700_v32  ;;  %v3603_v39 = vld [vmem:[#allocation3 + $0xf9] sm:$0xff]  ;;  %vm9888_vm14 = vmmov %vm9858_vm1 }
 0x5f1   : > { %v5101_v3 = vpop.permute.xlu1 %5100  ;;  %5514 = vrot.lane.b32.xlu1 %v5420_v42, %s6580_s18  ;;  %v3668_v42 = vld [vmem:[#allocation3 + $0xaa] sm:$0xff]  ;;  %v3796_v59 = vmul.f32 0.11111111, %v3764_v61  ;;  %v3797_v35 = vmul.f32 0.11111111, %v3765_v25 }
 0x5f2   : > { %5181 = vst.msk [vmem:[#allocation4 + $0x78] sm:$0xff] %vm2270_vm3, %v5101_v3  ;;  %v5483_v28 = vpop.permute.xlu0 %5482  ;;  %v3562_v3 = vld [vmem:[#allocation3 + $0xc0] sm:$0xff]  ;;  %v3766_v12 = vadd.f32 %v3734_v58, %v3702_v38  ;;  %v3704_v47 = vadd.f32 %v3668_v42, %v3632_v54  ;;  %v3767_v15 = vadd.f32 %v3735_v20, %v3703_v56  ;;  %v3737_v52 = vadd.f32 %v3703_v56, %v9394_v10  ;;  %v3567_v10 = vld [vmem:[#allocation3 + $0xf8] sm:$0xff]  ;;  %v3568_v25 = vld [vmem:[#allocation3 + $0x108] sm:$0xff] }
 0x5f3   : > { %5564 = vst.msk [vmem:[#allocation4 + $0x70] sm:$0xff] %vm9879_vm15, %v5483_v28  ;;  %5516 = vrot.lane.b32.xlu0 %v5421_v4, %s6580_s18  ;;  %v3633_v4 = vadd.f32 %v3597_v41, %v3561_v23  ;;  %v3669_v28 = vld [vmem:[#allocation3 + $0xb2] sm:$0xff]  ;;  %v3634_v13 = vadd.f32 %v3598_v36, %v3562_v3  ;;  %v3675_v3 = vld [vmem:[#allocation3 + $0xfa] sm:$0xff]  ;;  %v3676_v36 = vld [vmem:[#allocation3 + $0x10a] sm:$0xff] }
 0x5f4   : > { %v3798_v2 = vmul.f32 0.11111111, %v3766_v12  ;;  %v3768_v27 = vadd.f32 %v3736_v33, %v3704_v47  ;;  %v3738_v32 = vadd.f32 %v3704_v47, %v3702_v38  ;;  %v3674_v23 = vld [vmem:[#allocation3 + $0xf2] sm:$0xff]  ;;  %v3638_v38 = vadd.f32 %v3602_v26, %v3566_v14  ;;  %v3679_v26 = vld [vmem:[#allocation3 + $0x12a] sm:$0xff]  ;;  %vm9889_vm15 = vmmov %vm9858_vm1 }
 0x5f5   : > { %v5293_v46 = vpop.permute.xlu1 %5292  ;;  %5945 = vperm.xlu1 %6562, %v3790_v6   ;;  %v5595_v17 = vld [vmem:[#allocation4 + $0x68] sm:$0xff]  ;;  %v3705_v40 = vadd.f32 %v3669_v28, %v3633_v4  ;;  %v3706_v49 = vadd.f32 %v3670_v11, %v3634_v13  ;;  %v3569_v58 = vld [vmem:[#allocation3 + $0x110] sm:$0xff]  ;;  %v3571_v11 = vld [vmem:[#allocation3 + $0x128] sm:$0xff] }
 0x5f6   : > { %5373 = vst.msk [vmem:[#allocation4 + $0x78] sm:$0xff] %vm2463_vm5, %v5293_v46  ;;  %v5103_v1 = vpop.permute.xlu0 %5102  ;;  %6498 = vmatmul.mubr.msk.f32.gmra.mrb[12].mxu1 %vm9858_vm1, %v5595_v17  ;;  %v3601_v46 = vld [vmem:[#allocation3 + $0xe1] sm:$0xff]  ;;  %v3600_v17 = vld [vmem:[#allocation3 + $0xd9] sm:$0xff]  ;;  %v3800_v37 = vmul.f32 0.11111111, %v3768_v27  ;;  %v3710_v16 = vadd.f32 %v3674_v23, %v3638_v38  ;;  %vm9890_vm1 = vmmov %vm9859_vm4 }
 0x5f7   : > { %5182 = vst.msk [vmem:[#allocation4 + $0x80] sm:$0xff] %vm2270_vm3, %v5103_v1  ;;  %5950 = vperm.xlu0 %6561, %v3791_v0   ;;  %v3671_v1 = vld [vmem:[#allocation3 + $0xca] sm:$0xff]  ;;  %v3637_v51 = vadd.f32 %v3601_v46, %v3565_v63  ;;  %v3769_v57 = vadd.f32 %v3737_v52, %v3705_v40  ;;  %v3636_v31 = vadd.f32 %v3600_v17, %v3564_v7  ;;  %v3678_v7 = vld [vmem:[#allocation3 + $0x122] sm:$0xff] }
 0x5f8   : > { %v9409_v21 = vadd.f32 %v3671_v1, %v3635_v60  ;;  %v3739_v45 = vadd.f32 %v3705_v40, %v3703_v56  ;;  %v3770_v29 = vadd.f32 %v3738_v32, %v3706_v49  ;;  %v3740_v61 = vadd.f32 %v3706_v49, %v3704_v47  ;;  %v3605_v56 = vld [vmem:[#allocation3 + $0x111] sm:$0xff]  ;;  %v3607_v60 = vld [vmem:[#allocation3 + $0x129] sm:$0xff] }
 0x5f9   : > { %v5485_v22 = vpop.permute.xlu1 %5484  ;;  %5955 = vperm.xlu1 %6562, %v3792_v9   ;;  %v3799_v9 = vmul.f32 0.11111111, %v3767_v15  ;;  %v3708_v44 = vadd.f32 %v3672_v34, %v3636_v31  ;;  %v3641_v28 = vadd.f32 %v3605_v56, %v3569_v58  ;;  %v3606_v15 = vld [vmem:[#allocation3 + $0x121] sm:$0xff]  ;;  %v3643_v17 = vadd.f32 %v3607_v60, %v3571_v11 }
 0x5fa   : > { %5565 = vst.msk [vmem:[#allocation4 + $0x78] sm:$0xff] %vm9859_vm4, %v5485_v22  ;;  %v5295_v55 = vpop.permute.xlu0 %5294  ;;  %v5596_v5 = vld [vmem:[#allocation4 + $0x70] sm:$0xff]  ;;  %v3741_v42 = vadd.f32 %v9409_v21, %v3705_v40  ;;  %v3802_v54 = vmul.f32 0.11111111, %v3770_v29  ;;  %vm9891_vm4 = vmmov %vm9890_vm1 }
 0x5fb   : > { %5374 = vst.msk [vmem:[#allocation4 + $0x80] sm:$0xff] %vm2463_vm5, %v5295_v55  ;;  %5960 = vperm.xlu0 %6561, %v3793_v18   ;;  %6500 = vmatprep.mubr.msk.f32.mxu1 %vm9880_vm11, %v5596_v5  ;;  %v3673_v55 = vld [vmem:[#allocation3 + $0xe2] sm:$0xff]  ;;  %v3771_v5 = vadd.f32 %v3739_v45, %v9409_v21  ;;  %v3772_v4 = vadd.f32 %v3740_v61, %v3708_v44  ;;  %vm9892_vm11 = vmmov %vm9884_vm6 }
 0x5fc   : > { %v9415_v24 = vadd.f32 %v3673_v55, %v3637_v51  ;;  %v3742_v20 = vadd.f32 %v3708_v44, %v3706_v49  ;;  %v3744_v52 = vadd.f32 %v3710_v16, %v3708_v44  ;;  %v3573_v34 = vld [vmem:[#allocation3 + $0x140] sm:$0xff]  ;;  %v3574_v55 = vld [vmem:[#allocation3 + $0x150] sm:$0xff] }
 0x5fd   : > { %v5105_v48 = vpop.permute.xlu1 %5104  ;;  %5965 = vperm.xlu1 %6562, %v3794_v30   ;;  %v3801_v30 = vmul.f32 0.11111111, %v3769_v57  ;;  %v3803_v62 = vmul.f32 0.11111111, %v3771_v5  ;;  %v3804_v33 = vmul.f32 0.11111111, %v3772_v4 }
 0x5fe   : > { %5183 = vst.msk [vmem:[#allocation4 + $0x88] sm:$0xff] %vm2270_vm3, %v5105_v48  ;;  %v5487_v8 = vpop.permute.xlu0 %5486  ;;  %v3604_v48 = vld [vmem:[#allocation3 + $0x109] sm:$0xff]  ;;  %v3774_v40 = vadd.f32 %v3742_v20, %v3710_v16  ;;  %v3743_v13 = vadd.f32 %v9415_v24, %v9409_v21  ;;  %v3609_v51 = vld [vmem:[#allocation3 + $0x141] sm:$0xff]  ;;  %v3608_v57 = vld [vmem:[#allocation3 + $0x139] sm:$0xff] }
 0x5ff   : > { %5566 = vst.msk [vmem:[#allocation4 + $0x80] sm:$0xff] %vm9881_vm9, %v5487_v8  ;;  %5970 = vperm.xlu0 %6561, %v3795_v19   ;;  %v3639_v19 = vadd.f32 %v3603_v39, %v3567_v10  ;;  %v3773_v8 = vadd.f32 %v3741_v42, %v9415_v24  ;;  %v3645_v45 = vadd.f32 %v3609_v51, %v3573_v34  ;;  %v3613_v20 = vld [vmem:[#allocation3 + $0x171] sm:$0xff]  ;;  %vm9893_vm9 = vmmov %vm9884_vm6 }
 0x600   : > { %v3806_v21 = vmul.f32 0.11111111, %v3774_v40  ;;  %v3580_v51 = vld [vmem:[#allocation3 + $0x198] sm:$0xff] }
 0x601   : > { %v5297_v6 = vpop.permute.xlu1 %5296  ;;  %5975 = vperm.xlu1 %6562, %v3796_v59   ;;  %v5597_v50 = vld [vmem:[#allocation4 + $0x78] sm:$0xff]  ;;  %v3711_v47 = vadd.f32 %v3675_v3, %v3639_v19  ;;  %v3805_v46 = vmul.f32 0.11111111, %v3773_v8 }
 0x602   : > { %5375 = vst.msk [vmem:[#allocation4 + $0x88] sm:$0xff] %vm2463_vm5, %v5297_v6  ;;  %v4917_v0 = vpop.permute.xlu0 %4916  ;;  %6501 = vmatmul.mubr.msk.f32.gmra.mrb[14].mxu1 %vm9882_vm10, %v5597_v50  ;;  %v3570_v50 = vld [vmem:[#allocation3 + $0x120] sm:$0xff]  ;;  %v3576_v8 = vld [vmem:[#allocation3 + $0x168] sm:$0xff]  ;;  %vm9894_vm10 = vmmov %vm9890_vm1 }
 0x603   : > { %4993 = vst.msk [vmem:[#allocation4 + $0x98] sm:$0xff] %vm2076_vm2, %v4917_v0  ;;  %5980 = vperm.xlu0 %6561, %v3797_v35   ;;  %v3640_v35 = vadd.f32 %v3604_v48, %v3568_v25  ;;  %v3677_v0 = vld [vmem:[#allocation3 + $0x112] sm:$0xff]  ;;  %v3775_v27 = vadd.f32 %v3743_v13, %v3711_v47  ;;  %v3642_v1 = vadd.f32 %v3606_v15, %v3570_v50  ;;  %v3681_v25 = vld [vmem:[#allocation3 + $0x142] sm:$0xff]  ;;  %v3684_v50 = vld [vmem:[#allocation3 + $0x16a] sm:$0xff] }
 0x604   : > { %v3713_v49 = vadd.f32 %v3677_v0, %v3641_v28  ;;  %v3745_v31 = vadd.f32 %v3711_v47, %v9415_v24  ;;  %v3611_v24 = vld [vmem:[#allocation3 + $0x159] sm:$0xff]  ;;  %v9434_v42 = vadd.f32 %v3681_v25, %v3645_v45 }
 0x605   : > { %v5489_v43 = vpop.permute.xlu1 %5488  ;;  %5985 = vperm.xlu1 %6562, %v3798_v2   ;;  %v3712_v63 = vadd.f32 %v3676_v36, %v3640_v35  ;;  %v3714_v14 = vadd.f32 %v3678_v7, %v3642_v1  ;;  %v3807_v39 = vmul.f32 0.11111111, %v3775_v27  ;;  %v3682_v48 = vld [vmem:[#allocation3 + $0x152] sm:$0xff]  ;;  %v3578_v0 = vld [vmem:[#allocation3 + $0x180] sm:$0xff]  ;;  %v3615_v27 = vld [vmem:[#allocation3 + $0x189] sm:$0xff] }
 0x606   : > { %5567 = vst.msk [vmem:[#allocation4 + $0x88] sm:$0xff] %vm9883_vm8, %v5489_v43  ;;  %v5109_v22 = vpop.permute.xlu0 %5108  ;;  %v5598_v18 = vld [vmem:[#allocation4 + $0x80] sm:$0xff]  ;;  %v3747_v23 = vadd.f32 %v3713_v49, %v3711_v47  ;;  %vm9895_vm8 = vmmov %vm9890_vm1 }
 0x607   : > { %5185 = vst.msk [vmem:[#allocation4 + $0x98] sm:$0xff] %vm2270_vm3, %v5109_v22  ;;  %5990 = vperm.xlu0 %6561, %v3799_v9   ;;  %6503 = vmatprep.mubr.msk.f32.mxu1 %vm9884_vm6, %v5598_v18  ;;  %v3572_v9 = vld [vmem:[#allocation3 + $0x138] sm:$0xff]  ;;  %v3776_v32 = vadd.f32 %v3744_v52, %v3712_v63  ;;  %v9429_v22 = vadd.f32 %v3679_v26, %v3643_v17  ;;  %v3614_v17 = vld [vmem:[#allocation3 + $0x181] sm:$0xff] }
 0x608   : > { %v3680_v18 = vld [vmem:[#allocation3 + $0x13a] sm:$0xff]  ;;  %v3746_v29 = vadd.f32 %v3712_v63, %v3710_v16  ;;  %v3644_v44 = vadd.f32 %v3608_v57, %v3572_v9  ;;  %v3748_v4 = vadd.f32 %v3714_v14, %v3712_v63 }
 0x609   : > { %v5107_v41 = vpop.permute.xlu1 %5106  ;;  %5995 = vperm.xlu1 %6562, %v3800_v37   ;;  %v3777_v37 = vadd.f32 %v3745_v31, %v3713_v49  ;;  %v3808_v61 = vmul.f32 0.11111111, %v3776_v32  ;;  %v3749_v36 = vadd.f32 %v9429_v22, %v3713_v49  ;;  %v3751_v1 = vadd.f32 %v9434_v42, %v9429_v22  ;;  %v3686_v32 = vld [vmem:[#allocation3 + $0x182] sm:$0xff] }
 0x60a   : > { %5184 = vst.msk [vmem:[#allocation4 + $0x90] sm:$0xff] %vm2270_vm3, %v5107_v41  ;;  %v5301_v53 = vpop.permute.xlu0 %5300  ;;  %v3610_v41 = vld [vmem:[#allocation3 + $0x151] sm:$0xff]  ;;  %v3778_v38 = vadd.f32 %v3746_v29, %v3714_v14  ;;  %v3716_v19 = vadd.f32 %v3680_v18, %v3644_v44  ;;  %v3650_v18 = vadd.f32 %v3614_v17, %v3578_v0 }
 0x60b   : > { %5377 = vst.msk [vmem:[#allocation4 + $0x98] sm:$0xff] %vm2463_vm5, %v5301_v53  ;;  %6000 = vperm.xlu0 %6561, %v3801_v30   ;;  %v3575_v30 = vld [vmem:[#allocation3 + $0x158] sm:$0xff]  ;;  %v3779_v53 = vadd.f32 %v3747_v23, %v9429_v22  ;;  %v3809_v56 = vmul.f32 0.11111111, %v3777_v37  ;;  %v3646_v16 = vadd.f32 %v3610_v41, %v3574_v55  ;;  %v3781_v60 = vadd.f32 %v3749_v36, %v9434_v42  ;;  %v3687_v41 = vld [vmem:[#allocation3 + $0x18a] sm:$0xff] }
 0x60c   : > { %v3810_v47 = vmul.f32 0.11111111, %v3778_v38  ;;  %v3780_v35 = vadd.f32 %v3748_v4, %v3716_v19  ;;  %v3750_v40 = vadd.f32 %v3716_v19, %v3714_v14  ;;  %v3688_v23 = vld [vmem:[#allocation3 + $0x19a] sm:$0xff] }
 0x60d   : > { %v5299_v59 = vpop.permute.xlu1 %5298  ;;  %6005 = vperm.xlu1 %6562, %v3802_v54   ;;  %v5599_v12 = vld [vmem:[#allocation4 + $0x88] sm:$0xff]  ;;  %v3718_v28 = vadd.f32 %v3682_v48, %v3646_v16  ;;  %v3811_v11 = vmul.f32 0.11111111, %v3779_v53  ;;  %v3813_v9 = vmul.f32 0.11111111, %v3781_v60 }
 0x60e   : > { %5376 = vst.msk [vmem:[#allocation4 + $0x90] sm:$0xff] %vm2463_vm5, %v5299_v59  ;;  %v4919_v6 = vpop.permute.xlu0 %4918  ;;  %6504 = vmatmul.mubr.msk.f32.gmra.mrb[16].mxu1 %vm9885_vm7, %v5599_v12  ;;  %v3612_v59 = vld [vmem:[#allocation3 + $0x169] sm:$0xff]  ;;  %v3812_v52 = vmul.f32 0.11111111, %v3780_v35  ;;  %vm9896_vm7 = vmmov %vm9884_vm6 }
 0x60f   : > { %4994 = vst.msk [vmem:[#allocation4 + $0xa0] sm:$0xff] %vm2076_vm2, %v4919_v6  ;;  %6010 = vperm.xlu0 %6561, %v3803_v62   ;;  %v3647_v62 = vadd.f32 %v3611_v24, %v3575_v30  ;;  %v3577_v12 = vld [vmem:[#allocation3 + $0x170] sm:$0xff]  ;;  %v3683_v6 = vld [vmem:[#allocation3 + $0x15a] sm:$0xff]  ;;  %v3648_v63 = vadd.f32 %v3612_v59, %v3576_v8  ;;  %v3782_v49 = vadd.f32 %v3750_v40, %v3718_v28 }
 0x610   : > { %v3752_v57 = vadd.f32 %v3718_v28, %v3716_v19 }
 0x611   : > { %v5491_v2 = vpop.permute.xlu1 %5490  ;;  %6015 = vperm.xlu1 %6562, %v3804_v33   ;;  %v3719_v13 = vadd.f32 %v3683_v6, %v3647_v62  ;;  %v3720_v34 = vadd.f32 %v3684_v50, %v3648_v63  ;;  %v3814_v22 = vmul.f32 0.11111111, %v3782_v49 }
 0x612   : > { %5568 = vst.msk [vmem:[#allocation4 + $0x90] sm:$0xff] %vm9886_vm13, %v5491_v2  ;;  %v4921_v43 = vpop.permute.xlu0 %4920  ;;  %v3579_v2 = vld [vmem:[#allocation3 + $0x188] sm:$0xff]  ;;  %vm9897_vm13 = vmmov %vm9890_vm1 }
 0x613   : > { %4995 = vst.msk [vmem:[#allocation4 + $0xa8] sm:$0xff] %vm2076_vm2, %v4921_v43  ;;  %6020 = vperm.xlu0 %6561, %v3805_v46   ;;  %v3649_v46 = vadd.f32 %v3613_v20, %v3577_v12  ;;  %v3616_v43 = vld [vmem:[#allocation3 + $0x199] sm:$0xff]  ;;  %v3783_v14 = vadd.f32 %v3751_v1, %v3719_v13  ;;  %v3651_v45 = vadd.f32 %v3615_v27, %v3579_v2 }
 0x614   : > { %v3652_v29 = vadd.f32 %v3616_v43, %v3580_v51  ;;  %v3784_v44 = vadd.f32 %v3752_v57, %v3720_v34  ;;  %v3753_v55 = vadd.f32 %v3719_v13, %v9434_v42  ;;  %v3754_v19 = vadd.f32 %v3720_v34, %v3718_v28 }
 0x615   : > { %v5493_v10 = vpop.permute.xlu1 %5492  ;;  %6025 = vperm.xlu1 %6562, %v3806_v21   ;;  %v3685_v21 = vld [vmem:[#allocation3 + $0x172] sm:$0xff]  ;;  %v3723_v25 = vadd.f32 %v3687_v41, %v3651_v45 }
 0x616   : > { %5569 = vst.msk [vmem:[#allocation4 + $0x98] sm:$0xff] %vm9887_vm12, %v5493_v10  ;;  %v5113_v5 = vpop.permute.xlu0 %5112  ;;  %v3721_v26 = vadd.f32 %v3685_v21, %v3649_v46  ;;  %v3581_v10 = vld [vmem:[#allocation3 + $0x1a0] sm:$0xff]  ;;  %v3724_v48 = vadd.f32 %v3688_v23, %v3652_v29  ;;  %vm9898_vm12 = vmmov %vm9890_vm1 }
 0x617   : > { %5187 = vst.msk [vmem:[#allocation4 + $0xa8] sm:$0xff] %vm2270_vm3, %v5113_v5  ;;  %6030 = vperm.xlu0 %6561, %v3807_v39   ;;  %v3617_v39 = vld [vmem:[#allocation3 + $0x1a1] sm:$0xff]  ;;  %v3722_v5 = vadd.f32 %v3686_v32, %v3650_v18 }
 0x618   : > { %v3653_v30 = vadd.f32 %v3617_v39, %v3581_v10  ;;  %v3785_v38 = vadd.f32 %v3753_v55, %v3721_v26  ;;  %v3757_v59 = vadd.f32 %v3723_v25, %v3721_v26 }
 0x619   : > { %v5111_v58 = vpop.permute.xlu1 %5110  ;;  %6035 = vperm.xlu1 %6562, %v3808_v61   ;;  %v5600_v54 = vld [vmem:[#allocation4 + $0x90] sm:$0xff]  ;;  %v3815_v61 = vmul.f32 0.11111111, %v3783_v14  ;;  %v3786_v42 = vadd.f32 %v3754_v19, %v3722_v5  ;;  %v3756_v4 = vadd.f32 %v3722_v5, %v3720_v34 }
 0x61a   : > { %5186 = vst.msk [vmem:[#allocation4 + $0xa0] sm:$0xff] %vm2270_vm3, %v5111_v58  ;;  %v5305_v3 = vpop.permute.xlu0 %5304  ;;  %6506 = vmatprep.mubr.msk.f32.mxu1 %vm9888_vm14, %v5600_v54  ;;  %v3689_v58 = vld [vmem:[#allocation3 + $0x1a2] sm:$0xff]  ;;  %v3755_v54 = vadd.f32 %v3721_v26, %v3719_v13  ;;  %v3817_v62 = vmul.f32 0.11111111, %v3785_v38  ;;  %vm9899_vm14 = vmmov %vm9884_vm6 }
 0x61b   : > { %5379 = vst.msk [vmem:[#allocation4 + $0xa8] sm:$0xff] %vm2463_vm5, %v5305_v3  ;;  %6040 = vperm.xlu0 %6561, %v3809_v56   ;;  %v3816_v56 = vmul.f32 0.11111111, %v3784_v44  ;;  %v3725_v36 = vadd.f32 %v3689_v58, %v3653_v30  ;;  %v3818_v20 = vmul.f32 0.11111111, %v3786_v42 }
 0x61c   : > { %v3787_v3 = vadd.f32 %v3755_v54, %v3723_v25 }
 0x61d   : > { %v5303_v15 = vpop.permute.xlu1 %5302  ;;  %6045 = vperm.xlu1 %6562, %v3810_v47   ;;  %v5601_v33 = vld [vmem:[#allocation4 + $0x98] sm:$0xff]  ;;  %v3788_v47 = vadd.f32 %v3756_v4, %v3724_v48  ;;  %v3789_v60 = vadd.f32 %v3757_v59, %v3725_v36 }
 0x61e   : > { %5378 = vst.msk [vmem:[#allocation4 + $0xa0] sm:$0xff] %vm2463_vm5, %v5303_v15  ;;  %v4923_v7 = vpop.permute.xlu0 %4922  ;;  %6507 = vmatmul.mubr.msk.f32.gmra.mrb[18].mxu1 %vm9889_vm15, %v5601_v33  ;;  %v3819_v28 = vmul.f32 0.11111111, %v3787_v3  ;;  %vm9900_vm15 = vmmov %vm9884_vm6 }
 0x61f   : > { %4996 = vst.msk [vmem:[#allocation4 + $0xb0] sm:$0xff] %vm2076_vm2, %v4923_v7  ;;  %6050 = vperm.xlu0 %6561, %v3811_v11   ;;  %v3820_v50 = vmul.f32 0.11111111, %v3788_v47  ;;  %v3821_v33 = vmul.f32 0.11111111, %v3789_v60 }
 0x621   : > { %v5495_v31 = vpop.permute.xlu1 %5494  ;;  %6055 = vperm.xlu1 %6562, %v3812_v52  }
 0x622   : > { %5570 = vst.msk [vmem:[#allocation4 + $0xa0] sm:$0xff] %vm9890_vm1, %v5495_v31  ;;  %v4925_v37 = vpop.permute.xlu0 %4924 }
 0x623   : > { %4997 = vst.msk [vmem:[#allocation4 + $0xb8] sm:$0xff] %vm2076_vm2, %v4925_v37  ;;  %6060 = vperm.xlu0 %6561, %v3813_v9  }
 0x625   : > { %v5497_v24 = vpop.permute.xlu1 %5496  ;;  %6065 = vperm.xlu1 %6562, %v3814_v22  }
 0x626   : > { %5571 = vst.msk [vmem:[#allocation4 + $0xa8] sm:$0xff] %vm9891_vm4, %v5497_v24  ;;  %v5117_v53 = vpop.permute.xlu0 %5116  ;;  %vm9901_vm4 = vmmov %vm9890_vm1 }
 0x627   : > { %5189 = vst.msk [vmem:[#allocation4 + $0xb8] sm:$0xff] %vm2270_vm3, %v5117_v53  ;;  %6070 = vperm.xlu0 %6561, %v3815_v61  }
 0x629   : > { %v5115_v16 = vpop.permute.xlu1 %5114  ;;  %6075 = vperm.xlu1 %6562, %v3816_v56   ;;  %v5602_v8 = vld [vmem:[#allocation4 + $0xa0] sm:$0xff] }
 0x62a   : > { %5188 = vst.msk [vmem:[#allocation4 + $0xb0] sm:$0xff] %vm2270_vm3, %v5115_v16  ;;  %v5309_v12 = vpop.permute.xlu0 %5308  ;;  %6509 = vmatprep.mubr.msk.f32.mxu1 %vm9892_vm11, %v5602_v8  ;;  %vm9902_vm11 = vmmov %vm9884_vm6 }
 0x62b   : > { %5381 = vst.msk [vmem:[#allocation4 + $0xb8] sm:$0xff] %vm2463_vm5, %v5309_v12  ;;  %6080 = vperm.xlu0 %6561, %v3817_v62  }
 0x62d   : > { %v5307_v35 = vpop.permute.xlu1 %5306  ;;  %6085 = vperm.xlu1 %6562, %v3818_v20   ;;  %v5603_v11 = vld [vmem:[#allocation4 + $0xa8] sm:$0xff] }
 0x62e   : > { %5380 = vst.msk [vmem:[#allocation4 + $0xb0] sm:$0xff] %vm2463_vm5, %v5307_v35  ;;  %v4927_v6 = vpop.permute.xlu0 %4926  ;;  %6510 = vmatmul.mubr.msk.f32.gmra.mrb[20].mxu1 %vm9893_vm9, %v5603_v11  ;;  %vm9903_vm9 = vmmov %vm9884_vm6 }
 0x62f   : > { %4998 = vst.msk [vmem:[#allocation4 + $0xc0] sm:$0xff] %vm2076_vm2, %v4927_v6  ;;  %6090 = vperm.xlu0 %6561, %v3819_v28  }
 0x631   : > { %v5499_v15 = vpop.permute.xlu1 %5498  ;;  %6095 = vperm.xlu1 %6562, %v3820_v50  }
 0x632   : > { %5572 = vst.msk [vmem:[#allocation4 + $0xb0] sm:$0xff] %vm9894_vm10, %v5499_v15  ;;  %v4929_v40 = vpop.permute.xlu0 %4928  ;;  %vm9904_vm10 = vmmov %vm9890_vm1 }
 0x633   : > { %4999 = vst.msk [vmem:[#allocation4 + $0xc8] sm:$0xff] %vm2076_vm2, %v4929_v40  ;;  %6100 = vperm.xlu0 %6561, %v3821_v33  }
 0x635   : > { %v5501_v13 = vpop.permute.xlu1 %5500 }
 0x636   : > { %5573 = vst.msk [vmem:[#allocation4 + $0xb8] sm:$0xff] %vm9895_vm8, %v5501_v13  ;;  %v5121_v63 = vpop.permute.xlu0 %5120  ;;  %vm9905_vm8 = vmmov %vm9890_vm1 }
 0x637   : > { %5191 = vst.msk [vmem:[#allocation4 + $0xc8] sm:$0xff] %vm2270_vm3, %v5121_v63 }
 0x639   : > { %v5119_v46 = vpop.permute.xlu1 %5118  ;;  %v5604_v0 = vld [vmem:[#allocation4 + $0xb0] sm:$0xff] }
 0x63a   : > { %5190 = vst.msk [vmem:[#allocation4 + $0xc0] sm:$0xff] %vm2270_vm3, %v5119_v46  ;;  %v5313_v7 = vpop.permute.xlu0 %5312  ;;  %6512 = vmatprep.mubr.msk.f32.mxu1 %vm9884_vm6, %v5604_v0 }
 0x63b   : > { %5383 = vst.msk [vmem:[#allocation4 + $0xc8] sm:$0xff] %vm2463_vm5, %v5313_v7 }
 0x63d   : > { %v5311_v17 = vpop.permute.xlu1 %5310  ;;  %v5605_v2 = vld [vmem:[#allocation4 + $0xb8] sm:$0xff] }
 0x63e   : > { %5382 = vst.msk [vmem:[#allocation4 + $0xc0] sm:$0xff] %vm2463_vm5, %v5311_v17  ;;  %v4931_v27 = vpop.permute.xlu0 %4930  ;;  %6513 = vmatmul.mubr.msk.f32.gmra.mrb[22].mxu1 %vm9896_vm7, %v5605_v2  ;;  %vm9907_vm7 = vmmov %vm9890_vm1 }
 0x63f   : > { %5000 = vst.msk [vmem:[#allocation4 + $0xd0] sm:$0xff] %vm2076_vm2, %v4931_v27 }
 0x641   : > { %v5503_v52 = vpop.permute.xlu1 %5502 }
 0x642   : > { %5574 = vst.msk [vmem:[#allocation4 + $0xc0] sm:$0xff] %vm9897_vm13, %v5503_v52  ;;  %v4933_v49 = vpop.permute.xlu0 %4932  ;;  %vm9908_vm13 = vmmov %vm9890_vm1 }
 0x643   : > { %5001 = vst.msk [vmem:[#allocation4 + $0xd8] sm:$0xff] %vm2076_vm2, %v4933_v49 }
 0x645   : > { %v5505_v1 = vpop.permute.xlu1 %5504 }
 0x646   : > { %5575 = vst.msk [vmem:[#allocation4 + $0xc8] sm:$0xff] %vm9898_vm12, %v5505_v1  ;;  %v5125_v34 = vpop.permute.xlu0 %5124 }
 0x647   : > { %5193 = vst.msk [vmem:[#allocation4 + $0xd8] sm:$0xff] %vm2270_vm3, %v5125_v34 }
 0x649   : > { %v5123_v51 = vpop.permute.xlu1 %5122  ;;  %v5606_v43 = vld [vmem:[#allocation4 + $0xc0] sm:$0xff] }
 0x64a   : > { %5192 = vst.msk [vmem:[#allocation4 + $0xd0] sm:$0xff] %vm2270_vm3, %v5123_v51  ;;  %v5317_v9 = vpop.permute.xlu0 %5316  ;;  %6515 = vmatprep.mubr.msk.f32.mxu1 %vm9899_vm14, %v5606_v43 }
 0x64b   : > { %5385 = vst.msk [vmem:[#allocation4 + $0xd8] sm:$0xff] %vm2463_vm5, %v5317_v9 }
 0x64d   : > { %v5315_v57 = vpop.permute.xlu1 %5314  ;;  %v5607_v21 = vld [vmem:[#allocation4 + $0xc8] sm:$0xff] }
 0x64e   : > { %5384 = vst.msk [vmem:[#allocation4 + $0xd0] sm:$0xff] %vm2463_vm5, %v5315_v57  ;;  %v4935_v32 = vpop.permute.xlu0 %4934  ;;  %6516 = vmatmul.mubr.msk.f32.gmra.mrb[24].mxu1 %vm9900_vm15, %v5607_v21 }
 0x64f   : > { %5002 = vst.msk [vmem:[#allocation4 + $0xe0] sm:$0xff] %vm2076_vm2, %v4935_v32 }
 0x651   : > { %v5507_v31 = vpop.permute.xlu1 %5506 }
 0x652   : > { %5576 = vst.msk [vmem:[#allocation4 + $0xd0] sm:$0xff] %vm9890_vm1, %v5507_v31  ;;  %v4937_v14 = vpop.permute.xlu0 %4936 }
 0x653   : > { %5003 = vst.msk [vmem:[#allocation4 + $0xe8] sm:$0xff] %vm2076_vm2, %v4937_v14 }
 0x655   : > { %v5509_v26 = vpop.permute.xlu1 %5508 }
 0x656   : > { %5577 = vst.msk [vmem:[#allocation4 + $0xd8] sm:$0xff] %vm9901_vm4, %v5509_v26  ;;  %v5129_v18 = vpop.permute.xlu0 %5128 }
 0x657   : > { %5195 = vst.msk [vmem:[#allocation4 + $0xe8] sm:$0xff] %vm2270_vm3, %v5129_v18 }
 0x659   : > { %v5127_v45 = vpop.permute.xlu1 %5126  ;;  %v5608_v10 = vld [vmem:[#allocation4 + $0xd0] sm:$0xff] }
 0x65a   : > { %5194 = vst.msk [vmem:[#allocation4 + $0xe0] sm:$0xff] %vm2270_vm3, %v5127_v45  ;;  %v5321_v39 = vpop.permute.xlu0 %5320  ;;  %6518 = vmatprep.mubr.msk.f32.mxu1 %vm9902_vm11, %v5608_v10 }
 0x65b   : > { %5387 = vst.msk [vmem:[#allocation4 + $0xe8] sm:$0xff] %vm2463_vm5, %v5321_v39 }
 0x65d   : > { %v5319_v37 = vpop.permute.xlu1 %5318  ;;  %v5609_v29 = vld [vmem:[#allocation4 + $0xd8] sm:$0xff] }
 0x65e   : > { %5386 = vst.msk [vmem:[#allocation4 + $0xe0] sm:$0xff] %vm2463_vm5, %v5319_v37  ;;  %v4939_v22 = vpop.permute.xlu0 %4938  ;;  %6519 = vmatmul.mubr.msk.f32.gmra.mrb[26].mxu1 %vm9903_vm9, %v5609_v29 }
 0x65f   : > { %5004 = vst.msk [vmem:[#allocation4 + $0xf0] sm:$0xff] %vm2076_vm2, %v4939_v22 }
 0x661   : > { %v5511_v44 = vpop.permute.xlu1 %5510 }
 0x662   : > { %5578 = vst.msk [vmem:[#allocation4 + $0xe0] sm:$0xff] %vm9904_vm10, %v5511_v44  ;;  %v4941_v55 = vpop.permute.xlu0 %4940 }
 0x663   : > { %5005 = vst.msk [vmem:[#allocation4 + $0xf8] sm:$0xff] %vm2076_vm2, %v4941_v55  ;;  %vm9906_vm2 = vmmov %vm9884_vm6 }
 0x664   : > { %vm9910_vm12 = vmmov %vm9906_vm2 }
 0x665   : > { %v5513_v5 = vpop.permute.xlu1 %5512 }
 0x666   : > { %5579 = vst.msk [vmem:[#allocation4 + $0xe8] sm:$0xff] %vm9905_vm8, %v5513_v5  ;;  %v5133_v23 = vpop.permute.xlu0 %5132 }
 0x667   : > { %5197 = vst.msk [vmem:[#allocation4 + $0xf8] sm:$0xff] %vm2270_vm3, %v5133_v23 }
 0x669   : > { %v5131_v41 = vpop.permute.xlu1 %5130  ;;  %v5610_v30 = vld [vmem:[#allocation4 + $0xe0] sm:$0xff] }
 0x66a   : > { %5196 = vst.msk [vmem:[#allocation4 + $0xf0] sm:$0xff] %vm2270_vm3, %v5131_v41  ;;  %6521 = vmatprep.mubr.msk.f32.mxu1 %vm9884_vm6, %v5610_v30  ;;  %v5325_v24 = vpop.permute.xlu0 %5324  ;;  %vm9909_vm3 = vmmov %vm9906_vm2 }
 0x66b   : > { %5389 = vst.msk [vmem:[#allocation4 + $0xf8] sm:$0xff] %vm2463_vm5, %v5325_v24 }
 0x66d   : > { %v5323_v61 = vpop.permute.xlu1 %5322  ;;  %v5611_v38 = vld [vmem:[#allocation4 + $0xe8] sm:$0xff] }
 0x66e   : > { %5388 = vst.msk [vmem:[#allocation4 + $0xf0] sm:$0xff] %vm2463_vm5, %v5323_v61  ;;  %6522 = vmatmul.mubr.msk.f32.gmra.mrb[28].mxu1 %vm9906_vm2, %v5611_v38  ;;  %v5517_v19 = vpop.permute.xlu0 %5516 }
 0x66f   : > { %5581 = vst.msk [vmem:[#allocation4 + $0xf8] sm:$0xff] %vm9907_vm7, %v5517_v19 }
 0x671   : > { %v5515_v25 = vpop.permute.xlu1 %5514 }
 0x672   : > { %5580 = vst.msk [vmem:[#allocation4 + $0xf0] sm:$0xff] %vm9908_vm13, %v5515_v25 }
 0x675   : > { %v5946_v42 = vpop.permute.xlu1 %5945 }
 0x676   : > { %v5613_v53 = vld [vmem:[#allocation4 + $0xf8] sm:$0xff]  ;;  %v5951_v58 = vpop.permute.xlu0 %5950 }
 0x679   : > { %v5612_v48 = vld [vmem:[#allocation4 + $0xf0] sm:$0xff]  ;;  %v5956_v59 = vpop.permute.xlu1 %5955 }
 0x67a   : > { %6524 = vmatprep.mubr.msk.f32.mxu1 %vm9909_vm3, %v5612_v48  ;;  %v5961_v3 = vpop.permute.xlu0 %5960 }
 0x67b   : > { %6525 = vmatmul.mubr.msk.f32.gmra.mrb[30].mxu1 %vm9910_vm12, %v5613_v53 }
 0x67d   : > { %v5966_v6 = vpop.permute.xlu1 %5965 }
 0x67e   : > { %v5971_v11 = vpop.permute.xlu0 %5970 }
 0x681   : > { %v6481_v56 = vpop.f32.mrb[0].mxu1  ;;  %v5976_v0 = vpop.permute.xlu1 %5975 }
 0x682   : > { %v6104_v54 = vmul.f32 %v6481_v56, %v5951_v58  ;;  %v5784_v4 = vpop.f32.mrb[1].mxu1  ;;  %v5981_v63 = vpop.permute.xlu0 %5980 }
 0x683   : > { %v6103_v16 = vmul.f32 %v5946_v42, %v5784_v4 }
 0x684   : > { %v6136_v62 = vmax.f32 %v6104_v54, 0.0 }
 0x685   : > { %v6135_v8 = vmax.f32 %v6103_v16, 0.0  ;;  %v5986_v34 = vpop.permute.xlu1 %5985 }
 0x686   : > { %6168 = vst.msk [vmem:[%s9505_s17 + $0x8] sm:$0xff] %vm279_vm0, %v6136_v62  ;;  %v5991_v49 = vpop.permute.xlu0 %5990 }
 0x687   : > { %6167 = vst.msk [vmem:[%s9505_s17] sm:$0xff] %vm279_vm0, %v6135_v8 }
 0x689   : > { %v5996_v14 = vpop.permute.xlu1 %5995 }
 0x68a   : > { %v6001_v32 = vpop.permute.xlu0 %6000 }
 0x68d   : > { %v6484_v36 = vpop.f32.mrb[2].mxu1  ;;  %v6006_v22 = vpop.permute.xlu1 %6005 }
 0x68e   : > { %v6106_v12 = vmul.f32 %v6484_v36, %v5961_v3  ;;  %v5794_v20 = vpop.f32.mrb[3].mxu1  ;;  %v6011_v37 = vpop.permute.xlu0 %6010 }
 0x68f   : > { %v6105_v47 = vmul.f32 %v5956_v59, %v5794_v20 }
 0x690   : > { %v6138_v35 = vmax.f32 %v6106_v12, 0.0 }
 0x691   : > { %v6137_v28 = vmax.f32 %v6105_v47, 0.0  ;;  %v6016_v61 = vpop.permute.xlu1 %6015 }
 0x692   : > { %6170 = vst.msk [vmem:[%s9505_s17 + $0x18] sm:$0xff] %vm279_vm0, %v6138_v35  ;;  %v6021_v30 = vpop.permute.xlu0 %6020 }
 0x693   : > { %6169 = vst.msk [vmem:[%s9505_s17 + $0x10] sm:$0xff] %vm279_vm0, %v6137_v28 }
 0x695   : > { %v6026_v42 = vpop.permute.xlu1 %6025 }
 0x696   : > { %v6031_v58 = vpop.permute.xlu0 %6030 }
 0x699   : > { %v6487_v60 = vpop.f32.mrb[4].mxu1  ;;  %v6036_v59 = vpop.permute.xlu1 %6035 }
 0x69a   : > { %v6108_v50 = vmul.f32 %v6487_v60, %v5971_v11  ;;  %v5804_v15 = vpop.f32.mrb[5].mxu1  ;;  %v6041_v3 = vpop.permute.xlu0 %6040 }
 0x69b   : > { %v6107_v33 = vmul.f32 %v5966_v6, %v5804_v15 }
 0x69c   : > { %v6140_v40 = vmax.f32 %v6108_v50, 0.0 }
 0x69d   : > { %v6139_v13 = vmax.f32 %v6107_v33, 0.0  ;;  %v6046_v6 = vpop.permute.xlu1 %6045 }
 0x69e   : > { %6172 = vst.msk [vmem:[%s9505_s17 + $0x28] sm:$0xff] %vm279_vm0, %v6140_v40  ;;  %v6051_v11 = vpop.permute.xlu0 %6050 }
 0x69f   : > { %6171 = vst.msk [vmem:[%s9505_s17 + $0x20] sm:$0xff] %vm279_vm0, %v6139_v13 }
 0x6a5   : > { %v6490_v46 = vpop.f32.mrb[6].mxu1 }
 0x6a6   : > { %v6110_v7 = vmul.f32 %v6490_v46, %v5981_v63  ;;  %v5814_v17 = vpop.f32.mrb[7].mxu1  ;;  %v6061_v63 = vpop.permute.xlu0 %6060 }
 0x6a7   : > { %v6109_v2 = vmul.f32 %v5976_v0, %v5814_v17  ;;  %v6056_v0 = vpop.permute.xlu1 %6055 }
 0x6a8   : > { %v6142_v27 = vmax.f32 %v6110_v7, 0.0 }
 0x6a9   : > { %v6141_v52 = vmax.f32 %v6109_v2, 0.0 }
 0x6aa   : > { %6174 = vst.msk [vmem:[%s9505_s17 + $0x38] sm:$0xff] %vm279_vm0, %v6142_v27 }
 0x6ab   : > { %6173 = vst.msk [vmem:[%s9505_s17 + $0x30] sm:$0xff] %vm279_vm0, %v6141_v52 }
 0x6b1   : > { %v6493_v1 = vpop.f32.mrb[8].mxu1 }
 0x6b2   : > { %v6112_v51 = vmul.f32 %v6493_v1, %v5991_v49  ;;  %v5824_v43 = vpop.f32.mrb[9].mxu1  ;;  %v6071_v49 = vpop.permute.xlu0 %6070 }
 0x6b3   : > { %v6111_v9 = vmul.f32 %v5986_v34, %v5824_v43  ;;  %v6066_v34 = vpop.permute.xlu1 %6065 }
 0x6b4   : > { %v6144_v57 = vmax.f32 %v6112_v51, 0.0 }
 0x6b5   : > { %v6143_v21 = vmax.f32 %v6111_v9, 0.0 }
 0x6b6   : > { %6176 = vst.msk [vmem:[%s9505_s17 + $0x48] sm:$0xff] %vm279_vm0, %v6144_v57 }
 0x6b7   : > { %6175 = vst.msk [vmem:[%s9505_s17 + $0x40] sm:$0xff] %vm279_vm0, %v6143_v21 }
 0x6bd   : > { %v6496_v31 = vpop.f32.mrb[10].mxu1 }
 0x6be   : > { %v6114_v26 = vmul.f32 %v6496_v31, %v6001_v32  ;;  %v5834_v18 = vpop.f32.mrb[11].mxu1  ;;  %v6081_v32 = vpop.permute.xlu0 %6080 }
 0x6bf   : > { %v6113_v45 = vmul.f32 %v5996_v14, %v5834_v18  ;;  %v6076_v14 = vpop.permute.xlu1 %6075 }
 0x6c0   : > { %v6146_v10 = vmax.f32 %v6114_v26, 0.0 }
 0x6c1   : > { %v6145_v39 = vmax.f32 %v6113_v45, 0.0 }
 0x6c2   : > { %6178 = vst.msk [vmem:[%s9505_s17 + $0x58] sm:$0xff] %vm279_vm0, %v6146_v10 }
 0x6c3   : > { %6177 = vst.msk [vmem:[%s9505_s17 + $0x50] sm:$0xff] %vm279_vm0, %v6145_v39 }
 0x6c9   : > { %v6499_v29 = vpop.f32.mrb[12].mxu1 }
 0x6ca   : > { %v6116_v44 = vmul.f32 %v6499_v29, %v6011_v37  ;;  %v5844_v55 = vpop.f32.mrb[13].mxu1  ;;  %v6091_v37 = vpop.permute.xlu0 %6090 }
 0x6cb   : > { %v6115_v5 = vmul.f32 %v6006_v22, %v5844_v55  ;;  %v6086_v22 = vpop.permute.xlu1 %6085 }
 0x6cc   : > { %v6148_v23 = vmax.f32 %v6116_v44, 0.0 }
 0x6cd   : > { %v6147_v41 = vmax.f32 %v6115_v5, 0.0 }
 0x6ce   : > { %6180 = vst.msk [vmem:[%s9505_s17 + $0x68] sm:$0xff] %vm279_vm0, %v6148_v23 }
 0x6cf   : > { %6179 = vst.msk [vmem:[%s9505_s17 + $0x60] sm:$0xff] %vm279_vm0, %v6147_v41 }
 0x6d5   : > { %v6502_v24 = vpop.f32.mrb[14].mxu1 }
 0x6d6   : > { %v6118_v38 = vmul.f32 %v6502_v24, %v6021_v30  ;;  %v5854_v19 = vpop.f32.mrb[15].mxu1  ;;  %v6101_v30 = vpop.permute.xlu0 %6100 }
 0x6d7   : > { %v6117_v25 = vmul.f32 %v6016_v61, %v5854_v19  ;;  %v6096_v61 = vpop.permute.xlu1 %6095 }
 0x6d8   : > { %v6150_v53 = vmax.f32 %v6118_v38, 0.0 }
 0x6d9   : > { %v6149_v48 = vmax.f32 %v6117_v25, 0.0 }
 0x6da   : > { %6182 = vst.msk [vmem:[%s9505_s17 + $0x78] sm:$0xff] %vm279_vm0, %v6150_v53 }
 0x6db   : > { %6181 = vst.msk [vmem:[%s9505_s17 + $0x70] sm:$0xff] %vm279_vm0, %v6149_v48 }
 0x6e1   : > { %v6505_v56 = vpop.f32.mrb[16].mxu1 }
 0x6e2   : > { %v6120_v54 = vmul.f32 %v6505_v56, %v6031_v58  ;;  %v5864_v4 = vpop.f32.mrb[17].mxu1 }
 0x6e3   : > { %v6119_v16 = vmul.f32 %v6026_v42, %v5864_v4 }
 0x6e4   : > { %v6152_v62 = vmax.f32 %v6120_v54, 0.0 }
 0x6e5   : > { %v6151_v8 = vmax.f32 %v6119_v16, 0.0 }
 0x6e6   : > { %6184 = vst.msk [vmem:[%s9505_s17 + $0x88] sm:$0xff] %vm279_vm0, %v6152_v62 }
 0x6e7   : > { %6183 = vst.msk [vmem:[%s9505_s17 + $0x80] sm:$0xff] %vm279_vm0, %v6151_v8 }
 0x6f1   : > { %v6508_v36 = vpop.f32.mrb[18].mxu1 }
 0x6f2   : > { %v6122_v12 = vmul.f32 %v6508_v36, %v6041_v3  ;;  %v5874_v20 = vpop.f32.mrb[19].mxu1 }
 0x6f3   : > { %v6121_v47 = vmul.f32 %v6036_v59, %v5874_v20 }
 0x6f4   : > { %v6154_v35 = vmax.f32 %v6122_v12, 0.0 }
 0x6f5   : > { %v6153_v28 = vmax.f32 %v6121_v47, 0.0 }
 0x6f6   : > { %6186 = vst.msk [vmem:[%s9505_s17 + $0x98] sm:$0xff] %vm279_vm0, %v6154_v35 }
 0x6f7   : > { %6185 = vst.msk [vmem:[%s9505_s17 + $0x90] sm:$0xff] %vm279_vm0, %v6153_v28 }
 0x701   : > { %v6511_v60 = vpop.f32.mrb[20].mxu1 }
 0x702   : > { %v6124_v50 = vmul.f32 %v6511_v60, %v6051_v11  ;;  %v5884_v15 = vpop.f32.mrb[21].mxu1 }
 0x703   : > { %v6123_v33 = vmul.f32 %v6046_v6, %v5884_v15 }
 0x704   : > { %v6156_v40 = vmax.f32 %v6124_v50, 0.0 }
 0x705   : > { %v6155_v13 = vmax.f32 %v6123_v33, 0.0 }
 0x706   : > { %6188 = vst.msk [vmem:[%s9505_s17 + $0xa8] sm:$0xff] %vm279_vm0, %v6156_v40 }
 0x707   : > { %6187 = vst.msk [vmem:[%s9505_s17 + $0xa0] sm:$0xff] %vm279_vm0, %v6155_v13 }
 0x711   : > { %v6514_v46 = vpop.f32.mrb[22].mxu1 }
 0x712   : > { %v6126_v7 = vmul.f32 %v6514_v46, %v6061_v63  ;;  %v5894_v17 = vpop.f32.mrb[23].mxu1 }
 0x713   : > { %v6125_v2 = vmul.f32 %v6056_v0, %v5894_v17 }
 0x714   : > { %v6158_v27 = vmax.f32 %v6126_v7, 0.0 }
 0x715   : > { %v6157_v52 = vmax.f32 %v6125_v2, 0.0 }
 0x716   : > { %6190 = vst.msk [vmem:[%s9505_s17 + $0xb8] sm:$0xff] %vm279_vm0, %v6158_v27 }
 0x717   : > { %6189 = vst.msk [vmem:[%s9505_s17 + $0xb0] sm:$0xff] %vm279_vm0, %v6157_v52 }
 0x721   : > { %v6517_v1 = vpop.f32.mrb[24].mxu1 }
 0x722   : > { %v6128_v51 = vmul.f32 %v6517_v1, %v6071_v49  ;;  %v5904_v43 = vpop.f32.mrb[25].mxu1 }
 0x723   : > { %v6127_v9 = vmul.f32 %v6066_v34, %v5904_v43 }
 0x724   : > { %v6160_v57 = vmax.f32 %v6128_v51, 0.0 }
 0x725   : > { %v6159_v21 = vmax.f32 %v6127_v9, 0.0 }
 0x726   : > { %6192 = vst.msk [vmem:[%s9505_s17 + $0xc8] sm:$0xff] %vm279_vm0, %v6160_v57 }
 0x727   : > { %6191 = vst.msk [vmem:[%s9505_s17 + $0xc0] sm:$0xff] %vm279_vm0, %v6159_v21 }
 0x731   : > { %v6520_v31 = vpop.f32.mrb[26].mxu1 }
 0x732   : > { %v6130_v26 = vmul.f32 %v6520_v31, %v6081_v32  ;;  %v5914_v18 = vpop.f32.mrb[27].mxu1 }
 0x733   : > { %v6129_v45 = vmul.f32 %v6076_v14, %v5914_v18 }
 0x734   : > { %v6162_v10 = vmax.f32 %v6130_v26, 0.0 }
 0x735   : > { %v6161_v39 = vmax.f32 %v6129_v45, 0.0 }
 0x736   : > { %6194 = vst.msk [vmem:[%s9505_s17 + $0xd8] sm:$0xff] %vm279_vm0, %v6162_v10 }
 0x737   : > { %6193 = vst.msk [vmem:[%s9505_s17 + $0xd0] sm:$0xff] %vm279_vm0, %v6161_v39 }
 0x741   : > { %v6523_v29 = vpop.f32.mrb[28].mxu1 }
 0x742   : > { %v6132_v44 = vmul.f32 %v6523_v29, %v6091_v37  ;;  %v5924_v55 = vpop.f32.mrb[29].mxu1 }
 0x743   : > { %v6131_v5 = vmul.f32 %v6086_v22, %v5924_v55 }
 0x744   : > { %v6164_v23 = vmax.f32 %v6132_v44, 0.0 }
 0x745   : > { %v6163_v41 = vmax.f32 %v6131_v5, 0.0 }
 0x746   : > { %6196 = vst.msk [vmem:[%s9505_s17 + $0xe8] sm:$0xff] %vm279_vm0, %v6164_v23 }
 0x747   : > { %6195 = vst.msk [vmem:[%s9505_s17 + $0xe0] sm:$0xff] %vm279_vm0, %v6163_v41 }
 0x74e   : > { %v6526_v24 = vpop.f32.mrb[30].mxu1 }
 0x74f   : > { %v6134_v38 = vmul.f32 %v6526_v24, %v6101_v30  ;;  %v5934_v19 = vpop.f32.mrb[31].mxu1 }
 0x750   : > { %v6133_v25 = vmul.f32 %v6096_v61, %v5934_v19 }
 0x751   : > { %v6166_v53 = vmax.f32 %v6134_v38, 0.0 }
 0x752   : > { %v6165_v48 = vmax.f32 %v6133_v25, 0.0 }
 0x753   : > { %6198 = vst.msk [vmem:[%s9505_s17 + $0xf8] sm:$0xff] %vm279_vm0, %v6166_v53 }
 0x754   : > { %6197 = vst.msk [vmem:[%s9505_s17 + $0xf0] sm:$0xff] %vm279_vm0, %v6165_v48 }
 0x755 PF: > { %s17_s24 = sadd.s32 1, %s6569_s24  }
 0x756   : > { %p14_p4 = scmp.ge.s32.totalorder %s17_s24, 4  }
 0x758   :  { %16 = sbr.rel (!%p14_p4) target bundleno = 1 (0x1), region = 83 }

</bundles_post_ra>
